<compile_context>
chip_gen: v7x
topology: tpu7x:2x2x1
jax: 0.10.0
libtpu: 0.0.40
codegen_flags: <defaults>
</compile_context>

<pallas_src>
import functools

import jax
import jax.numpy as jnp
from jax.experimental import pallas as pl
from jax.experimental.pallas import tpu as pltpu


def _tap_planes(ref, ci, H, Wl):
    """9 shifted (H, Wl) planes of channel `ci` of a zero-padded (C, H+2, Wl) ref.

    Tap t = (dy+1)*3 + (dx+1); plane[t][h, w] == ref[ci, h + dy + 1, w + dx]
    for the interior lanes (wrap-around only pollutes padding lanes).
    """
    planes = []
    for dy in (-1, 0, 1):
        rows = ref[ci, pl.ds(dy + 1, H), :]                      # (H, Wl)
        for dx in (-1, 0, 1):
            if dx == 0:
                planes.append(rows)
            else:
                planes.append(pltpu.roll(rows, shift=(-dx) % Wl, axis=1))
    return planes


def _ge_layer_s1_kernel(x_ref, w1_ref, b1_ref, wdw_ref, b2_ref, w3_ref, b3_ref,
                        out_ref, f1_ref, *, H, W, Wl, C, mid, exp_ratio):
    """Fused conv1(3x3) -> dwconv(3x3 grouped) -> conv2(1x1) -> +x -> ReLU.

    x_ref  : (C, H+2, Wl)  zero-padded image (row halo + lane padding)
    w1_ref : (9*C*C,)      SMEM, index [(t*C + ci)*C + co], BN folded
    wdw_ref: (9*mid,)      SMEM, index [t*mid + m], BN folded (grouped conv)
    w3_ref : (mid*C,)      SMEM, index [m*C + co], BN folded
    b*_ref : SMEM folded BN biases
    out_ref: (C, H, W)     exact-size NCHW output block
    f1_ref : (C, H+2, Wl)  VMEM scratch holding zero-padded conv1 output
    """
    f32 = jnp.float32

    # Lanes >= W are padding; feat1 must be zero there so the second 3x3
    # sees genuine zero padding (also kills the roll wrap-around junk).
    lane_pad = jax.lax.broadcasted_iota(jnp.int32, (H, Wl), 1) >= W

    # ---- conv1: 3x3 (C -> C) + folded BN + ReLU ---------------------------
    acc1 = [jnp.zeros((H, Wl), f32) for _ in range(C)]
    for ci in range(C):
        taps = _tap_planes(x_ref, ci, H, Wl)
        for t in range(9):
            tap = taps[t]
            for co in range(C):
                acc1[co] = acc1[co] + w1_ref[(t * C + ci) * C + co] * tap

    # Zero only the halo rows (interior rows are fully rewritten below).
    # Done every step: scratch is per-core, so don't gate on program_id == 0.
    zrow = jnp.zeros((1, Wl), f32)
    for c in range(C):
        f1_ref[c, 0:1, :] = zrow
        f1_ref[c, H + 1:H + 2, :] = zrow
    for co in range(C):
        feat = jnp.maximum(acc1[co] + b1_ref[co], 0.0)
        f1_ref[co, pl.ds(1, H), :] = jnp.where(lane_pad, 0.0, feat)

    # ---- dwconv 3x3 (grouped C -> mid) + BN + ReLU, fused with 1x1 conv2 --
    acc3 = [jnp.zeros((H, Wl), f32) for _ in range(C)]
    for ci in range(C):
        taps = _tap_planes(f1_ref, ci, H, Wl)
        for e in range(exp_ratio):
            m = ci * exp_ratio + e
            a2 = jnp.zeros((H, Wl), f32)
            for t in range(9):
                a2 = a2 + wdw_ref[t * mid + m] * taps[t]
            f2 = jnp.maximum(a2 + b2_ref[m], 0.0)
            for co in range(C):
                acc3[co] = acc3[co] + w3_ref[m * C + co] * f2

    # ---- conv2 bias + residual + ReLU, exact-width store ------------------
    for co in range(C):
        res = acc3[co] + b3_ref[co] + x_ref[co, pl.ds(1, H), :]
        out_ref[co, :, :] = jnp.maximum(res, 0.0)[:, :W]


def _fold_bn(w, bn, eps):
    """Fold eval-mode BatchNorm into conv weight/bias. w: (O, I, kh, kw)."""
    gamma, beta, mean, var = [p.astype(jnp.float32) for p in bn]
    scale = gamma / jnp.sqrt(var + eps)
    return w.astype(jnp.float32) * scale[:, None, None, None], beta - mean * scale


@jax.jit
def ge_layer_s1(x, w1, bn1, wdw, bn2, w3, bn3):
    """GELayerS1 forward (inference-mode BN). NCHW in / NCHW out."""
    eps = 1e-5
    N, C, H, W = x.shape
    mid = wdw.shape[0]
    exp_ratio = mid // C
    cout = w3.shape[0]
    assert cout == C, "GELayerS1 residual add requires in_chan == out_chan"
    assert mid == C * exp_ratio

    Hp = H + 2
    Wl = ((W + 1 + 127) // 128) * 128          # lane-padded width (>= W + 1)
    f32 = jnp.float32

    # --- fold BN into conv weights / biases --------------------------------
    w1_f, b1 = _fold_bn(w1, bn1, eps)          # (C, C, 3, 3)
    wdw_f, b2 = _fold_bn(wdw, bn2, eps)        # (mid, 1, 3, 3), grouped
    w3_f, b3 = _fold_bn(w3, bn3, eps)          # (C, mid, 1, 1)

    # flat per-tap weight tables for SMEM scalar access
    w1_flat = jnp.transpose(w1_f, (2, 3, 1, 0)).reshape(-1)            # [(t*C+ci)*C+co]
    wdw_flat = jnp.transpose(wdw_f[:, 0, :, :], (1, 2, 0)).reshape(-1)  # [t*mid + m]
    w3_flat = w3_f[:, :, 0, 0].T.reshape(-1)                            # [m*C + co]
    b1, b2, b3 = b1.reshape(-1), b2.reshape(-1), b3.reshape(-1)

    # --- single wrapper-side pad: 1-row halo + lane padding (stays NCHW) ---
    xp = jnp.pad(x.astype(f32), ((0, 0), (0, 0), (1, 1), (0, Wl - W)))

    kernel = functools.partial(_ge_layer_s1_kernel, H=H, W=W, Wl=Wl, C=C,
                               mid=mid, exp_ratio=exp_ratio)
    smem = pl.BlockSpec(memory_space=pltpu.MemorySpace.SMEM)

    out = pl.pallas_call(
        kernel,
        out_shape=jax.ShapeDtypeStruct((N, C, H, W), f32),
        grid_spec=pltpu.PrefetchScalarGridSpec(
            num_scalar_prefetch=0,
            grid=(N,),
            in_specs=[
                pl.BlockSpec((None, C, Hp, Wl), lambda n: (n, 0, 0, 0)),
                smem, smem, smem, smem, smem, smem,
            ],
            out_specs=pl.BlockSpec((None, C, H, W), lambda n: (n, 0, 0, 0)),
            scratch_shapes=[pltpu.VMEM((C, Hp, Wl), f32)],
        ),
        compiler_params=pltpu.CompilerParams(
            dimension_semantics=("parallel",)),
    )(xp, w1_flat, b1, wdw_flat, b2, w3_flat, b3)

    return out.astype(x.dtype)


def _ref_ge_layer_s1(x, w1, bn1, wdw, bn2, w3, bn3):
    """Pure-JAX reference via lax.conv_general_dilated (eval-mode BN)."""
    eps = 1e-5
    hp = jax.lax.Precision.HIGHEST
    dn = ("NCHW", "OIHW", "NCHW")

    def bn(y, p):
        gamma, beta, mean, var = p
        inv = gamma / jnp.sqrt(var + eps)
        return (y - mean[None, :, None, None]) * inv[None, :, None, None] \
            + beta[None, :, None, None]

    f = jax.lax.conv_general_dilated(x, w1, (1, 1), ((1, 1), (1, 1)),
                                     dimension_numbers=dn, precision=hp)
    f = jax.nn.relu(bn(f, bn1))
    f = jax.lax.conv_general_dilated(f, wdw, (1, 1), ((1, 1), (1, 1)),
                                     dimension_numbers=dn,
                                     feature_group_count=x.shape[1],
                                     precision=hp)
    f = jax.nn.relu(bn(f, bn2))
    f = jax.lax.conv_general_dilated(f, w3, (1, 1), ((0, 0), (0, 0)),
                                     dimension_numbers=dn, precision=hp)
    f = bn(f, bn3)
    return jax.nn.relu(f + x)


if __name__ == "__main__":
    key = jax.random.PRNGKey(0)
    ks = jax.random.split(key, 8)

    N, C, H, W, exp_ratio = 2, 4, 16, 16, 6
    mid = C * exp_ratio

    x = jax.random.normal(ks[0], (N, C, H, W), dtype=jnp.float32)
    # conv weights (bias=False in the module); scaled so activations stay O(1)
    w1 = jax.random.normal(ks[1], (C, C, 3, 3), dtype=jnp.float32) / 6.0
    wdw = jax.random.normal(ks[2], (mid, 1, 3, 3), dtype=jnp.float32) / 3.0
    w3 = jax.random.normal(ks[3], (C, mid, 1, 1), dtype=jnp.float32) / 5.0

    def bn_init(k, ch):
        k1, k2, k3, k4 = jax.random.split(k, 4)
        return (jax.random.uniform(k1, (ch,), jnp.float32, 0.5, 1.5),   # gamma
                jax.random.normal(k2, (ch,), jnp.float32) * 0.1,        # beta
                jax.random.normal(k3, (ch,), jnp.float32) * 0.1,        # running mean
                jax.random.uniform(k4, (ch,), jnp.float32, 0.5, 1.5))   # running var

    bn1 = bn_init(ks[4], C)
    bn2 = bn_init(ks[5], mid)
    bn3 = bn_init(ks[6], C)

    out = ge_layer_s1(x, w1, bn1, wdw, bn2, w3, bn3)
    out = jax.block_until_ready(out)

    ref = _ref_ge_layer_s1(x, w1, bn1, wdw, bn2, w3, bn3)
    ref = jax.block_until_ready(ref)

    assert out.shape == (N, C, H, W)
    assert bool(jnp.all(jnp.isfinite(out)))
    assert bool(jnp.allclose(out, ref, rtol=1e-3, atol=1e-3)), \
        f"max |diff| = {float(jnp.max(jnp.abs(out - ref)))}"
    print("KERNEL_OK")
</pallas_src>

<mosaic_0001>
module attributes {stable_mosaic.version = 11 : i64} {
  func.func @_ge_layer_s1_kernel(%arg0: i32, %arg1: memref<1x4x18x128xf32, #tpu.memory_space<vmem>>, %arg2: memref<144xf32, #tpu.memory_space<smem>>, %arg3: memref<4xf32, #tpu.memory_space<smem>>, %arg4: memref<216xf32, #tpu.memory_space<smem>>, %arg5: memref<24xf32, #tpu.memory_space<smem>>, %arg6: memref<96xf32, #tpu.memory_space<smem>>, %arg7: memref<4xf32, #tpu.memory_space<smem>>, %arg8: memref<1x4x16x16xf32, #tpu.memory_space<vmem>>, %arg9: memref<4x18x128xf32, #tpu.memory_space<vmem>>) attributes {dimension_semantics = [#tpu.dimension_semantics<parallel>], iteration_bounds = array<i64: 2>, scalar_prefetch = 0 : i64, scratch_operands = 1 : i64, tpu.core_type = #tpu.core_type<tc>, window_params = [{transform_indices = @transform_0, window_bounds = array<i64: 1, 4, 18, 128>}, {transform_indices = @transform_1, window_bounds = array<i64: 144>}, {transform_indices = @transform_2, window_bounds = array<i64: 4>}, {transform_indices = @transform_3, window_bounds = array<i64: 216>}, {transform_indices = @transform_4, window_bounds = array<i64: 24>}, {transform_indices = @transform_5, window_bounds = array<i64: 96>}, {transform_indices = @transform_6, window_bounds = array<i64: 4>}, {transform_indices = @transform_7, window_bounds = array<i64: 1, 4, 16, 16>}]} {
    %0 = tpu.iota {dimensions = array<i32: 1>} : vector<16x128xi32>
    %c16_i32 = arith.constant 16 : i32
    %1 = vector.broadcast %c16_i32 : i32 to vector<16x128xi32>
    %2 = arith.cmpi sge, %0, %1 : vector<16x128xi32>
    %cst = arith.constant 0.000000e+00 : f32
    %3 = vector.broadcast %cst : f32 to vector<16x128xf32>
    %cst_0 = arith.constant 0.000000e+00 : f32
    %4 = vector.broadcast %cst_0 : f32 to vector<16x128xf32>
    %cst_1 = arith.constant 0.000000e+00 : f32
    %5 = vector.broadcast %cst_1 : f32 to vector<16x128xf32>
    %cst_2 = arith.constant 0.000000e+00 : f32
    %6 = vector.broadcast %cst_2 : f32 to vector<16x128xf32>
    %c0 = arith.constant 0 : index
    %c0_3 = arith.constant 0 : index
    %c0_4 = arith.constant 0 : index
    %c0_5 = arith.constant 0 : index
    %7 = vector.load %arg1[%c0, %c0_3, %c0_4, %c0_5] : memref<1x4x18x128xf32, #tpu.memory_space<vmem>>, vector<1x1x16x128xf32>
    %8 = vector.shape_cast %7 : vector<1x1x16x128xf32> to vector<16x128xf32>
    %c1_i32 = arith.constant 1 : i32
    %9 = tpu.dynamic_rotate %8 by %c1_i32 dim 1 : vector<16x128xf32>, i32 -> vector<16x128xf32>
    %c127_i32 = arith.constant 127 : i32
    %10 = tpu.dynamic_rotate %8 by %c127_i32 dim 1 : vector<16x128xf32>, i32 -> vector<16x128xf32>
    %c0_6 = arith.constant 0 : index
    %c0_7 = arith.constant 0 : index
    %c1 = arith.constant 1 : index
    %c0_8 = arith.constant 0 : index
    %11 = vector.load %arg1[%c0_6, %c0_7, %c1, %c0_8] : memref<1x4x18x128xf32, #tpu.memory_space<vmem>>, vector<1x1x16x128xf32>
    %12 = vector.shape_cast %11 : vector<1x1x16x128xf32> to vector<16x128xf32>
    %c1_i32_9 = arith.constant 1 : i32
    %13 = tpu.dynamic_rotate %12 by %c1_i32_9 dim 1 : vector<16x128xf32>, i32 -> vector<16x128xf32>
    %c127_i32_10 = arith.constant 127 : i32
    %14 = tpu.dynamic_rotate %12 by %c127_i32_10 dim 1 : vector<16x128xf32>, i32 -> vector<16x128xf32>
    %c0_11 = arith.constant 0 : index
    %c0_12 = arith.constant 0 : index
    %c2 = arith.constant 2 : index
    %c0_13 = arith.constant 0 : index
    %15 = vector.load %arg1[%c0_11, %c0_12, %c2, %c0_13] : memref<1x4x18x128xf32, #tpu.memory_space<vmem>>, vector<1x1x16x128xf32>
    %16 = vector.shape_cast %15 : vector<1x1x16x128xf32> to vector<16x128xf32>
    %c1_i32_14 = arith.constant 1 : i32
    %17 = tpu.dynamic_rotate %16 by %c1_i32_14 dim 1 : vector<16x128xf32>, i32 -> vector<16x128xf32>
    %c127_i32_15 = arith.constant 127 : i32
    %18 = tpu.dynamic_rotate %16 by %c127_i32_15 dim 1 : vector<16x128xf32>, i32 -> vector<16x128xf32>
    %c0_16 = arith.constant 0 : index
    %19 = memref.load %arg2[%c0_16] : memref<144xf32, #tpu.memory_space<smem>>
    %20 = vector.broadcast %19 : f32 to vector<16x128xf32>
    %21 = arith.mulf %20, %9 : vector<16x128xf32>
    %22 = arith.addf %3, %21 : vector<16x128xf32>
    %c1_17 = arith.constant 1 : index
    %23 = memref.load %arg2[%c1_17] : memref<144xf32, #tpu.memory_space<smem>>
    %24 = vector.broadcast %23 : f32 to vector<16x128xf32>
    %25 = arith.mulf %24, %9 : vector<16x128xf32>
    %26 = arith.addf %4, %25 : vector<16x128xf32>
    %c2_18 = arith.constant 2 : index
    %27 = memref.load %arg2[%c2_18] : memref<144xf32, #tpu.memory_space<smem>>
    %28 = vector.broadcast %27 : f32 to vector<16x128xf32>
    %29 = arith.mulf %28, %9 : vector<16x128xf32>
    %30 = arith.addf %5, %29 : vector<16x128xf32>
    %c3 = arith.constant 3 : index
    %31 = memref.load %arg2[%c3] : memref<144xf32, #tpu.memory_space<smem>>
    %32 = vector.broadcast %31 : f32 to vector<16x128xf32>
    %33 = arith.mulf %32, %9 : vector<16x128xf32>
    %34 = arith.addf %6, %33 : vector<16x128xf32>
    %c16 = arith.constant 16 : index
    %35 = memref.load %arg2[%c16] : memref<144xf32, #tpu.memory_space<smem>>
    %36 = vector.broadcast %35 : f32 to vector<16x128xf32>
    %37 = arith.mulf %36, %8 : vector<16x128xf32>
    %38 = arith.addf %22, %37 : vector<16x128xf32>
    %c17 = arith.constant 17 : index
    %39 = memref.load %arg2[%c17] : memref<144xf32, #tpu.memory_space<smem>>
    %40 = vector.broadcast %39 : f32 to vector<16x128xf32>
    %41 = arith.mulf %40, %8 : vector<16x128xf32>
    %42 = arith.addf %26, %41 : vector<16x128xf32>
    %c18 = arith.constant 18 : index
    %43 = memref.load %arg2[%c18] : memref<144xf32, #tpu.memory_space<smem>>
    %44 = vector.broadcast %43 : f32 to vector<16x128xf32>
    %45 = arith.mulf %44, %8 : vector<16x128xf32>
    %46 = arith.addf %30, %45 : vector<16x128xf32>
    %c19 = arith.constant 19 : index
    %47 = memref.load %arg2[%c19] : memref<144xf32, #tpu.memory_space<smem>>
    %48 = vector.broadcast %47 : f32 to vector<16x128xf32>
    %49 = arith.mulf %48, %8 : vector<16x128xf32>
    %50 = arith.addf %34, %49 : vector<16x128xf32>
    %c32 = arith.constant 32 : index
    %51 = memref.load %arg2[%c32] : memref<144xf32, #tpu.memory_space<smem>>
    %52 = vector.broadcast %51 : f32 to vector<16x128xf32>
    %53 = arith.mulf %52, %10 : vector<16x128xf32>
    %54 = arith.addf %38, %53 : vector<16x128xf32>
    %c33 = arith.constant 33 : index
    %55 = memref.load %arg2[%c33] : memref<144xf32, #tpu.memory_space<smem>>
    %56 = vector.broadcast %55 : f32 to vector<16x128xf32>
    %57 = arith.mulf %56, %10 : vector<16x128xf32>
    %58 = arith.addf %42, %57 : vector<16x128xf32>
    %c34 = arith.constant 34 : index
    %59 = memref.load %arg2[%c34] : memref<144xf32, #tpu.memory_space<smem>>
    %60 = vector.broadcast %59 : f32 to vector<16x128xf32>
    %61 = arith.mulf %60, %10 : vector<16x128xf32>
    %62 = arith.addf %46, %61 : vector<16x128xf32>
    %c35 = arith.constant 35 : index
    %63 = memref.load %arg2[%c35] : memref<144xf32, #tpu.memory_space<smem>>
    %64 = vector.broadcast %63 : f32 to vector<16x128xf32>
    %65 = arith.mulf %64, %10 : vector<16x128xf32>
    %66 = arith.addf %50, %65 : vector<16x128xf32>
    %c48 = arith.constant 48 : index
    %67 = memref.load %arg2[%c48] : memref<144xf32, #tpu.memory_space<smem>>
    %68 = vector.broadcast %67 : f32 to vector<16x128xf32>
    %69 = arith.mulf %68, %13 : vector<16x128xf32>
    %70 = arith.addf %54, %69 : vector<16x128xf32>
    %c49 = arith.constant 49 : index
    %71 = memref.load %arg2[%c49] : memref<144xf32, #tpu.memory_space<smem>>
    %72 = vector.broadcast %71 : f32 to vector<16x128xf32>
    %73 = arith.mulf %72, %13 : vector<16x128xf32>
    %74 = arith.addf %58, %73 : vector<16x128xf32>
    %c50 = arith.constant 50 : index
    %75 = memref.load %arg2[%c50] : memref<144xf32, #tpu.memory_space<smem>>
    %76 = vector.broadcast %75 : f32 to vector<16x128xf32>
    %77 = arith.mulf %76, %13 : vector<16x128xf32>
    %78 = arith.addf %62, %77 : vector<16x128xf32>
    %c51 = arith.constant 51 : index
    %79 = memref.load %arg2[%c51] : memref<144xf32, #tpu.memory_space<smem>>
    %80 = vector.broadcast %79 : f32 to vector<16x128xf32>
    %81 = arith.mulf %80, %13 : vector<16x128xf32>
    %82 = arith.addf %66, %81 : vector<16x128xf32>
    %c64 = arith.constant 64 : index
    %83 = memref.load %arg2[%c64] : memref<144xf32, #tpu.memory_space<smem>>
    %84 = vector.broadcast %83 : f32 to vector<16x128xf32>
    %85 = arith.mulf %84, %12 : vector<16x128xf32>
    %86 = arith.addf %70, %85 : vector<16x128xf32>
    %c65 = arith.constant 65 : index
    %87 = memref.load %arg2[%c65] : memref<144xf32, #tpu.memory_space<smem>>
    %88 = vector.broadcast %87 : f32 to vector<16x128xf32>
    %89 = arith.mulf %88, %12 : vector<16x128xf32>
    %90 = arith.addf %74, %89 : vector<16x128xf32>
    %c66 = arith.constant 66 : index
    %91 = memref.load %arg2[%c66] : memref<144xf32, #tpu.memory_space<smem>>
    %92 = vector.broadcast %91 : f32 to vector<16x128xf32>
    %93 = arith.mulf %92, %12 : vector<16x128xf32>
    %94 = arith.addf %78, %93 : vector<16x128xf32>
    %c67 = arith.constant 67 : index
    %95 = memref.load %arg2[%c67] : memref<144xf32, #tpu.memory_space<smem>>
    %96 = vector.broadcast %95 : f32 to vector<16x128xf32>
    %97 = arith.mulf %96, %12 : vector<16x128xf32>
    %98 = arith.addf %82, %97 : vector<16x128xf32>
    %c80 = arith.constant 80 : index
    %99 = memref.load %arg2[%c80] : memref<144xf32, #tpu.memory_space<smem>>
    %100 = vector.broadcast %99 : f32 to vector<16x128xf32>
    %101 = arith.mulf %100, %14 : vector<16x128xf32>
    %102 = arith.addf %86, %101 : vector<16x128xf32>
    %c81 = arith.constant 81 : index
    %103 = memref.load %arg2[%c81] : memref<144xf32, #tpu.memory_space<smem>>
    %104 = vector.broadcast %103 : f32 to vector<16x128xf32>
    %105 = arith.mulf %104, %14 : vector<16x128xf32>
    %106 = arith.addf %90, %105 : vector<16x128xf32>
    %c82 = arith.constant 82 : index
    %107 = memref.load %arg2[%c82] : memref<144xf32, #tpu.memory_space<smem>>
    %108 = vector.broadcast %107 : f32 to vector<16x128xf32>
    %109 = arith.mulf %108, %14 : vector<16x128xf32>
    %110 = arith.addf %94, %109 : vector<16x128xf32>
    %c83 = arith.constant 83 : index
    %111 = memref.load %arg2[%c83] : memref<144xf32, #tpu.memory_space<smem>>
    %112 = vector.broadcast %111 : f32 to vector<16x128xf32>
    %113 = arith.mulf %112, %14 : vector<16x128xf32>
    %114 = arith.addf %98, %113 : vector<16x128xf32>
    %c96 = arith.constant 96 : index
    %115 = memref.load %arg2[%c96] : memref<144xf32, #tpu.memory_space<smem>>
    %116 = vector.broadcast %115 : f32 to vector<16x128xf32>
    %117 = arith.mulf %116, %17 : vector<16x128xf32>
    %118 = arith.addf %102, %117 : vector<16x128xf32>
    %c97 = arith.constant 97 : index
    %119 = memref.load %arg2[%c97] : memref<144xf32, #tpu.memory_space<smem>>
    %120 = vector.broadcast %119 : f32 to vector<16x128xf32>
    %121 = arith.mulf %120, %17 : vector<16x128xf32>
    %122 = arith.addf %106, %121 : vector<16x128xf32>
    %c98 = arith.constant 98 : index
    %123 = memref.load %arg2[%c98] : memref<144xf32, #tpu.memory_space<smem>>
    %124 = vector.broadcast %123 : f32 to vector<16x128xf32>
    %125 = arith.mulf %124, %17 : vector<16x128xf32>
    %126 = arith.addf %110, %125 : vector<16x128xf32>
    %c99 = arith.constant 99 : index
    %127 = memref.load %arg2[%c99] : memref<144xf32, #tpu.memory_space<smem>>
    %128 = vector.broadcast %127 : f32 to vector<16x128xf32>
    %129 = arith.mulf %128, %17 : vector<16x128xf32>
    %130 = arith.addf %114, %129 : vector<16x128xf32>
    %c112 = arith.constant 112 : index
    %131 = memref.load %arg2[%c112] : memref<144xf32, #tpu.memory_space<smem>>
    %132 = vector.broadcast %131 : f32 to vector<16x128xf32>
    %133 = arith.mulf %132, %16 : vector<16x128xf32>
    %134 = arith.addf %118, %133 : vector<16x128xf32>
    %c113 = arith.constant 113 : index
    %135 = memref.load %arg2[%c113] : memref<144xf32, #tpu.memory_space<smem>>
    %136 = vector.broadcast %135 : f32 to vector<16x128xf32>
    %137 = arith.mulf %136, %16 : vector<16x128xf32>
    %138 = arith.addf %122, %137 : vector<16x128xf32>
    %c114 = arith.constant 114 : index
    %139 = memref.load %arg2[%c114] : memref<144xf32, #tpu.memory_space<smem>>
    %140 = vector.broadcast %139 : f32 to vector<16x128xf32>
    %141 = arith.mulf %140, %16 : vector<16x128xf32>
    %142 = arith.addf %126, %141 : vector<16x128xf32>
    %c115 = arith.constant 115 : index
    %143 = memref.load %arg2[%c115] : memref<144xf32, #tpu.memory_space<smem>>
    %144 = vector.broadcast %143 : f32 to vector<16x128xf32>
    %145 = arith.mulf %144, %16 : vector<16x128xf32>
    %146 = arith.addf %130, %145 : vector<16x128xf32>
    %c128 = arith.constant 128 : index
    %147 = memref.load %arg2[%c128] : memref<144xf32, #tpu.memory_space<smem>>
    %148 = vector.broadcast %147 : f32 to vector<16x128xf32>
    %149 = arith.mulf %148, %18 : vector<16x128xf32>
    %150 = arith.addf %134, %149 : vector<16x128xf32>
    %c129 = arith.constant 129 : index
    %151 = memref.load %arg2[%c129] : memref<144xf32, #tpu.memory_space<smem>>
    %152 = vector.broadcast %151 : f32 to vector<16x128xf32>
    %153 = arith.mulf %152, %18 : vector<16x128xf32>
    %154 = arith.addf %138, %153 : vector<16x128xf32>
    %c130 = arith.constant 130 : index
    %155 = memref.load %arg2[%c130] : memref<144xf32, #tpu.memory_space<smem>>
    %156 = vector.broadcast %155 : f32 to vector<16x128xf32>
    %157 = arith.mulf %156, %18 : vector<16x128xf32>
    %158 = arith.addf %142, %157 : vector<16x128xf32>
    %c131 = arith.constant 131 : index
    %159 = memref.load %arg2[%c131] : memref<144xf32, #tpu.memory_space<smem>>
    %160 = vector.broadcast %159 : f32 to vector<16x128xf32>
    %161 = arith.mulf %160, %18 : vector<16x128xf32>
    %162 = arith.addf %146, %161 : vector<16x128xf32>
    %c0_19 = arith.constant 0 : index
    %c1_20 = arith.constant 1 : index
    %c0_21 = arith.constant 0 : index
    %c0_22 = arith.constant 0 : index
    %163 = vector.load %arg1[%c0_19, %c1_20, %c0_21, %c0_22] : memref<1x4x18x128xf32, #tpu.memory_space<vmem>>, vector<1x1x16x128xf32>
    %164 = vector.shape_cast %163 : vector<1x1x16x128xf32> to vector<16x128xf32>
    %c1_i32_23 = arith.constant 1 : i32
    %165 = tpu.dynamic_rotate %164 by %c1_i32_23 dim 1 : vector<16x128xf32>, i32 -> vector<16x128xf32>
    %c127_i32_24 = arith.constant 127 : i32
    %166 = tpu.dynamic_rotate %164 by %c127_i32_24 dim 1 : vector<16x128xf32>, i32 -> vector<16x128xf32>
    %c0_25 = arith.constant 0 : index
    %c1_26 = arith.constant 1 : index
    %c1_27 = arith.constant 1 : index
    %c0_28 = arith.constant 0 : index
    %167 = vector.load %arg1[%c0_25, %c1_26, %c1_27, %c0_28] : memref<1x4x18x128xf32, #tpu.memory_space<vmem>>, vector<1x1x16x128xf32>
    %168 = vector.shape_cast %167 : vector<1x1x16x128xf32> to vector<16x128xf32>
    %c1_i32_29 = arith.constant 1 : i32
    %169 = tpu.dynamic_rotate %168 by %c1_i32_29 dim 1 : vector<16x128xf32>, i32 -> vector<16x128xf32>
    %c127_i32_30 = arith.constant 127 : i32
    %170 = tpu.dynamic_rotate %168 by %c127_i32_30 dim 1 : vector<16x128xf32>, i32 -> vector<16x128xf32>
    %c0_31 = arith.constant 0 : index
    %c1_32 = arith.constant 1 : index
    %c2_33 = arith.constant 2 : index
    %c0_34 = arith.constant 0 : index
    %171 = vector.load %arg1[%c0_31, %c1_32, %c2_33, %c0_34] : memref<1x4x18x128xf32, #tpu.memory_space<vmem>>, vector<1x1x16x128xf32>
    %172 = vector.shape_cast %171 : vector<1x1x16x128xf32> to vector<16x128xf32>
    %c1_i32_35 = arith.constant 1 : i32
    %173 = tpu.dynamic_rotate %172 by %c1_i32_35 dim 1 : vector<16x128xf32>, i32 -> vector<16x128xf32>
    %c127_i32_36 = arith.constant 127 : i32
    %174 = tpu.dynamic_rotate %172 by %c127_i32_36 dim 1 : vector<16x128xf32>, i32 -> vector<16x128xf32>
    %c4 = arith.constant 4 : index
    %175 = memref.load %arg2[%c4] : memref<144xf32, #tpu.memory_space<smem>>
    %176 = vector.broadcast %175 : f32 to vector<16x128xf32>
    %177 = arith.mulf %176, %165 : vector<16x128xf32>
    %178 = arith.addf %150, %177 : vector<16x128xf32>
    %c5 = arith.constant 5 : index
    %179 = memref.load %arg2[%c5] : memref<144xf32, #tpu.memory_space<smem>>
    %180 = vector.broadcast %179 : f32 to vector<16x128xf32>
    %181 = arith.mulf %180, %165 : vector<16x128xf32>
    %182 = arith.addf %154, %181 : vector<16x128xf32>
    %c6 = arith.constant 6 : index
    %183 = memref.load %arg2[%c6] : memref<144xf32, #tpu.memory_space<smem>>
    %184 = vector.broadcast %183 : f32 to vector<16x128xf32>
    %185 = arith.mulf %184, %165 : vector<16x128xf32>
    %186 = arith.addf %158, %185 : vector<16x128xf32>
    %c7 = arith.constant 7 : index
    %187 = memref.load %arg2[%c7] : memref<144xf32, #tpu.memory_space<smem>>
    %188 = vector.broadcast %187 : f32 to vector<16x128xf32>
    %189 = arith.mulf %188, %165 : vector<16x128xf32>
    %190 = arith.addf %162, %189 : vector<16x128xf32>
    %c20 = arith.constant 20 : index
    %191 = memref.load %arg2[%c20] : memref<144xf32, #tpu.memory_space<smem>>
    %192 = vector.broadcast %191 : f32 to vector<16x128xf32>
    %193 = arith.mulf %192, %164 : vector<16x128xf32>
    %194 = arith.addf %178, %193 : vector<16x128xf32>
    %c21 = arith.constant 21 : index
    %195 = memref.load %arg2[%c21] : memref<144xf32, #tpu.memory_space<smem>>
    %196 = vector.broadcast %195 : f32 to vector<16x128xf32>
    %197 = arith.mulf %196, %164 : vector<16x128xf32>
    %198 = arith.addf %182, %197 : vector<16x128xf32>
    %c22 = arith.constant 22 : index
    %199 = memref.load %arg2[%c22] : memref<144xf32, #tpu.memory_space<smem>>
    %200 = vector.broadcast %199 : f32 to vector<16x128xf32>
    %201 = arith.mulf %200, %164 : vector<16x128xf32>
    %202 = arith.addf %186, %201 : vector<16x128xf32>
    %c23 = arith.constant 23 : index
    %203 = memref.load %arg2[%c23] : memref<144xf32, #tpu.memory_space<smem>>
    %204 = vector.broadcast %203 : f32 to vector<16x128xf32>
    %205 = arith.mulf %204, %164 : vector<16x128xf32>
    %206 = arith.addf %190, %205 : vector<16x128xf32>
    %c36 = arith.constant 36 : index
    %207 = memref.load %arg2[%c36] : memref<144xf32, #tpu.memory_space<smem>>
    %208 = vector.broadcast %207 : f32 to vector<16x128xf32>
    %209 = arith.mulf %208, %166 : vector<16x128xf32>
    %210 = arith.addf %194, %209 : vector<16x128xf32>
    %c37 = arith.constant 37 : index
    %211 = memref.load %arg2[%c37] : memref<144xf32, #tpu.memory_space<smem>>
    %212 = vector.broadcast %211 : f32 to vector<16x128xf32>
    %213 = arith.mulf %212, %166 : vector<16x128xf32>
    %214 = arith.addf %198, %213 : vector<16x128xf32>
    %c38 = arith.constant 38 : index
    %215 = memref.load %arg2[%c38] : memref<144xf32, #tpu.memory_space<smem>>
    %216 = vector.broadcast %215 : f32 to vector<16x128xf32>
    %217 = arith.mulf %216, %166 : vector<16x128xf32>
    %218 = arith.addf %202, %217 : vector<16x128xf32>
    %c39 = arith.constant 39 : index
    %219 = memref.load %arg2[%c39] : memref<144xf32, #tpu.memory_space<smem>>
    %220 = vector.broadcast %219 : f32 to vector<16x128xf32>
    %221 = arith.mulf %220, %166 : vector<16x128xf32>
    %222 = arith.addf %206, %221 : vector<16x128xf32>
    %c52 = arith.constant 52 : index
    %223 = memref.load %arg2[%c52] : memref<144xf32, #tpu.memory_space<smem>>
    %224 = vector.broadcast %223 : f32 to vector<16x128xf32>
    %225 = arith.mulf %224, %169 : vector<16x128xf32>
    %226 = arith.addf %210, %225 : vector<16x128xf32>
    %c53 = arith.constant 53 : index
    %227 = memref.load %arg2[%c53] : memref<144xf32, #tpu.memory_space<smem>>
    %228 = vector.broadcast %227 : f32 to vector<16x128xf32>
    %229 = arith.mulf %228, %169 : vector<16x128xf32>
    %230 = arith.addf %214, %229 : vector<16x128xf32>
    %c54 = arith.constant 54 : index
    %231 = memref.load %arg2[%c54] : memref<144xf32, #tpu.memory_space<smem>>
    %232 = vector.broadcast %231 : f32 to vector<16x128xf32>
    %233 = arith.mulf %232, %169 : vector<16x128xf32>
    %234 = arith.addf %218, %233 : vector<16x128xf32>
    %c55 = arith.constant 55 : index
    %235 = memref.load %arg2[%c55] : memref<144xf32, #tpu.memory_space<smem>>
    %236 = vector.broadcast %235 : f32 to vector<16x128xf32>
    %237 = arith.mulf %236, %169 : vector<16x128xf32>
    %238 = arith.addf %222, %237 : vector<16x128xf32>
    %c68 = arith.constant 68 : index
    %239 = memref.load %arg2[%c68] : memref<144xf32, #tpu.memory_space<smem>>
    %240 = vector.broadcast %239 : f32 to vector<16x128xf32>
    %241 = arith.mulf %240, %168 : vector<16x128xf32>
    %242 = arith.addf %226, %241 : vector<16x128xf32>
    %c69 = arith.constant 69 : index
    %243 = memref.load %arg2[%c69] : memref<144xf32, #tpu.memory_space<smem>>
    %244 = vector.broadcast %243 : f32 to vector<16x128xf32>
    %245 = arith.mulf %244, %168 : vector<16x128xf32>
    %246 = arith.addf %230, %245 : vector<16x128xf32>
    %c70 = arith.constant 70 : index
    %247 = memref.load %arg2[%c70] : memref<144xf32, #tpu.memory_space<smem>>
    %248 = vector.broadcast %247 : f32 to vector<16x128xf32>
    %249 = arith.mulf %248, %168 : vector<16x128xf32>
    %250 = arith.addf %234, %249 : vector<16x128xf32>
    %c71 = arith.constant 71 : index
    %251 = memref.load %arg2[%c71] : memref<144xf32, #tpu.memory_space<smem>>
    %252 = vector.broadcast %251 : f32 to vector<16x128xf32>
    %253 = arith.mulf %252, %168 : vector<16x128xf32>
    %254 = arith.addf %238, %253 : vector<16x128xf32>
    %c84 = arith.constant 84 : index
    %255 = memref.load %arg2[%c84] : memref<144xf32, #tpu.memory_space<smem>>
    %256 = vector.broadcast %255 : f32 to vector<16x128xf32>
    %257 = arith.mulf %256, %170 : vector<16x128xf32>
    %258 = arith.addf %242, %257 : vector<16x128xf32>
    %c85 = arith.constant 85 : index
    %259 = memref.load %arg2[%c85] : memref<144xf32, #tpu.memory_space<smem>>
    %260 = vector.broadcast %259 : f32 to vector<16x128xf32>
    %261 = arith.mulf %260, %170 : vector<16x128xf32>
    %262 = arith.addf %246, %261 : vector<16x128xf32>
    %c86 = arith.constant 86 : index
    %263 = memref.load %arg2[%c86] : memref<144xf32, #tpu.memory_space<smem>>
    %264 = vector.broadcast %263 : f32 to vector<16x128xf32>
    %265 = arith.mulf %264, %170 : vector<16x128xf32>
    %266 = arith.addf %250, %265 : vector<16x128xf32>
    %c87 = arith.constant 87 : index
    %267 = memref.load %arg2[%c87] : memref<144xf32, #tpu.memory_space<smem>>
    %268 = vector.broadcast %267 : f32 to vector<16x128xf32>
    %269 = arith.mulf %268, %170 : vector<16x128xf32>
    %270 = arith.addf %254, %269 : vector<16x128xf32>
    %c100 = arith.constant 100 : index
    %271 = memref.load %arg2[%c100] : memref<144xf32, #tpu.memory_space<smem>>
    %272 = vector.broadcast %271 : f32 to vector<16x128xf32>
    %273 = arith.mulf %272, %173 : vector<16x128xf32>
    %274 = arith.addf %258, %273 : vector<16x128xf32>
    %c101 = arith.constant 101 : index
    %275 = memref.load %arg2[%c101] : memref<144xf32, #tpu.memory_space<smem>>
    %276 = vector.broadcast %275 : f32 to vector<16x128xf32>
    %277 = arith.mulf %276, %173 : vector<16x128xf32>
    %278 = arith.addf %262, %277 : vector<16x128xf32>
    %c102 = arith.constant 102 : index
    %279 = memref.load %arg2[%c102] : memref<144xf32, #tpu.memory_space<smem>>
    %280 = vector.broadcast %279 : f32 to vector<16x128xf32>
    %281 = arith.mulf %280, %173 : vector<16x128xf32>
    %282 = arith.addf %266, %281 : vector<16x128xf32>
    %c103 = arith.constant 103 : index
    %283 = memref.load %arg2[%c103] : memref<144xf32, #tpu.memory_space<smem>>
    %284 = vector.broadcast %283 : f32 to vector<16x128xf32>
    %285 = arith.mulf %284, %173 : vector<16x128xf32>
    %286 = arith.addf %270, %285 : vector<16x128xf32>
    %c116 = arith.constant 116 : index
    %287 = memref.load %arg2[%c116] : memref<144xf32, #tpu.memory_space<smem>>
    %288 = vector.broadcast %287 : f32 to vector<16x128xf32>
    %289 = arith.mulf %288, %172 : vector<16x128xf32>
    %290 = arith.addf %274, %289 : vector<16x128xf32>
    %c117 = arith.constant 117 : index
    %291 = memref.load %arg2[%c117] : memref<144xf32, #tpu.memory_space<smem>>
    %292 = vector.broadcast %291 : f32 to vector<16x128xf32>
    %293 = arith.mulf %292, %172 : vector<16x128xf32>
    %294 = arith.addf %278, %293 : vector<16x128xf32>
    %c118 = arith.constant 118 : index
    %295 = memref.load %arg2[%c118] : memref<144xf32, #tpu.memory_space<smem>>
    %296 = vector.broadcast %295 : f32 to vector<16x128xf32>
    %297 = arith.mulf %296, %172 : vector<16x128xf32>
    %298 = arith.addf %282, %297 : vector<16x128xf32>
    %c119 = arith.constant 119 : index
    %299 = memref.load %arg2[%c119] : memref<144xf32, #tpu.memory_space<smem>>
    %300 = vector.broadcast %299 : f32 to vector<16x128xf32>
    %301 = arith.mulf %300, %172 : vector<16x128xf32>
    %302 = arith.addf %286, %301 : vector<16x128xf32>
    %c132 = arith.constant 132 : index
    %303 = memref.load %arg2[%c132] : memref<144xf32, #tpu.memory_space<smem>>
    %304 = vector.broadcast %303 : f32 to vector<16x128xf32>
    %305 = arith.mulf %304, %174 : vector<16x128xf32>
    %306 = arith.addf %290, %305 : vector<16x128xf32>
    %c133 = arith.constant 133 : index
    %307 = memref.load %arg2[%c133] : memref<144xf32, #tpu.memory_space<smem>>
    %308 = vector.broadcast %307 : f32 to vector<16x128xf32>
    %309 = arith.mulf %308, %174 : vector<16x128xf32>
    %310 = arith.addf %294, %309 : vector<16x128xf32>
    %c134 = arith.constant 134 : index
    %311 = memref.load %arg2[%c134] : memref<144xf32, #tpu.memory_space<smem>>
    %312 = vector.broadcast %311 : f32 to vector<16x128xf32>
    %313 = arith.mulf %312, %174 : vector<16x128xf32>
    %314 = arith.addf %298, %313 : vector<16x128xf32>
    %c135 = arith.constant 135 : index
    %315 = memref.load %arg2[%c135] : memref<144xf32, #tpu.memory_space<smem>>
    %316 = vector.broadcast %315 : f32 to vector<16x128xf32>
    %317 = arith.mulf %316, %174 : vector<16x128xf32>
    %318 = arith.addf %302, %317 : vector<16x128xf32>
    %c0_37 = arith.constant 0 : index
    %c2_38 = arith.constant 2 : index
    %c0_39 = arith.constant 0 : index
    %c0_40 = arith.constant 0 : index
    %319 = vector.load %arg1[%c0_37, %c2_38, %c0_39, %c0_40] : memref<1x4x18x128xf32, #tpu.memory_space<vmem>>, vector<1x1x16x128xf32>
    %320 = vector.shape_cast %319 : vector<1x1x16x128xf32> to vector<16x128xf32>
    %c1_i32_41 = arith.constant 1 : i32
    %321 = tpu.dynamic_rotate %320 by %c1_i32_41 dim 1 : vector<16x128xf32>, i32 -> vector<16x128xf32>
    %c127_i32_42 = arith.constant 127 : i32
    %322 = tpu.dynamic_rotate %320 by %c127_i32_42 dim 1 : vector<16x128xf32>, i32 -> vector<16x128xf32>
    %c0_43 = arith.constant 0 : index
    %c2_44 = arith.constant 2 : index
    %c1_45 = arith.constant 1 : index
    %c0_46 = arith.constant 0 : index
    %323 = vector.load %arg1[%c0_43, %c2_44, %c1_45, %c0_46] : memref<1x4x18x128xf32, #tpu.memory_space<vmem>>, vector<1x1x16x128xf32>
    %324 = vector.shape_cast %323 : vector<1x1x16x128xf32> to vector<16x128xf32>
    %c1_i32_47 = arith.constant 1 : i32
    %325 = tpu.dynamic_rotate %324 by %c1_i32_47 dim 1 : vector<16x128xf32>, i32 -> vector<16x128xf32>
    %c127_i32_48 = arith.constant 127 : i32
    %326 = tpu.dynamic_rotate %324 by %c127_i32_48 dim 1 : vector<16x128xf32>, i32 -> vector<16x128xf32>
    %c0_49 = arith.constant 0 : index
    %c2_50 = arith.constant 2 : index
    %c2_51 = arith.constant 2 : index
    %c0_52 = arith.constant 0 : index
    %327 = vector.load %arg1[%c0_49, %c2_50, %c2_51, %c0_52] : memref<1x4x18x128xf32, #tpu.memory_space<vmem>>, vector<1x1x16x128xf32>
    %328 = vector.shape_cast %327 : vector<1x1x16x128xf32> to vector<16x128xf32>
    %c1_i32_53 = arith.constant 1 : i32
    %329 = tpu.dynamic_rotate %328 by %c1_i32_53 dim 1 : vector<16x128xf32>, i32 -> vector<16x128xf32>
    %c127_i32_54 = arith.constant 127 : i32
    %330 = tpu.dynamic_rotate %328 by %c127_i32_54 dim 1 : vector<16x128xf32>, i32 -> vector<16x128xf32>
    %c8 = arith.constant 8 : index
    %331 = memref.load %arg2[%c8] : memref<144xf32, #tpu.memory_space<smem>>
    %332 = vector.broadcast %331 : f32 to vector<16x128xf32>
    %333 = arith.mulf %332, %321 : vector<16x128xf32>
    %334 = arith.addf %306, %333 : vector<16x128xf32>
    %c9 = arith.constant 9 : index
    %335 = memref.load %arg2[%c9] : memref<144xf32, #tpu.memory_space<smem>>
    %336 = vector.broadcast %335 : f32 to vector<16x128xf32>
    %337 = arith.mulf %336, %321 : vector<16x128xf32>
    %338 = arith.addf %310, %337 : vector<16x128xf32>
    %c10 = arith.constant 10 : index
    %339 = memref.load %arg2[%c10] : memref<144xf32, #tpu.memory_space<smem>>
    %340 = vector.broadcast %339 : f32 to vector<16x128xf32>
    %341 = arith.mulf %340, %321 : vector<16x128xf32>
    %342 = arith.addf %314, %341 : vector<16x128xf32>
    %c11 = arith.constant 11 : index
    %343 = memref.load %arg2[%c11] : memref<144xf32, #tpu.memory_space<smem>>
    %344 = vector.broadcast %343 : f32 to vector<16x128xf32>
    %345 = arith.mulf %344, %321 : vector<16x128xf32>
    %346 = arith.addf %318, %345 : vector<16x128xf32>
    %c24 = arith.constant 24 : index
    %347 = memref.load %arg2[%c24] : memref<144xf32, #tpu.memory_space<smem>>
    %348 = vector.broadcast %347 : f32 to vector<16x128xf32>
    %349 = arith.mulf %348, %320 : vector<16x128xf32>
    %350 = arith.addf %334, %349 : vector<16x128xf32>
    %c25 = arith.constant 25 : index
    %351 = memref.load %arg2[%c25] : memref<144xf32, #tpu.memory_space<smem>>
    %352 = vector.broadcast %351 : f32 to vector<16x128xf32>
    %353 = arith.mulf %352, %320 : vector<16x128xf32>
    %354 = arith.addf %338, %353 : vector<16x128xf32>
    %c26 = arith.constant 26 : index
    %355 = memref.load %arg2[%c26] : memref<144xf32, #tpu.memory_space<smem>>
    %356 = vector.broadcast %355 : f32 to vector<16x128xf32>
    %357 = arith.mulf %356, %320 : vector<16x128xf32>
    %358 = arith.addf %342, %357 : vector<16x128xf32>
    %c27 = arith.constant 27 : index
    %359 = memref.load %arg2[%c27] : memref<144xf32, #tpu.memory_space<smem>>
    %360 = vector.broadcast %359 : f32 to vector<16x128xf32>
    %361 = arith.mulf %360, %320 : vector<16x128xf32>
    %362 = arith.addf %346, %361 : vector<16x128xf32>
    %c40 = arith.constant 40 : index
    %363 = memref.load %arg2[%c40] : memref<144xf32, #tpu.memory_space<smem>>
    %364 = vector.broadcast %363 : f32 to vector<16x128xf32>
    %365 = arith.mulf %364, %322 : vector<16x128xf32>
    %366 = arith.addf %350, %365 : vector<16x128xf32>
    %c41 = arith.constant 41 : index
    %367 = memref.load %arg2[%c41] : memref<144xf32, #tpu.memory_space<smem>>
    %368 = vector.broadcast %367 : f32 to vector<16x128xf32>
    %369 = arith.mulf %368, %322 : vector<16x128xf32>
    %370 = arith.addf %354, %369 : vector<16x128xf32>
    %c42 = arith.constant 42 : index
    %371 = memref.load %arg2[%c42] : memref<144xf32, #tpu.memory_space<smem>>
    %372 = vector.broadcast %371 : f32 to vector<16x128xf32>
    %373 = arith.mulf %372, %322 : vector<16x128xf32>
    %374 = arith.addf %358, %373 : vector<16x128xf32>
    %c43 = arith.constant 43 : index
    %375 = memref.load %arg2[%c43] : memref<144xf32, #tpu.memory_space<smem>>
    %376 = vector.broadcast %375 : f32 to vector<16x128xf32>
    %377 = arith.mulf %376, %322 : vector<16x128xf32>
    %378 = arith.addf %362, %377 : vector<16x128xf32>
    %c56 = arith.constant 56 : index
    %379 = memref.load %arg2[%c56] : memref<144xf32, #tpu.memory_space<smem>>
    %380 = vector.broadcast %379 : f32 to vector<16x128xf32>
    %381 = arith.mulf %380, %325 : vector<16x128xf32>
    %382 = arith.addf %366, %381 : vector<16x128xf32>
    %c57 = arith.constant 57 : index
    %383 = memref.load %arg2[%c57] : memref<144xf32, #tpu.memory_space<smem>>
    %384 = vector.broadcast %383 : f32 to vector<16x128xf32>
    %385 = arith.mulf %384, %325 : vector<16x128xf32>
    %386 = arith.addf %370, %385 : vector<16x128xf32>
    %c58 = arith.constant 58 : index
    %387 = memref.load %arg2[%c58] : memref<144xf32, #tpu.memory_space<smem>>
    %388 = vector.broadcast %387 : f32 to vector<16x128xf32>
    %389 = arith.mulf %388, %325 : vector<16x128xf32>
    %390 = arith.addf %374, %389 : vector<16x128xf32>
    %c59 = arith.constant 59 : index
    %391 = memref.load %arg2[%c59] : memref<144xf32, #tpu.memory_space<smem>>
    %392 = vector.broadcast %391 : f32 to vector<16x128xf32>
    %393 = arith.mulf %392, %325 : vector<16x128xf32>
    %394 = arith.addf %378, %393 : vector<16x128xf32>
    %c72 = arith.constant 72 : index
    %395 = memref.load %arg2[%c72] : memref<144xf32, #tpu.memory_space<smem>>
    %396 = vector.broadcast %395 : f32 to vector<16x128xf32>
    %397 = arith.mulf %396, %324 : vector<16x128xf32>
    %398 = arith.addf %382, %397 : vector<16x128xf32>
    %c73 = arith.constant 73 : index
    %399 = memref.load %arg2[%c73] : memref<144xf32, #tpu.memory_space<smem>>
    %400 = vector.broadcast %399 : f32 to vector<16x128xf32>
    %401 = arith.mulf %400, %324 : vector<16x128xf32>
    %402 = arith.addf %386, %401 : vector<16x128xf32>
    %c74 = arith.constant 74 : index
    %403 = memref.load %arg2[%c74] : memref<144xf32, #tpu.memory_space<smem>>
    %404 = vector.broadcast %403 : f32 to vector<16x128xf32>
    %405 = arith.mulf %404, %324 : vector<16x128xf32>
    %406 = arith.addf %390, %405 : vector<16x128xf32>
    %c75 = arith.constant 75 : index
    %407 = memref.load %arg2[%c75] : memref<144xf32, #tpu.memory_space<smem>>
    %408 = vector.broadcast %407 : f32 to vector<16x128xf32>
    %409 = arith.mulf %408, %324 : vector<16x128xf32>
    %410 = arith.addf %394, %409 : vector<16x128xf32>
    %c88 = arith.constant 88 : index
    %411 = memref.load %arg2[%c88] : memref<144xf32, #tpu.memory_space<smem>>
    %412 = vector.broadcast %411 : f32 to vector<16x128xf32>
    %413 = arith.mulf %412, %326 : vector<16x128xf32>
    %414 = arith.addf %398, %413 : vector<16x128xf32>
    %c89 = arith.constant 89 : index
    %415 = memref.load %arg2[%c89] : memref<144xf32, #tpu.memory_space<smem>>
    %416 = vector.broadcast %415 : f32 to vector<16x128xf32>
    %417 = arith.mulf %416, %326 : vector<16x128xf32>
    %418 = arith.addf %402, %417 : vector<16x128xf32>
    %c90 = arith.constant 90 : index
    %419 = memref.load %arg2[%c90] : memref<144xf32, #tpu.memory_space<smem>>
    %420 = vector.broadcast %419 : f32 to vector<16x128xf32>
    %421 = arith.mulf %420, %326 : vector<16x128xf32>
    %422 = arith.addf %406, %421 : vector<16x128xf32>
    %c91 = arith.constant 91 : index
    %423 = memref.load %arg2[%c91] : memref<144xf32, #tpu.memory_space<smem>>
    %424 = vector.broadcast %423 : f32 to vector<16x128xf32>
    %425 = arith.mulf %424, %326 : vector<16x128xf32>
    %426 = arith.addf %410, %425 : vector<16x128xf32>
    %c104 = arith.constant 104 : index
    %427 = memref.load %arg2[%c104] : memref<144xf32, #tpu.memory_space<smem>>
    %428 = vector.broadcast %427 : f32 to vector<16x128xf32>
    %429 = arith.mulf %428, %329 : vector<16x128xf32>
    %430 = arith.addf %414, %429 : vector<16x128xf32>
    %c105 = arith.constant 105 : index
    %431 = memref.load %arg2[%c105] : memref<144xf32, #tpu.memory_space<smem>>
    %432 = vector.broadcast %431 : f32 to vector<16x128xf32>
    %433 = arith.mulf %432, %329 : vector<16x128xf32>
    %434 = arith.addf %418, %433 : vector<16x128xf32>
    %c106 = arith.constant 106 : index
    %435 = memref.load %arg2[%c106] : memref<144xf32, #tpu.memory_space<smem>>
    %436 = vector.broadcast %435 : f32 to vector<16x128xf32>
    %437 = arith.mulf %436, %329 : vector<16x128xf32>
    %438 = arith.addf %422, %437 : vector<16x128xf32>
    %c107 = arith.constant 107 : index
    %439 = memref.load %arg2[%c107] : memref<144xf32, #tpu.memory_space<smem>>
    %440 = vector.broadcast %439 : f32 to vector<16x128xf32>
    %441 = arith.mulf %440, %329 : vector<16x128xf32>
    %442 = arith.addf %426, %441 : vector<16x128xf32>
    %c120 = arith.constant 120 : index
    %443 = memref.load %arg2[%c120] : memref<144xf32, #tpu.memory_space<smem>>
    %444 = vector.broadcast %443 : f32 to vector<16x128xf32>
    %445 = arith.mulf %444, %328 : vector<16x128xf32>
    %446 = arith.addf %430, %445 : vector<16x128xf32>
    %c121 = arith.constant 121 : index
    %447 = memref.load %arg2[%c121] : memref<144xf32, #tpu.memory_space<smem>>
    %448 = vector.broadcast %447 : f32 to vector<16x128xf32>
    %449 = arith.mulf %448, %328 : vector<16x128xf32>
    %450 = arith.addf %434, %449 : vector<16x128xf32>
    %c122 = arith.constant 122 : index
    %451 = memref.load %arg2[%c122] : memref<144xf32, #tpu.memory_space<smem>>
    %452 = vector.broadcast %451 : f32 to vector<16x128xf32>
    %453 = arith.mulf %452, %328 : vector<16x128xf32>
    %454 = arith.addf %438, %453 : vector<16x128xf32>
    %c123 = arith.constant 123 : index
    %455 = memref.load %arg2[%c123] : memref<144xf32, #tpu.memory_space<smem>>
    %456 = vector.broadcast %455 : f32 to vector<16x128xf32>
    %457 = arith.mulf %456, %328 : vector<16x128xf32>
    %458 = arith.addf %442, %457 : vector<16x128xf32>
    %c136 = arith.constant 136 : index
    %459 = memref.load %arg2[%c136] : memref<144xf32, #tpu.memory_space<smem>>
    %460 = vector.broadcast %459 : f32 to vector<16x128xf32>
    %461 = arith.mulf %460, %330 : vector<16x128xf32>
    %462 = arith.addf %446, %461 : vector<16x128xf32>
    %c137 = arith.constant 137 : index
    %463 = memref.load %arg2[%c137] : memref<144xf32, #tpu.memory_space<smem>>
    %464 = vector.broadcast %463 : f32 to vector<16x128xf32>
    %465 = arith.mulf %464, %330 : vector<16x128xf32>
    %466 = arith.addf %450, %465 : vector<16x128xf32>
    %c138 = arith.constant 138 : index
    %467 = memref.load %arg2[%c138] : memref<144xf32, #tpu.memory_space<smem>>
    %468 = vector.broadcast %467 : f32 to vector<16x128xf32>
    %469 = arith.mulf %468, %330 : vector<16x128xf32>
    %470 = arith.addf %454, %469 : vector<16x128xf32>
    %c139 = arith.constant 139 : index
    %471 = memref.load %arg2[%c139] : memref<144xf32, #tpu.memory_space<smem>>
    %472 = vector.broadcast %471 : f32 to vector<16x128xf32>
    %473 = arith.mulf %472, %330 : vector<16x128xf32>
    %474 = arith.addf %458, %473 : vector<16x128xf32>
    %c0_55 = arith.constant 0 : index
    %c3_56 = arith.constant 3 : index
    %c0_57 = arith.constant 0 : index
    %c0_58 = arith.constant 0 : index
    %475 = vector.load %arg1[%c0_55, %c3_56, %c0_57, %c0_58] : memref<1x4x18x128xf32, #tpu.memory_space<vmem>>, vector<1x1x16x128xf32>
    %476 = vector.shape_cast %475 : vector<1x1x16x128xf32> to vector<16x128xf32>
    %c1_i32_59 = arith.constant 1 : i32
    %477 = tpu.dynamic_rotate %476 by %c1_i32_59 dim 1 : vector<16x128xf32>, i32 -> vector<16x128xf32>
    %c127_i32_60 = arith.constant 127 : i32
    %478 = tpu.dynamic_rotate %476 by %c127_i32_60 dim 1 : vector<16x128xf32>, i32 -> vector<16x128xf32>
    %c0_61 = arith.constant 0 : index
    %c3_62 = arith.constant 3 : index
    %c1_63 = arith.constant 1 : index
    %c0_64 = arith.constant 0 : index
    %479 = vector.load %arg1[%c0_61, %c3_62, %c1_63, %c0_64] : memref<1x4x18x128xf32, #tpu.memory_space<vmem>>, vector<1x1x16x128xf32>
    %480 = vector.shape_cast %479 : vector<1x1x16x128xf32> to vector<16x128xf32>
    %c1_i32_65 = arith.constant 1 : i32
    %481 = tpu.dynamic_rotate %480 by %c1_i32_65 dim 1 : vector<16x128xf32>, i32 -> vector<16x128xf32>
    %c127_i32_66 = arith.constant 127 : i32
    %482 = tpu.dynamic_rotate %480 by %c127_i32_66 dim 1 : vector<16x128xf32>, i32 -> vector<16x128xf32>
    %c0_67 = arith.constant 0 : index
    %c3_68 = arith.constant 3 : index
    %c2_69 = arith.constant 2 : index
    %c0_70 = arith.constant 0 : index
    %483 = vector.load %arg1[%c0_67, %c3_68, %c2_69, %c0_70] : memref<1x4x18x128xf32, #tpu.memory_space<vmem>>, vector<1x1x16x128xf32>
    %484 = vector.shape_cast %483 : vector<1x1x16x128xf32> to vector<16x128xf32>
    %c1_i32_71 = arith.constant 1 : i32
    %485 = tpu.dynamic_rotate %484 by %c1_i32_71 dim 1 : vector<16x128xf32>, i32 -> vector<16x128xf32>
    %c127_i32_72 = arith.constant 127 : i32
    %486 = tpu.dynamic_rotate %484 by %c127_i32_72 dim 1 : vector<16x128xf32>, i32 -> vector<16x128xf32>
    %c12 = arith.constant 12 : index
    %487 = memref.load %arg2[%c12] : memref<144xf32, #tpu.memory_space<smem>>
    %488 = vector.broadcast %487 : f32 to vector<16x128xf32>
    %489 = arith.mulf %488, %477 : vector<16x128xf32>
    %490 = arith.addf %462, %489 : vector<16x128xf32>
    %c13 = arith.constant 13 : index
    %491 = memref.load %arg2[%c13] : memref<144xf32, #tpu.memory_space<smem>>
    %492 = vector.broadcast %491 : f32 to vector<16x128xf32>
    %493 = arith.mulf %492, %477 : vector<16x128xf32>
    %494 = arith.addf %466, %493 : vector<16x128xf32>
    %c14 = arith.constant 14 : index
    %495 = memref.load %arg2[%c14] : memref<144xf32, #tpu.memory_space<smem>>
    %496 = vector.broadcast %495 : f32 to vector<16x128xf32>
    %497 = arith.mulf %496, %477 : vector<16x128xf32>
    %498 = arith.addf %470, %497 : vector<16x128xf32>
    %c15 = arith.constant 15 : index
    %499 = memref.load %arg2[%c15] : memref<144xf32, #tpu.memory_space<smem>>
    %500 = vector.broadcast %499 : f32 to vector<16x128xf32>
    %501 = arith.mulf %500, %477 : vector<16x128xf32>
    %502 = arith.addf %474, %501 : vector<16x128xf32>
    %c28 = arith.constant 28 : index
    %503 = memref.load %arg2[%c28] : memref<144xf32, #tpu.memory_space<smem>>
    %504 = vector.broadcast %503 : f32 to vector<16x128xf32>
    %505 = arith.mulf %504, %476 : vector<16x128xf32>
    %506 = arith.addf %490, %505 : vector<16x128xf32>
    %c29 = arith.constant 29 : index
    %507 = memref.load %arg2[%c29] : memref<144xf32, #tpu.memory_space<smem>>
    %508 = vector.broadcast %507 : f32 to vector<16x128xf32>
    %509 = arith.mulf %508, %476 : vector<16x128xf32>
    %510 = arith.addf %494, %509 : vector<16x128xf32>
    %c30 = arith.constant 30 : index
    %511 = memref.load %arg2[%c30] : memref<144xf32, #tpu.memory_space<smem>>
    %512 = vector.broadcast %511 : f32 to vector<16x128xf32>
    %513 = arith.mulf %512, %476 : vector<16x128xf32>
    %514 = arith.addf %498, %513 : vector<16x128xf32>
    %c31 = arith.constant 31 : index
    %515 = memref.load %arg2[%c31] : memref<144xf32, #tpu.memory_space<smem>>
    %516 = vector.broadcast %515 : f32 to vector<16x128xf32>
    %517 = arith.mulf %516, %476 : vector<16x128xf32>
    %518 = arith.addf %502, %517 : vector<16x128xf32>
    %c44 = arith.constant 44 : index
    %519 = memref.load %arg2[%c44] : memref<144xf32, #tpu.memory_space<smem>>
    %520 = vector.broadcast %519 : f32 to vector<16x128xf32>
    %521 = arith.mulf %520, %478 : vector<16x128xf32>
    %522 = arith.addf %506, %521 : vector<16x128xf32>
    %c45 = arith.constant 45 : index
    %523 = memref.load %arg2[%c45] : memref<144xf32, #tpu.memory_space<smem>>
    %524 = vector.broadcast %523 : f32 to vector<16x128xf32>
    %525 = arith.mulf %524, %478 : vector<16x128xf32>
    %526 = arith.addf %510, %525 : vector<16x128xf32>
    %c46 = arith.constant 46 : index
    %527 = memref.load %arg2[%c46] : memref<144xf32, #tpu.memory_space<smem>>
    %528 = vector.broadcast %527 : f32 to vector<16x128xf32>
    %529 = arith.mulf %528, %478 : vector<16x128xf32>
    %530 = arith.addf %514, %529 : vector<16x128xf32>
    %c47 = arith.constant 47 : index
    %531 = memref.load %arg2[%c47] : memref<144xf32, #tpu.memory_space<smem>>
    %532 = vector.broadcast %531 : f32 to vector<16x128xf32>
    %533 = arith.mulf %532, %478 : vector<16x128xf32>
    %534 = arith.addf %518, %533 : vector<16x128xf32>
    %c60 = arith.constant 60 : index
    %535 = memref.load %arg2[%c60] : memref<144xf32, #tpu.memory_space<smem>>
    %536 = vector.broadcast %535 : f32 to vector<16x128xf32>
    %537 = arith.mulf %536, %481 : vector<16x128xf32>
    %538 = arith.addf %522, %537 : vector<16x128xf32>
    %c61 = arith.constant 61 : index
    %539 = memref.load %arg2[%c61] : memref<144xf32, #tpu.memory_space<smem>>
    %540 = vector.broadcast %539 : f32 to vector<16x128xf32>
    %541 = arith.mulf %540, %481 : vector<16x128xf32>
    %542 = arith.addf %526, %541 : vector<16x128xf32>
    %c62 = arith.constant 62 : index
    %543 = memref.load %arg2[%c62] : memref<144xf32, #tpu.memory_space<smem>>
    %544 = vector.broadcast %543 : f32 to vector<16x128xf32>
    %545 = arith.mulf %544, %481 : vector<16x128xf32>
    %546 = arith.addf %530, %545 : vector<16x128xf32>
    %c63 = arith.constant 63 : index
    %547 = memref.load %arg2[%c63] : memref<144xf32, #tpu.memory_space<smem>>
    %548 = vector.broadcast %547 : f32 to vector<16x128xf32>
    %549 = arith.mulf %548, %481 : vector<16x128xf32>
    %550 = arith.addf %534, %549 : vector<16x128xf32>
    %c76 = arith.constant 76 : index
    %551 = memref.load %arg2[%c76] : memref<144xf32, #tpu.memory_space<smem>>
    %552 = vector.broadcast %551 : f32 to vector<16x128xf32>
    %553 = arith.mulf %552, %480 : vector<16x128xf32>
    %554 = arith.addf %538, %553 : vector<16x128xf32>
    %c77 = arith.constant 77 : index
    %555 = memref.load %arg2[%c77] : memref<144xf32, #tpu.memory_space<smem>>
    %556 = vector.broadcast %555 : f32 to vector<16x128xf32>
    %557 = arith.mulf %556, %480 : vector<16x128xf32>
    %558 = arith.addf %542, %557 : vector<16x128xf32>
    %c78 = arith.constant 78 : index
    %559 = memref.load %arg2[%c78] : memref<144xf32, #tpu.memory_space<smem>>
    %560 = vector.broadcast %559 : f32 to vector<16x128xf32>
    %561 = arith.mulf %560, %480 : vector<16x128xf32>
    %562 = arith.addf %546, %561 : vector<16x128xf32>
    %c79 = arith.constant 79 : index
    %563 = memref.load %arg2[%c79] : memref<144xf32, #tpu.memory_space<smem>>
    %564 = vector.broadcast %563 : f32 to vector<16x128xf32>
    %565 = arith.mulf %564, %480 : vector<16x128xf32>
    %566 = arith.addf %550, %565 : vector<16x128xf32>
    %c92 = arith.constant 92 : index
    %567 = memref.load %arg2[%c92] : memref<144xf32, #tpu.memory_space<smem>>
    %568 = vector.broadcast %567 : f32 to vector<16x128xf32>
    %569 = arith.mulf %568, %482 : vector<16x128xf32>
    %570 = arith.addf %554, %569 : vector<16x128xf32>
    %c93 = arith.constant 93 : index
    %571 = memref.load %arg2[%c93] : memref<144xf32, #tpu.memory_space<smem>>
    %572 = vector.broadcast %571 : f32 to vector<16x128xf32>
    %573 = arith.mulf %572, %482 : vector<16x128xf32>
    %574 = arith.addf %558, %573 : vector<16x128xf32>
    %c94 = arith.constant 94 : index
    %575 = memref.load %arg2[%c94] : memref<144xf32, #tpu.memory_space<smem>>
    %576 = vector.broadcast %575 : f32 to vector<16x128xf32>
    %577 = arith.mulf %576, %482 : vector<16x128xf32>
    %578 = arith.addf %562, %577 : vector<16x128xf32>
    %c95 = arith.constant 95 : index
    %579 = memref.load %arg2[%c95] : memref<144xf32, #tpu.memory_space<smem>>
    %580 = vector.broadcast %579 : f32 to vector<16x128xf32>
    %581 = arith.mulf %580, %482 : vector<16x128xf32>
    %582 = arith.addf %566, %581 : vector<16x128xf32>
    %c108 = arith.constant 108 : index
    %583 = memref.load %arg2[%c108] : memref<144xf32, #tpu.memory_space<smem>>
    %584 = vector.broadcast %583 : f32 to vector<16x128xf32>
    %585 = arith.mulf %584, %485 : vector<16x128xf32>
    %586 = arith.addf %570, %585 : vector<16x128xf32>
    %c109 = arith.constant 109 : index
    %587 = memref.load %arg2[%c109] : memref<144xf32, #tpu.memory_space<smem>>
    %588 = vector.broadcast %587 : f32 to vector<16x128xf32>
    %589 = arith.mulf %588, %485 : vector<16x128xf32>
    %590 = arith.addf %574, %589 : vector<16x128xf32>
    %c110 = arith.constant 110 : index
    %591 = memref.load %arg2[%c110] : memref<144xf32, #tpu.memory_space<smem>>
    %592 = vector.broadcast %591 : f32 to vector<16x128xf32>
    %593 = arith.mulf %592, %485 : vector<16x128xf32>
    %594 = arith.addf %578, %593 : vector<16x128xf32>
    %c111 = arith.constant 111 : index
    %595 = memref.load %arg2[%c111] : memref<144xf32, #tpu.memory_space<smem>>
    %596 = vector.broadcast %595 : f32 to vector<16x128xf32>
    %597 = arith.mulf %596, %485 : vector<16x128xf32>
    %598 = arith.addf %582, %597 : vector<16x128xf32>
    %c124 = arith.constant 124 : index
    %599 = memref.load %arg2[%c124] : memref<144xf32, #tpu.memory_space<smem>>
    %600 = vector.broadcast %599 : f32 to vector<16x128xf32>
    %601 = arith.mulf %600, %484 : vector<16x128xf32>
    %602 = arith.addf %586, %601 : vector<16x128xf32>
    %c125 = arith.constant 125 : index
    %603 = memref.load %arg2[%c125] : memref<144xf32, #tpu.memory_space<smem>>
    %604 = vector.broadcast %603 : f32 to vector<16x128xf32>
    %605 = arith.mulf %604, %484 : vector<16x128xf32>
    %606 = arith.addf %590, %605 : vector<16x128xf32>
    %c126 = arith.constant 126 : index
    %607 = memref.load %arg2[%c126] : memref<144xf32, #tpu.memory_space<smem>>
    %608 = vector.broadcast %607 : f32 to vector<16x128xf32>
    %609 = arith.mulf %608, %484 : vector<16x128xf32>
    %610 = arith.addf %594, %609 : vector<16x128xf32>
    %c127 = arith.constant 127 : index
    %611 = memref.load %arg2[%c127] : memref<144xf32, #tpu.memory_space<smem>>
    %612 = vector.broadcast %611 : f32 to vector<16x128xf32>
    %613 = arith.mulf %612, %484 : vector<16x128xf32>
    %614 = arith.addf %598, %613 : vector<16x128xf32>
    %c140 = arith.constant 140 : index
    %615 = memref.load %arg2[%c140] : memref<144xf32, #tpu.memory_space<smem>>
    %616 = vector.broadcast %615 : f32 to vector<16x128xf32>
    %617 = arith.mulf %616, %486 : vector<16x128xf32>
    %618 = arith.addf %602, %617 : vector<16x128xf32>
    %c141 = arith.constant 141 : index
    %619 = memref.load %arg2[%c141] : memref<144xf32, #tpu.memory_space<smem>>
    %620 = vector.broadcast %619 : f32 to vector<16x128xf32>
    %621 = arith.mulf %620, %486 : vector<16x128xf32>
    %622 = arith.addf %606, %621 : vector<16x128xf32>
    %c142 = arith.constant 142 : index
    %623 = memref.load %arg2[%c142] : memref<144xf32, #tpu.memory_space<smem>>
    %624 = vector.broadcast %623 : f32 to vector<16x128xf32>
    %625 = arith.mulf %624, %486 : vector<16x128xf32>
    %626 = arith.addf %610, %625 : vector<16x128xf32>
    %c143 = arith.constant 143 : index
    %627 = memref.load %arg2[%c143] : memref<144xf32, #tpu.memory_space<smem>>
    %628 = vector.broadcast %627 : f32 to vector<16x128xf32>
    %629 = arith.mulf %628, %486 : vector<16x128xf32>
    %630 = arith.addf %614, %629 : vector<16x128xf32>
    %cst_73 = arith.constant 0.000000e+00 : f32
    %631 = vector.broadcast %cst_73 : f32 to vector<1x128xf32>
    %c0_74 = arith.constant 0 : index
    %c0_75 = arith.constant 0 : index
    %c0_76 = arith.constant 0 : index
    %632 = vector.load %arg9[%c0_74, %c0_75, %c0_76] : memref<4x18x128xf32, #tpu.memory_space<vmem>>, vector<1x1x128xf32>
    %633 = vector.shape_cast %632 : vector<1x1x128xf32> to vector<1x128xf32>
    %634 = vector.shape_cast %631 : vector<1x128xf32> to vector<1x1x128xf32>
    tpu.vector_store %arg9[%c0_74, %c0_75, %c0_76], %634 {strides = array<i32>} : memref<4x18x128xf32, #tpu.memory_space<vmem>>, vector<1x1x128xf32>,
    %c0_77 = arith.constant 0 : index
    %c17_78 = arith.constant 17 : index
    %c0_79 = arith.constant 0 : index
    %635 = vector.load %arg9[%c0_77, %c17_78, %c0_79] : memref<4x18x128xf32, #tpu.memory_space<vmem>>, vector<1x1x128xf32>
    %636 = vector.shape_cast %635 : vector<1x1x128xf32> to vector<1x128xf32>
    %637 = vector.shape_cast %631 : vector<1x128xf32> to vector<1x1x128xf32>
    tpu.vector_store %arg9[%c0_77, %c17_78, %c0_79], %637 {strides = array<i32>} : memref<4x18x128xf32, #tpu.memory_space<vmem>>, vector<1x1x128xf32>,
    %c1_80 = arith.constant 1 : index
    %c0_81 = arith.constant 0 : index
    %c0_82 = arith.constant 0 : index
    %638 = vector.load %arg9[%c1_80, %c0_81, %c0_82] : memref<4x18x128xf32, #tpu.memory_space<vmem>>, vector<1x1x128xf32>
    %639 = vector.shape_cast %638 : vector<1x1x128xf32> to vector<1x128xf32>
    %640 = vector.shape_cast %631 : vector<1x128xf32> to vector<1x1x128xf32>
    tpu.vector_store %arg9[%c1_80, %c0_81, %c0_82], %640 {strides = array<i32>} : memref<4x18x128xf32, #tpu.memory_space<vmem>>, vector<1x1x128xf32>,
    %c1_83 = arith.constant 1 : index
    %c17_84 = arith.constant 17 : index
    %c0_85 = arith.constant 0 : index
    %641 = vector.load %arg9[%c1_83, %c17_84, %c0_85] : memref<4x18x128xf32, #tpu.memory_space<vmem>>, vector<1x1x128xf32>
    %642 = vector.shape_cast %641 : vector<1x1x128xf32> to vector<1x128xf32>
    %643 = vector.shape_cast %631 : vector<1x128xf32> to vector<1x1x128xf32>
    tpu.vector_store %arg9[%c1_83, %c17_84, %c0_85], %643 {strides = array<i32>} : memref<4x18x128xf32, #tpu.memory_space<vmem>>, vector<1x1x128xf32>,
    %c2_86 = arith.constant 2 : index
    %c0_87 = arith.constant 0 : index
    %c0_88 = arith.constant 0 : index
    %644 = vector.load %arg9[%c2_86, %c0_87, %c0_88] : memref<4x18x128xf32, #tpu.memory_space<vmem>>, vector<1x1x128xf32>
    %645 = vector.shape_cast %644 : vector<1x1x128xf32> to vector<1x128xf32>
    %646 = vector.shape_cast %631 : vector<1x128xf32> to vector<1x1x128xf32>
    tpu.vector_store %arg9[%c2_86, %c0_87, %c0_88], %646 {strides = array<i32>} : memref<4x18x128xf32, #tpu.memory_space<vmem>>, vector<1x1x128xf32>,
    %c2_89 = arith.constant 2 : index
    %c17_90 = arith.constant 17 : index
    %c0_91 = arith.constant 0 : index
    %647 = vector.load %arg9[%c2_89, %c17_90, %c0_91] : memref<4x18x128xf32, #tpu.memory_space<vmem>>, vector<1x1x128xf32>
    %648 = vector.shape_cast %647 : vector<1x1x128xf32> to vector<1x128xf32>
    %649 = vector.shape_cast %631 : vector<1x128xf32> to vector<1x1x128xf32>
    tpu.vector_store %arg9[%c2_89, %c17_90, %c0_91], %649 {strides = array<i32>} : memref<4x18x128xf32, #tpu.memory_space<vmem>>, vector<1x1x128xf32>,
    %c3_92 = arith.constant 3 : index
    %c0_93 = arith.constant 0 : index
    %c0_94 = arith.constant 0 : index
    %650 = vector.load %arg9[%c3_92, %c0_93, %c0_94] : memref<4x18x128xf32, #tpu.memory_space<vmem>>, vector<1x1x128xf32>
    %651 = vector.shape_cast %650 : vector<1x1x128xf32> to vector<1x128xf32>
    %652 = vector.shape_cast %631 : vector<1x128xf32> to vector<1x1x128xf32>
    tpu.vector_store %arg9[%c3_92, %c0_93, %c0_94], %652 {strides = array<i32>} : memref<4x18x128xf32, #tpu.memory_space<vmem>>, vector<1x1x128xf32>,
    %c3_95 = arith.constant 3 : index
    %c17_96 = arith.constant 17 : index
    %c0_97 = arith.constant 0 : index
    %653 = vector.load %arg9[%c3_95, %c17_96, %c0_97] : memref<4x18x128xf32, #tpu.memory_space<vmem>>, vector<1x1x128xf32>
    %654 = vector.shape_cast %653 : vector<1x1x128xf32> to vector<1x128xf32>
    %655 = vector.shape_cast %631 : vector<1x128xf32> to vector<1x1x128xf32>
    tpu.vector_store %arg9[%c3_95, %c17_96, %c0_97], %655 {strides = array<i32>} : memref<4x18x128xf32, #tpu.memory_space<vmem>>, vector<1x1x128xf32>,
    %c0_98 = arith.constant 0 : index
    %656 = memref.load %arg3[%c0_98] : memref<4xf32, #tpu.memory_space<smem>>
    %657 = vector.broadcast %656 : f32 to vector<16x128xf32>
    %658 = arith.addf %618, %657 : vector<16x128xf32>
    %cst_99 = arith.constant 0.000000e+00 : f32
    %659 = vector.broadcast %cst_99 : f32 to vector<16x128xf32>
    %660 = arith.maximumf %658, %659 : vector<16x128xf32>
    %cst_100 = arith.constant 0.000000e+00 : f32
    %661 = vector.broadcast %cst_100 : f32 to vector<16x128xf32>
    %662 = arith.select %2, %661, %660 : vector<16x128xi1>, vector<16x128xf32>
    %c0_101 = arith.constant 0 : index
    %c1_102 = arith.constant 1 : index
    %c0_103 = arith.constant 0 : index
    %663 = vector.load %arg9[%c0_101, %c1_102, %c0_103] : memref<4x18x128xf32, #tpu.memory_space<vmem>>, vector<1x16x128xf32>
    %664 = vector.shape_cast %663 : vector<1x16x128xf32> to vector<16x128xf32>
    %665 = vector.shape_cast %662 : vector<16x128xf32> to vector<1x16x128xf32>
    tpu.vector_store %arg9[%c0_101, %c1_102, %c0_103], %665 {strides = array<i32>} : memref<4x18x128xf32, #tpu.memory_space<vmem>>, vector<1x16x128xf32>,
    %c1_104 = arith.constant 1 : index
    %666 = memref.load %arg3[%c1_104] : memref<4xf32, #tpu.memory_space<smem>>
    %667 = vector.broadcast %666 : f32 to vector<16x128xf32>
    %668 = arith.addf %622, %667 : vector<16x128xf32>
    %cst_105 = arith.constant 0.000000e+00 : f32
    %669 = vector.broadcast %cst_105 : f32 to vector<16x128xf32>
    %670 = arith.maximumf %668, %669 : vector<16x128xf32>
    %cst_106 = arith.constant 0.000000e+00 : f32
    %671 = vector.broadcast %cst_106 : f32 to vector<16x128xf32>
    %672 = arith.select %2, %671, %670 : vector<16x128xi1>, vector<16x128xf32>
    %c1_107 = arith.constant 1 : index
    %c1_108 = arith.constant 1 : index
    %c0_109 = arith.constant 0 : index
    %673 = vector.load %arg9[%c1_107, %c1_108, %c0_109] : memref<4x18x128xf32, #tpu.memory_space<vmem>>, vector<1x16x128xf32>
    %674 = vector.shape_cast %673 : vector<1x16x128xf32> to vector<16x128xf32>
    %675 = vector.shape_cast %672 : vector<16x128xf32> to vector<1x16x128xf32>
    tpu.vector_store %arg9[%c1_107, %c1_108, %c0_109], %675 {strides = array<i32>} : memref<4x18x128xf32, #tpu.memory_space<vmem>>, vector<1x16x128xf32>,
    %c2_110 = arith.constant 2 : index
    %676 = memref.load %arg3[%c2_110] : memref<4xf32, #tpu.memory_space<smem>>
    %677 = vector.broadcast %676 : f32 to vector<16x128xf32>
    %678 = arith.addf %626, %677 : vector<16x128xf32>
    %cst_111 = arith.constant 0.000000e+00 : f32
    %679 = vector.broadcast %cst_111 : f32 to vector<16x128xf32>
    %680 = arith.maximumf %678, %679 : vector<16x128xf32>
    %cst_112 = arith.constant 0.000000e+00 : f32
    %681 = vector.broadcast %cst_112 : f32 to vector<16x128xf32>
    %682 = arith.select %2, %681, %680 : vector<16x128xi1>, vector<16x128xf32>
    %c2_113 = arith.constant 2 : index
    %c1_114 = arith.constant 1 : index
    %c0_115 = arith.constant 0 : index
    %683 = vector.load %arg9[%c2_113, %c1_114, %c0_115] : memref<4x18x128xf32, #tpu.memory_space<vmem>>, vector<1x16x128xf32>
    %684 = vector.shape_cast %683 : vector<1x16x128xf32> to vector<16x128xf32>
    %685 = vector.shape_cast %682 : vector<16x128xf32> to vector<1x16x128xf32>
    tpu.vector_store %arg9[%c2_113, %c1_114, %c0_115], %685 {strides = array<i32>} : memref<4x18x128xf32, #tpu.memory_space<vmem>>, vector<1x16x128xf32>,
    %c3_116 = arith.constant 3 : index
    %686 = memref.load %arg3[%c3_116] : memref<4xf32, #tpu.memory_space<smem>>
    %687 = vector.broadcast %686 : f32 to vector<16x128xf32>
    %688 = arith.addf %630, %687 : vector<16x128xf32>
    %cst_117 = arith.constant 0.000000e+00 : f32
    %689 = vector.broadcast %cst_117 : f32 to vector<16x128xf32>
    %690 = arith.maximumf %688, %689 : vector<16x128xf32>
    %cst_118 = arith.constant 0.000000e+00 : f32
    %691 = vector.broadcast %cst_118 : f32 to vector<16x128xf32>
    %692 = arith.select %2, %691, %690 : vector<16x128xi1>, vector<16x128xf32>
    %c3_119 = arith.constant 3 : index
    %c1_120 = arith.constant 1 : index
    %c0_121 = arith.constant 0 : index
    %693 = vector.load %arg9[%c3_119, %c1_120, %c0_121] : memref<4x18x128xf32, #tpu.memory_space<vmem>>, vector<1x16x128xf32>
    %694 = vector.shape_cast %693 : vector<1x16x128xf32> to vector<16x128xf32>
    %695 = vector.shape_cast %692 : vector<16x128xf32> to vector<1x16x128xf32>
    tpu.vector_store %arg9[%c3_119, %c1_120, %c0_121], %695 {strides = array<i32>} : memref<4x18x128xf32, #tpu.memory_space<vmem>>, vector<1x16x128xf32>,
    %cst_122 = arith.constant 0.000000e+00 : f32
    %696 = vector.broadcast %cst_122 : f32 to vector<16x128xf32>
    %cst_123 = arith.constant 0.000000e+00 : f32
    %697 = vector.broadcast %cst_123 : f32 to vector<16x128xf32>
    %cst_124 = arith.constant 0.000000e+00 : f32
    %698 = vector.broadcast %cst_124 : f32 to vector<16x128xf32>
    %cst_125 = arith.constant 0.000000e+00 : f32
    %699 = vector.broadcast %cst_125 : f32 to vector<16x128xf32>
    %c0_126 = arith.constant 0 : index
    %c0_127 = arith.constant 0 : index
    %c0_128 = arith.constant 0 : index
    %700 = vector.load %arg9[%c0_126, %c0_127, %c0_128] : memref<4x18x128xf32, #tpu.memory_space<vmem>>, vector<1x16x128xf32>
    %701 = vector.shape_cast %700 : vector<1x16x128xf32> to vector<16x128xf32>
    %c1_i32_129 = arith.constant 1 : i32
    %702 = tpu.dynamic_rotate %701 by %c1_i32_129 dim 1 : vector<16x128xf32>, i32 -> vector<16x128xf32>
    %c127_i32_130 = arith.constant 127 : i32
    %703 = tpu.dynamic_rotate %701 by %c127_i32_130 dim 1 : vector<16x128xf32>, i32 -> vector<16x128xf32>
    %c0_131 = arith.constant 0 : index
    %c1_132 = arith.constant 1 : index
    %c0_133 = arith.constant 0 : index
    %704 = vector.load %arg9[%c0_131, %c1_132, %c0_133] : memref<4x18x128xf32, #tpu.memory_space<vmem>>, vector<1x16x128xf32>
    %705 = vector.shape_cast %704 : vector<1x16x128xf32> to vector<16x128xf32>
    %c1_i32_134 = arith.constant 1 : i32
    %706 = tpu.dynamic_rotate %705 by %c1_i32_134 dim 1 : vector<16x128xf32>, i32 -> vector<16x128xf32>
    %c127_i32_135 = arith.constant 127 : i32
    %707 = tpu.dynamic_rotate %705 by %c127_i32_135 dim 1 : vector<16x128xf32>, i32 -> vector<16x128xf32>
    %c0_136 = arith.constant 0 : index
    %c2_137 = arith.constant 2 : index
    %c0_138 = arith.constant 0 : index
    %708 = vector.load %arg9[%c0_136, %c2_137, %c0_138] : memref<4x18x128xf32, #tpu.memory_space<vmem>>, vector<1x16x128xf32>
    %709 = vector.shape_cast %708 : vector<1x16x128xf32> to vector<16x128xf32>
    %c1_i32_139 = arith.constant 1 : i32
    %710 = tpu.dynamic_rotate %709 by %c1_i32_139 dim 1 : vector<16x128xf32>, i32 -> vector<16x128xf32>
    %c127_i32_140 = arith.constant 127 : i32
    %711 = tpu.dynamic_rotate %709 by %c127_i32_140 dim 1 : vector<16x128xf32>, i32 -> vector<16x128xf32>
    %cst_141 = arith.constant 0.000000e+00 : f32
    %712 = vector.broadcast %cst_141 : f32 to vector<16x128xf32>
    %c0_142 = arith.constant 0 : index
    %713 = memref.load %arg4[%c0_142] : memref<216xf32, #tpu.memory_space<smem>>
    %714 = vector.broadcast %713 : f32 to vector<16x128xf32>
    %715 = arith.mulf %714, %702 : vector<16x128xf32>
    %716 = arith.addf %712, %715 : vector<16x128xf32>
    %c24_143 = arith.constant 24 : index
    %717 = memref.load %arg4[%c24_143] : memref<216xf32, #tpu.memory_space<smem>>
    %718 = vector.broadcast %717 : f32 to vector<16x128xf32>
    %719 = arith.mulf %718, %701 : vector<16x128xf32>
    %720 = arith.addf %716, %719 : vector<16x128xf32>
    %c48_144 = arith.constant 48 : index
    %721 = memref.load %arg4[%c48_144] : memref<216xf32, #tpu.memory_space<smem>>
    %722 = vector.broadcast %721 : f32 to vector<16x128xf32>
    %723 = arith.mulf %722, %703 : vector<16x128xf32>
    %724 = arith.addf %720, %723 : vector<16x128xf32>
    %c72_145 = arith.constant 72 : index
    %725 = memref.load %arg4[%c72_145] : memref<216xf32, #tpu.memory_space<smem>>
    %726 = vector.broadcast %725 : f32 to vector<16x128xf32>
    %727 = arith.mulf %726, %706 : vector<16x128xf32>
    %728 = arith.addf %724, %727 : vector<16x128xf32>
    %c96_146 = arith.constant 96 : index
    %729 = memref.load %arg4[%c96_146] : memref<216xf32, #tpu.memory_space<smem>>
    %730 = vector.broadcast %729 : f32 to vector<16x128xf32>
    %731 = arith.mulf %730, %705 : vector<16x128xf32>
    %732 = arith.addf %728, %731 : vector<16x128xf32>
    %c120_147 = arith.constant 120 : index
    %733 = memref.load %arg4[%c120_147] : memref<216xf32, #tpu.memory_space<smem>>
    %734 = vector.broadcast %733 : f32 to vector<16x128xf32>
    %735 = arith.mulf %734, %707 : vector<16x128xf32>
    %736 = arith.addf %732, %735 : vector<16x128xf32>
    %c144 = arith.constant 144 : index
    %737 = memref.load %arg4[%c144] : memref<216xf32, #tpu.memory_space<smem>>
    %738 = vector.broadcast %737 : f32 to vector<16x128xf32>
    %739 = arith.mulf %738, %710 : vector<16x128xf32>
    %740 = arith.addf %736, %739 : vector<16x128xf32>
    %c168 = arith.constant 168 : index
    %741 = memref.load %arg4[%c168] : memref<216xf32, #tpu.memory_space<smem>>
    %742 = vector.broadcast %741 : f32 to vector<16x128xf32>
    %743 = arith.mulf %742, %709 : vector<16x128xf32>
    %744 = arith.addf %740, %743 : vector<16x128xf32>
    %c192 = arith.constant 192 : index
    %745 = memref.load %arg4[%c192] : memref<216xf32, #tpu.memory_space<smem>>
    %746 = vector.broadcast %745 : f32 to vector<16x128xf32>
    %747 = arith.mulf %746, %711 : vector<16x128xf32>
    %748 = arith.addf %744, %747 : vector<16x128xf32>
    %c0_148 = arith.constant 0 : index
    %749 = memref.load %arg5[%c0_148] : memref<24xf32, #tpu.memory_space<smem>>
    %750 = vector.broadcast %749 : f32 to vector<16x128xf32>
    %751 = arith.addf %748, %750 : vector<16x128xf32>
    %cst_149 = arith.constant 0.000000e+00 : f32
    %752 = vector.broadcast %cst_149 : f32 to vector<16x128xf32>
    %753 = arith.maximumf %751, %752 : vector<16x128xf32>
    %c0_150 = arith.constant 0 : index
    %754 = memref.load %arg6[%c0_150] : memref<96xf32, #tpu.memory_space<smem>>
    %755 = vector.broadcast %754 : f32 to vector<16x128xf32>
    %756 = arith.mulf %755, %753 : vector<16x128xf32>
    %757 = arith.addf %696, %756 : vector<16x128xf32>
    %c1_151 = arith.constant 1 : index
    %758 = memref.load %arg6[%c1_151] : memref<96xf32, #tpu.memory_space<smem>>
    %759 = vector.broadcast %758 : f32 to vector<16x128xf32>
    %760 = arith.mulf %759, %753 : vector<16x128xf32>
    %761 = arith.addf %697, %760 : vector<16x128xf32>
    %c2_152 = arith.constant 2 : index
    %762 = memref.load %arg6[%c2_152] : memref<96xf32, #tpu.memory_space<smem>>
    %763 = vector.broadcast %762 : f32 to vector<16x128xf32>
    %764 = arith.mulf %763, %753 : vector<16x128xf32>
    %765 = arith.addf %698, %764 : vector<16x128xf32>
    %c3_153 = arith.constant 3 : index
    %766 = memref.load %arg6[%c3_153] : memref<96xf32, #tpu.memory_space<smem>>
    %767 = vector.broadcast %766 : f32 to vector<16x128xf32>
    %768 = arith.mulf %767, %753 : vector<16x128xf32>
    %769 = arith.addf %699, %768 : vector<16x128xf32>
    %cst_154 = arith.constant 0.000000e+00 : f32
    %770 = vector.broadcast %cst_154 : f32 to vector<16x128xf32>
    %c1_155 = arith.constant 1 : index
    %771 = memref.load %arg4[%c1_155] : memref<216xf32, #tpu.memory_space<smem>>
    %772 = vector.broadcast %771 : f32 to vector<16x128xf32>
    %773 = arith.mulf %772, %702 : vector<16x128xf32>
    %774 = arith.addf %770, %773 : vector<16x128xf32>
    %c25_156 = arith.constant 25 : index
    %775 = memref.load %arg4[%c25_156] : memref<216xf32, #tpu.memory_space<smem>>
    %776 = vector.broadcast %775 : f32 to vector<16x128xf32>
    %777 = arith.mulf %776, %701 : vector<16x128xf32>
    %778 = arith.addf %774, %777 : vector<16x128xf32>
    %c49_157 = arith.constant 49 : index
    %779 = memref.load %arg4[%c49_157] : memref<216xf32, #tpu.memory_space<smem>>
    %780 = vector.broadcast %779 : f32 to vector<16x128xf32>
    %781 = arith.mulf %780, %703 : vector<16x128xf32>
    %782 = arith.addf %778, %781 : vector<16x128xf32>
    %c73_158 = arith.constant 73 : index
    %783 = memref.load %arg4[%c73_158] : memref<216xf32, #tpu.memory_space<smem>>
    %784 = vector.broadcast %783 : f32 to vector<16x128xf32>
    %785 = arith.mulf %784, %706 : vector<16x128xf32>
    %786 = arith.addf %782, %785 : vector<16x128xf32>
    %c97_159 = arith.constant 97 : index
    %787 = memref.load %arg4[%c97_159] : memref<216xf32, #tpu.memory_space<smem>>
    %788 = vector.broadcast %787 : f32 to vector<16x128xf32>
    %789 = arith.mulf %788, %705 : vector<16x128xf32>
    %790 = arith.addf %786, %789 : vector<16x128xf32>
    %c121_160 = arith.constant 121 : index
    %791 = memref.load %arg4[%c121_160] : memref<216xf32, #tpu.memory_space<smem>>
    %792 = vector.broadcast %791 : f32 to vector<16x128xf32>
    %793 = arith.mulf %792, %707 : vector<16x128xf32>
    %794 = arith.addf %790, %793 : vector<16x128xf32>
    %c145 = arith.constant 145 : index
    %795 = memref.load %arg4[%c145] : memref<216xf32, #tpu.memory_space<smem>>
    %796 = vector.broadcast %795 : f32 to vector<16x128xf32>
    %797 = arith.mulf %796, %710 : vector<16x128xf32>
    %798 = arith.addf %794, %797 : vector<16x128xf32>
    %c169 = arith.constant 169 : index
    %799 = memref.load %arg4[%c169] : memref<216xf32, #tpu.memory_space<smem>>
    %800 = vector.broadcast %799 : f32 to vector<16x128xf32>
    %801 = arith.mulf %800, %709 : vector<16x128xf32>
    %802 = arith.addf %798, %801 : vector<16x128xf32>
    %c193 = arith.constant 193 : index
    %803 = memref.load %arg4[%c193] : memref<216xf32, #tpu.memory_space<smem>>
    %804 = vector.broadcast %803 : f32 to vector<16x128xf32>
    %805 = arith.mulf %804, %711 : vector<16x128xf32>
    %806 = arith.addf %802, %805 : vector<16x128xf32>
    %c1_161 = arith.constant 1 : index
    %807 = memref.load %arg5[%c1_161] : memref<24xf32, #tpu.memory_space<smem>>
    %808 = vector.broadcast %807 : f32 to vector<16x128xf32>
    %809 = arith.addf %806, %808 : vector<16x128xf32>
    %cst_162 = arith.constant 0.000000e+00 : f32
    %810 = vector.broadcast %cst_162 : f32 to vector<16x128xf32>
    %811 = arith.maximumf %809, %810 : vector<16x128xf32>
    %c4_163 = arith.constant 4 : index
    %812 = memref.load %arg6[%c4_163] : memref<96xf32, #tpu.memory_space<smem>>
    %813 = vector.broadcast %812 : f32 to vector<16x128xf32>
    %814 = arith.mulf %813, %811 : vector<16x128xf32>
    %815 = arith.addf %757, %814 : vector<16x128xf32>
    %c5_164 = arith.constant 5 : index
    %816 = memref.load %arg6[%c5_164] : memref<96xf32, #tpu.memory_space<smem>>
    %817 = vector.broadcast %816 : f32 to vector<16x128xf32>
    %818 = arith.mulf %817, %811 : vector<16x128xf32>
    %819 = arith.addf %761, %818 : vector<16x128xf32>
    %c6_165 = arith.constant 6 : index
    %820 = memref.load %arg6[%c6_165] : memref<96xf32, #tpu.memory_space<smem>>
    %821 = vector.broadcast %820 : f32 to vector<16x128xf32>
    %822 = arith.mulf %821, %811 : vector<16x128xf32>
    %823 = arith.addf %765, %822 : vector<16x128xf32>
    %c7_166 = arith.constant 7 : index
    %824 = memref.load %arg6[%c7_166] : memref<96xf32, #tpu.memory_space<smem>>
    %825 = vector.broadcast %824 : f32 to vector<16x128xf32>
    %826 = arith.mulf %825, %811 : vector<16x128xf32>
    %827 = arith.addf %769, %826 : vector<16x128xf32>
    %cst_167 = arith.constant 0.000000e+00 : f32
    %828 = vector.broadcast %cst_167 : f32 to vector<16x128xf32>
    %c2_168 = arith.constant 2 : index
    %829 = memref.load %arg4[%c2_168] : memref<216xf32, #tpu.memory_space<smem>>
    %830 = vector.broadcast %829 : f32 to vector<16x128xf32>
    %831 = arith.mulf %830, %702 : vector<16x128xf32>
    %832 = arith.addf %828, %831 : vector<16x128xf32>
    %c26_169 = arith.constant 26 : index
    %833 = memref.load %arg4[%c26_169] : memref<216xf32, #tpu.memory_space<smem>>
    %834 = vector.broadcast %833 : f32 to vector<16x128xf32>
    %835 = arith.mulf %834, %701 : vector<16x128xf32>
    %836 = arith.addf %832, %835 : vector<16x128xf32>
    %c50_170 = arith.constant 50 : index
    %837 = memref.load %arg4[%c50_170] : memref<216xf32, #tpu.memory_space<smem>>
    %838 = vector.broadcast %837 : f32 to vector<16x128xf32>
    %839 = arith.mulf %838, %703 : vector<16x128xf32>
    %840 = arith.addf %836, %839 : vector<16x128xf32>
    %c74_171 = arith.constant 74 : index
    %841 = memref.load %arg4[%c74_171] : memref<216xf32, #tpu.memory_space<smem>>
    %842 = vector.broadcast %841 : f32 to vector<16x128xf32>
    %843 = arith.mulf %842, %706 : vector<16x128xf32>
    %844 = arith.addf %840, %843 : vector<16x128xf32>
    %c98_172 = arith.constant 98 : index
    %845 = memref.load %arg4[%c98_172] : memref<216xf32, #tpu.memory_space<smem>>
    %846 = vector.broadcast %845 : f32 to vector<16x128xf32>
    %847 = arith.mulf %846, %705 : vector<16x128xf32>
    %848 = arith.addf %844, %847 : vector<16x128xf32>
    %c122_173 = arith.constant 122 : index
    %849 = memref.load %arg4[%c122_173] : memref<216xf32, #tpu.memory_space<smem>>
    %850 = vector.broadcast %849 : f32 to vector<16x128xf32>
    %851 = arith.mulf %850, %707 : vector<16x128xf32>
    %852 = arith.addf %848, %851 : vector<16x128xf32>
    %c146 = arith.constant 146 : index
    %853 = memref.load %arg4[%c146] : memref<216xf32, #tpu.memory_space<smem>>
    %854 = vector.broadcast %853 : f32 to vector<16x128xf32>
    %855 = arith.mulf %854, %710 : vector<16x128xf32>
    %856 = arith.addf %852, %855 : vector<16x128xf32>
    %c170 = arith.constant 170 : index
    %857 = memref.load %arg4[%c170] : memref<216xf32, #tpu.memory_space<smem>>
    %858 = vector.broadcast %857 : f32 to vector<16x128xf32>
    %859 = arith.mulf %858, %709 : vector<16x128xf32>
    %860 = arith.addf %856, %859 : vector<16x128xf32>
    %c194 = arith.constant 194 : index
    %861 = memref.load %arg4[%c194] : memref<216xf32, #tpu.memory_space<smem>>
    %862 = vector.broadcast %861 : f32 to vector<16x128xf32>
    %863 = arith.mulf %862, %711 : vector<16x128xf32>
    %864 = arith.addf %860, %863 : vector<16x128xf32>
    %c2_174 = arith.constant 2 : index
    %865 = memref.load %arg5[%c2_174] : memref<24xf32, #tpu.memory_space<smem>>
    %866 = vector.broadcast %865 : f32 to vector<16x128xf32>
    %867 = arith.addf %864, %866 : vector<16x128xf32>
    %cst_175 = arith.constant 0.000000e+00 : f32
    %868 = vector.broadcast %cst_175 : f32 to vector<16x128xf32>
    %869 = arith.maximumf %867, %868 : vector<16x128xf32>
    %c8_176 = arith.constant 8 : index
    %870 = memref.load %arg6[%c8_176] : memref<96xf32, #tpu.memory_space<smem>>
    %871 = vector.broadcast %870 : f32 to vector<16x128xf32>
    %872 = arith.mulf %871, %869 : vector<16x128xf32>
    %873 = arith.addf %815, %872 : vector<16x128xf32>
    %c9_177 = arith.constant 9 : index
    %874 = memref.load %arg6[%c9_177] : memref<96xf32, #tpu.memory_space<smem>>
    %875 = vector.broadcast %874 : f32 to vector<16x128xf32>
    %876 = arith.mulf %875, %869 : vector<16x128xf32>
    %877 = arith.addf %819, %876 : vector<16x128xf32>
    %c10_178 = arith.constant 10 : index
    %878 = memref.load %arg6[%c10_178] : memref<96xf32, #tpu.memory_space<smem>>
    %879 = vector.broadcast %878 : f32 to vector<16x128xf32>
    %880 = arith.mulf %879, %869 : vector<16x128xf32>
    %881 = arith.addf %823, %880 : vector<16x128xf32>
    %c11_179 = arith.constant 11 : index
    %882 = memref.load %arg6[%c11_179] : memref<96xf32, #tpu.memory_space<smem>>
    %883 = vector.broadcast %882 : f32 to vector<16x128xf32>
    %884 = arith.mulf %883, %869 : vector<16x128xf32>
    %885 = arith.addf %827, %884 : vector<16x128xf32>
    %cst_180 = arith.constant 0.000000e+00 : f32
    %886 = vector.broadcast %cst_180 : f32 to vector<16x128xf32>
    %c3_181 = arith.constant 3 : index
    %887 = memref.load %arg4[%c3_181] : memref<216xf32, #tpu.memory_space<smem>>
    %888 = vector.broadcast %887 : f32 to vector<16x128xf32>
    %889 = arith.mulf %888, %702 : vector<16x128xf32>
    %890 = arith.addf %886, %889 : vector<16x128xf32>
    %c27_182 = arith.constant 27 : index
    %891 = memref.load %arg4[%c27_182] : memref<216xf32, #tpu.memory_space<smem>>
    %892 = vector.broadcast %891 : f32 to vector<16x128xf32>
    %893 = arith.mulf %892, %701 : vector<16x128xf32>
    %894 = arith.addf %890, %893 : vector<16x128xf32>
    %c51_183 = arith.constant 51 : index
    %895 = memref.load %arg4[%c51_183] : memref<216xf32, #tpu.memory_space<smem>>
    %896 = vector.broadcast %895 : f32 to vector<16x128xf32>
    %897 = arith.mulf %896, %703 : vector<16x128xf32>
    %898 = arith.addf %894, %897 : vector<16x128xf32>
    %c75_184 = arith.constant 75 : index
    %899 = memref.load %arg4[%c75_184] : memref<216xf32, #tpu.memory_space<smem>>
    %900 = vector.broadcast %899 : f32 to vector<16x128xf32>
    %901 = arith.mulf %900, %706 : vector<16x128xf32>
    %902 = arith.addf %898, %901 : vector<16x128xf32>
    %c99_185 = arith.constant 99 : index
    %903 = memref.load %arg4[%c99_185] : memref<216xf32, #tpu.memory_space<smem>>
    %904 = vector.broadcast %903 : f32 to vector<16x128xf32>
    %905 = arith.mulf %904, %705 : vector<16x128xf32>
    %906 = arith.addf %902, %905 : vector<16x128xf32>
    %c123_186 = arith.constant 123 : index
    %907 = memref.load %arg4[%c123_186] : memref<216xf32, #tpu.memory_space<smem>>
    %908 = vector.broadcast %907 : f32 to vector<16x128xf32>
    %909 = arith.mulf %908, %707 : vector<16x128xf32>
    %910 = arith.addf %906, %909 : vector<16x128xf32>
    %c147 = arith.constant 147 : index
    %911 = memref.load %arg4[%c147] : memref<216xf32, #tpu.memory_space<smem>>
    %912 = vector.broadcast %911 : f32 to vector<16x128xf32>
    %913 = arith.mulf %912, %710 : vector<16x128xf32>
    %914 = arith.addf %910, %913 : vector<16x128xf32>
    %c171 = arith.constant 171 : index
    %915 = memref.load %arg4[%c171] : memref<216xf32, #tpu.memory_space<smem>>
    %916 = vector.broadcast %915 : f32 to vector<16x128xf32>
    %917 = arith.mulf %916, %709 : vector<16x128xf32>
    %918 = arith.addf %914, %917 : vector<16x128xf32>
    %c195 = arith.constant 195 : index
    %919 = memref.load %arg4[%c195] : memref<216xf32, #tpu.memory_space<smem>>
    %920 = vector.broadcast %919 : f32 to vector<16x128xf32>
    %921 = arith.mulf %920, %711 : vector<16x128xf32>
    %922 = arith.addf %918, %921 : vector<16x128xf32>
    %c3_187 = arith.constant 3 : index
    %923 = memref.load %arg5[%c3_187] : memref<24xf32, #tpu.memory_space<smem>>
    %924 = vector.broadcast %923 : f32 to vector<16x128xf32>
    %925 = arith.addf %922, %924 : vector<16x128xf32>
    %cst_188 = arith.constant 0.000000e+00 : f32
    %926 = vector.broadcast %cst_188 : f32 to vector<16x128xf32>
    %927 = arith.maximumf %925, %926 : vector<16x128xf32>
    %c12_189 = arith.constant 12 : index
    %928 = memref.load %arg6[%c12_189] : memref<96xf32, #tpu.memory_space<smem>>
    %929 = vector.broadcast %928 : f32 to vector<16x128xf32>
    %930 = arith.mulf %929, %927 : vector<16x128xf32>
    %931 = arith.addf %873, %930 : vector<16x128xf32>
    %c13_190 = arith.constant 13 : index
    %932 = memref.load %arg6[%c13_190] : memref<96xf32, #tpu.memory_space<smem>>
    %933 = vector.broadcast %932 : f32 to vector<16x128xf32>
    %934 = arith.mulf %933, %927 : vector<16x128xf32>
    %935 = arith.addf %877, %934 : vector<16x128xf32>
    %c14_191 = arith.constant 14 : index
    %936 = memref.load %arg6[%c14_191] : memref<96xf32, #tpu.memory_space<smem>>
    %937 = vector.broadcast %936 : f32 to vector<16x128xf32>
    %938 = arith.mulf %937, %927 : vector<16x128xf32>
    %939 = arith.addf %881, %938 : vector<16x128xf32>
    %c15_192 = arith.constant 15 : index
    %940 = memref.load %arg6[%c15_192] : memref<96xf32, #tpu.memory_space<smem>>
    %941 = vector.broadcast %940 : f32 to vector<16x128xf32>
    %942 = arith.mulf %941, %927 : vector<16x128xf32>
    %943 = arith.addf %885, %942 : vector<16x128xf32>
    %cst_193 = arith.constant 0.000000e+00 : f32
    %944 = vector.broadcast %cst_193 : f32 to vector<16x128xf32>
    %c4_194 = arith.constant 4 : index
    %945 = memref.load %arg4[%c4_194] : memref<216xf32, #tpu.memory_space<smem>>
    %946 = vector.broadcast %945 : f32 to vector<16x128xf32>
    %947 = arith.mulf %946, %702 : vector<16x128xf32>
    %948 = arith.addf %944, %947 : vector<16x128xf32>
    %c28_195 = arith.constant 28 : index
    %949 = memref.load %arg4[%c28_195] : memref<216xf32, #tpu.memory_space<smem>>
    %950 = vector.broadcast %949 : f32 to vector<16x128xf32>
    %951 = arith.mulf %950, %701 : vector<16x128xf32>
    %952 = arith.addf %948, %951 : vector<16x128xf32>
    %c52_196 = arith.constant 52 : index
    %953 = memref.load %arg4[%c52_196] : memref<216xf32, #tpu.memory_space<smem>>
    %954 = vector.broadcast %953 : f32 to vector<16x128xf32>
    %955 = arith.mulf %954, %703 : vector<16x128xf32>
    %956 = arith.addf %952, %955 : vector<16x128xf32>
    %c76_197 = arith.constant 76 : index
    %957 = memref.load %arg4[%c76_197] : memref<216xf32, #tpu.memory_space<smem>>
    %958 = vector.broadcast %957 : f32 to vector<16x128xf32>
    %959 = arith.mulf %958, %706 : vector<16x128xf32>
    %960 = arith.addf %956, %959 : vector<16x128xf32>
    %c100_198 = arith.constant 100 : index
    %961 = memref.load %arg4[%c100_198] : memref<216xf32, #tpu.memory_space<smem>>
    %962 = vector.broadcast %961 : f32 to vector<16x128xf32>
    %963 = arith.mulf %962, %705 : vector<16x128xf32>
    %964 = arith.addf %960, %963 : vector<16x128xf32>
    %c124_199 = arith.constant 124 : index
    %965 = memref.load %arg4[%c124_199] : memref<216xf32, #tpu.memory_space<smem>>
    %966 = vector.broadcast %965 : f32 to vector<16x128xf32>
    %967 = arith.mulf %966, %707 : vector<16x128xf32>
    %968 = arith.addf %964, %967 : vector<16x128xf32>
    %c148 = arith.constant 148 : index
    %969 = memref.load %arg4[%c148] : memref<216xf32, #tpu.memory_space<smem>>
    %970 = vector.broadcast %969 : f32 to vector<16x128xf32>
    %971 = arith.mulf %970, %710 : vector<16x128xf32>
    %972 = arith.addf %968, %971 : vector<16x128xf32>
    %c172 = arith.constant 172 : index
    %973 = memref.load %arg4[%c172] : memref<216xf32, #tpu.memory_space<smem>>
    %974 = vector.broadcast %973 : f32 to vector<16x128xf32>
    %975 = arith.mulf %974, %709 : vector<16x128xf32>
    %976 = arith.addf %972, %975 : vector<16x128xf32>
    %c196 = arith.constant 196 : index
    %977 = memref.load %arg4[%c196] : memref<216xf32, #tpu.memory_space<smem>>
    %978 = vector.broadcast %977 : f32 to vector<16x128xf32>
    %979 = arith.mulf %978, %711 : vector<16x128xf32>
    %980 = arith.addf %976, %979 : vector<16x128xf32>
    %c4_200 = arith.constant 4 : index
    %981 = memref.load %arg5[%c4_200] : memref<24xf32, #tpu.memory_space<smem>>
    %982 = vector.broadcast %981 : f32 to vector<16x128xf32>
    %983 = arith.addf %980, %982 : vector<16x128xf32>
    %cst_201 = arith.constant 0.000000e+00 : f32
    %984 = vector.broadcast %cst_201 : f32 to vector<16x128xf32>
    %985 = arith.maximumf %983, %984 : vector<16x128xf32>
    %c16_202 = arith.constant 16 : index
    %986 = memref.load %arg6[%c16_202] : memref<96xf32, #tpu.memory_space<smem>>
    %987 = vector.broadcast %986 : f32 to vector<16x128xf32>
    %988 = arith.mulf %987, %985 : vector<16x128xf32>
    %989 = arith.addf %931, %988 : vector<16x128xf32>
    %c17_203 = arith.constant 17 : index
    %990 = memref.load %arg6[%c17_203] : memref<96xf32, #tpu.memory_space<smem>>
    %991 = vector.broadcast %990 : f32 to vector<16x128xf32>
    %992 = arith.mulf %991, %985 : vector<16x128xf32>
    %993 = arith.addf %935, %992 : vector<16x128xf32>
    %c18_204 = arith.constant 18 : index
    %994 = memref.load %arg6[%c18_204] : memref<96xf32, #tpu.memory_space<smem>>
    %995 = vector.broadcast %994 : f32 to vector<16x128xf32>
    %996 = arith.mulf %995, %985 : vector<16x128xf32>
    %997 = arith.addf %939, %996 : vector<16x128xf32>
    %c19_205 = arith.constant 19 : index
    %998 = memref.load %arg6[%c19_205] : memref<96xf32, #tpu.memory_space<smem>>
    %999 = vector.broadcast %998 : f32 to vector<16x128xf32>
    %1000 = arith.mulf %999, %985 : vector<16x128xf32>
    %1001 = arith.addf %943, %1000 : vector<16x128xf32>
    %cst_206 = arith.constant 0.000000e+00 : f32
    %1002 = vector.broadcast %cst_206 : f32 to vector<16x128xf32>
    %c5_207 = arith.constant 5 : index
    %1003 = memref.load %arg4[%c5_207] : memref<216xf32, #tpu.memory_space<smem>>
    %1004 = vector.broadcast %1003 : f32 to vector<16x128xf32>
    %1005 = arith.mulf %1004, %702 : vector<16x128xf32>
    %1006 = arith.addf %1002, %1005 : vector<16x128xf32>
    %c29_208 = arith.constant 29 : index
    %1007 = memref.load %arg4[%c29_208] : memref<216xf32, #tpu.memory_space<smem>>
    %1008 = vector.broadcast %1007 : f32 to vector<16x128xf32>
    %1009 = arith.mulf %1008, %701 : vector<16x128xf32>
    %1010 = arith.addf %1006, %1009 : vector<16x128xf32>
    %c53_209 = arith.constant 53 : index
    %1011 = memref.load %arg4[%c53_209] : memref<216xf32, #tpu.memory_space<smem>>
    %1012 = vector.broadcast %1011 : f32 to vector<16x128xf32>
    %1013 = arith.mulf %1012, %703 : vector<16x128xf32>
    %1014 = arith.addf %1010, %1013 : vector<16x128xf32>
    %c77_210 = arith.constant 77 : index
    %1015 = memref.load %arg4[%c77_210] : memref<216xf32, #tpu.memory_space<smem>>
    %1016 = vector.broadcast %1015 : f32 to vector<16x128xf32>
    %1017 = arith.mulf %1016, %706 : vector<16x128xf32>
    %1018 = arith.addf %1014, %1017 : vector<16x128xf32>
    %c101_211 = arith.constant 101 : index
    %1019 = memref.load %arg4[%c101_211] : memref<216xf32, #tpu.memory_space<smem>>
    %1020 = vector.broadcast %1019 : f32 to vector<16x128xf32>
    %1021 = arith.mulf %1020, %705 : vector<16x128xf32>
    %1022 = arith.addf %1018, %1021 : vector<16x128xf32>
    %c125_212 = arith.constant 125 : index
    %1023 = memref.load %arg4[%c125_212] : memref<216xf32, #tpu.memory_space<smem>>
    %1024 = vector.broadcast %1023 : f32 to vector<16x128xf32>
    %1025 = arith.mulf %1024, %707 : vector<16x128xf32>
    %1026 = arith.addf %1022, %1025 : vector<16x128xf32>
    %c149 = arith.constant 149 : index
    %1027 = memref.load %arg4[%c149] : memref<216xf32, #tpu.memory_space<smem>>
    %1028 = vector.broadcast %1027 : f32 to vector<16x128xf32>
    %1029 = arith.mulf %1028, %710 : vector<16x128xf32>
    %1030 = arith.addf %1026, %1029 : vector<16x128xf32>
    %c173 = arith.constant 173 : index
    %1031 = memref.load %arg4[%c173] : memref<216xf32, #tpu.memory_space<smem>>
    %1032 = vector.broadcast %1031 : f32 to vector<16x128xf32>
    %1033 = arith.mulf %1032, %709 : vector<16x128xf32>
    %1034 = arith.addf %1030, %1033 : vector<16x128xf32>
    %c197 = arith.constant 197 : index
    %1035 = memref.load %arg4[%c197] : memref<216xf32, #tpu.memory_space<smem>>
    %1036 = vector.broadcast %1035 : f32 to vector<16x128xf32>
    %1037 = arith.mulf %1036, %711 : vector<16x128xf32>
    %1038 = arith.addf %1034, %1037 : vector<16x128xf32>
    %c5_213 = arith.constant 5 : index
    %1039 = memref.load %arg5[%c5_213] : memref<24xf32, #tpu.memory_space<smem>>
    %1040 = vector.broadcast %1039 : f32 to vector<16x128xf32>
    %1041 = arith.addf %1038, %1040 : vector<16x128xf32>
    %cst_214 = arith.constant 0.000000e+00 : f32
    %1042 = vector.broadcast %cst_214 : f32 to vector<16x128xf32>
    %1043 = arith.maximumf %1041, %1042 : vector<16x128xf32>
    %c20_215 = arith.constant 20 : index
    %1044 = memref.load %arg6[%c20_215] : memref<96xf32, #tpu.memory_space<smem>>
    %1045 = vector.broadcast %1044 : f32 to vector<16x128xf32>
    %1046 = arith.mulf %1045, %1043 : vector<16x128xf32>
    %1047 = arith.addf %989, %1046 : vector<16x128xf32>
    %c21_216 = arith.constant 21 : index
    %1048 = memref.load %arg6[%c21_216] : memref<96xf32, #tpu.memory_space<smem>>
    %1049 = vector.broadcast %1048 : f32 to vector<16x128xf32>
    %1050 = arith.mulf %1049, %1043 : vector<16x128xf32>
    %1051 = arith.addf %993, %1050 : vector<16x128xf32>
    %c22_217 = arith.constant 22 : index
    %1052 = memref.load %arg6[%c22_217] : memref<96xf32, #tpu.memory_space<smem>>
    %1053 = vector.broadcast %1052 : f32 to vector<16x128xf32>
    %1054 = arith.mulf %1053, %1043 : vector<16x128xf32>
    %1055 = arith.addf %997, %1054 : vector<16x128xf32>
    %c23_218 = arith.constant 23 : index
    %1056 = memref.load %arg6[%c23_218] : memref<96xf32, #tpu.memory_space<smem>>
    %1057 = vector.broadcast %1056 : f32 to vector<16x128xf32>
    %1058 = arith.mulf %1057, %1043 : vector<16x128xf32>
    %1059 = arith.addf %1001, %1058 : vector<16x128xf32>
    %c1_219 = arith.constant 1 : index
    %c0_220 = arith.constant 0 : index
    %c0_221 = arith.constant 0 : index
    %1060 = vector.load %arg9[%c1_219, %c0_220, %c0_221] : memref<4x18x128xf32, #tpu.memory_space<vmem>>, vector<1x16x128xf32>
    %1061 = vector.shape_cast %1060 : vector<1x16x128xf32> to vector<16x128xf32>
    %c1_i32_222 = arith.constant 1 : i32
    %1062 = tpu.dynamic_rotate %1061 by %c1_i32_222 dim 1 : vector<16x128xf32>, i32 -> vector<16x128xf32>
    %c127_i32_223 = arith.constant 127 : i32
    %1063 = tpu.dynamic_rotate %1061 by %c127_i32_223 dim 1 : vector<16x128xf32>, i32 -> vector<16x128xf32>
    %c1_224 = arith.constant 1 : index
    %c1_225 = arith.constant 1 : index
    %c0_226 = arith.constant 0 : index
    %1064 = vector.load %arg9[%c1_224, %c1_225, %c0_226] : memref<4x18x128xf32, #tpu.memory_space<vmem>>, vector<1x16x128xf32>
    %1065 = vector.shape_cast %1064 : vector<1x16x128xf32> to vector<16x128xf32>
    %c1_i32_227 = arith.constant 1 : i32
    %1066 = tpu.dynamic_rotate %1065 by %c1_i32_227 dim 1 : vector<16x128xf32>, i32 -> vector<16x128xf32>
    %c127_i32_228 = arith.constant 127 : i32
    %1067 = tpu.dynamic_rotate %1065 by %c127_i32_228 dim 1 : vector<16x128xf32>, i32 -> vector<16x128xf32>
    %c1_229 = arith.constant 1 : index
    %c2_230 = arith.constant 2 : index
    %c0_231 = arith.constant 0 : index
    %1068 = vector.load %arg9[%c1_229, %c2_230, %c0_231] : memref<4x18x128xf32, #tpu.memory_space<vmem>>, vector<1x16x128xf32>
    %1069 = vector.shape_cast %1068 : vector<1x16x128xf32> to vector<16x128xf32>
    %c1_i32_232 = arith.constant 1 : i32
    %1070 = tpu.dynamic_rotate %1069 by %c1_i32_232 dim 1 : vector<16x128xf32>, i32 -> vector<16x128xf32>
    %c127_i32_233 = arith.constant 127 : i32
    %1071 = tpu.dynamic_rotate %1069 by %c127_i32_233 dim 1 : vector<16x128xf32>, i32 -> vector<16x128xf32>
    %cst_234 = arith.constant 0.000000e+00 : f32
    %1072 = vector.broadcast %cst_234 : f32 to vector<16x128xf32>
    %c6_235 = arith.constant 6 : index
    %1073 = memref.load %arg4[%c6_235] : memref<216xf32, #tpu.memory_space<smem>>
    %1074 = vector.broadcast %1073 : f32 to vector<16x128xf32>
    %1075 = arith.mulf %1074, %1062 : vector<16x128xf32>
    %1076 = arith.addf %1072, %1075 : vector<16x128xf32>
    %c30_236 = arith.constant 30 : index
    %1077 = memref.load %arg4[%c30_236] : memref<216xf32, #tpu.memory_space<smem>>
    %1078 = vector.broadcast %1077 : f32 to vector<16x128xf32>
    %1079 = arith.mulf %1078, %1061 : vector<16x128xf32>
    %1080 = arith.addf %1076, %1079 : vector<16x128xf32>
    %c54_237 = arith.constant 54 : index
    %1081 = memref.load %arg4[%c54_237] : memref<216xf32, #tpu.memory_space<smem>>
    %1082 = vector.broadcast %1081 : f32 to vector<16x128xf32>
    %1083 = arith.mulf %1082, %1063 : vector<16x128xf32>
    %1084 = arith.addf %1080, %1083 : vector<16x128xf32>
    %c78_238 = arith.constant 78 : index
    %1085 = memref.load %arg4[%c78_238] : memref<216xf32, #tpu.memory_space<smem>>
    %1086 = vector.broadcast %1085 : f32 to vector<16x128xf32>
    %1087 = arith.mulf %1086, %1066 : vector<16x128xf32>
    %1088 = arith.addf %1084, %1087 : vector<16x128xf32>
    %c102_239 = arith.constant 102 : index
    %1089 = memref.load %arg4[%c102_239] : memref<216xf32, #tpu.memory_space<smem>>
    %1090 = vector.broadcast %1089 : f32 to vector<16x128xf32>
    %1091 = arith.mulf %1090, %1065 : vector<16x128xf32>
    %1092 = arith.addf %1088, %1091 : vector<16x128xf32>
    %c126_240 = arith.constant 126 : index
    %1093 = memref.load %arg4[%c126_240] : memref<216xf32, #tpu.memory_space<smem>>
    %1094 = vector.broadcast %1093 : f32 to vector<16x128xf32>
    %1095 = arith.mulf %1094, %1067 : vector<16x128xf32>
    %1096 = arith.addf %1092, %1095 : vector<16x128xf32>
    %c150 = arith.constant 150 : index
    %1097 = memref.load %arg4[%c150] : memref<216xf32, #tpu.memory_space<smem>>
    %1098 = vector.broadcast %1097 : f32 to vector<16x128xf32>
    %1099 = arith.mulf %1098, %1070 : vector<16x128xf32>
    %1100 = arith.addf %1096, %1099 : vector<16x128xf32>
    %c174 = arith.constant 174 : index
    %1101 = memref.load %arg4[%c174] : memref<216xf32, #tpu.memory_space<smem>>
    %1102 = vector.broadcast %1101 : f32 to vector<16x128xf32>
    %1103 = arith.mulf %1102, %1069 : vector<16x128xf32>
    %1104 = arith.addf %1100, %1103 : vector<16x128xf32>
    %c198 = arith.constant 198 : index
    %1105 = memref.load %arg4[%c198] : memref<216xf32, #tpu.memory_space<smem>>
    %1106 = vector.broadcast %1105 : f32 to vector<16x128xf32>
    %1107 = arith.mulf %1106, %1071 : vector<16x128xf32>
    %1108 = arith.addf %1104, %1107 : vector<16x128xf32>
    %c6_241 = arith.constant 6 : index
    %1109 = memref.load %arg5[%c6_241] : memref<24xf32, #tpu.memory_space<smem>>
    %1110 = vector.broadcast %1109 : f32 to vector<16x128xf32>
    %1111 = arith.addf %1108, %1110 : vector<16x128xf32>
    %cst_242 = arith.constant 0.000000e+00 : f32
    %1112 = vector.broadcast %cst_242 : f32 to vector<16x128xf32>
    %1113 = arith.maximumf %1111, %1112 : vector<16x128xf32>
    %c24_243 = arith.constant 24 : index
    %1114 = memref.load %arg6[%c24_243] : memref<96xf32, #tpu.memory_space<smem>>
    %1115 = vector.broadcast %1114 : f32 to vector<16x128xf32>
    %1116 = arith.mulf %1115, %1113 : vector<16x128xf32>
    %1117 = arith.addf %1047, %1116 : vector<16x128xf32>
    %c25_244 = arith.constant 25 : index
    %1118 = memref.load %arg6[%c25_244] : memref<96xf32, #tpu.memory_space<smem>>
    %1119 = vector.broadcast %1118 : f32 to vector<16x128xf32>
    %1120 = arith.mulf %1119, %1113 : vector<16x128xf32>
    %1121 = arith.addf %1051, %1120 : vector<16x128xf32>
    %c26_245 = arith.constant 26 : index
    %1122 = memref.load %arg6[%c26_245] : memref<96xf32, #tpu.memory_space<smem>>
    %1123 = vector.broadcast %1122 : f32 to vector<16x128xf32>
    %1124 = arith.mulf %1123, %1113 : vector<16x128xf32>
    %1125 = arith.addf %1055, %1124 : vector<16x128xf32>
    %c27_246 = arith.constant 27 : index
    %1126 = memref.load %arg6[%c27_246] : memref<96xf32, #tpu.memory_space<smem>>
    %1127 = vector.broadcast %1126 : f32 to vector<16x128xf32>
    %1128 = arith.mulf %1127, %1113 : vector<16x128xf32>
    %1129 = arith.addf %1059, %1128 : vector<16x128xf32>
    %cst_247 = arith.constant 0.000000e+00 : f32
    %1130 = vector.broadcast %cst_247 : f32 to vector<16x128xf32>
    %c7_248 = arith.constant 7 : index
    %1131 = memref.load %arg4[%c7_248] : memref<216xf32, #tpu.memory_space<smem>>
    %1132 = vector.broadcast %1131 : f32 to vector<16x128xf32>
    %1133 = arith.mulf %1132, %1062 : vector<16x128xf32>
    %1134 = arith.addf %1130, %1133 : vector<16x128xf32>
    %c31_249 = arith.constant 31 : index
    %1135 = memref.load %arg4[%c31_249] : memref<216xf32, #tpu.memory_space<smem>>
    %1136 = vector.broadcast %1135 : f32 to vector<16x128xf32>
    %1137 = arith.mulf %1136, %1061 : vector<16x128xf32>
    %1138 = arith.addf %1134, %1137 : vector<16x128xf32>
    %c55_250 = arith.constant 55 : index
    %1139 = memref.load %arg4[%c55_250] : memref<216xf32, #tpu.memory_space<smem>>
    %1140 = vector.broadcast %1139 : f32 to vector<16x128xf32>
    %1141 = arith.mulf %1140, %1063 : vector<16x128xf32>
    %1142 = arith.addf %1138, %1141 : vector<16x128xf32>
    %c79_251 = arith.constant 79 : index
    %1143 = memref.load %arg4[%c79_251] : memref<216xf32, #tpu.memory_space<smem>>
    %1144 = vector.broadcast %1143 : f32 to vector<16x128xf32>
    %1145 = arith.mulf %1144, %1066 : vector<16x128xf32>
    %1146 = arith.addf %1142, %1145 : vector<16x128xf32>
    %c103_252 = arith.constant 103 : index
    %1147 = memref.load %arg4[%c103_252] : memref<216xf32, #tpu.memory_space<smem>>
    %1148 = vector.broadcast %1147 : f32 to vector<16x128xf32>
    %1149 = arith.mulf %1148, %1065 : vector<16x128xf32>
    %1150 = arith.addf %1146, %1149 : vector<16x128xf32>
    %c127_253 = arith.constant 127 : index
    %1151 = memref.load %arg4[%c127_253] : memref<216xf32, #tpu.memory_space<smem>>
    %1152 = vector.broadcast %1151 : f32 to vector<16x128xf32>
    %1153 = arith.mulf %1152, %1067 : vector<16x128xf32>
    %1154 = arith.addf %1150, %1153 : vector<16x128xf32>
    %c151 = arith.constant 151 : index
    %1155 = memref.load %arg4[%c151] : memref<216xf32, #tpu.memory_space<smem>>
    %1156 = vector.broadcast %1155 : f32 to vector<16x128xf32>
    %1157 = arith.mulf %1156, %1070 : vector<16x128xf32>
    %1158 = arith.addf %1154, %1157 : vector<16x128xf32>
    %c175 = arith.constant 175 : index
    %1159 = memref.load %arg4[%c175] : memref<216xf32, #tpu.memory_space<smem>>
    %1160 = vector.broadcast %1159 : f32 to vector<16x128xf32>
    %1161 = arith.mulf %1160, %1069 : vector<16x128xf32>
    %1162 = arith.addf %1158, %1161 : vector<16x128xf32>
    %c199 = arith.constant 199 : index
    %1163 = memref.load %arg4[%c199] : memref<216xf32, #tpu.memory_space<smem>>
    %1164 = vector.broadcast %1163 : f32 to vector<16x128xf32>
    %1165 = arith.mulf %1164, %1071 : vector<16x128xf32>
    %1166 = arith.addf %1162, %1165 : vector<16x128xf32>
    %c7_254 = arith.constant 7 : index
    %1167 = memref.load %arg5[%c7_254] : memref<24xf32, #tpu.memory_space<smem>>
    %1168 = vector.broadcast %1167 : f32 to vector<16x128xf32>
    %1169 = arith.addf %1166, %1168 : vector<16x128xf32>
    %cst_255 = arith.constant 0.000000e+00 : f32
    %1170 = vector.broadcast %cst_255 : f32 to vector<16x128xf32>
    %1171 = arith.maximumf %1169, %1170 : vector<16x128xf32>
    %c28_256 = arith.constant 28 : index
    %1172 = memref.load %arg6[%c28_256] : memref<96xf32, #tpu.memory_space<smem>>
    %1173 = vector.broadcast %1172 : f32 to vector<16x128xf32>
    %1174 = arith.mulf %1173, %1171 : vector<16x128xf32>
    %1175 = arith.addf %1117, %1174 : vector<16x128xf32>
    %c29_257 = arith.constant 29 : index
    %1176 = memref.load %arg6[%c29_257] : memref<96xf32, #tpu.memory_space<smem>>
    %1177 = vector.broadcast %1176 : f32 to vector<16x128xf32>
    %1178 = arith.mulf %1177, %1171 : vector<16x128xf32>
    %1179 = arith.addf %1121, %1178 : vector<16x128xf32>
    %c30_258 = arith.constant 30 : index
    %1180 = memref.load %arg6[%c30_258] : memref<96xf32, #tpu.memory_space<smem>>
    %1181 = vector.broadcast %1180 : f32 to vector<16x128xf32>
    %1182 = arith.mulf %1181, %1171 : vector<16x128xf32>
    %1183 = arith.addf %1125, %1182 : vector<16x128xf32>
    %c31_259 = arith.constant 31 : index
    %1184 = memref.load %arg6[%c31_259] : memref<96xf32, #tpu.memory_space<smem>>
    %1185 = vector.broadcast %1184 : f32 to vector<16x128xf32>
    %1186 = arith.mulf %1185, %1171 : vector<16x128xf32>
    %1187 = arith.addf %1129, %1186 : vector<16x128xf32>
    %cst_260 = arith.constant 0.000000e+00 : f32
    %1188 = vector.broadcast %cst_260 : f32 to vector<16x128xf32>
    %c8_261 = arith.constant 8 : index
    %1189 = memref.load %arg4[%c8_261] : memref<216xf32, #tpu.memory_space<smem>>
    %1190 = vector.broadcast %1189 : f32 to vector<16x128xf32>
    %1191 = arith.mulf %1190, %1062 : vector<16x128xf32>
    %1192 = arith.addf %1188, %1191 : vector<16x128xf32>
    %c32_262 = arith.constant 32 : index
    %1193 = memref.load %arg4[%c32_262] : memref<216xf32, #tpu.memory_space<smem>>
    %1194 = vector.broadcast %1193 : f32 to vector<16x128xf32>
    %1195 = arith.mulf %1194, %1061 : vector<16x128xf32>
    %1196 = arith.addf %1192, %1195 : vector<16x128xf32>
    %c56_263 = arith.constant 56 : index
    %1197 = memref.load %arg4[%c56_263] : memref<216xf32, #tpu.memory_space<smem>>
    %1198 = vector.broadcast %1197 : f32 to vector<16x128xf32>
    %1199 = arith.mulf %1198, %1063 : vector<16x128xf32>
    %1200 = arith.addf %1196, %1199 : vector<16x128xf32>
    %c80_264 = arith.constant 80 : index
    %1201 = memref.load %arg4[%c80_264] : memref<216xf32, #tpu.memory_space<smem>>
    %1202 = vector.broadcast %1201 : f32 to vector<16x128xf32>
    %1203 = arith.mulf %1202, %1066 : vector<16x128xf32>
    %1204 = arith.addf %1200, %1203 : vector<16x128xf32>
    %c104_265 = arith.constant 104 : index
    %1205 = memref.load %arg4[%c104_265] : memref<216xf32, #tpu.memory_space<smem>>
    %1206 = vector.broadcast %1205 : f32 to vector<16x128xf32>
    %1207 = arith.mulf %1206, %1065 : vector<16x128xf32>
    %1208 = arith.addf %1204, %1207 : vector<16x128xf32>
    %c128_266 = arith.constant 128 : index
    %1209 = memref.load %arg4[%c128_266] : memref<216xf32, #tpu.memory_space<smem>>
    %1210 = vector.broadcast %1209 : f32 to vector<16x128xf32>
    %1211 = arith.mulf %1210, %1067 : vector<16x128xf32>
    %1212 = arith.addf %1208, %1211 : vector<16x128xf32>
    %c152 = arith.constant 152 : index
    %1213 = memref.load %arg4[%c152] : memref<216xf32, #tpu.memory_space<smem>>
    %1214 = vector.broadcast %1213 : f32 to vector<16x128xf32>
    %1215 = arith.mulf %1214, %1070 : vector<16x128xf32>
    %1216 = arith.addf %1212, %1215 : vector<16x128xf32>
    %c176 = arith.constant 176 : index
    %1217 = memref.load %arg4[%c176] : memref<216xf32, #tpu.memory_space<smem>>
    %1218 = vector.broadcast %1217 : f32 to vector<16x128xf32>
    %1219 = arith.mulf %1218, %1069 : vector<16x128xf32>
    %1220 = arith.addf %1216, %1219 : vector<16x128xf32>
    %c200 = arith.constant 200 : index
    %1221 = memref.load %arg4[%c200] : memref<216xf32, #tpu.memory_space<smem>>
    %1222 = vector.broadcast %1221 : f32 to vector<16x128xf32>
    %1223 = arith.mulf %1222, %1071 : vector<16x128xf32>
    %1224 = arith.addf %1220, %1223 : vector<16x128xf32>
    %c8_267 = arith.constant 8 : index
    %1225 = memref.load %arg5[%c8_267] : memref<24xf32, #tpu.memory_space<smem>>
    %1226 = vector.broadcast %1225 : f32 to vector<16x128xf32>
    %1227 = arith.addf %1224, %1226 : vector<16x128xf32>
    %cst_268 = arith.constant 0.000000e+00 : f32
    %1228 = vector.broadcast %cst_268 : f32 to vector<16x128xf32>
    %1229 = arith.maximumf %1227, %1228 : vector<16x128xf32>
    %c32_269 = arith.constant 32 : index
    %1230 = memref.load %arg6[%c32_269] : memref<96xf32, #tpu.memory_space<smem>>
    %1231 = vector.broadcast %1230 : f32 to vector<16x128xf32>
    %1232 = arith.mulf %1231, %1229 : vector<16x128xf32>
    %1233 = arith.addf %1175, %1232 : vector<16x128xf32>
    %c33_270 = arith.constant 33 : index
    %1234 = memref.load %arg6[%c33_270] : memref<96xf32, #tpu.memory_space<smem>>
    %1235 = vector.broadcast %1234 : f32 to vector<16x128xf32>
    %1236 = arith.mulf %1235, %1229 : vector<16x128xf32>
    %1237 = arith.addf %1179, %1236 : vector<16x128xf32>
    %c34_271 = arith.constant 34 : index
    %1238 = memref.load %arg6[%c34_271] : memref<96xf32, #tpu.memory_space<smem>>
    %1239 = vector.broadcast %1238 : f32 to vector<16x128xf32>
    %1240 = arith.mulf %1239, %1229 : vector<16x128xf32>
    %1241 = arith.addf %1183, %1240 : vector<16x128xf32>
    %c35_272 = arith.constant 35 : index
    %1242 = memref.load %arg6[%c35_272] : memref<96xf32, #tpu.memory_space<smem>>
    %1243 = vector.broadcast %1242 : f32 to vector<16x128xf32>
    %1244 = arith.mulf %1243, %1229 : vector<16x128xf32>
    %1245 = arith.addf %1187, %1244 : vector<16x128xf32>
    %cst_273 = arith.constant 0.000000e+00 : f32
    %1246 = vector.broadcast %cst_273 : f32 to vector<16x128xf32>
    %c9_274 = arith.constant 9 : index
    %1247 = memref.load %arg4[%c9_274] : memref<216xf32, #tpu.memory_space<smem>>
    %1248 = vector.broadcast %1247 : f32 to vector<16x128xf32>
    %1249 = arith.mulf %1248, %1062 : vector<16x128xf32>
    %1250 = arith.addf %1246, %1249 : vector<16x128xf32>
    %c33_275 = arith.constant 33 : index
    %1251 = memref.load %arg4[%c33_275] : memref<216xf32, #tpu.memory_space<smem>>
    %1252 = vector.broadcast %1251 : f32 to vector<16x128xf32>
    %1253 = arith.mulf %1252, %1061 : vector<16x128xf32>
    %1254 = arith.addf %1250, %1253 : vector<16x128xf32>
    %c57_276 = arith.constant 57 : index
    %1255 = memref.load %arg4[%c57_276] : memref<216xf32, #tpu.memory_space<smem>>
    %1256 = vector.broadcast %1255 : f32 to vector<16x128xf32>
    %1257 = arith.mulf %1256, %1063 : vector<16x128xf32>
    %1258 = arith.addf %1254, %1257 : vector<16x128xf32>
    %c81_277 = arith.constant 81 : index
    %1259 = memref.load %arg4[%c81_277] : memref<216xf32, #tpu.memory_space<smem>>
    %1260 = vector.broadcast %1259 : f32 to vector<16x128xf32>
    %1261 = arith.mulf %1260, %1066 : vector<16x128xf32>
    %1262 = arith.addf %1258, %1261 : vector<16x128xf32>
    %c105_278 = arith.constant 105 : index
    %1263 = memref.load %arg4[%c105_278] : memref<216xf32, #tpu.memory_space<smem>>
    %1264 = vector.broadcast %1263 : f32 to vector<16x128xf32>
    %1265 = arith.mulf %1264, %1065 : vector<16x128xf32>
    %1266 = arith.addf %1262, %1265 : vector<16x128xf32>
    %c129_279 = arith.constant 129 : index
    %1267 = memref.load %arg4[%c129_279] : memref<216xf32, #tpu.memory_space<smem>>
    %1268 = vector.broadcast %1267 : f32 to vector<16x128xf32>
    %1269 = arith.mulf %1268, %1067 : vector<16x128xf32>
    %1270 = arith.addf %1266, %1269 : vector<16x128xf32>
    %c153 = arith.constant 153 : index
    %1271 = memref.load %arg4[%c153] : memref<216xf32, #tpu.memory_space<smem>>
    %1272 = vector.broadcast %1271 : f32 to vector<16x128xf32>
    %1273 = arith.mulf %1272, %1070 : vector<16x128xf32>
    %1274 = arith.addf %1270, %1273 : vector<16x128xf32>
    %c177 = arith.constant 177 : index
    %1275 = memref.load %arg4[%c177] : memref<216xf32, #tpu.memory_space<smem>>
    %1276 = vector.broadcast %1275 : f32 to vector<16x128xf32>
    %1277 = arith.mulf %1276, %1069 : vector<16x128xf32>
    %1278 = arith.addf %1274, %1277 : vector<16x128xf32>
    %c201 = arith.constant 201 : index
    %1279 = memref.load %arg4[%c201] : memref<216xf32, #tpu.memory_space<smem>>
    %1280 = vector.broadcast %1279 : f32 to vector<16x128xf32>
    %1281 = arith.mulf %1280, %1071 : vector<16x128xf32>
    %1282 = arith.addf %1278, %1281 : vector<16x128xf32>
    %c9_280 = arith.constant 9 : index
    %1283 = memref.load %arg5[%c9_280] : memref<24xf32, #tpu.memory_space<smem>>
    %1284 = vector.broadcast %1283 : f32 to vector<16x128xf32>
    %1285 = arith.addf %1282, %1284 : vector<16x128xf32>
    %cst_281 = arith.constant 0.000000e+00 : f32
    %1286 = vector.broadcast %cst_281 : f32 to vector<16x128xf32>
    %1287 = arith.maximumf %1285, %1286 : vector<16x128xf32>
    %c36_282 = arith.constant 36 : index
    %1288 = memref.load %arg6[%c36_282] : memref<96xf32, #tpu.memory_space<smem>>
    %1289 = vector.broadcast %1288 : f32 to vector<16x128xf32>
    %1290 = arith.mulf %1289, %1287 : vector<16x128xf32>
    %1291 = arith.addf %1233, %1290 : vector<16x128xf32>
    %c37_283 = arith.constant 37 : index
    %1292 = memref.load %arg6[%c37_283] : memref<96xf32, #tpu.memory_space<smem>>
    %1293 = vector.broadcast %1292 : f32 to vector<16x128xf32>
    %1294 = arith.mulf %1293, %1287 : vector<16x128xf32>
    %1295 = arith.addf %1237, %1294 : vector<16x128xf32>
    %c38_284 = arith.constant 38 : index
    %1296 = memref.load %arg6[%c38_284] : memref<96xf32, #tpu.memory_space<smem>>
    %1297 = vector.broadcast %1296 : f32 to vector<16x128xf32>
    %1298 = arith.mulf %1297, %1287 : vector<16x128xf32>
    %1299 = arith.addf %1241, %1298 : vector<16x128xf32>
    %c39_285 = arith.constant 39 : index
    %1300 = memref.load %arg6[%c39_285] : memref<96xf32, #tpu.memory_space<smem>>
    %1301 = vector.broadcast %1300 : f32 to vector<16x128xf32>
    %1302 = arith.mulf %1301, %1287 : vector<16x128xf32>
    %1303 = arith.addf %1245, %1302 : vector<16x128xf32>
    %cst_286 = arith.constant 0.000000e+00 : f32
    %1304 = vector.broadcast %cst_286 : f32 to vector<16x128xf32>
    %c10_287 = arith.constant 10 : index
    %1305 = memref.load %arg4[%c10_287] : memref<216xf32, #tpu.memory_space<smem>>
    %1306 = vector.broadcast %1305 : f32 to vector<16x128xf32>
    %1307 = arith.mulf %1306, %1062 : vector<16x128xf32>
    %1308 = arith.addf %1304, %1307 : vector<16x128xf32>
    %c34_288 = arith.constant 34 : index
    %1309 = memref.load %arg4[%c34_288] : memref<216xf32, #tpu.memory_space<smem>>
    %1310 = vector.broadcast %1309 : f32 to vector<16x128xf32>
    %1311 = arith.mulf %1310, %1061 : vector<16x128xf32>
    %1312 = arith.addf %1308, %1311 : vector<16x128xf32>
    %c58_289 = arith.constant 58 : index
    %1313 = memref.load %arg4[%c58_289] : memref<216xf32, #tpu.memory_space<smem>>
    %1314 = vector.broadcast %1313 : f32 to vector<16x128xf32>
    %1315 = arith.mulf %1314, %1063 : vector<16x128xf32>
    %1316 = arith.addf %1312, %1315 : vector<16x128xf32>
    %c82_290 = arith.constant 82 : index
    %1317 = memref.load %arg4[%c82_290] : memref<216xf32, #tpu.memory_space<smem>>
    %1318 = vector.broadcast %1317 : f32 to vector<16x128xf32>
    %1319 = arith.mulf %1318, %1066 : vector<16x128xf32>
    %1320 = arith.addf %1316, %1319 : vector<16x128xf32>
    %c106_291 = arith.constant 106 : index
    %1321 = memref.load %arg4[%c106_291] : memref<216xf32, #tpu.memory_space<smem>>
    %1322 = vector.broadcast %1321 : f32 to vector<16x128xf32>
    %1323 = arith.mulf %1322, %1065 : vector<16x128xf32>
    %1324 = arith.addf %1320, %1323 : vector<16x128xf32>
    %c130_292 = arith.constant 130 : index
    %1325 = memref.load %arg4[%c130_292] : memref<216xf32, #tpu.memory_space<smem>>
    %1326 = vector.broadcast %1325 : f32 to vector<16x128xf32>
    %1327 = arith.mulf %1326, %1067 : vector<16x128xf32>
    %1328 = arith.addf %1324, %1327 : vector<16x128xf32>
    %c154 = arith.constant 154 : index
    %1329 = memref.load %arg4[%c154] : memref<216xf32, #tpu.memory_space<smem>>
    %1330 = vector.broadcast %1329 : f32 to vector<16x128xf32>
    %1331 = arith.mulf %1330, %1070 : vector<16x128xf32>
    %1332 = arith.addf %1328, %1331 : vector<16x128xf32>
    %c178 = arith.constant 178 : index
    %1333 = memref.load %arg4[%c178] : memref<216xf32, #tpu.memory_space<smem>>
    %1334 = vector.broadcast %1333 : f32 to vector<16x128xf32>
    %1335 = arith.mulf %1334, %1069 : vector<16x128xf32>
    %1336 = arith.addf %1332, %1335 : vector<16x128xf32>
    %c202 = arith.constant 202 : index
    %1337 = memref.load %arg4[%c202] : memref<216xf32, #tpu.memory_space<smem>>
    %1338 = vector.broadcast %1337 : f32 to vector<16x128xf32>
    %1339 = arith.mulf %1338, %1071 : vector<16x128xf32>
    %1340 = arith.addf %1336, %1339 : vector<16x128xf32>
    %c10_293 = arith.constant 10 : index
    %1341 = memref.load %arg5[%c10_293] : memref<24xf32, #tpu.memory_space<smem>>
    %1342 = vector.broadcast %1341 : f32 to vector<16x128xf32>
    %1343 = arith.addf %1340, %1342 : vector<16x128xf32>
    %cst_294 = arith.constant 0.000000e+00 : f32
    %1344 = vector.broadcast %cst_294 : f32 to vector<16x128xf32>
    %1345 = arith.maximumf %1343, %1344 : vector<16x128xf32>
    %c40_295 = arith.constant 40 : index
    %1346 = memref.load %arg6[%c40_295] : memref<96xf32, #tpu.memory_space<smem>>
    %1347 = vector.broadcast %1346 : f32 to vector<16x128xf32>
    %1348 = arith.mulf %1347, %1345 : vector<16x128xf32>
    %1349 = arith.addf %1291, %1348 : vector<16x128xf32>
    %c41_296 = arith.constant 41 : index
    %1350 = memref.load %arg6[%c41_296] : memref<96xf32, #tpu.memory_space<smem>>
    %1351 = vector.broadcast %1350 : f32 to vector<16x128xf32>
    %1352 = arith.mulf %1351, %1345 : vector<16x128xf32>
    %1353 = arith.addf %1295, %1352 : vector<16x128xf32>
    %c42_297 = arith.constant 42 : index
    %1354 = memref.load %arg6[%c42_297] : memref<96xf32, #tpu.memory_space<smem>>
    %1355 = vector.broadcast %1354 : f32 to vector<16x128xf32>
    %1356 = arith.mulf %1355, %1345 : vector<16x128xf32>
    %1357 = arith.addf %1299, %1356 : vector<16x128xf32>
    %c43_298 = arith.constant 43 : index
    %1358 = memref.load %arg6[%c43_298] : memref<96xf32, #tpu.memory_space<smem>>
    %1359 = vector.broadcast %1358 : f32 to vector<16x128xf32>
    %1360 = arith.mulf %1359, %1345 : vector<16x128xf32>
    %1361 = arith.addf %1303, %1360 : vector<16x128xf32>
    %cst_299 = arith.constant 0.000000e+00 : f32
    %1362 = vector.broadcast %cst_299 : f32 to vector<16x128xf32>
    %c11_300 = arith.constant 11 : index
    %1363 = memref.load %arg4[%c11_300] : memref<216xf32, #tpu.memory_space<smem>>
    %1364 = vector.broadcast %1363 : f32 to vector<16x128xf32>
    %1365 = arith.mulf %1364, %1062 : vector<16x128xf32>
    %1366 = arith.addf %1362, %1365 : vector<16x128xf32>
    %c35_301 = arith.constant 35 : index
    %1367 = memref.load %arg4[%c35_301] : memref<216xf32, #tpu.memory_space<smem>>
    %1368 = vector.broadcast %1367 : f32 to vector<16x128xf32>
    %1369 = arith.mulf %1368, %1061 : vector<16x128xf32>
    %1370 = arith.addf %1366, %1369 : vector<16x128xf32>
    %c59_302 = arith.constant 59 : index
    %1371 = memref.load %arg4[%c59_302] : memref<216xf32, #tpu.memory_space<smem>>
    %1372 = vector.broadcast %1371 : f32 to vector<16x128xf32>
    %1373 = arith.mulf %1372, %1063 : vector<16x128xf32>
    %1374 = arith.addf %1370, %1373 : vector<16x128xf32>
    %c83_303 = arith.constant 83 : index
    %1375 = memref.load %arg4[%c83_303] : memref<216xf32, #tpu.memory_space<smem>>
    %1376 = vector.broadcast %1375 : f32 to vector<16x128xf32>
    %1377 = arith.mulf %1376, %1066 : vector<16x128xf32>
    %1378 = arith.addf %1374, %1377 : vector<16x128xf32>
    %c107_304 = arith.constant 107 : index
    %1379 = memref.load %arg4[%c107_304] : memref<216xf32, #tpu.memory_space<smem>>
    %1380 = vector.broadcast %1379 : f32 to vector<16x128xf32>
    %1381 = arith.mulf %1380, %1065 : vector<16x128xf32>
    %1382 = arith.addf %1378, %1381 : vector<16x128xf32>
    %c131_305 = arith.constant 131 : index
    %1383 = memref.load %arg4[%c131_305] : memref<216xf32, #tpu.memory_space<smem>>
    %1384 = vector.broadcast %1383 : f32 to vector<16x128xf32>
    %1385 = arith.mulf %1384, %1067 : vector<16x128xf32>
    %1386 = arith.addf %1382, %1385 : vector<16x128xf32>
    %c155 = arith.constant 155 : index
    %1387 = memref.load %arg4[%c155] : memref<216xf32, #tpu.memory_space<smem>>
    %1388 = vector.broadcast %1387 : f32 to vector<16x128xf32>
    %1389 = arith.mulf %1388, %1070 : vector<16x128xf32>
    %1390 = arith.addf %1386, %1389 : vector<16x128xf32>
    %c179 = arith.constant 179 : index
    %1391 = memref.load %arg4[%c179] : memref<216xf32, #tpu.memory_space<smem>>
    %1392 = vector.broadcast %1391 : f32 to vector<16x128xf32>
    %1393 = arith.mulf %1392, %1069 : vector<16x128xf32>
    %1394 = arith.addf %1390, %1393 : vector<16x128xf32>
    %c203 = arith.constant 203 : index
    %1395 = memref.load %arg4[%c203] : memref<216xf32, #tpu.memory_space<smem>>
    %1396 = vector.broadcast %1395 : f32 to vector<16x128xf32>
    %1397 = arith.mulf %1396, %1071 : vector<16x128xf32>
    %1398 = arith.addf %1394, %1397 : vector<16x128xf32>
    %c11_306 = arith.constant 11 : index
    %1399 = memref.load %arg5[%c11_306] : memref<24xf32, #tpu.memory_space<smem>>
    %1400 = vector.broadcast %1399 : f32 to vector<16x128xf32>
    %1401 = arith.addf %1398, %1400 : vector<16x128xf32>
    %cst_307 = arith.constant 0.000000e+00 : f32
    %1402 = vector.broadcast %cst_307 : f32 to vector<16x128xf32>
    %1403 = arith.maximumf %1401, %1402 : vector<16x128xf32>
    %c44_308 = arith.constant 44 : index
    %1404 = memref.load %arg6[%c44_308] : memref<96xf32, #tpu.memory_space<smem>>
    %1405 = vector.broadcast %1404 : f32 to vector<16x128xf32>
    %1406 = arith.mulf %1405, %1403 : vector<16x128xf32>
    %1407 = arith.addf %1349, %1406 : vector<16x128xf32>
    %c45_309 = arith.constant 45 : index
    %1408 = memref.load %arg6[%c45_309] : memref<96xf32, #tpu.memory_space<smem>>
    %1409 = vector.broadcast %1408 : f32 to vector<16x128xf32>
    %1410 = arith.mulf %1409, %1403 : vector<16x128xf32>
    %1411 = arith.addf %1353, %1410 : vector<16x128xf32>
    %c46_310 = arith.constant 46 : index
    %1412 = memref.load %arg6[%c46_310] : memref<96xf32, #tpu.memory_space<smem>>
    %1413 = vector.broadcast %1412 : f32 to vector<16x128xf32>
    %1414 = arith.mulf %1413, %1403 : vector<16x128xf32>
    %1415 = arith.addf %1357, %1414 : vector<16x128xf32>
    %c47_311 = arith.constant 47 : index
    %1416 = memref.load %arg6[%c47_311] : memref<96xf32, #tpu.memory_space<smem>>
    %1417 = vector.broadcast %1416 : f32 to vector<16x128xf32>
    %1418 = arith.mulf %1417, %1403 : vector<16x128xf32>
    %1419 = arith.addf %1361, %1418 : vector<16x128xf32>
    %c2_312 = arith.constant 2 : index
    %c0_313 = arith.constant 0 : index
    %c0_314 = arith.constant 0 : index
    %1420 = vector.load %arg9[%c2_312, %c0_313, %c0_314] : memref<4x18x128xf32, #tpu.memory_space<vmem>>, vector<1x16x128xf32>
    %1421 = vector.shape_cast %1420 : vector<1x16x128xf32> to vector<16x128xf32>
    %c1_i32_315 = arith.constant 1 : i32
    %1422 = tpu.dynamic_rotate %1421 by %c1_i32_315 dim 1 : vector<16x128xf32>, i32 -> vector<16x128xf32>
    %c127_i32_316 = arith.constant 127 : i32
    %1423 = tpu.dynamic_rotate %1421 by %c127_i32_316 dim 1 : vector<16x128xf32>, i32 -> vector<16x128xf32>
    %c2_317 = arith.constant 2 : index
    %c1_318 = arith.constant 1 : index
    %c0_319 = arith.constant 0 : index
    %1424 = vector.load %arg9[%c2_317, %c1_318, %c0_319] : memref<4x18x128xf32, #tpu.memory_space<vmem>>, vector<1x16x128xf32>
    %1425 = vector.shape_cast %1424 : vector<1x16x128xf32> to vector<16x128xf32>
    %c1_i32_320 = arith.constant 1 : i32
    %1426 = tpu.dynamic_rotate %1425 by %c1_i32_320 dim 1 : vector<16x128xf32>, i32 -> vector<16x128xf32>
    %c127_i32_321 = arith.constant 127 : i32
    %1427 = tpu.dynamic_rotate %1425 by %c127_i32_321 dim 1 : vector<16x128xf32>, i32 -> vector<16x128xf32>
    %c2_322 = arith.constant 2 : index
    %c2_323 = arith.constant 2 : index
    %c0_324 = arith.constant 0 : index
    %1428 = vector.load %arg9[%c2_322, %c2_323, %c0_324] : memref<4x18x128xf32, #tpu.memory_space<vmem>>, vector<1x16x128xf32>
    %1429 = vector.shape_cast %1428 : vector<1x16x128xf32> to vector<16x128xf32>
    %c1_i32_325 = arith.constant 1 : i32
    %1430 = tpu.dynamic_rotate %1429 by %c1_i32_325 dim 1 : vector<16x128xf32>, i32 -> vector<16x128xf32>
    %c127_i32_326 = arith.constant 127 : i32
    %1431 = tpu.dynamic_rotate %1429 by %c127_i32_326 dim 1 : vector<16x128xf32>, i32 -> vector<16x128xf32>
    %cst_327 = arith.constant 0.000000e+00 : f32
    %1432 = vector.broadcast %cst_327 : f32 to vector<16x128xf32>
    %c12_328 = arith.constant 12 : index
    %1433 = memref.load %arg4[%c12_328] : memref<216xf32, #tpu.memory_space<smem>>
    %1434 = vector.broadcast %1433 : f32 to vector<16x128xf32>
    %1435 = arith.mulf %1434, %1422 : vector<16x128xf32>
    %1436 = arith.addf %1432, %1435 : vector<16x128xf32>
    %c36_329 = arith.constant 36 : index
    %1437 = memref.load %arg4[%c36_329] : memref<216xf32, #tpu.memory_space<smem>>
    %1438 = vector.broadcast %1437 : f32 to vector<16x128xf32>
    %1439 = arith.mulf %1438, %1421 : vector<16x128xf32>
    %1440 = arith.addf %1436, %1439 : vector<16x128xf32>
    %c60_330 = arith.constant 60 : index
    %1441 = memref.load %arg4[%c60_330] : memref<216xf32, #tpu.memory_space<smem>>
    %1442 = vector.broadcast %1441 : f32 to vector<16x128xf32>
    %1443 = arith.mulf %1442, %1423 : vector<16x128xf32>
    %1444 = arith.addf %1440, %1443 : vector<16x128xf32>
    %c84_331 = arith.constant 84 : index
    %1445 = memref.load %arg4[%c84_331] : memref<216xf32, #tpu.memory_space<smem>>
    %1446 = vector.broadcast %1445 : f32 to vector<16x128xf32>
    %1447 = arith.mulf %1446, %1426 : vector<16x128xf32>
    %1448 = arith.addf %1444, %1447 : vector<16x128xf32>
    %c108_332 = arith.constant 108 : index
    %1449 = memref.load %arg4[%c108_332] : memref<216xf32, #tpu.memory_space<smem>>
    %1450 = vector.broadcast %1449 : f32 to vector<16x128xf32>
    %1451 = arith.mulf %1450, %1425 : vector<16x128xf32>
    %1452 = arith.addf %1448, %1451 : vector<16x128xf32>
    %c132_333 = arith.constant 132 : index
    %1453 = memref.load %arg4[%c132_333] : memref<216xf32, #tpu.memory_space<smem>>
    %1454 = vector.broadcast %1453 : f32 to vector<16x128xf32>
    %1455 = arith.mulf %1454, %1427 : vector<16x128xf32>
    %1456 = arith.addf %1452, %1455 : vector<16x128xf32>
    %c156 = arith.constant 156 : index
    %1457 = memref.load %arg4[%c156] : memref<216xf32, #tpu.memory_space<smem>>
    %1458 = vector.broadcast %1457 : f32 to vector<16x128xf32>
    %1459 = arith.mulf %1458, %1430 : vector<16x128xf32>
    %1460 = arith.addf %1456, %1459 : vector<16x128xf32>
    %c180 = arith.constant 180 : index
    %1461 = memref.load %arg4[%c180] : memref<216xf32, #tpu.memory_space<smem>>
    %1462 = vector.broadcast %1461 : f32 to vector<16x128xf32>
    %1463 = arith.mulf %1462, %1429 : vector<16x128xf32>
    %1464 = arith.addf %1460, %1463 : vector<16x128xf32>
    %c204 = arith.constant 204 : index
    %1465 = memref.load %arg4[%c204] : memref<216xf32, #tpu.memory_space<smem>>
    %1466 = vector.broadcast %1465 : f32 to vector<16x128xf32>
    %1467 = arith.mulf %1466, %1431 : vector<16x128xf32>
    %1468 = arith.addf %1464, %1467 : vector<16x128xf32>
    %c12_334 = arith.constant 12 : index
    %1469 = memref.load %arg5[%c12_334] : memref<24xf32, #tpu.memory_space<smem>>
    %1470 = vector.broadcast %1469 : f32 to vector<16x128xf32>
    %1471 = arith.addf %1468, %1470 : vector<16x128xf32>
    %cst_335 = arith.constant 0.000000e+00 : f32
    %1472 = vector.broadcast %cst_335 : f32 to vector<16x128xf32>
    %1473 = arith.maximumf %1471, %1472 : vector<16x128xf32>
    %c48_336 = arith.constant 48 : index
    %1474 = memref.load %arg6[%c48_336] : memref<96xf32, #tpu.memory_space<smem>>
    %1475 = vector.broadcast %1474 : f32 to vector<16x128xf32>
    %1476 = arith.mulf %1475, %1473 : vector<16x128xf32>
    %1477 = arith.addf %1407, %1476 : vector<16x128xf32>
    %c49_337 = arith.constant 49 : index
    %1478 = memref.load %arg6[%c49_337] : memref<96xf32, #tpu.memory_space<smem>>
    %1479 = vector.broadcast %1478 : f32 to vector<16x128xf32>
    %1480 = arith.mulf %1479, %1473 : vector<16x128xf32>
    %1481 = arith.addf %1411, %1480 : vector<16x128xf32>
    %c50_338 = arith.constant 50 : index
    %1482 = memref.load %arg6[%c50_338] : memref<96xf32, #tpu.memory_space<smem>>
    %1483 = vector.broadcast %1482 : f32 to vector<16x128xf32>
    %1484 = arith.mulf %1483, %1473 : vector<16x128xf32>
    %1485 = arith.addf %1415, %1484 : vector<16x128xf32>
    %c51_339 = arith.constant 51 : index
    %1486 = memref.load %arg6[%c51_339] : memref<96xf32, #tpu.memory_space<smem>>
    %1487 = vector.broadcast %1486 : f32 to vector<16x128xf32>
    %1488 = arith.mulf %1487, %1473 : vector<16x128xf32>
    %1489 = arith.addf %1419, %1488 : vector<16x128xf32>
    %cst_340 = arith.constant 0.000000e+00 : f32
    %1490 = vector.broadcast %cst_340 : f32 to vector<16x128xf32>
    %c13_341 = arith.constant 13 : index
    %1491 = memref.load %arg4[%c13_341] : memref<216xf32, #tpu.memory_space<smem>>
    %1492 = vector.broadcast %1491 : f32 to vector<16x128xf32>
    %1493 = arith.mulf %1492, %1422 : vector<16x128xf32>
    %1494 = arith.addf %1490, %1493 : vector<16x128xf32>
    %c37_342 = arith.constant 37 : index
    %1495 = memref.load %arg4[%c37_342] : memref<216xf32, #tpu.memory_space<smem>>
    %1496 = vector.broadcast %1495 : f32 to vector<16x128xf32>
    %1497 = arith.mulf %1496, %1421 : vector<16x128xf32>
    %1498 = arith.addf %1494, %1497 : vector<16x128xf32>
    %c61_343 = arith.constant 61 : index
    %1499 = memref.load %arg4[%c61_343] : memref<216xf32, #tpu.memory_space<smem>>
    %1500 = vector.broadcast %1499 : f32 to vector<16x128xf32>
    %1501 = arith.mulf %1500, %1423 : vector<16x128xf32>
    %1502 = arith.addf %1498, %1501 : vector<16x128xf32>
    %c85_344 = arith.constant 85 : index
    %1503 = memref.load %arg4[%c85_344] : memref<216xf32, #tpu.memory_space<smem>>
    %1504 = vector.broadcast %1503 : f32 to vector<16x128xf32>
    %1505 = arith.mulf %1504, %1426 : vector<16x128xf32>
    %1506 = arith.addf %1502, %1505 : vector<16x128xf32>
    %c109_345 = arith.constant 109 : index
    %1507 = memref.load %arg4[%c109_345] : memref<216xf32, #tpu.memory_space<smem>>
    %1508 = vector.broadcast %1507 : f32 to vector<16x128xf32>
    %1509 = arith.mulf %1508, %1425 : vector<16x128xf32>
    %1510 = arith.addf %1506, %1509 : vector<16x128xf32>
    %c133_346 = arith.constant 133 : index
    %1511 = memref.load %arg4[%c133_346] : memref<216xf32, #tpu.memory_space<smem>>
    %1512 = vector.broadcast %1511 : f32 to vector<16x128xf32>
    %1513 = arith.mulf %1512, %1427 : vector<16x128xf32>
    %1514 = arith.addf %1510, %1513 : vector<16x128xf32>
    %c157 = arith.constant 157 : index
    %1515 = memref.load %arg4[%c157] : memref<216xf32, #tpu.memory_space<smem>>
    %1516 = vector.broadcast %1515 : f32 to vector<16x128xf32>
    %1517 = arith.mulf %1516, %1430 : vector<16x128xf32>
    %1518 = arith.addf %1514, %1517 : vector<16x128xf32>
    %c181 = arith.constant 181 : index
    %1519 = memref.load %arg4[%c181] : memref<216xf32, #tpu.memory_space<smem>>
    %1520 = vector.broadcast %1519 : f32 to vector<16x128xf32>
    %1521 = arith.mulf %1520, %1429 : vector<16x128xf32>
    %1522 = arith.addf %1518, %1521 : vector<16x128xf32>
    %c205 = arith.constant 205 : index
    %1523 = memref.load %arg4[%c205] : memref<216xf32, #tpu.memory_space<smem>>
    %1524 = vector.broadcast %1523 : f32 to vector<16x128xf32>
    %1525 = arith.mulf %1524, %1431 : vector<16x128xf32>
    %1526 = arith.addf %1522, %1525 : vector<16x128xf32>
    %c13_347 = arith.constant 13 : index
    %1527 = memref.load %arg5[%c13_347] : memref<24xf32, #tpu.memory_space<smem>>
    %1528 = vector.broadcast %1527 : f32 to vector<16x128xf32>
    %1529 = arith.addf %1526, %1528 : vector<16x128xf32>
    %cst_348 = arith.constant 0.000000e+00 : f32
    %1530 = vector.broadcast %cst_348 : f32 to vector<16x128xf32>
    %1531 = arith.maximumf %1529, %1530 : vector<16x128xf32>
    %c52_349 = arith.constant 52 : index
    %1532 = memref.load %arg6[%c52_349] : memref<96xf32, #tpu.memory_space<smem>>
    %1533 = vector.broadcast %1532 : f32 to vector<16x128xf32>
    %1534 = arith.mulf %1533, %1531 : vector<16x128xf32>
    %1535 = arith.addf %1477, %1534 : vector<16x128xf32>
    %c53_350 = arith.constant 53 : index
    %1536 = memref.load %arg6[%c53_350] : memref<96xf32, #tpu.memory_space<smem>>
    %1537 = vector.broadcast %1536 : f32 to vector<16x128xf32>
    %1538 = arith.mulf %1537, %1531 : vector<16x128xf32>
    %1539 = arith.addf %1481, %1538 : vector<16x128xf32>
    %c54_351 = arith.constant 54 : index
    %1540 = memref.load %arg6[%c54_351] : memref<96xf32, #tpu.memory_space<smem>>
    %1541 = vector.broadcast %1540 : f32 to vector<16x128xf32>
    %1542 = arith.mulf %1541, %1531 : vector<16x128xf32>
    %1543 = arith.addf %1485, %1542 : vector<16x128xf32>
    %c55_352 = arith.constant 55 : index
    %1544 = memref.load %arg6[%c55_352] : memref<96xf32, #tpu.memory_space<smem>>
    %1545 = vector.broadcast %1544 : f32 to vector<16x128xf32>
    %1546 = arith.mulf %1545, %1531 : vector<16x128xf32>
    %1547 = arith.addf %1489, %1546 : vector<16x128xf32>
    %cst_353 = arith.constant 0.000000e+00 : f32
    %1548 = vector.broadcast %cst_353 : f32 to vector<16x128xf32>
    %c14_354 = arith.constant 14 : index
    %1549 = memref.load %arg4[%c14_354] : memref<216xf32, #tpu.memory_space<smem>>
    %1550 = vector.broadcast %1549 : f32 to vector<16x128xf32>
    %1551 = arith.mulf %1550, %1422 : vector<16x128xf32>
    %1552 = arith.addf %1548, %1551 : vector<16x128xf32>
    %c38_355 = arith.constant 38 : index
    %1553 = memref.load %arg4[%c38_355] : memref<216xf32, #tpu.memory_space<smem>>
    %1554 = vector.broadcast %1553 : f32 to vector<16x128xf32>
    %1555 = arith.mulf %1554, %1421 : vector<16x128xf32>
    %1556 = arith.addf %1552, %1555 : vector<16x128xf32>
    %c62_356 = arith.constant 62 : index
    %1557 = memref.load %arg4[%c62_356] : memref<216xf32, #tpu.memory_space<smem>>
    %1558 = vector.broadcast %1557 : f32 to vector<16x128xf32>
    %1559 = arith.mulf %1558, %1423 : vector<16x128xf32>
    %1560 = arith.addf %1556, %1559 : vector<16x128xf32>
    %c86_357 = arith.constant 86 : index
    %1561 = memref.load %arg4[%c86_357] : memref<216xf32, #tpu.memory_space<smem>>
    %1562 = vector.broadcast %1561 : f32 to vector<16x128xf32>
    %1563 = arith.mulf %1562, %1426 : vector<16x128xf32>
    %1564 = arith.addf %1560, %1563 : vector<16x128xf32>
    %c110_358 = arith.constant 110 : index
    %1565 = memref.load %arg4[%c110_358] : memref<216xf32, #tpu.memory_space<smem>>
    %1566 = vector.broadcast %1565 : f32 to vector<16x128xf32>
    %1567 = arith.mulf %1566, %1425 : vector<16x128xf32>
    %1568 = arith.addf %1564, %1567 : vector<16x128xf32>
    %c134_359 = arith.constant 134 : index
    %1569 = memref.load %arg4[%c134_359] : memref<216xf32, #tpu.memory_space<smem>>
    %1570 = vector.broadcast %1569 : f32 to vector<16x128xf32>
    %1571 = arith.mulf %1570, %1427 : vector<16x128xf32>
    %1572 = arith.addf %1568, %1571 : vector<16x128xf32>
    %c158 = arith.constant 158 : index
    %1573 = memref.load %arg4[%c158] : memref<216xf32, #tpu.memory_space<smem>>
    %1574 = vector.broadcast %1573 : f32 to vector<16x128xf32>
    %1575 = arith.mulf %1574, %1430 : vector<16x128xf32>
    %1576 = arith.addf %1572, %1575 : vector<16x128xf32>
    %c182 = arith.constant 182 : index
    %1577 = memref.load %arg4[%c182] : memref<216xf32, #tpu.memory_space<smem>>
    %1578 = vector.broadcast %1577 : f32 to vector<16x128xf32>
    %1579 = arith.mulf %1578, %1429 : vector<16x128xf32>
    %1580 = arith.addf %1576, %1579 : vector<16x128xf32>
    %c206 = arith.constant 206 : index
    %1581 = memref.load %arg4[%c206] : memref<216xf32, #tpu.memory_space<smem>>
    %1582 = vector.broadcast %1581 : f32 to vector<16x128xf32>
    %1583 = arith.mulf %1582, %1431 : vector<16x128xf32>
    %1584 = arith.addf %1580, %1583 : vector<16x128xf32>
    %c14_360 = arith.constant 14 : index
    %1585 = memref.load %arg5[%c14_360] : memref<24xf32, #tpu.memory_space<smem>>
    %1586 = vector.broadcast %1585 : f32 to vector<16x128xf32>
    %1587 = arith.addf %1584, %1586 : vector<16x128xf32>
    %cst_361 = arith.constant 0.000000e+00 : f32
    %1588 = vector.broadcast %cst_361 : f32 to vector<16x128xf32>
    %1589 = arith.maximumf %1587, %1588 : vector<16x128xf32>
    %c56_362 = arith.constant 56 : index
    %1590 = memref.load %arg6[%c56_362] : memref<96xf32, #tpu.memory_space<smem>>
    %1591 = vector.broadcast %1590 : f32 to vector<16x128xf32>
    %1592 = arith.mulf %1591, %1589 : vector<16x128xf32>
    %1593 = arith.addf %1535, %1592 : vector<16x128xf32>
    %c57_363 = arith.constant 57 : index
    %1594 = memref.load %arg6[%c57_363] : memref<96xf32, #tpu.memory_space<smem>>
    %1595 = vector.broadcast %1594 : f32 to vector<16x128xf32>
    %1596 = arith.mulf %1595, %1589 : vector<16x128xf32>
    %1597 = arith.addf %1539, %1596 : vector<16x128xf32>
    %c58_364 = arith.constant 58 : index
    %1598 = memref.load %arg6[%c58_364] : memref<96xf32, #tpu.memory_space<smem>>
    %1599 = vector.broadcast %1598 : f32 to vector<16x128xf32>
    %1600 = arith.mulf %1599, %1589 : vector<16x128xf32>
    %1601 = arith.addf %1543, %1600 : vector<16x128xf32>
    %c59_365 = arith.constant 59 : index
    %1602 = memref.load %arg6[%c59_365] : memref<96xf32, #tpu.memory_space<smem>>
    %1603 = vector.broadcast %1602 : f32 to vector<16x128xf32>
    %1604 = arith.mulf %1603, %1589 : vector<16x128xf32>
    %1605 = arith.addf %1547, %1604 : vector<16x128xf32>
    %cst_366 = arith.constant 0.000000e+00 : f32
    %1606 = vector.broadcast %cst_366 : f32 to vector<16x128xf32>
    %c15_367 = arith.constant 15 : index
    %1607 = memref.load %arg4[%c15_367] : memref<216xf32, #tpu.memory_space<smem>>
    %1608 = vector.broadcast %1607 : f32 to vector<16x128xf32>
    %1609 = arith.mulf %1608, %1422 : vector<16x128xf32>
    %1610 = arith.addf %1606, %1609 : vector<16x128xf32>
    %c39_368 = arith.constant 39 : index
    %1611 = memref.load %arg4[%c39_368] : memref<216xf32, #tpu.memory_space<smem>>
    %1612 = vector.broadcast %1611 : f32 to vector<16x128xf32>
    %1613 = arith.mulf %1612, %1421 : vector<16x128xf32>
    %1614 = arith.addf %1610, %1613 : vector<16x128xf32>
    %c63_369 = arith.constant 63 : index
    %1615 = memref.load %arg4[%c63_369] : memref<216xf32, #tpu.memory_space<smem>>
    %1616 = vector.broadcast %1615 : f32 to vector<16x128xf32>
    %1617 = arith.mulf %1616, %1423 : vector<16x128xf32>
    %1618 = arith.addf %1614, %1617 : vector<16x128xf32>
    %c87_370 = arith.constant 87 : index
    %1619 = memref.load %arg4[%c87_370] : memref<216xf32, #tpu.memory_space<smem>>
    %1620 = vector.broadcast %1619 : f32 to vector<16x128xf32>
    %1621 = arith.mulf %1620, %1426 : vector<16x128xf32>
    %1622 = arith.addf %1618, %1621 : vector<16x128xf32>
    %c111_371 = arith.constant 111 : index
    %1623 = memref.load %arg4[%c111_371] : memref<216xf32, #tpu.memory_space<smem>>
    %1624 = vector.broadcast %1623 : f32 to vector<16x128xf32>
    %1625 = arith.mulf %1624, %1425 : vector<16x128xf32>
    %1626 = arith.addf %1622, %1625 : vector<16x128xf32>
    %c135_372 = arith.constant 135 : index
    %1627 = memref.load %arg4[%c135_372] : memref<216xf32, #tpu.memory_space<smem>>
    %1628 = vector.broadcast %1627 : f32 to vector<16x128xf32>
    %1629 = arith.mulf %1628, %1427 : vector<16x128xf32>
    %1630 = arith.addf %1626, %1629 : vector<16x128xf32>
    %c159 = arith.constant 159 : index
    %1631 = memref.load %arg4[%c159] : memref<216xf32, #tpu.memory_space<smem>>
    %1632 = vector.broadcast %1631 : f32 to vector<16x128xf32>
    %1633 = arith.mulf %1632, %1430 : vector<16x128xf32>
    %1634 = arith.addf %1630, %1633 : vector<16x128xf32>
    %c183 = arith.constant 183 : index
    %1635 = memref.load %arg4[%c183] : memref<216xf32, #tpu.memory_space<smem>>
    %1636 = vector.broadcast %1635 : f32 to vector<16x128xf32>
    %1637 = arith.mulf %1636, %1429 : vector<16x128xf32>
    %1638 = arith.addf %1634, %1637 : vector<16x128xf32>
    %c207 = arith.constant 207 : index
    %1639 = memref.load %arg4[%c207] : memref<216xf32, #tpu.memory_space<smem>>
    %1640 = vector.broadcast %1639 : f32 to vector<16x128xf32>
    %1641 = arith.mulf %1640, %1431 : vector<16x128xf32>
    %1642 = arith.addf %1638, %1641 : vector<16x128xf32>
    %c15_373 = arith.constant 15 : index
    %1643 = memref.load %arg5[%c15_373] : memref<24xf32, #tpu.memory_space<smem>>
    %1644 = vector.broadcast %1643 : f32 to vector<16x128xf32>
    %1645 = arith.addf %1642, %1644 : vector<16x128xf32>
    %cst_374 = arith.constant 0.000000e+00 : f32
    %1646 = vector.broadcast %cst_374 : f32 to vector<16x128xf32>
    %1647 = arith.maximumf %1645, %1646 : vector<16x128xf32>
    %c60_375 = arith.constant 60 : index
    %1648 = memref.load %arg6[%c60_375] : memref<96xf32, #tpu.memory_space<smem>>
    %1649 = vector.broadcast %1648 : f32 to vector<16x128xf32>
    %1650 = arith.mulf %1649, %1647 : vector<16x128xf32>
    %1651 = arith.addf %1593, %1650 : vector<16x128xf32>
    %c61_376 = arith.constant 61 : index
    %1652 = memref.load %arg6[%c61_376] : memref<96xf32, #tpu.memory_space<smem>>
    %1653 = vector.broadcast %1652 : f32 to vector<16x128xf32>
    %1654 = arith.mulf %1653, %1647 : vector<16x128xf32>
    %1655 = arith.addf %1597, %1654 : vector<16x128xf32>
    %c62_377 = arith.constant 62 : index
    %1656 = memref.load %arg6[%c62_377] : memref<96xf32, #tpu.memory_space<smem>>
    %1657 = vector.broadcast %1656 : f32 to vector<16x128xf32>
    %1658 = arith.mulf %1657, %1647 : vector<16x128xf32>
    %1659 = arith.addf %1601, %1658 : vector<16x128xf32>
    %c63_378 = arith.constant 63 : index
    %1660 = memref.load %arg6[%c63_378] : memref<96xf32, #tpu.memory_space<smem>>
    %1661 = vector.broadcast %1660 : f32 to vector<16x128xf32>
    %1662 = arith.mulf %1661, %1647 : vector<16x128xf32>
    %1663 = arith.addf %1605, %1662 : vector<16x128xf32>
    %cst_379 = arith.constant 0.000000e+00 : f32
    %1664 = vector.broadcast %cst_379 : f32 to vector<16x128xf32>
    %c16_380 = arith.constant 16 : index
    %1665 = memref.load %arg4[%c16_380] : memref<216xf32, #tpu.memory_space<smem>>
    %1666 = vector.broadcast %1665 : f32 to vector<16x128xf32>
    %1667 = arith.mulf %1666, %1422 : vector<16x128xf32>
    %1668 = arith.addf %1664, %1667 : vector<16x128xf32>
    %c40_381 = arith.constant 40 : index
    %1669 = memref.load %arg4[%c40_381] : memref<216xf32, #tpu.memory_space<smem>>
    %1670 = vector.broadcast %1669 : f32 to vector<16x128xf32>
    %1671 = arith.mulf %1670, %1421 : vector<16x128xf32>
    %1672 = arith.addf %1668, %1671 : vector<16x128xf32>
    %c64_382 = arith.constant 64 : index
    %1673 = memref.load %arg4[%c64_382] : memref<216xf32, #tpu.memory_space<smem>>
    %1674 = vector.broadcast %1673 : f32 to vector<16x128xf32>
    %1675 = arith.mulf %1674, %1423 : vector<16x128xf32>
    %1676 = arith.addf %1672, %1675 : vector<16x128xf32>
    %c88_383 = arith.constant 88 : index
    %1677 = memref.load %arg4[%c88_383] : memref<216xf32, #tpu.memory_space<smem>>
    %1678 = vector.broadcast %1677 : f32 to vector<16x128xf32>
    %1679 = arith.mulf %1678, %1426 : vector<16x128xf32>
    %1680 = arith.addf %1676, %1679 : vector<16x128xf32>
    %c112_384 = arith.constant 112 : index
    %1681 = memref.load %arg4[%c112_384] : memref<216xf32, #tpu.memory_space<smem>>
    %1682 = vector.broadcast %1681 : f32 to vector<16x128xf32>
    %1683 = arith.mulf %1682, %1425 : vector<16x128xf32>
    %1684 = arith.addf %1680, %1683 : vector<16x128xf32>
    %c136_385 = arith.constant 136 : index
    %1685 = memref.load %arg4[%c136_385] : memref<216xf32, #tpu.memory_space<smem>>
    %1686 = vector.broadcast %1685 : f32 to vector<16x128xf32>
    %1687 = arith.mulf %1686, %1427 : vector<16x128xf32>
    %1688 = arith.addf %1684, %1687 : vector<16x128xf32>
    %c160 = arith.constant 160 : index
    %1689 = memref.load %arg4[%c160] : memref<216xf32, #tpu.memory_space<smem>>
    %1690 = vector.broadcast %1689 : f32 to vector<16x128xf32>
    %1691 = arith.mulf %1690, %1430 : vector<16x128xf32>
    %1692 = arith.addf %1688, %1691 : vector<16x128xf32>
    %c184 = arith.constant 184 : index
    %1693 = memref.load %arg4[%c184] : memref<216xf32, #tpu.memory_space<smem>>
    %1694 = vector.broadcast %1693 : f32 to vector<16x128xf32>
    %1695 = arith.mulf %1694, %1429 : vector<16x128xf32>
    %1696 = arith.addf %1692, %1695 : vector<16x128xf32>
    %c208 = arith.constant 208 : index
    %1697 = memref.load %arg4[%c208] : memref<216xf32, #tpu.memory_space<smem>>
    %1698 = vector.broadcast %1697 : f32 to vector<16x128xf32>
    %1699 = arith.mulf %1698, %1431 : vector<16x128xf32>
    %1700 = arith.addf %1696, %1699 : vector<16x128xf32>
    %c16_386 = arith.constant 16 : index
    %1701 = memref.load %arg5[%c16_386] : memref<24xf32, #tpu.memory_space<smem>>
    %1702 = vector.broadcast %1701 : f32 to vector<16x128xf32>
    %1703 = arith.addf %1700, %1702 : vector<16x128xf32>
    %cst_387 = arith.constant 0.000000e+00 : f32
    %1704 = vector.broadcast %cst_387 : f32 to vector<16x128xf32>
    %1705 = arith.maximumf %1703, %1704 : vector<16x128xf32>
    %c64_388 = arith.constant 64 : index
    %1706 = memref.load %arg6[%c64_388] : memref<96xf32, #tpu.memory_space<smem>>
    %1707 = vector.broadcast %1706 : f32 to vector<16x128xf32>
    %1708 = arith.mulf %1707, %1705 : vector<16x128xf32>
    %1709 = arith.addf %1651, %1708 : vector<16x128xf32>
    %c65_389 = arith.constant 65 : index
    %1710 = memref.load %arg6[%c65_389] : memref<96xf32, #tpu.memory_space<smem>>
    %1711 = vector.broadcast %1710 : f32 to vector<16x128xf32>
    %1712 = arith.mulf %1711, %1705 : vector<16x128xf32>
    %1713 = arith.addf %1655, %1712 : vector<16x128xf32>
    %c66_390 = arith.constant 66 : index
    %1714 = memref.load %arg6[%c66_390] : memref<96xf32, #tpu.memory_space<smem>>
    %1715 = vector.broadcast %1714 : f32 to vector<16x128xf32>
    %1716 = arith.mulf %1715, %1705 : vector<16x128xf32>
    %1717 = arith.addf %1659, %1716 : vector<16x128xf32>
    %c67_391 = arith.constant 67 : index
    %1718 = memref.load %arg6[%c67_391] : memref<96xf32, #tpu.memory_space<smem>>
    %1719 = vector.broadcast %1718 : f32 to vector<16x128xf32>
    %1720 = arith.mulf %1719, %1705 : vector<16x128xf32>
    %1721 = arith.addf %1663, %1720 : vector<16x128xf32>
    %cst_392 = arith.constant 0.000000e+00 : f32
    %1722 = vector.broadcast %cst_392 : f32 to vector<16x128xf32>
    %c17_393 = arith.constant 17 : index
    %1723 = memref.load %arg4[%c17_393] : memref<216xf32, #tpu.memory_space<smem>>
    %1724 = vector.broadcast %1723 : f32 to vector<16x128xf32>
    %1725 = arith.mulf %1724, %1422 : vector<16x128xf32>
    %1726 = arith.addf %1722, %1725 : vector<16x128xf32>
    %c41_394 = arith.constant 41 : index
    %1727 = memref.load %arg4[%c41_394] : memref<216xf32, #tpu.memory_space<smem>>
    %1728 = vector.broadcast %1727 : f32 to vector<16x128xf32>
    %1729 = arith.mulf %1728, %1421 : vector<16x128xf32>
    %1730 = arith.addf %1726, %1729 : vector<16x128xf32>
    %c65_395 = arith.constant 65 : index
    %1731 = memref.load %arg4[%c65_395] : memref<216xf32, #tpu.memory_space<smem>>
    %1732 = vector.broadcast %1731 : f32 to vector<16x128xf32>
    %1733 = arith.mulf %1732, %1423 : vector<16x128xf32>
    %1734 = arith.addf %1730, %1733 : vector<16x128xf32>
    %c89_396 = arith.constant 89 : index
    %1735 = memref.load %arg4[%c89_396] : memref<216xf32, #tpu.memory_space<smem>>
    %1736 = vector.broadcast %1735 : f32 to vector<16x128xf32>
    %1737 = arith.mulf %1736, %1426 : vector<16x128xf32>
    %1738 = arith.addf %1734, %1737 : vector<16x128xf32>
    %c113_397 = arith.constant 113 : index
    %1739 = memref.load %arg4[%c113_397] : memref<216xf32, #tpu.memory_space<smem>>
    %1740 = vector.broadcast %1739 : f32 to vector<16x128xf32>
    %1741 = arith.mulf %1740, %1425 : vector<16x128xf32>
    %1742 = arith.addf %1738, %1741 : vector<16x128xf32>
    %c137_398 = arith.constant 137 : index
    %1743 = memref.load %arg4[%c137_398] : memref<216xf32, #tpu.memory_space<smem>>
    %1744 = vector.broadcast %1743 : f32 to vector<16x128xf32>
    %1745 = arith.mulf %1744, %1427 : vector<16x128xf32>
    %1746 = arith.addf %1742, %1745 : vector<16x128xf32>
    %c161 = arith.constant 161 : index
    %1747 = memref.load %arg4[%c161] : memref<216xf32, #tpu.memory_space<smem>>
    %1748 = vector.broadcast %1747 : f32 to vector<16x128xf32>
    %1749 = arith.mulf %1748, %1430 : vector<16x128xf32>
    %1750 = arith.addf %1746, %1749 : vector<16x128xf32>
    %c185 = arith.constant 185 : index
    %1751 = memref.load %arg4[%c185] : memref<216xf32, #tpu.memory_space<smem>>
    %1752 = vector.broadcast %1751 : f32 to vector<16x128xf32>
    %1753 = arith.mulf %1752, %1429 : vector<16x128xf32>
    %1754 = arith.addf %1750, %1753 : vector<16x128xf32>
    %c209 = arith.constant 209 : index
    %1755 = memref.load %arg4[%c209] : memref<216xf32, #tpu.memory_space<smem>>
    %1756 = vector.broadcast %1755 : f32 to vector<16x128xf32>
    %1757 = arith.mulf %1756, %1431 : vector<16x128xf32>
    %1758 = arith.addf %1754, %1757 : vector<16x128xf32>
    %c17_399 = arith.constant 17 : index
    %1759 = memref.load %arg5[%c17_399] : memref<24xf32, #tpu.memory_space<smem>>
    %1760 = vector.broadcast %1759 : f32 to vector<16x128xf32>
    %1761 = arith.addf %1758, %1760 : vector<16x128xf32>
    %cst_400 = arith.constant 0.000000e+00 : f32
    %1762 = vector.broadcast %cst_400 : f32 to vector<16x128xf32>
    %1763 = arith.maximumf %1761, %1762 : vector<16x128xf32>
    %c68_401 = arith.constant 68 : index
    %1764 = memref.load %arg6[%c68_401] : memref<96xf32, #tpu.memory_space<smem>>
    %1765 = vector.broadcast %1764 : f32 to vector<16x128xf32>
    %1766 = arith.mulf %1765, %1763 : vector<16x128xf32>
    %1767 = arith.addf %1709, %1766 : vector<16x128xf32>
    %c69_402 = arith.constant 69 : index
    %1768 = memref.load %arg6[%c69_402] : memref<96xf32, #tpu.memory_space<smem>>
    %1769 = vector.broadcast %1768 : f32 to vector<16x128xf32>
    %1770 = arith.mulf %1769, %1763 : vector<16x128xf32>
    %1771 = arith.addf %1713, %1770 : vector<16x128xf32>
    %c70_403 = arith.constant 70 : index
    %1772 = memref.load %arg6[%c70_403] : memref<96xf32, #tpu.memory_space<smem>>
    %1773 = vector.broadcast %1772 : f32 to vector<16x128xf32>
    %1774 = arith.mulf %1773, %1763 : vector<16x128xf32>
    %1775 = arith.addf %1717, %1774 : vector<16x128xf32>
    %c71_404 = arith.constant 71 : index
    %1776 = memref.load %arg6[%c71_404] : memref<96xf32, #tpu.memory_space<smem>>
    %1777 = vector.broadcast %1776 : f32 to vector<16x128xf32>
    %1778 = arith.mulf %1777, %1763 : vector<16x128xf32>
    %1779 = arith.addf %1721, %1778 : vector<16x128xf32>
    %c3_405 = arith.constant 3 : index
    %c0_406 = arith.constant 0 : index
    %c0_407 = arith.constant 0 : index
    %1780 = vector.load %arg9[%c3_405, %c0_406, %c0_407] : memref<4x18x128xf32, #tpu.memory_space<vmem>>, vector<1x16x128xf32>
    %1781 = vector.shape_cast %1780 : vector<1x16x128xf32> to vector<16x128xf32>
    %c1_i32_408 = arith.constant 1 : i32
    %1782 = tpu.dynamic_rotate %1781 by %c1_i32_408 dim 1 : vector<16x128xf32>, i32 -> vector<16x128xf32>
    %c127_i32_409 = arith.constant 127 : i32
    %1783 = tpu.dynamic_rotate %1781 by %c127_i32_409 dim 1 : vector<16x128xf32>, i32 -> vector<16x128xf32>
    %c3_410 = arith.constant 3 : index
    %c1_411 = arith.constant 1 : index
    %c0_412 = arith.constant 0 : index
    %1784 = vector.load %arg9[%c3_410, %c1_411, %c0_412] : memref<4x18x128xf32, #tpu.memory_space<vmem>>, vector<1x16x128xf32>
    %1785 = vector.shape_cast %1784 : vector<1x16x128xf32> to vector<16x128xf32>
    %c1_i32_413 = arith.constant 1 : i32
    %1786 = tpu.dynamic_rotate %1785 by %c1_i32_413 dim 1 : vector<16x128xf32>, i32 -> vector<16x128xf32>
    %c127_i32_414 = arith.constant 127 : i32
    %1787 = tpu.dynamic_rotate %1785 by %c127_i32_414 dim 1 : vector<16x128xf32>, i32 -> vector<16x128xf32>
    %c3_415 = arith.constant 3 : index
    %c2_416 = arith.constant 2 : index
    %c0_417 = arith.constant 0 : index
    %1788 = vector.load %arg9[%c3_415, %c2_416, %c0_417] : memref<4x18x128xf32, #tpu.memory_space<vmem>>, vector<1x16x128xf32>
    %1789 = vector.shape_cast %1788 : vector<1x16x128xf32> to vector<16x128xf32>
    %c1_i32_418 = arith.constant 1 : i32
    %1790 = tpu.dynamic_rotate %1789 by %c1_i32_418 dim 1 : vector<16x128xf32>, i32 -> vector<16x128xf32>
    %c127_i32_419 = arith.constant 127 : i32
    %1791 = tpu.dynamic_rotate %1789 by %c127_i32_419 dim 1 : vector<16x128xf32>, i32 -> vector<16x128xf32>
    %cst_420 = arith.constant 0.000000e+00 : f32
    %1792 = vector.broadcast %cst_420 : f32 to vector<16x128xf32>
    %c18_421 = arith.constant 18 : index
    %1793 = memref.load %arg4[%c18_421] : memref<216xf32, #tpu.memory_space<smem>>
    %1794 = vector.broadcast %1793 : f32 to vector<16x128xf32>
    %1795 = arith.mulf %1794, %1782 : vector<16x128xf32>
    %1796 = arith.addf %1792, %1795 : vector<16x128xf32>
    %c42_422 = arith.constant 42 : index
    %1797 = memref.load %arg4[%c42_422] : memref<216xf32, #tpu.memory_space<smem>>
    %1798 = vector.broadcast %1797 : f32 to vector<16x128xf32>
    %1799 = arith.mulf %1798, %1781 : vector<16x128xf32>
    %1800 = arith.addf %1796, %1799 : vector<16x128xf32>
    %c66_423 = arith.constant 66 : index
    %1801 = memref.load %arg4[%c66_423] : memref<216xf32, #tpu.memory_space<smem>>
    %1802 = vector.broadcast %1801 : f32 to vector<16x128xf32>
    %1803 = arith.mulf %1802, %1783 : vector<16x128xf32>
    %1804 = arith.addf %1800, %1803 : vector<16x128xf32>
    %c90_424 = arith.constant 90 : index
    %1805 = memref.load %arg4[%c90_424] : memref<216xf32, #tpu.memory_space<smem>>
    %1806 = vector.broadcast %1805 : f32 to vector<16x128xf32>
    %1807 = arith.mulf %1806, %1786 : vector<16x128xf32>
    %1808 = arith.addf %1804, %1807 : vector<16x128xf32>
    %c114_425 = arith.constant 114 : index
    %1809 = memref.load %arg4[%c114_425] : memref<216xf32, #tpu.memory_space<smem>>
    %1810 = vector.broadcast %1809 : f32 to vector<16x128xf32>
    %1811 = arith.mulf %1810, %1785 : vector<16x128xf32>
    %1812 = arith.addf %1808, %1811 : vector<16x128xf32>
    %c138_426 = arith.constant 138 : index
    %1813 = memref.load %arg4[%c138_426] : memref<216xf32, #tpu.memory_space<smem>>
    %1814 = vector.broadcast %1813 : f32 to vector<16x128xf32>
    %1815 = arith.mulf %1814, %1787 : vector<16x128xf32>
    %1816 = arith.addf %1812, %1815 : vector<16x128xf32>
    %c162 = arith.constant 162 : index
    %1817 = memref.load %arg4[%c162] : memref<216xf32, #tpu.memory_space<smem>>
    %1818 = vector.broadcast %1817 : f32 to vector<16x128xf32>
    %1819 = arith.mulf %1818, %1790 : vector<16x128xf32>
    %1820 = arith.addf %1816, %1819 : vector<16x128xf32>
    %c186 = arith.constant 186 : index
    %1821 = memref.load %arg4[%c186] : memref<216xf32, #tpu.memory_space<smem>>
    %1822 = vector.broadcast %1821 : f32 to vector<16x128xf32>
    %1823 = arith.mulf %1822, %1789 : vector<16x128xf32>
    %1824 = arith.addf %1820, %1823 : vector<16x128xf32>
    %c210 = arith.constant 210 : index
    %1825 = memref.load %arg4[%c210] : memref<216xf32, #tpu.memory_space<smem>>
    %1826 = vector.broadcast %1825 : f32 to vector<16x128xf32>
    %1827 = arith.mulf %1826, %1791 : vector<16x128xf32>
    %1828 = arith.addf %1824, %1827 : vector<16x128xf32>
    %c18_427 = arith.constant 18 : index
    %1829 = memref.load %arg5[%c18_427] : memref<24xf32, #tpu.memory_space<smem>>
    %1830 = vector.broadcast %1829 : f32 to vector<16x128xf32>
    %1831 = arith.addf %1828, %1830 : vector<16x128xf32>
    %cst_428 = arith.constant 0.000000e+00 : f32
    %1832 = vector.broadcast %cst_428 : f32 to vector<16x128xf32>
    %1833 = arith.maximumf %1831, %1832 : vector<16x128xf32>
    %c72_429 = arith.constant 72 : index
    %1834 = memref.load %arg6[%c72_429] : memref<96xf32, #tpu.memory_space<smem>>
    %1835 = vector.broadcast %1834 : f32 to vector<16x128xf32>
    %1836 = arith.mulf %1835, %1833 : vector<16x128xf32>
    %1837 = arith.addf %1767, %1836 : vector<16x128xf32>
    %c73_430 = arith.constant 73 : index
    %1838 = memref.load %arg6[%c73_430] : memref<96xf32, #tpu.memory_space<smem>>
    %1839 = vector.broadcast %1838 : f32 to vector<16x128xf32>
    %1840 = arith.mulf %1839, %1833 : vector<16x128xf32>
    %1841 = arith.addf %1771, %1840 : vector<16x128xf32>
    %c74_431 = arith.constant 74 : index
    %1842 = memref.load %arg6[%c74_431] : memref<96xf32, #tpu.memory_space<smem>>
    %1843 = vector.broadcast %1842 : f32 to vector<16x128xf32>
    %1844 = arith.mulf %1843, %1833 : vector<16x128xf32>
    %1845 = arith.addf %1775, %1844 : vector<16x128xf32>
    %c75_432 = arith.constant 75 : index
    %1846 = memref.load %arg6[%c75_432] : memref<96xf32, #tpu.memory_space<smem>>
    %1847 = vector.broadcast %1846 : f32 to vector<16x128xf32>
    %1848 = arith.mulf %1847, %1833 : vector<16x128xf32>
    %1849 = arith.addf %1779, %1848 : vector<16x128xf32>
    %cst_433 = arith.constant 0.000000e+00 : f32
    %1850 = vector.broadcast %cst_433 : f32 to vector<16x128xf32>
    %c19_434 = arith.constant 19 : index
    %1851 = memref.load %arg4[%c19_434] : memref<216xf32, #tpu.memory_space<smem>>
    %1852 = vector.broadcast %1851 : f32 to vector<16x128xf32>
    %1853 = arith.mulf %1852, %1782 : vector<16x128xf32>
    %1854 = arith.addf %1850, %1853 : vector<16x128xf32>
    %c43_435 = arith.constant 43 : index
    %1855 = memref.load %arg4[%c43_435] : memref<216xf32, #tpu.memory_space<smem>>
    %1856 = vector.broadcast %1855 : f32 to vector<16x128xf32>
    %1857 = arith.mulf %1856, %1781 : vector<16x128xf32>
    %1858 = arith.addf %1854, %1857 : vector<16x128xf32>
    %c67_436 = arith.constant 67 : index
    %1859 = memref.load %arg4[%c67_436] : memref<216xf32, #tpu.memory_space<smem>>
    %1860 = vector.broadcast %1859 : f32 to vector<16x128xf32>
    %1861 = arith.mulf %1860, %1783 : vector<16x128xf32>
    %1862 = arith.addf %1858, %1861 : vector<16x128xf32>
    %c91_437 = arith.constant 91 : index
    %1863 = memref.load %arg4[%c91_437] : memref<216xf32, #tpu.memory_space<smem>>
    %1864 = vector.broadcast %1863 : f32 to vector<16x128xf32>
    %1865 = arith.mulf %1864, %1786 : vector<16x128xf32>
    %1866 = arith.addf %1862, %1865 : vector<16x128xf32>
    %c115_438 = arith.constant 115 : index
    %1867 = memref.load %arg4[%c115_438] : memref<216xf32, #tpu.memory_space<smem>>
    %1868 = vector.broadcast %1867 : f32 to vector<16x128xf32>
    %1869 = arith.mulf %1868, %1785 : vector<16x128xf32>
    %1870 = arith.addf %1866, %1869 : vector<16x128xf32>
    %c139_439 = arith.constant 139 : index
    %1871 = memref.load %arg4[%c139_439] : memref<216xf32, #tpu.memory_space<smem>>
    %1872 = vector.broadcast %1871 : f32 to vector<16x128xf32>
    %1873 = arith.mulf %1872, %1787 : vector<16x128xf32>
    %1874 = arith.addf %1870, %1873 : vector<16x128xf32>
    %c163 = arith.constant 163 : index
    %1875 = memref.load %arg4[%c163] : memref<216xf32, #tpu.memory_space<smem>>
    %1876 = vector.broadcast %1875 : f32 to vector<16x128xf32>
    %1877 = arith.mulf %1876, %1790 : vector<16x128xf32>
    %1878 = arith.addf %1874, %1877 : vector<16x128xf32>
    %c187 = arith.constant 187 : index
    %1879 = memref.load %arg4[%c187] : memref<216xf32, #tpu.memory_space<smem>>
    %1880 = vector.broadcast %1879 : f32 to vector<16x128xf32>
    %1881 = arith.mulf %1880, %1789 : vector<16x128xf32>
    %1882 = arith.addf %1878, %1881 : vector<16x128xf32>
    %c211 = arith.constant 211 : index
    %1883 = memref.load %arg4[%c211] : memref<216xf32, #tpu.memory_space<smem>>
    %1884 = vector.broadcast %1883 : f32 to vector<16x128xf32>
    %1885 = arith.mulf %1884, %1791 : vector<16x128xf32>
    %1886 = arith.addf %1882, %1885 : vector<16x128xf32>
    %c19_440 = arith.constant 19 : index
    %1887 = memref.load %arg5[%c19_440] : memref<24xf32, #tpu.memory_space<smem>>
    %1888 = vector.broadcast %1887 : f32 to vector<16x128xf32>
    %1889 = arith.addf %1886, %1888 : vector<16x128xf32>
    %cst_441 = arith.constant 0.000000e+00 : f32
    %1890 = vector.broadcast %cst_441 : f32 to vector<16x128xf32>
    %1891 = arith.maximumf %1889, %1890 : vector<16x128xf32>
    %c76_442 = arith.constant 76 : index
    %1892 = memref.load %arg6[%c76_442] : memref<96xf32, #tpu.memory_space<smem>>
    %1893 = vector.broadcast %1892 : f32 to vector<16x128xf32>
    %1894 = arith.mulf %1893, %1891 : vector<16x128xf32>
    %1895 = arith.addf %1837, %1894 : vector<16x128xf32>
    %c77_443 = arith.constant 77 : index
    %1896 = memref.load %arg6[%c77_443] : memref<96xf32, #tpu.memory_space<smem>>
    %1897 = vector.broadcast %1896 : f32 to vector<16x128xf32>
    %1898 = arith.mulf %1897, %1891 : vector<16x128xf32>
    %1899 = arith.addf %1841, %1898 : vector<16x128xf32>
    %c78_444 = arith.constant 78 : index
    %1900 = memref.load %arg6[%c78_444] : memref<96xf32, #tpu.memory_space<smem>>
    %1901 = vector.broadcast %1900 : f32 to vector<16x128xf32>
    %1902 = arith.mulf %1901, %1891 : vector<16x128xf32>
    %1903 = arith.addf %1845, %1902 : vector<16x128xf32>
    %c79_445 = arith.constant 79 : index
    %1904 = memref.load %arg6[%c79_445] : memref<96xf32, #tpu.memory_space<smem>>
    %1905 = vector.broadcast %1904 : f32 to vector<16x128xf32>
    %1906 = arith.mulf %1905, %1891 : vector<16x128xf32>
    %1907 = arith.addf %1849, %1906 : vector<16x128xf32>
    %cst_446 = arith.constant 0.000000e+00 : f32
    %1908 = vector.broadcast %cst_446 : f32 to vector<16x128xf32>
    %c20_447 = arith.constant 20 : index
    %1909 = memref.load %arg4[%c20_447] : memref<216xf32, #tpu.memory_space<smem>>
    %1910 = vector.broadcast %1909 : f32 to vector<16x128xf32>
    %1911 = arith.mulf %1910, %1782 : vector<16x128xf32>
    %1912 = arith.addf %1908, %1911 : vector<16x128xf32>
    %c44_448 = arith.constant 44 : index
    %1913 = memref.load %arg4[%c44_448] : memref<216xf32, #tpu.memory_space<smem>>
    %1914 = vector.broadcast %1913 : f32 to vector<16x128xf32>
    %1915 = arith.mulf %1914, %1781 : vector<16x128xf32>
    %1916 = arith.addf %1912, %1915 : vector<16x128xf32>
    %c68_449 = arith.constant 68 : index
    %1917 = memref.load %arg4[%c68_449] : memref<216xf32, #tpu.memory_space<smem>>
    %1918 = vector.broadcast %1917 : f32 to vector<16x128xf32>
    %1919 = arith.mulf %1918, %1783 : vector<16x128xf32>
    %1920 = arith.addf %1916, %1919 : vector<16x128xf32>
    %c92_450 = arith.constant 92 : index
    %1921 = memref.load %arg4[%c92_450] : memref<216xf32, #tpu.memory_space<smem>>
    %1922 = vector.broadcast %1921 : f32 to vector<16x128xf32>
    %1923 = arith.mulf %1922, %1786 : vector<16x128xf32>
    %1924 = arith.addf %1920, %1923 : vector<16x128xf32>
    %c116_451 = arith.constant 116 : index
    %1925 = memref.load %arg4[%c116_451] : memref<216xf32, #tpu.memory_space<smem>>
    %1926 = vector.broadcast %1925 : f32 to vector<16x128xf32>
    %1927 = arith.mulf %1926, %1785 : vector<16x128xf32>
    %1928 = arith.addf %1924, %1927 : vector<16x128xf32>
    %c140_452 = arith.constant 140 : index
    %1929 = memref.load %arg4[%c140_452] : memref<216xf32, #tpu.memory_space<smem>>
    %1930 = vector.broadcast %1929 : f32 to vector<16x128xf32>
    %1931 = arith.mulf %1930, %1787 : vector<16x128xf32>
    %1932 = arith.addf %1928, %1931 : vector<16x128xf32>
    %c164 = arith.constant 164 : index
    %1933 = memref.load %arg4[%c164] : memref<216xf32, #tpu.memory_space<smem>>
    %1934 = vector.broadcast %1933 : f32 to vector<16x128xf32>
    %1935 = arith.mulf %1934, %1790 : vector<16x128xf32>
    %1936 = arith.addf %1932, %1935 : vector<16x128xf32>
    %c188 = arith.constant 188 : index
    %1937 = memref.load %arg4[%c188] : memref<216xf32, #tpu.memory_space<smem>>
    %1938 = vector.broadcast %1937 : f32 to vector<16x128xf32>
    %1939 = arith.mulf %1938, %1789 : vector<16x128xf32>
    %1940 = arith.addf %1936, %1939 : vector<16x128xf32>
    %c212 = arith.constant 212 : index
    %1941 = memref.load %arg4[%c212] : memref<216xf32, #tpu.memory_space<smem>>
    %1942 = vector.broadcast %1941 : f32 to vector<16x128xf32>
    %1943 = arith.mulf %1942, %1791 : vector<16x128xf32>
    %1944 = arith.addf %1940, %1943 : vector<16x128xf32>
    %c20_453 = arith.constant 20 : index
    %1945 = memref.load %arg5[%c20_453] : memref<24xf32, #tpu.memory_space<smem>>
    %1946 = vector.broadcast %1945 : f32 to vector<16x128xf32>
    %1947 = arith.addf %1944, %1946 : vector<16x128xf32>
    %cst_454 = arith.constant 0.000000e+00 : f32
    %1948 = vector.broadcast %cst_454 : f32 to vector<16x128xf32>
    %1949 = arith.maximumf %1947, %1948 : vector<16x128xf32>
    %c80_455 = arith.constant 80 : index
    %1950 = memref.load %arg6[%c80_455] : memref<96xf32, #tpu.memory_space<smem>>
    %1951 = vector.broadcast %1950 : f32 to vector<16x128xf32>
    %1952 = arith.mulf %1951, %1949 : vector<16x128xf32>
    %1953 = arith.addf %1895, %1952 : vector<16x128xf32>
    %c81_456 = arith.constant 81 : index
    %1954 = memref.load %arg6[%c81_456] : memref<96xf32, #tpu.memory_space<smem>>
    %1955 = vector.broadcast %1954 : f32 to vector<16x128xf32>
    %1956 = arith.mulf %1955, %1949 : vector<16x128xf32>
    %1957 = arith.addf %1899, %1956 : vector<16x128xf32>
    %c82_457 = arith.constant 82 : index
    %1958 = memref.load %arg6[%c82_457] : memref<96xf32, #tpu.memory_space<smem>>
    %1959 = vector.broadcast %1958 : f32 to vector<16x128xf32>
    %1960 = arith.mulf %1959, %1949 : vector<16x128xf32>
    %1961 = arith.addf %1903, %1960 : vector<16x128xf32>
    %c83_458 = arith.constant 83 : index
    %1962 = memref.load %arg6[%c83_458] : memref<96xf32, #tpu.memory_space<smem>>
    %1963 = vector.broadcast %1962 : f32 to vector<16x128xf32>
    %1964 = arith.mulf %1963, %1949 : vector<16x128xf32>
    %1965 = arith.addf %1907, %1964 : vector<16x128xf32>
    %cst_459 = arith.constant 0.000000e+00 : f32
    %1966 = vector.broadcast %cst_459 : f32 to vector<16x128xf32>
    %c21_460 = arith.constant 21 : index
    %1967 = memref.load %arg4[%c21_460] : memref<216xf32, #tpu.memory_space<smem>>
    %1968 = vector.broadcast %1967 : f32 to vector<16x128xf32>
    %1969 = arith.mulf %1968, %1782 : vector<16x128xf32>
    %1970 = arith.addf %1966, %1969 : vector<16x128xf32>
    %c45_461 = arith.constant 45 : index
    %1971 = memref.load %arg4[%c45_461] : memref<216xf32, #tpu.memory_space<smem>>
    %1972 = vector.broadcast %1971 : f32 to vector<16x128xf32>
    %1973 = arith.mulf %1972, %1781 : vector<16x128xf32>
    %1974 = arith.addf %1970, %1973 : vector<16x128xf32>
    %c69_462 = arith.constant 69 : index
    %1975 = memref.load %arg4[%c69_462] : memref<216xf32, #tpu.memory_space<smem>>
    %1976 = vector.broadcast %1975 : f32 to vector<16x128xf32>
    %1977 = arith.mulf %1976, %1783 : vector<16x128xf32>
    %1978 = arith.addf %1974, %1977 : vector<16x128xf32>
    %c93_463 = arith.constant 93 : index
    %1979 = memref.load %arg4[%c93_463] : memref<216xf32, #tpu.memory_space<smem>>
    %1980 = vector.broadcast %1979 : f32 to vector<16x128xf32>
    %1981 = arith.mulf %1980, %1786 : vector<16x128xf32>
    %1982 = arith.addf %1978, %1981 : vector<16x128xf32>
    %c117_464 = arith.constant 117 : index
    %1983 = memref.load %arg4[%c117_464] : memref<216xf32, #tpu.memory_space<smem>>
    %1984 = vector.broadcast %1983 : f32 to vector<16x128xf32>
    %1985 = arith.mulf %1984, %1785 : vector<16x128xf32>
    %1986 = arith.addf %1982, %1985 : vector<16x128xf32>
    %c141_465 = arith.constant 141 : index
    %1987 = memref.load %arg4[%c141_465] : memref<216xf32, #tpu.memory_space<smem>>
    %1988 = vector.broadcast %1987 : f32 to vector<16x128xf32>
    %1989 = arith.mulf %1988, %1787 : vector<16x128xf32>
    %1990 = arith.addf %1986, %1989 : vector<16x128xf32>
    %c165 = arith.constant 165 : index
    %1991 = memref.load %arg4[%c165] : memref<216xf32, #tpu.memory_space<smem>>
    %1992 = vector.broadcast %1991 : f32 to vector<16x128xf32>
    %1993 = arith.mulf %1992, %1790 : vector<16x128xf32>
    %1994 = arith.addf %1990, %1993 : vector<16x128xf32>
    %c189 = arith.constant 189 : index
    %1995 = memref.load %arg4[%c189] : memref<216xf32, #tpu.memory_space<smem>>
    %1996 = vector.broadcast %1995 : f32 to vector<16x128xf32>
    %1997 = arith.mulf %1996, %1789 : vector<16x128xf32>
    %1998 = arith.addf %1994, %1997 : vector<16x128xf32>
    %c213 = arith.constant 213 : index
    %1999 = memref.load %arg4[%c213] : memref<216xf32, #tpu.memory_space<smem>>
    %2000 = vector.broadcast %1999 : f32 to vector<16x128xf32>
    %2001 = arith.mulf %2000, %1791 : vector<16x128xf32>
    %2002 = arith.addf %1998, %2001 : vector<16x128xf32>
    %c21_466 = arith.constant 21 : index
    %2003 = memref.load %arg5[%c21_466] : memref<24xf32, #tpu.memory_space<smem>>
    %2004 = vector.broadcast %2003 : f32 to vector<16x128xf32>
    %2005 = arith.addf %2002, %2004 : vector<16x128xf32>
    %cst_467 = arith.constant 0.000000e+00 : f32
    %2006 = vector.broadcast %cst_467 : f32 to vector<16x128xf32>
    %2007 = arith.maximumf %2005, %2006 : vector<16x128xf32>
    %c84_468 = arith.constant 84 : index
    %2008 = memref.load %arg6[%c84_468] : memref<96xf32, #tpu.memory_space<smem>>
    %2009 = vector.broadcast %2008 : f32 to vector<16x128xf32>
    %2010 = arith.mulf %2009, %2007 : vector<16x128xf32>
    %2011 = arith.addf %1953, %2010 : vector<16x128xf32>
    %c85_469 = arith.constant 85 : index
    %2012 = memref.load %arg6[%c85_469] : memref<96xf32, #tpu.memory_space<smem>>
    %2013 = vector.broadcast %2012 : f32 to vector<16x128xf32>
    %2014 = arith.mulf %2013, %2007 : vector<16x128xf32>
    %2015 = arith.addf %1957, %2014 : vector<16x128xf32>
    %c86_470 = arith.constant 86 : index
    %2016 = memref.load %arg6[%c86_470] : memref<96xf32, #tpu.memory_space<smem>>
    %2017 = vector.broadcast %2016 : f32 to vector<16x128xf32>
    %2018 = arith.mulf %2017, %2007 : vector<16x128xf32>
    %2019 = arith.addf %1961, %2018 : vector<16x128xf32>
    %c87_471 = arith.constant 87 : index
    %2020 = memref.load %arg6[%c87_471] : memref<96xf32, #tpu.memory_space<smem>>
    %2021 = vector.broadcast %2020 : f32 to vector<16x128xf32>
    %2022 = arith.mulf %2021, %2007 : vector<16x128xf32>
    %2023 = arith.addf %1965, %2022 : vector<16x128xf32>
    %cst_472 = arith.constant 0.000000e+00 : f32
    %2024 = vector.broadcast %cst_472 : f32 to vector<16x128xf32>
    %c22_473 = arith.constant 22 : index
    %2025 = memref.load %arg4[%c22_473] : memref<216xf32, #tpu.memory_space<smem>>
    %2026 = vector.broadcast %2025 : f32 to vector<16x128xf32>
    %2027 = arith.mulf %2026, %1782 : vector<16x128xf32>
    %2028 = arith.addf %2024, %2027 : vector<16x128xf32>
    %c46_474 = arith.constant 46 : index
    %2029 = memref.load %arg4[%c46_474] : memref<216xf32, #tpu.memory_space<smem>>
    %2030 = vector.broadcast %2029 : f32 to vector<16x128xf32>
    %2031 = arith.mulf %2030, %1781 : vector<16x128xf32>
    %2032 = arith.addf %2028, %2031 : vector<16x128xf32>
    %c70_475 = arith.constant 70 : index
    %2033 = memref.load %arg4[%c70_475] : memref<216xf32, #tpu.memory_space<smem>>
    %2034 = vector.broadcast %2033 : f32 to vector<16x128xf32>
    %2035 = arith.mulf %2034, %1783 : vector<16x128xf32>
    %2036 = arith.addf %2032, %2035 : vector<16x128xf32>
    %c94_476 = arith.constant 94 : index
    %2037 = memref.load %arg4[%c94_476] : memref<216xf32, #tpu.memory_space<smem>>
    %2038 = vector.broadcast %2037 : f32 to vector<16x128xf32>
    %2039 = arith.mulf %2038, %1786 : vector<16x128xf32>
    %2040 = arith.addf %2036, %2039 : vector<16x128xf32>
    %c118_477 = arith.constant 118 : index
    %2041 = memref.load %arg4[%c118_477] : memref<216xf32, #tpu.memory_space<smem>>
    %2042 = vector.broadcast %2041 : f32 to vector<16x128xf32>
    %2043 = arith.mulf %2042, %1785 : vector<16x128xf32>
    %2044 = arith.addf %2040, %2043 : vector<16x128xf32>
    %c142_478 = arith.constant 142 : index
    %2045 = memref.load %arg4[%c142_478] : memref<216xf32, #tpu.memory_space<smem>>
    %2046 = vector.broadcast %2045 : f32 to vector<16x128xf32>
    %2047 = arith.mulf %2046, %1787 : vector<16x128xf32>
    %2048 = arith.addf %2044, %2047 : vector<16x128xf32>
    %c166 = arith.constant 166 : index
    %2049 = memref.load %arg4[%c166] : memref<216xf32, #tpu.memory_space<smem>>
    %2050 = vector.broadcast %2049 : f32 to vector<16x128xf32>
    %2051 = arith.mulf %2050, %1790 : vector<16x128xf32>
    %2052 = arith.addf %2048, %2051 : vector<16x128xf32>
    %c190 = arith.constant 190 : index
    %2053 = memref.load %arg4[%c190] : memref<216xf32, #tpu.memory_space<smem>>
    %2054 = vector.broadcast %2053 : f32 to vector<16x128xf32>
    %2055 = arith.mulf %2054, %1789 : vector<16x128xf32>
    %2056 = arith.addf %2052, %2055 : vector<16x128xf32>
    %c214 = arith.constant 214 : index
    %2057 = memref.load %arg4[%c214] : memref<216xf32, #tpu.memory_space<smem>>
    %2058 = vector.broadcast %2057 : f32 to vector<16x128xf32>
    %2059 = arith.mulf %2058, %1791 : vector<16x128xf32>
    %2060 = arith.addf %2056, %2059 : vector<16x128xf32>
    %c22_479 = arith.constant 22 : index
    %2061 = memref.load %arg5[%c22_479] : memref<24xf32, #tpu.memory_space<smem>>
    %2062 = vector.broadcast %2061 : f32 to vector<16x128xf32>
    %2063 = arith.addf %2060, %2062 : vector<16x128xf32>
    %cst_480 = arith.constant 0.000000e+00 : f32
    %2064 = vector.broadcast %cst_480 : f32 to vector<16x128xf32>
    %2065 = arith.maximumf %2063, %2064 : vector<16x128xf32>
    %c88_481 = arith.constant 88 : index
    %2066 = memref.load %arg6[%c88_481] : memref<96xf32, #tpu.memory_space<smem>>
    %2067 = vector.broadcast %2066 : f32 to vector<16x128xf32>
    %2068 = arith.mulf %2067, %2065 : vector<16x128xf32>
    %2069 = arith.addf %2011, %2068 : vector<16x128xf32>
    %c89_482 = arith.constant 89 : index
    %2070 = memref.load %arg6[%c89_482] : memref<96xf32, #tpu.memory_space<smem>>
    %2071 = vector.broadcast %2070 : f32 to vector<16x128xf32>
    %2072 = arith.mulf %2071, %2065 : vector<16x128xf32>
    %2073 = arith.addf %2015, %2072 : vector<16x128xf32>
    %c90_483 = arith.constant 90 : index
    %2074 = memref.load %arg6[%c90_483] : memref<96xf32, #tpu.memory_space<smem>>
    %2075 = vector.broadcast %2074 : f32 to vector<16x128xf32>
    %2076 = arith.mulf %2075, %2065 : vector<16x128xf32>
    %2077 = arith.addf %2019, %2076 : vector<16x128xf32>
    %c91_484 = arith.constant 91 : index
    %2078 = memref.load %arg6[%c91_484] : memref<96xf32, #tpu.memory_space<smem>>
    %2079 = vector.broadcast %2078 : f32 to vector<16x128xf32>
    %2080 = arith.mulf %2079, %2065 : vector<16x128xf32>
    %2081 = arith.addf %2023, %2080 : vector<16x128xf32>
    %cst_485 = arith.constant 0.000000e+00 : f32
    %2082 = vector.broadcast %cst_485 : f32 to vector<16x128xf32>
    %c23_486 = arith.constant 23 : index
    %2083 = memref.load %arg4[%c23_486] : memref<216xf32, #tpu.memory_space<smem>>
    %2084 = vector.broadcast %2083 : f32 to vector<16x128xf32>
    %2085 = arith.mulf %2084, %1782 : vector<16x128xf32>
    %2086 = arith.addf %2082, %2085 : vector<16x128xf32>
    %c47_487 = arith.constant 47 : index
    %2087 = memref.load %arg4[%c47_487] : memref<216xf32, #tpu.memory_space<smem>>
    %2088 = vector.broadcast %2087 : f32 to vector<16x128xf32>
    %2089 = arith.mulf %2088, %1781 : vector<16x128xf32>
    %2090 = arith.addf %2086, %2089 : vector<16x128xf32>
    %c71_488 = arith.constant 71 : index
    %2091 = memref.load %arg4[%c71_488] : memref<216xf32, #tpu.memory_space<smem>>
    %2092 = vector.broadcast %2091 : f32 to vector<16x128xf32>
    %2093 = arith.mulf %2092, %1783 : vector<16x128xf32>
    %2094 = arith.addf %2090, %2093 : vector<16x128xf32>
    %c95_489 = arith.constant 95 : index
    %2095 = memref.load %arg4[%c95_489] : memref<216xf32, #tpu.memory_space<smem>>
    %2096 = vector.broadcast %2095 : f32 to vector<16x128xf32>
    %2097 = arith.mulf %2096, %1786 : vector<16x128xf32>
    %2098 = arith.addf %2094, %2097 : vector<16x128xf32>
    %c119_490 = arith.constant 119 : index
    %2099 = memref.load %arg4[%c119_490] : memref<216xf32, #tpu.memory_space<smem>>
    %2100 = vector.broadcast %2099 : f32 to vector<16x128xf32>
    %2101 = arith.mulf %2100, %1785 : vector<16x128xf32>
    %2102 = arith.addf %2098, %2101 : vector<16x128xf32>
    %c143_491 = arith.constant 143 : index
    %2103 = memref.load %arg4[%c143_491] : memref<216xf32, #tpu.memory_space<smem>>
    %2104 = vector.broadcast %2103 : f32 to vector<16x128xf32>
    %2105 = arith.mulf %2104, %1787 : vector<16x128xf32>
    %2106 = arith.addf %2102, %2105 : vector<16x128xf32>
    %c167 = arith.constant 167 : index
    %2107 = memref.load %arg4[%c167] : memref<216xf32, #tpu.memory_space<smem>>
    %2108 = vector.broadcast %2107 : f32 to vector<16x128xf32>
    %2109 = arith.mulf %2108, %1790 : vector<16x128xf32>
    %2110 = arith.addf %2106, %2109 : vector<16x128xf32>
    %c191 = arith.constant 191 : index
    %2111 = memref.load %arg4[%c191] : memref<216xf32, #tpu.memory_space<smem>>
    %2112 = vector.broadcast %2111 : f32 to vector<16x128xf32>
    %2113 = arith.mulf %2112, %1789 : vector<16x128xf32>
    %2114 = arith.addf %2110, %2113 : vector<16x128xf32>
    %c215 = arith.constant 215 : index
    %2115 = memref.load %arg4[%c215] : memref<216xf32, #tpu.memory_space<smem>>
    %2116 = vector.broadcast %2115 : f32 to vector<16x128xf32>
    %2117 = arith.mulf %2116, %1791 : vector<16x128xf32>
    %2118 = arith.addf %2114, %2117 : vector<16x128xf32>
    %c23_492 = arith.constant 23 : index
    %2119 = memref.load %arg5[%c23_492] : memref<24xf32, #tpu.memory_space<smem>>
    %2120 = vector.broadcast %2119 : f32 to vector<16x128xf32>
    %2121 = arith.addf %2118, %2120 : vector<16x128xf32>
    %cst_493 = arith.constant 0.000000e+00 : f32
    %2122 = vector.broadcast %cst_493 : f32 to vector<16x128xf32>
    %2123 = arith.maximumf %2121, %2122 : vector<16x128xf32>
    %c92_494 = arith.constant 92 : index
    %2124 = memref.load %arg6[%c92_494] : memref<96xf32, #tpu.memory_space<smem>>
    %2125 = vector.broadcast %2124 : f32 to vector<16x128xf32>
    %2126 = arith.mulf %2125, %2123 : vector<16x128xf32>
    %2127 = arith.addf %2069, %2126 : vector<16x128xf32>
    %c93_495 = arith.constant 93 : index
    %2128 = memref.load %arg6[%c93_495] : memref<96xf32, #tpu.memory_space<smem>>
    %2129 = vector.broadcast %2128 : f32 to vector<16x128xf32>
    %2130 = arith.mulf %2129, %2123 : vector<16x128xf32>
    %2131 = arith.addf %2073, %2130 : vector<16x128xf32>
    %c94_496 = arith.constant 94 : index
    %2132 = memref.load %arg6[%c94_496] : memref<96xf32, #tpu.memory_space<smem>>
    %2133 = vector.broadcast %2132 : f32 to vector<16x128xf32>
    %2134 = arith.mulf %2133, %2123 : vector<16x128xf32>
    %2135 = arith.addf %2077, %2134 : vector<16x128xf32>
    %c95_497 = arith.constant 95 : index
    %2136 = memref.load %arg6[%c95_497] : memref<96xf32, #tpu.memory_space<smem>>
    %2137 = vector.broadcast %2136 : f32 to vector<16x128xf32>
    %2138 = arith.mulf %2137, %2123 : vector<16x128xf32>
    %2139 = arith.addf %2081, %2138 : vector<16x128xf32>
    %c0_498 = arith.constant 0 : index
    %2140 = memref.load %arg7[%c0_498] : memref<4xf32, #tpu.memory_space<smem>>
    %2141 = vector.broadcast %2140 : f32 to vector<16x128xf32>
    %2142 = arith.addf %2127, %2141 : vector<16x128xf32>
    %c0_499 = arith.constant 0 : index
    %c0_500 = arith.constant 0 : index
    %c1_501 = arith.constant 1 : index
    %c0_502 = arith.constant 0 : index
    %2143 = vector.load %arg1[%c0_499, %c0_500, %c1_501, %c0_502] : memref<1x4x18x128xf32, #tpu.memory_space<vmem>>, vector<1x1x16x128xf32>
    %2144 = vector.shape_cast %2143 : vector<1x1x16x128xf32> to vector<16x128xf32>
    %2145 = arith.addf %2142, %2144 : vector<16x128xf32>
    %cst_503 = arith.constant 0.000000e+00 : f32
    %2146 = vector.broadcast %cst_503 : f32 to vector<16x128xf32>
    %2147 = arith.maximumf %2145, %2146 : vector<16x128xf32>
    %2148 = vector.extract_strided_slice %2147 {offsets = [0, 0], sizes = [16, 16], strides = [1, 1]} : vector<16x128xf32> to vector<16x16xf32>
    %c0_504 = arith.constant 0 : index
    %c0_505 = arith.constant 0 : index
    %c0_506 = arith.constant 0 : index
    %c0_507 = arith.constant 0 : index
    %2149 = vector.load %arg8[%c0_504, %c0_505, %c0_506, %c0_507] : memref<1x4x16x16xf32, #tpu.memory_space<vmem>>, vector<1x1x16x16xf32>
    %2150 = vector.shape_cast %2149 : vector<1x1x16x16xf32> to vector<16x16xf32>
    %2151 = vector.shape_cast %2148 : vector<16x16xf32> to vector<1x1x16x16xf32>
    tpu.vector_store %arg8[%c0_504, %c0_505, %c0_506, %c0_507], %2151 {strides = array<i32>} : memref<1x4x16x16xf32, #tpu.memory_space<vmem>>, vector<1x1x16x16xf32>,
    %c1_508 = arith.constant 1 : index
    %2152 = memref.load %arg7[%c1_508] : memref<4xf32, #tpu.memory_space<smem>>
    %2153 = vector.broadcast %2152 : f32 to vector<16x128xf32>
    %2154 = arith.addf %2131, %2153 : vector<16x128xf32>
    %c0_509 = arith.constant 0 : index
    %c1_510 = arith.constant 1 : index
    %c1_511 = arith.constant 1 : index
    %c0_512 = arith.constant 0 : index
    %2155 = vector.load %arg1[%c0_509, %c1_510, %c1_511, %c0_512] : memref<1x4x18x128xf32, #tpu.memory_space<vmem>>, vector<1x1x16x128xf32>
    %2156 = vector.shape_cast %2155 : vector<1x1x16x128xf32> to vector<16x128xf32>
    %2157 = arith.addf %2154, %2156 : vector<16x128xf32>
    %cst_513 = arith.constant 0.000000e+00 : f32
    %2158 = vector.broadcast %cst_513 : f32 to vector<16x128xf32>
    %2159 = arith.maximumf %2157, %2158 : vector<16x128xf32>
    %2160 = vector.extract_strided_slice %2159 {offsets = [0, 0], sizes = [16, 16], strides = [1, 1]} : vector<16x128xf32> to vector<16x16xf32>
    %c0_514 = arith.constant 0 : index
    %c1_515 = arith.constant 1 : index
    %c0_516 = arith.constant 0 : index
    %c0_517 = arith.constant 0 : index
    %2161 = vector.load %arg8[%c0_514, %c1_515, %c0_516, %c0_517] : memref<1x4x16x16xf32, #tpu.memory_space<vmem>>, vector<1x1x16x16xf32>
    %2162 = vector.shape_cast %2161 : vector<1x1x16x16xf32> to vector<16x16xf32>
    %2163 = vector.shape_cast %2160 : vector<16x16xf32> to vector<1x1x16x16xf32>
    tpu.vector_store %arg8[%c0_514, %c1_515, %c0_516, %c0_517], %2163 {strides = array<i32>} : memref<1x4x16x16xf32, #tpu.memory_space<vmem>>, vector<1x1x16x16xf32>,
    %c2_518 = arith.constant 2 : index
    %2164 = memref.load %arg7[%c2_518] : memref<4xf32, #tpu.memory_space<smem>>
    %2165 = vector.broadcast %2164 : f32 to vector<16x128xf32>
    %2166 = arith.addf %2135, %2165 : vector<16x128xf32>
    %c0_519 = arith.constant 0 : index
    %c2_520 = arith.constant 2 : index
    %c1_521 = arith.constant 1 : index
    %c0_522 = arith.constant 0 : index
    %2167 = vector.load %arg1[%c0_519, %c2_520, %c1_521, %c0_522] : memref<1x4x18x128xf32, #tpu.memory_space<vmem>>, vector<1x1x16x128xf32>
    %2168 = vector.shape_cast %2167 : vector<1x1x16x128xf32> to vector<16x128xf32>
    %2169 = arith.addf %2166, %2168 : vector<16x128xf32>
    %cst_523 = arith.constant 0.000000e+00 : f32
    %2170 = vector.broadcast %cst_523 : f32 to vector<16x128xf32>
    %2171 = arith.maximumf %2169, %2170 : vector<16x128xf32>
    %2172 = vector.extract_strided_slice %2171 {offsets = [0, 0], sizes = [16, 16], strides = [1, 1]} : vector<16x128xf32> to vector<16x16xf32>
    %c0_524 = arith.constant 0 : index
    %c2_525 = arith.constant 2 : index
    %c0_526 = arith.constant 0 : index
    %c0_527 = arith.constant 0 : index
    %2173 = vector.load %arg8[%c0_524, %c2_525, %c0_526, %c0_527] : memref<1x4x16x16xf32, #tpu.memory_space<vmem>>, vector<1x1x16x16xf32>
    %2174 = vector.shape_cast %2173 : vector<1x1x16x16xf32> to vector<16x16xf32>
    %2175 = vector.shape_cast %2172 : vector<16x16xf32> to vector<1x1x16x16xf32>
    tpu.vector_store %arg8[%c0_524, %c2_525, %c0_526, %c0_527], %2175 {strides = array<i32>} : memref<1x4x16x16xf32, #tpu.memory_space<vmem>>, vector<1x1x16x16xf32>,
    %c3_528 = arith.constant 3 : index
    %2176 = memref.load %arg7[%c3_528] : memref<4xf32, #tpu.memory_space<smem>>
    %2177 = vector.broadcast %2176 : f32 to vector<16x128xf32>
    %2178 = arith.addf %2139, %2177 : vector<16x128xf32>
    %c0_529 = arith.constant 0 : index
    %c3_530 = arith.constant 3 : index
    %c1_531 = arith.constant 1 : index
    %c0_532 = arith.constant 0 : index
    %2179 = vector.load %arg1[%c0_529, %c3_530, %c1_531, %c0_532] : memref<1x4x18x128xf32, #tpu.memory_space<vmem>>, vector<1x1x16x128xf32>
    %2180 = vector.shape_cast %2179 : vector<1x1x16x128xf32> to vector<16x128xf32>
    %2181 = arith.addf %2178, %2180 : vector<16x128xf32>
    %cst_533 = arith.constant 0.000000e+00 : f32
    %2182 = vector.broadcast %cst_533 : f32 to vector<16x128xf32>
    %2183 = arith.maximumf %2181, %2182 : vector<16x128xf32>
    %2184 = vector.extract_strided_slice %2183 {offsets = [0, 0], sizes = [16, 16], strides = [1, 1]} : vector<16x128xf32> to vector<16x16xf32>
    %c0_534 = arith.constant 0 : index
    %c3_535 = arith.constant 3 : index
    %c0_536 = arith.constant 0 : index
    %c0_537 = arith.constant 0 : index
    %2185 = vector.load %arg8[%c0_534, %c3_535, %c0_536, %c0_537] : memref<1x4x16x16xf32, #tpu.memory_space<vmem>>, vector<1x1x16x16xf32>
    %2186 = vector.shape_cast %2185 : vector<1x1x16x16xf32> to vector<16x16xf32>
    %2187 = vector.shape_cast %2184 : vector<16x16xf32> to vector<1x1x16x16xf32>
    tpu.vector_store %arg8[%c0_534, %c3_535, %c0_536, %c0_537], %2187 {strides = array<i32>} : memref<1x4x16x16xf32, #tpu.memory_space<vmem>>, vector<1x1x16x16xf32>,
    return
  }
  func.func @transform_0(%arg0: i32) -> (i32, i32, i32, i32) {
    %c0_i32 = arith.constant 0 : i32
    %c0_i32_0 = arith.constant 0 : i32
    %c0_i32_1 = arith.constant 0 : i32
    %c0_i32_2 = arith.constant 0 : i32
    return %arg0, %c0_i32, %c0_i32_0, %c0_i32_1 : i32, i32, i32, i32
  }
  func.func @transform_1(%arg0: i32) -> i32 {
    %c0_i32 = arith.constant 0 : i32
    %c0_i32_0 = arith.constant 0 : i32
    return %c0_i32 : i32
  }
  func.func @transform_2(%arg0: i32) -> i32 {
    %c0_i32 = arith.constant 0 : i32
    %c0_i32_0 = arith.constant 0 : i32
    return %c0_i32 : i32
  }
  func.func @transform_3(%arg0: i32) -> i32 {
    %c0_i32 = arith.constant 0 : i32
    %c0_i32_0 = arith.constant 0 : i32
    return %c0_i32 : i32
  }
  func.func @transform_4(%arg0: i32) -> i32 {
    %c0_i32 = arith.constant 0 : i32
    %c0_i32_0 = arith.constant 0 : i32
    return %c0_i32 : i32
  }
  func.func @transform_5(%arg0: i32) -> i32 {
    %c0_i32 = arith.constant 0 : i32
    %c0_i32_0 = arith.constant 0 : i32
    return %c0_i32 : i32
  }
  func.func @transform_6(%arg0: i32) -> i32 {
    %c0_i32 = arith.constant 0 : i32
    %c0_i32_0 = arith.constant 0 : i32
    return %c0_i32 : i32
  }
  func.func @transform_7(%arg0: i32) -> (i32, i32, i32, i32) {
    %c0_i32 = arith.constant 0 : i32
    %c0_i32_0 = arith.constant 0 : i32
    %c0_i32_1 = arith.constant 0 : i32
    %c0_i32_2 = arith.constant 0 : i32
    return %arg0, %c0_i32, %c0_i32_0, %c0_i32_1 : i32, i32, i32, i32
  }
}

</mosaic_0001>

<bundles_post_ra>
// kernel: ge_layer_s1.1
= control target key start
LH: loop header
LB: loop body
LE: loop exit
PB: predicated region body
PF: predicated region fallthrough
CT: control target
= control target key end

     0   :  { %s9286_s0 = inlined_call_operand.vmem [shape: f32[2,4,18,128], index: 0, kind: input, shape index: {}]   ;;  %s9287_s1 = inlined_call_operand.vmem [shape: f32[144], index: 1, kind: input, shape index: {}]   ;;  %s9288_s2 = inlined_call_operand.vmem [shape: f32[4], index: 2, kind: input, shape index: {}]   ;;  %s9289_s3 = inlined_call_operand.vmem [shape: f32[216], index: 3, kind: input, shape index: {}]   ;;  %s9290_s4 = inlined_call_operand.vmem [shape: f32[24], index: 4, kind: input, shape index: {}]   ;;  %s9291_s5 = inlined_call_operand.vmem [shape: f32[96], index: 5, kind: input, shape index: {}]   ;;  %s9292_s6 = inlined_call_operand.vmem [shape: f32[4], index: 6, kind: input, shape index: {}]   ;;  %s9293_s7 = inlined_call_operand.hbm [shape: f32[2,4,16,16], index: 7, kind: output, shape index: {}]  }
   0x1   :  { %9790 = sst [smem:[#allocation272_spill]] %s9286_s0 }
   0x2   :  { %9791 = sst [smem:[#allocation273_spill]] %s9287_s1 }
   0x3   :  { %9792 = sst [smem:[#allocation274_spill]] %s9288_s2 }
   0x4   :  { %9793 = sst [smem:[#allocation275_spill]] %s9289_s3 }
   0x5   :  { %9794 = sst [smem:[#allocation276_spill]] %s9290_s4 }
   0x6   :  { %9795 = sst [smem:[#allocation277_spill]] %s9291_s5 }
   0x7   :  { %9796 = sst [smem:[#allocation278_spill]] %s9292_s6 }
   0x8   :  { %9797 = sst [smem:[#allocation279_spill]] %s9293_s7 }
   0x9   :  { %12 = vsyncpa [#allocation5], 0 }
   0xa   :  { %13 = vsyncpa [#allocation7], 0 }
   0xb   :  { %14 = vsyncpa [#allocation10], 0 }
   0xc   :  { %15 = vsyncpa [#allocation13], 0 }
   0xd   :  { %16 = vsyncpa [#allocation4], 0 }
   0xe   :  { %18 = vsyncpa [#allocation4 + $0x1], 0  ;;  %s4585_s24 = smov 0   ;;  %s4587_s25 = smov 0  }
   0xf   :  { %s4589_s26 = smov 0   ;;  %s4591_s27 = smov 0  }
  0x10 LB: > { %9798 = sst [smem:[#allocation20_spill]] %s4519_s24  ;;  %s4606_s28 = sadd.s32 4294967295, %s4531_s27   ;;  %s4531_s27 = sphi %s4591_s27, %s11398_s27   ;;  %s4527_s26 = sphi %s4589_s26, %s11401_s26   ;;  %s4523_s25 = sphi %s4587_s25, %s11400_s25   ;;  %s4519_s24 = sphi %s4585_s24, %s11399_s24  }
  0x11   : > { %9799 = sst [smem:[#allocation21_spill]] %s4523_s25  ;;  %s3719_s29 = sadd.s32 4294967294, %s4531_s27  }
  0x12   : > { %9800 = sst [smem:[#allocation22_spill]] %s4527_s26  ;;  %s4610_s30 = sadd.s32 1, %s4531_s27  }
  0x13   : > { %9801 = sst [smem:[#allocation23_spill]] %s4531_s27  ;;  %s183_s8 = sadd.s32 1, %s4527_s26 }
  0x14   : > { %9802 = sst [smem:[#allocation24_spill]] %s4606_s28  ;;  %s180_s9 = ssub.s32 %s4531_s27, %s4610_s30 }
  0x15   : > { %9803 = sst [smem:[#allocation25_spill]] %s4610_s30  ;;  %p193_p0 = scmp.ne.s32.totalorder %s4527_s26, %s4523_s25 }
  0x16   : > { %p181_p1 = scmp.eq.s32.totalorder %s180_s9, 0  ;;  %p194_p2 = scmp.eq.s32.totalorder %s4606_s28, 1 }
  0x17   : > { %p199_p3 = scmp.ne.s32.totalorder %s4523_s25, %s4519_s24  ;;  %p200_p4 = scmp.eq.s32.totalorder %s3719_s29, 1 }
  0x18   : > { %s4621_s10 = scalar_select %p181_p1, %s4527_s26, %s183_s8  }
  0x19   : > { %p4623_p5 = por %p194_p2, %p193_p0  ;;  %p4627_p6 = por %p200_p4, %p199_p3 }
  0x1a   : > { %9804 = sst [smem:[#allocation26_spill]] %s4621_s10  ;;  %p3720_p7 = scmp.ge.s32.totalorder %s4531_s27, 1 }
  0x1b   : > { %s9805_s11 = scalar_select %p4623_p5, 1, 0 }
  0x1c   : > { %s9807_s12 = scalar_select %p4627_p6, 1, 0 }
  0x1d   : > { %9806 = sst [smem:[#allocation27_spill]] %s9805_s11  ;;  %p207_p8 = scmp.lt.s32.totalorder %s4531_s27, 3 }
  0x1e   : > { %9808 = sst [smem:[#allocation28_spill]] %s9807_s12  ;;  %p9294_p9 = scmp.eq.s32.totalorder %s4606_s28, 0 }
  0x1f   : > { %p4634_p10 = pnand %p3720_p7, %p207_p8  ;;  %s9810_s2 = sld [smem:[#allocation274_spill]] }
  0x20   : > { %s9811_s4 = sld [smem:[#allocation276_spill]]  ;;  %s9813_s1 = sld [smem:[#allocation273_spill]] }
  0x21   : > { %s9809_s13 = scalar_select %p4634_p10, 1, 0 }
  0x22   : > { %p4282_p11 = pneg %p4634_p10  ;;  %s9814_s3 = sld [smem:[#allocation275_spill]] }
  0x24   : > { %p4648_p12 = pnand %p9294_p9, %p4282_p11 }
  0x25   : > { %s231_s16 = sshll.u32 %s9810_s2, 4  ;;  %s232_s16 = int_to_ptr.vmem [resolvable:$true] %s231_s16 }
  0x26   : > { %s253_s19 = sshll.u32 %s9811_s4, 4  ;;  %s220_s23 = sshll.u32 %s9813_s1, 4  ;;  %s254_s19 = int_to_ptr.vmem [resolvable:$true] %s253_s19  ;;  %s4655_s23 = int_to_ptr.vmem [resolvable:$true] %s220_s23 }
  0x27   : > { %s4363_s14 = scalar_lea.vmem %s232_s16, 16  ;;  %p4662_p0 = pneg %p4648_p12 }
  0x28   : > { %s242_s9 = sshll.u32 %s9814_s3, 4  ;;  %p4364_p13 = scmp.ne.s32.totalorder %s232_s16, %s4363_s14  ;;  %s243_s9 = int_to_ptr.vmem [resolvable:$true] %s242_s9 }
  0x29   : > { %p4371_p3 = scmp.lt.s32.totalorder %s232_s16, %s232_s16  ;;  %p4372_p4 = scmp.lt.s32.totalorder %s4363_s14, %s4363_s14 }
  0x2a   : > { %p4366_p1 = pnand %p4662_p0, %p4364_p13 }
  0x2b   : > { %p4373_p7 = por %p4372_p4, %p4371_p3 }
  0x2c   : > { %p4367_p2 = pneg %p4366_p1 }
  0x2e   : > { %p4374_p8 = pnand %p4373_p7, %p4367_p2 }
  0x30   : > { %4377 = shalt.err (!%p4374_p8)
}
  0x31   : > { %s4533_s17 = smov [#allocation6]   ;;  %s4378_s18 = scalar_lea.vmem %s254_s19, 16 }
  0x32   : > { %4288 = dma.vmem_to_smem (!%p4648_p12), %s232_s16, 16, %s4533_s17, [#allocation7]  }
  0x33   : > { %p4379_p11 = scmp.ne.s32.totalorder %s254_s19, %s4378_s18  ;;  %p4386_p5 = scmp.lt.s32.totalorder %s254_s19, %s254_s19 }
  0x34   : > { %p4387_p10 = scmp.lt.s32.totalorder %s4378_s18, %s4378_s18 }
  0x35   : > { %p4381_p9 = pnand %p4379_p11, %p4662_p0 }
  0x36   : > { %p4388_p13 = por %p4387_p10, %p4386_p5 }
  0x37   : > { %p4382_p6 = pneg %p4381_p9 }
  0x39   : > { %p4389_p1 = pnand %p4388_p13, %p4382_p6 }
  0x3b   : > { %4392 = shalt.err (!%p4389_p1)
}
  0x3c   : > { %s4534_s21 = smov [#allocation9]   ;;  %s4393_s22 = scalar_lea.vmem %s4655_s23, 32 }
  0x3d   : > { %4294 = dma.vmem_to_smem (!%p4648_p12), %s254_s19, 16, %s4534_s21, [#allocation10]  }
  0x3e   : > { %p4394_p2 = scmp.ne.s32.totalorder %s4655_s23, %s4393_s22  ;;  %p4401_p9 = scmp.lt.s32.totalorder %s4655_s23, %s4655_s23 }
  0x3f   : > { %p4402_p7 = scmp.lt.s32.totalorder %s4393_s22, %s4393_s22 }
  0x40   : > { %p4396_p3 = pnand %p4394_p2, %p4662_p0 }
  0x41   : > { %p4403_p8 = por %p4402_p7, %p4401_p9 }
  0x42   : > { %p4397_p4 = pneg %p4396_p3 }
  0x44   : > { %p4404_p5 = pnand %p4403_p8, %p4397_p4 }
  0x46   : > { %4407 = shalt.err (!%p4404_p5)
}
  0x47   : > { %s4535_s16 = smov [#allocation3]   ;;  %s4408_s19 = scalar_lea.vmem %s243_s9, 32 }
  0x48   : > { %4285 = dma.vmem_to_smem (!%p4648_p12), %s4655_s23, 32, %s4535_s16, [#allocation5]  }
  0x49   : > { %p4409_p6 = scmp.ne.s32.totalorder %s243_s9, %s4408_s19  ;;  %p4416_p13 = scmp.lt.s32.totalorder %s243_s9, %s243_s9 }
  0x4a   : > { %p4417_p1 = scmp.lt.s32.totalorder %s4408_s19, %s4408_s19 }
  0x4b   : > { %p4411_p10 = pnand %p4409_p6, %p4662_p0 }
  0x4c   : > { %p4418_p2 = por %p4417_p1, %p4416_p13 }
  0x4d   : > { %p4412_p11 = pneg %p4411_p10 }
  0x4f   : > { %p4419_p3 = pnand %p4418_p2, %p4412_p11 }
  0x51   : > { %4422 = shalt.err (!%p4419_p3)
}
  0x52   : > { %s4536_s14 = smov [#allocation8]   ;;  %s9816_s5 = sld [smem:[#allocation277_spill]] }
  0x53   : > { %4291 = dma.vmem_to_smem (!%p4648_p12), %s243_s9, 32, %s4536_s14, [#allocation7]  }
  0x54   : > { %s9817_s6 = sld [smem:[#allocation278_spill]] }
  0x58   : > { %s264_s18 = sshll.u32 %s9816_s5, 4  ;;  %s265_s18 = int_to_ptr.vmem [resolvable:$true] %s264_s18 }
  0x59   : > { %s4423_s29 = scalar_lea.vmem %s265_s18, 16  ;;  %p4431_p8 = scmp.lt.s32.totalorder %s265_s18, %s265_s18 }
  0x5a   : > { %s275_s16 = sshll.u32 %s9817_s6, 4  ;;  %p4424_p4 = scmp.ne.s32.totalorder %s265_s18, %s4423_s29  ;;  %s276_s16 = int_to_ptr.vmem [resolvable:$true] %s275_s16 }
  0x5b   : > { %p4432_p5 = scmp.lt.s32.totalorder %s4423_s29, %s4423_s29 }
  0x5c   : > { %p4426_p9 = pnand %p4424_p4, %p4662_p0 }
  0x5d   : > { %p4433_p6 = por %p4432_p5, %p4431_p8 }
  0x5e   : > { %p4427_p7 = pneg %p4426_p9 }
  0x60   : > { %p4434_p10 = pnand %p4433_p6, %p4427_p7 }
  0x62   : > { %4437 = shalt.err (!%p4434_p10)
}
  0x63   : > { %s4537_s9 = smov [#allocation11]   ;;  %s4438_s8 = scalar_lea.vmem %s276_s16, 16 }
  0x64   : > { %4297 = dma.vmem_to_smem (!%p4648_p12), %s265_s18, 16, %s4537_s9, [#allocation10]  }
  0x65   : > { %p4439_p11 = scmp.ne.s32.totalorder %s276_s16, %s4438_s8  ;;  %p4446_p2 = scmp.lt.s32.totalorder %s276_s16, %s276_s16 }
  0x66   : > { %p4447_p3 = scmp.lt.s32.totalorder %s4438_s8, %s4438_s8 }
  0x67   : > { %p4441_p13 = pnand %p4439_p11, %p4662_p0 }
  0x68   : > { %p4448_p4 = por %p4447_p3, %p4446_p2 }
  0x69   : > { %p4442_p1 = pneg %p4441_p13 }
  0x6b   : > { %p4449_p9 = pnand %p4448_p4, %p4442_p1 }
  0x6d   : > { %4452 = shalt.err (!%p4449_p9)
}
  0x6e   : > { %s4538_s19 = smov [#allocation12]   ;;  %p9818_p7 = scmp.ne.s32.totalorder %s9809_s13, 0 }
  0x6f   : > { %4300 = dma.vmem_to_smem (!%p4648_p12), %s276_s16, 16, %s4538_s19, [#allocation13]  }
  0x70   : > { %296 = sbr.rel (%p9818_p7) target bundleno = 1039 (0x40f), region = 48 }
  0x77   : > { %p9819_p8 = scmp.eq.s32.totalorder %s4606_s28, 0 }
  0x79   : > { %4498 = dma.done.wait (%p9819_p8), [#allocation5], 32   ;;  %p9820_p5 = pmov %p9819_p8 }
  0x7b   : > { %4500 = vsyncadd (%p9820_p5), [#allocation5], 4294967264  ;;  %p9821_p0 = pmov %p9820_p5 }
  0x7d   : > { %4502 = dma.done.wait (%p9821_p0), [#allocation7], 48   ;;  %p9822_p6 = pmov %p9821_p0 }
  0x7e   : > { %p9823_p10 = pmov %p9821_p0 }
  0x7f   : > { %4504 = vsyncadd (%p9822_p6), [#allocation7], 4294967248 }
  0x80   : > { %4506 = dma.done.wait (%p9823_p10), [#allocation10], 32   ;;  %p9824_p12 = pmov %p9821_p0 }
  0x81   : > { %p9825_p11 = pmov %p9821_p0 }
  0x82   : > { %4508 = vsyncadd (%p9824_p12), [#allocation10], 4294967264 }
  0x83   : > { %4510 = dma.done.wait (%p9825_p11), [#allocation13], 16   ;;  %p9826_p13 = pmov %p9821_p0 }
  0x85   : > { %4512 = vsyncadd (%p9826_p13), [#allocation13], 4294967280 }
  0x86   : > { %322 = sfence }
  0x87   : > { %p349_p1 = scmp.lt.s32.totalorder %s4606_s28, 1  ;;  %s9827_s0 = sld [smem:[#allocation272_spill]]  ;;  %vm3541_vm1 = vcmask 130048  }
  0x88   : > { %s9297_s17 = smov 127   ;;  %s9300_s18 = smov 1  }
  0x89   : > { %s350_s13 = scalar_select %p349_p1, %s4606_s28, 1 }
  0x8a   : > { %s4796_s21 = sld [smem:[#allocation3 + $0x20]]  ;;  %s4798_s22 = sld [smem:[#allocation3 + $0x21]] }
  0x8b   : > { %s4255_s20 = smul.u32 96, %s350_s13  ;;  %s4800_s16 = sld [smem:[#allocation3 + $0x22]] }
  0x8c   : > { %s4802_s29 = sld [smem:[#allocation3 + $0x23]]  ;;  %s4808_s9 = sld [smem:[#allocation3]] }
  0x8d   : > { %s4728_s23 = scalar_lea.vmem %s9827_s0, %s4255_s20  ;;  %s4810_s8 = sld [smem:[#allocation3 + $0x1]] }
  0x8e   : > { %9828 = sst [smem:[#allocation29_spill]] %s4728_s23  ;;  %v4731_v0 = vld [vmem:[%s4728_s23] sm:$0xff]  ;;  %v4738_v1 = vld [vmem:[%s4728_s23 + $0x8] sm:$0xff]  ;;  %v4776_v7 = vld [vmem:[%s4728_s23 + $0x18] sm:$0xff]  ;;  %s4818_s19 = sld [smem:[#allocation3 + $0x2]] }
  0x8f   : > { %363 = vrot.lane.b32.xlu1 %v4731_v0, %s9297_s17  ;;  %359 = vrot.lane.b32.xlu0 %v4731_v0, %s9300_s18  ;;  %v4745_v2 = vld [vmem:[%s4728_s23 + $0x9] sm:$0xff]  ;;  %v4748_v3 = vld [vmem:[%s4728_s23 + $0x1] sm:$0xff]  ;;  %s4820_s13 = sld [smem:[#allocation3 + $0x3]]  ;;  %s4822_s20 = sld [smem:[#allocation3 + $0x10]] }
  0x90   : > { %v4759_v4 = vld [vmem:[%s4728_s23 + $0xa] sm:$0xff]  ;;  %v4762_v5 = vld [vmem:[%s4728_s23 + $0x2] sm:$0xff]  ;;  %v4790_v9 = vld [vmem:[%s4728_s23 + $0x19] sm:$0xff]  ;;  %9829 = sst [smem:[#allocation30_spill]] %s4796_s21  ;;  %s4824_s15 = sld [smem:[#allocation3 + $0x11]] }
  0x91   : > { %v4773_v6 = vld [vmem:[%s4728_s23 + $0x20] sm:$0xff]  ;;  %9830 = sst [smem:[#allocation31_spill]] %s4798_s22  ;;  %s4826_s14 = sld [smem:[#allocation3 + $0x12]]  ;;  %v4859_v12 = vld [vmem:[%s4728_s23 + $0x38] sm:$0xff]  ;;  %v4862_v13 = vld [vmem:[%s4728_s23 + $0x30] sm:$0xff] }
  0x92   : > { %v4787_v8 = vld [vmem:[%s4728_s23 + $0x21] sm:$0xff]  ;;  %9831 = sst [smem:[#allocation32_spill]] %s4800_s16  ;;  %s4834_s0 = sld [smem:[#allocation3 + $0x30]]  ;;  %v4905_v14 = vld [vmem:[%s4728_s23 + $0x39] sm:$0xff]  ;;  %v4908_v15 = vld [vmem:[%s4728_s23 + $0x31] sm:$0xff] }
  0x93   : > { %365 = vrot.lane.b32.xlu1 %v4738_v1, %s9297_s17  ;;  %361 = vrot.lane.b32.xlu0 %v4738_v1, %s9300_s18  ;;  %9832 = sst [smem:[#allocation33_spill]] %s4802_s29  ;;  %v4813_v10 = vld [vmem:[%s4728_s23 + $0x22] sm:$0xff]  ;;  %v4816_v11 = vld [vmem:[%s4728_s23 + $0x1a] sm:$0xff]  ;;  %s4836_s1 = sld [smem:[#allocation3 + $0x31]] }
  0x94   : > { %9833 = sst [smem:[#allocation34_spill]] %s4808_s9  ;;  %s4838_s2 = sld [smem:[#allocation3 + $0x32]]  ;;  %v4994_v43 = vld [vmem:[%s4728_s23 + $0x3a] sm:$0xff]  ;;  %v4997_v44 = vld [vmem:[%s4728_s23 + $0x32] sm:$0xff] }
  0x95   : > { %9834 = sst [smem:[#allocation35_spill]] %s4810_s8  ;;  %s4840_s3 = sld [smem:[#allocation3 + $0x33]]  ;;  %v412_v18 = vstv %s4822_s20  ;;  %v5204_v42 = vld [vmem:[%s4728_s23 + $0x51] sm:$0xff] }
  0x96   : > { %9835 = sst [smem:[#allocation36_spill]] %s4818_s19  ;;  %s4844_s5 = sld [smem:[#allocation3 + $0x41]]  ;;  %v418_v19 = vstv %s4824_s15  ;;  %v4943_v28 = vmul.f32 %v412_v18, %v4731_v0  ;;  %v4966_v35 = vmul.f32 %v412_v18, %v4738_v1  ;;  %v5280_v23 = vld [vmem:[%s4728_s23 + $0x52] sm:$0xff] }
  0x97   : > { %371 = vrot.lane.b32.xlu1 %v4745_v2, %s9300_s18  ;;  %369 = vrot.lane.b32.xlu0 %v4748_v3, %s9300_s18  ;;  %9836 = sst [smem:[#allocation37_spill]] %s4820_s13  ;;  %s4842_s4 = sld [smem:[#allocation3 + $0x40]]  ;;  %v424_v20 = vstv %s4826_s14  ;;  %v4946_v29 = vmul.f32 %v418_v19, %v4731_v0  ;;  %v4969_v36 = vmul.f32 %v418_v19, %v4738_v1  ;;  %v5074_v19 = vld [vmem:[%s4728_s23 + $0x50] sm:$0xff] }
  0x98   : > { %9837 = sst [smem:[#allocation38_spill]] %s4834_s0  ;;  %s4848_s10 = sld [smem:[#allocation3 + $0x43]]  ;;  %v4949_v30 = vmul.f32 %v424_v20, %v4731_v0  ;;  %v4982_v39 = vmul.f32 %v424_v20, %v4738_v1 }
  0x99   : > { %9838 = sst [smem:[#allocation39_spill]] %s4836_s1  ;;  %s4846_s6 = sld [smem:[#allocation3 + $0x42]] }
  0x9a   : > { %9839 = sst [smem:[#allocation40_spill]] %s4838_s2  ;;  %s9841_s26 = smov 127  }
  0x9b   : > { %375 = vrot.lane.b32.xlu1 %v4745_v2, %s9297_s17  ;;  %373 = vrot.lane.b32.xlu0 %v4748_v3, %s9297_s17  ;;  %9840 = sst [smem:[#allocation41_spill]] %s4840_s3  ;;  %s4856_s30 = sld [smem:[#allocation3 + $0x51]] }
  0x9c   : > { %s4864_s12 = sld [smem:[#allocation3 + $0x52]]  ;;  %s4866_s24 = sld [smem:[#allocation3 + $0x53]]  ;;  %v490_v33 = vstv %s4844_s5 }
  0x9d   : > { %s4868_s27 = sld [smem:[#allocation3 + $0x60]]  ;;  %s4870_s7 = sld [smem:[#allocation3 + $0x61]]  ;;  %v484_v32 = vstv %s4842_s4  ;;  %v5004_v47 = vmul.f32 %v490_v33, %v4745_v2  ;;  %v5038_v57 = vmul.f32 %v490_v33, %v4748_v3 }
  0x9e   : > { %s4872_s11 = sld [smem:[#allocation3 + $0x62]]  ;;  %s4874_s28 = sld [smem:[#allocation3 + $0x63]]  ;;  %v502_v38 = vstv %s4848_s10  ;;  %v5001_v46 = vmul.f32 %v484_v32, %v4745_v2  ;;  %v5025_v54 = vmul.f32 %v484_v32, %v4748_v3  ;;  %v5103_v32 = vld [vmem:[%s4728_s23 + $0x48] sm:$0xff] }
  0x9f   : > { %381 = vrot.lane.b32.xlu1 %v4759_v4, %s9300_s18  ;;  %379 = vrot.lane.b32.xlu0 %v4762_v5, %s9300_s18  ;;  %s9850_s25 = smov 1   ;;  %s4927_s21 = sld [smem:[#allocation3 + $0x16]]  ;;  %v496_v34 = vstv %s4846_s6  ;;  %v5014_v49 = vmul.f32 %v502_v38, %v4745_v2  ;;  %v5044_v59 = vmul.f32 %v502_v38, %v4748_v3 }
  0xa0   : > { %s4937_s20 = sld [smem:[#allocation3 + $0x24]]  ;;  %s4939_s15 = sld [smem:[#allocation3 + $0x25]]  ;;  %v5007_v48 = vmul.f32 %v496_v34, %v4745_v2  ;;  %v5041_v58 = vmul.f32 %v496_v34, %v4748_v3 }
  0xa1   : > { %9843 = sst [smem:[#allocation43_spill]] %s4856_s30  ;;  %s4892_s30 = sld [smem:[#allocation3 + $0x82]] }
  0xa2   : > { %9844 = sst [smem:[#allocation44_spill]] %s4864_s12  ;;  %s4953_s14 = sld [smem:[#allocation3 + $0x27]] }
  0xa3   : > { %385 = vrot.lane.b32.xlu1 %v4759_v4, %s9297_s17  ;;  %383 = vrot.lane.b32.xlu0 %v4762_v5, %s9297_s17  ;;  %9845 = sst [smem:[#allocation45_spill]] %s4866_s24  ;;  %s4880_s12 = sld [smem:[#allocation3 + $0x70]] }
  0xa4   : > { %9846 = sst [smem:[#allocation46_spill]] %s4868_s27  ;;  %s4882_s24 = sld [smem:[#allocation3 + $0x71]] }
  0xa5   : > { %9847 = sst [smem:[#allocation47_spill]] %s4870_s7  ;;  %s4884_s27 = sld [smem:[#allocation3 + $0x72]]  ;;  %v671_v63 = vstv %s4927_s21 }
  0xa6   : > { %9848 = sst [smem:[#allocation48_spill]] %s4872_s11  ;;  %s4886_s11 = sld [smem:[#allocation3 + $0x73]]  ;;  %v5167_v53 = vmul.f32 %v4776_v7, %v671_v63 }
  0xa7   : > { %608 = vrot.lane.b32.xlu1 %v4773_v6, %s9300_s18  ;;  %606 = vrot.lane.b32.xlu0 %v4776_v7, %s9300_s18  ;;  %9849 = sst [smem:[#allocation49_spill]] %s4874_s28  ;;  %s4888_s28 = sld [smem:[#allocation3 + $0x80]] }
  0xa8   : > { %s4890_s7 = sld [smem:[#allocation3 + $0x81]]  ;;  %9860 = sst [smem:[#allocation59_spill]] %s4937_s20 }
  0xa9   : > { %9854 = sst [smem:[#allocation53_spill]] %s4892_s30  ;;  %s4913_s30 = sld [smem:[#allocation3 + $0x7]]  ;;  %v556_v55 = vstv %s4880_s12 }
  0xaa   : > { %9861 = sst [smem:[#allocation60_spill]] %s4939_s15  ;;  %s4961_s29 = sld [smem:[#allocation3 + $0x34]]  ;;  %v562_v56 = vstv %s4882_s24  ;;  %v5061_v2 = vmul.f32 %v556_v55, %v4759_v4  ;;  %v5067_v18 = vmul.f32 %v556_v55, %v4762_v5 }
  0xab   : > { %612 = vrot.lane.b32.xlu1 %v4773_v6, %s9297_s17  ;;  %610 = vrot.lane.b32.xlu0 %v4776_v7, %s9297_s17  ;;  %9863 = sst [smem:[#allocation62_spill]] %s4953_s14  ;;  %s4963_s16 = sld [smem:[#allocation3 + $0x35]]  ;;  %v568_v60 = vstv %s4884_s27  ;;  %v5064_v3 = vmul.f32 %v562_v56, %v4759_v4  ;;  %v5094_v38 = vmul.f32 %v562_v56, %v4762_v5 }
  0xac   : > { %9851 = sst [smem:[#allocation50_spill]] %s4886_s11  ;;  %s4900_s11 = sld [smem:[#allocation3 + $0x4]]  ;;  %v5077_v20 = vmul.f32 %v568_v60, %v4759_v4 }
  0xad   : > { %9852 = sst [smem:[#allocation51_spill]] %s4888_s28  ;;  %s4902_s28 = sld [smem:[#allocation3 + $0x5]] }
  0xae   : > { %9853 = sst [smem:[#allocation52_spill]] %s4890_s7  ;;  %s4921_s7 = sld [smem:[#allocation3 + $0x15]] }
  0xaf   : > { %618 = vrot.lane.b32.xlu1 %v4787_v8, %s9300_s18  ;;  %616 = vrot.lane.b32.xlu0 %v4790_v9, %s9300_s18  ;;  %9859 = sst [smem:[#allocation58_spill]] %s4913_s30  ;;  %s4975_s4 = sld [smem:[#allocation3 + $0x37]] }
  0xb0   : > { %9864 = sst [smem:[#allocation63_spill]] %s4961_s29  ;;  %s4973_s22 = sld [smem:[#allocation3 + $0x36]] }
  0xb1   : > { %9865 = sst [smem:[#allocation64_spill]] %s4963_s16  ;;  %s4991_s19 = sld [smem:[#allocation3 + $0x45]] }
  0xb2   : > { %9856 = sst [smem:[#allocation55_spill]] %s4900_s11  ;;  %s4919_s11 = sld [smem:[#allocation3 + $0x14]] }
  0xb3   : > { %622 = vrot.lane.b32.xlu1 %v4787_v8, %s9297_s17  ;;  %620 = vrot.lane.b32.xlu0 %v4790_v9, %s9297_s17  ;;  %s4828_s17 = sld [smem:[#allocation3 + $0x13]]  ;;  %9857 = sst [smem:[#allocation56_spill]] %s4902_s28 }
  0xb4   : > { %s4989_s10 = sld [smem:[#allocation3 + $0x44]]  ;;  %s5009_s2 = sld [smem:[#allocation3 + $0x46]]  ;;  %v665_v33 = vstv %s4921_s7 }
  0xb5   : > { %9867 = sst [smem:[#allocation66_spill]] %s4975_s4  ;;  %s5011_s1 = sld [smem:[#allocation3 + $0x47]]  ;;  %v5130_v52 = vmul.f32 %v4773_v6, %v665_v33  ;;  %v5157_v62 = vmul.f32 %v4776_v7, %v665_v33 }
  0xb6   : > { %9866 = sst [smem:[#allocation65_spill]] %s4973_s22  ;;  %s5019_s3 = sld [smem:[#allocation3 + $0x54]] }
  0xb7   : > { %628 = vrot.lane.b32.xlu1 %v4813_v10, %s9300_s18  ;;  %626 = vrot.lane.b32.xlu0 %v4816_v11, %s9300_s18  ;;  %s4854_s18 = sld [smem:[#allocation3 + $0x50]]  ;;  %s5021_s9 = sld [smem:[#allocation3 + $0x55]]  ;;  %v737_v50 = vstv %s4991_s19 }
  0xb8   : > { %s9878_s16 = sld [smem:[#allocation50_spill]]  ;;  %s5047_s24 = sld [smem:[#allocation3 + $0x64]]  ;;  %v659_v55 = vstv %s4919_s11 }
  0xb9   : > { %v430_v24 = vstv %s4828_s17  ;;  %s4951_s17 = sld [smem:[#allocation3 + $0x26]]  ;;  %s5049_s13 = sld [smem:[#allocation3 + $0x65]] }
  0xba   : > { %v4956_v31 = vmul.f32 %v430_v24, %v4731_v0  ;;  %v4985_v40 = vmul.f32 %v430_v24, %v4738_v1  ;;  %s5029_s29 = sld [smem:[#allocation3 + $0x56]]  ;;  %s5069_s27 = sld [smem:[#allocation3 + $0x74]]  ;;  %v5107_v1 = vmul.f32 %v568_v60, %v4762_v5  ;;  %v5127_v24 = vmul.f32 %v4773_v6, %v659_v55 }
  0xbb   : > { %632 = vrot.lane.b32.xlu1 %v4813_v10, %s9841_s26  ;;  %630 = vrot.lane.b32.xlu0 %v4816_v11, %s9841_s26  ;;  %9872 = sst [smem:[#allocation67_spill]] %s5011_s1  ;;  %s5071_s22 = sld [smem:[#allocation3 + $0x75]]  ;;  %v731_v51 = vstv %s4989_s10 }
  0xbc   : > { %9873 = sst [smem:[#allocation68_spill]] %s5019_s3  ;;  %s5031_s1 = sld [smem:[#allocation3 + $0x57]]  ;;  %v5197_v41 = vmul.f32 %v4790_v9, %v731_v51 }
  0xbd   : > { %9842 = sst [smem:[#allocation42_spill]] %s4854_s18  ;;  %s4894_s18 = sld [smem:[#allocation3 + $0x83]] }
  0xbe   : > { %9875 = sst [smem:[#allocation69_spill]] %s5021_s9  ;;  %v574_v0 = vstv %s9878_s16  ;;  %s5082_s5 = sld [smem:[#allocation3 + $0x76]] }
  0xbf   : > { %855 = vrot.lane.b32.xlu1 %v4859_v12, %s9850_s25  ;;  %853 = vrot.lane.b32.xlu0 %v4862_v13, %s9850_s25  ;;  %9862 = sst [smem:[#allocation61_spill]] %s4951_s17  ;;  %s5084_s4 = sld [smem:[#allocation3 + $0x77]]  ;;  %v5091_v34 = vmul.f32 %v574_v0, %v4759_v4  ;;  %v5116_v56 = vmul.f32 %v574_v0, %v4762_v5  ;;  %v5133_v5 = vmul.f32 %v4776_v7, %v659_v55  ;;  %v743_v55 = vstv %s5009_s2 }
  0xc0   : > { %9879 = sst [smem:[#allocation50_spill]] %s5029_s29  ;;  %s5057_s29 = sld [smem:[#allocation3 + $0x67]]  ;;  %v5144_v0 = vmul.f32 %v4773_v6, %v671_v63  ;;  %v5207_v63 = vld [vmem:[%s4728_s23 + $0x49] sm:$0xff]  ;;  %v5210_v61 = vmul.f32 %v4787_v8, %v743_v55  ;;  %v803_v21 = vstv %s5069_s27  ;;  %v5244_v27 = vmul.f32 %v4790_v9, %v743_v55 }
  0xc1   : > { %9882 = sst [smem:[#allocation71_spill]] %s5047_s24  ;;  %s5098_s6 = sld [smem:[#allocation3 + $0x84]]  ;;  %v809_v17 = vstv %s5071_s22  ;;  %v5257_v25 = vmul.f32 %v4813_v10, %v803_v21 }
  0xc2   : > { %9881 = sst [smem:[#allocation70_spill]] %s5031_s1  ;;  %s5055_s1 = sld [smem:[#allocation3 + $0x66]]  ;;  %9915 = vst [vmem:[#allocation88_spill] sm:$0xff] %v5244_v27  ;;  %v5260_v55 = vmul.f32 %v4813_v10, %v809_v17  ;;  %v5301_v22 = vmul.f32 %v4816_v11, %v809_v17 }
  0xc3   : > { %9855 = sst [smem:[#allocation54_spill]] %s4894_s18  ;;  %859 = vrot.lane.b32.xlu1 %v4859_v12, %s9841_s26  ;;  %857 = vrot.lane.b32.xlu0 %v4862_v13, %s9841_s26  ;;  %s4911_s18 = sld [smem:[#allocation3 + $0x6]]  ;;  %9918 = vst [vmem:[#allocation91_spill] sm:$0xff] %v5257_v25 }
  0xc4   : > { %9884 = sst [smem:[#allocation72_spill]] %s5049_s13  ;;  %s5100_s0 = sld [smem:[#allocation3 + $0x85]]  ;;  %v815_v16 = vstv %s5082_s5  ;;  %9919 = vst [vmem:[#allocation92_spill] sm:$0xff] %v5260_v55  ;;  %9933 = vst [vmem:[#allocation102_spill] sm:$0xff] %v5301_v22 }
  0xc5   : > { %s5121_s7 = sld [smem:[#allocation3 + $0x8]]  ;;  %s5123_s11 = sld [smem:[#allocation3 + $0x9]]  ;;  %v821_v37 = vstv %s5084_s4  ;;  %v5304_v26 = vmul.f32 %v4816_v11, %v815_v16 }
  0xc6   : > { %9888 = sst [smem:[#allocation74_spill]] %s5057_s29  ;;  %s5137_s21 = sld [smem:[#allocation3 + $0xb]] }
  0xc7   : > { %865 = vrot.lane.b32.xlu1 %v4905_v14, %s9850_s25  ;;  %863 = vrot.lane.b32.xlu0 %v4908_v15, %s9850_s25  ;;  %s5111_s29 = sld [smem:[#allocation3 + $0x86]]  ;;  %s9899_s30 = sld [smem:[#allocation67_spill]]  ;;  %9934 = vst [vmem:[#allocation103_spill] sm:$0xff] %v5304_v26 }
  0xc8   : > { %9887 = sst [smem:[#allocation73_spill]] %s5055_s1  ;;  %s5113_s1 = sld [smem:[#allocation3 + $0x87]] }
  0xc9   : > { %9858 = sst [smem:[#allocation57_spill]] %s4911_s18  ;;  %s4929_s18 = sld [smem:[#allocation3 + $0x17]] }
  0xca   : > { %9892 = sst [smem:[#allocation75_spill]] %s5100_s0  ;;  %s5151_s28 = sld [smem:[#allocation3 + $0x18]] }
  0xcb   : > { %869 = vrot.lane.b32.xlu1 %v4905_v14, %s9841_s26  ;;  %867 = vrot.lane.b32.xlu0 %v4908_v15, %s9841_s26  ;;  %9895 = sst [smem:[#allocation78_spill]] %s5121_s7  ;;  %s5153_s16 = sld [smem:[#allocation3 + $0x19]] }
  0xcc   : > { %9896 = sst [smem:[#allocation79_spill]] %s5123_s11  ;;  %s5171_s15 = sld [smem:[#allocation3 + $0x28]] }
  0xcd   : > { %9893 = sst [smem:[#allocation76_spill]] %s5111_s29  ;;  %s5163_s7 = sld [smem:[#allocation3 + $0x1b]]  ;;  %v749_v45 = vstv %s9899_s30 }
  0xce   : > { %9894 = sst [smem:[#allocation77_spill]] %s5113_s1  ;;  %s5181_s19 = sld [smem:[#allocation3 + $0x2a]] }
  0xcf   : > { %875 = vrot.lane.b32.xlu1 %v4994_v43, %s9850_s25  ;;  %873 = vrot.lane.b32.xlu0 %v4997_v44, %s9850_s25  ;;  %v677_v4 = vstv %s4929_s18  ;;  %s5135_s18 = sld [smem:[#allocation3 + $0xa]]  ;;  %9898 = sst [smem:[#allocation81_spill]] %s5137_s21 }
  0xd0   : > { %v5147_v60 = vmul.f32 %v4773_v6, %v677_v4  ;;  %s5173_s17 = sld [smem:[#allocation3 + $0x29]]  ;;  %v5176_v33 = vmul.f32 %v4776_v7, %v677_v4  ;;  %s5183_s10 = sld [smem:[#allocation3 + $0x2b]]  ;;  %v5191_v7 = vmul.f32 %v4787_v8, %v731_v51  ;;  %v5194_v4 = vmul.f32 %v4787_v8, %v737_v50  ;;  %v5297_v51 = vld [vmem:[%s4728_s23 + $0x4a] sm:$0xff] }
  0xd1   : > { %s5199_s30 = sld [smem:[#allocation3 + $0x38]]  ;;  %s5201_s8 = sld [smem:[#allocation3 + $0x39]]  ;;  %v5213_v6 = vmul.f32 %v4787_v8, %v749_v45  ;;  %v5231_v8 = vmul.f32 %v4790_v9, %v737_v50  ;;  %v5247_v50 = vmul.f32 %v4790_v9, %v749_v45  ;;  %v5263_v9 = vmul.f32 %v4813_v10, %v815_v16 }
  0xd2   : > { %s5217_s11 = sld [smem:[#allocation3 + $0x3a]]  ;;  %s5219_s12 = sld [smem:[#allocation3 + $0x3b]]  ;;  %v5270_v45 = vmul.f32 %v4813_v10, %v821_v37  ;;  %v906_v55 = vstv %s5151_s28  ;;  %v912_v25 = vstv %s5153_s16 }
  0xd3   : > { %879 = vrot.lane.b32.xlu1 %v4994_v43, %s9841_s26  ;;  %877 = vrot.lane.b32.xlu0 %v4997_v44, %s9841_s26  ;;  %s5225_s20 = sld [smem:[#allocation3 + $0x48]]  ;;  %s5235_s9 = sld [smem:[#allocation3 + $0x4a]]  ;;  %9916 = vst [vmem:[#allocation89_spill] sm:$0xff] %v5247_v50  ;;  %9920 = vst [vmem:[#allocation93_spill] sm:$0xff] %v5263_v9  ;;  %v5283_v9 = vmul.f32 %v4816_v11, %v803_v21  ;;  %v924_v27 = vstv %s5163_s7  ;;  %v5326_v17 = vmul.f32 %v4859_v12, %v912_v25 }
  0xd4   : > { %9905 = sst [smem:[#allocation82_spill]] %s5181_s19  ;;  %s5237_s3 = sld [smem:[#allocation3 + $0x4b]]  ;;  %9923 = vst [vmem:[#allocation96_spill] sm:$0xff] %v5270_v45  ;;  %v5348_v21 = vmul.f32 %v4859_v12, %v924_v27  ;;  %v5351_v50 = vmul.f32 %v4862_v13, %v906_v55 }
  0xd5   : > { %9897 = sst [smem:[#allocation80_spill]] %s5135_s18  ;;  %s5161_s18 = sld [smem:[#allocation3 + $0x1a]]  ;;  %9927 = vst [vmem:[#allocation99_spill] sm:$0xff] %v5283_v9  ;;  %v5307_v9 = vmul.f32 %v4816_v11, %v821_v37  ;;  %v5323_v11 = vmul.f32 %v4859_v12, %v906_v55  ;;  %9937 = vst [vmem:[#allocation106_spill] sm:$0xff] %v5326_v17  ;;  %v5372_v55 = vmul.f32 %v4862_v13, %v924_v27 }
  0xd6   : > { %9904 = sst [smem:[#allocation67_spill]] %s5173_s17  ;;  %s5251_s22 = sld [smem:[#allocation3 + $0x58]]  ;;  %9943 = vst [vmem:[#allocation110_spill] sm:$0xff] %v5348_v21  ;;  %9944 = vst [vmem:[#allocation111_spill] sm:$0xff] %v5351_v50 }
  0xd7   : > { %1102 = vrot.lane.b32.xlu1 %v5074_v19, %s9850_s25  ;;  %1100 = vrot.lane.b32.xlu0 %v5103_v32, %s9850_s25  ;;  %9906 = sst [smem:[#allocation83_spill]] %s5183_s10  ;;  %s5253_s4 = sld [smem:[#allocation3 + $0x59]]  ;;  %9935 = vst [vmem:[#allocation104_spill] sm:$0xff] %v5307_v9  ;;  %9936 = vst [vmem:[#allocation105_spill] sm:$0xff] %v5323_v11 }
  0xd8   : > { %9908 = sst [smem:[#allocation84_spill]] %s5199_s30  ;;  %s5227_s30 = sld [smem:[#allocation3 + $0x49]]  ;;  %9950 = vst [vmem:[#allocation115_spill] sm:$0xff] %v5372_v55 }
  0xd9   : > { %9910 = sst [smem:[#allocation85_spill]] %s5201_s8  ;;  %s5265_s5 = sld [smem:[#allocation3 + $0x5a]]  ;;  %v978_v45 = vstv %s5225_s20  ;;  %v990_v11 = vstv %s5235_s9 }
  0xda   : > { %9911 = sst [smem:[#allocation86_spill]] %s5217_s11  ;;  %s5267_s27 = sld [smem:[#allocation3 + $0x5b]]  ;;  %v5424_v21 = vmul.f32 %v4908_v15, %v990_v11 }
  0xdb   : > { %1106 = vrot.lane.b32.xlu1 %v5074_v19, %s9841_s26  ;;  %1104 = vrot.lane.b32.xlu0 %v5103_v32, %s9841_s26  ;;  %9912 = sst [smem:[#allocation87_spill]] %s5219_s12  ;;  %s5275_s8 = sld [smem:[#allocation3 + $0x68]]  ;;  %v918_v10 = vstv %s5161_s18 }
  0xdc   : > { %9917 = sst [smem:[#allocation90_spill]] %s5251_s22  ;;  %s5277_s14 = sld [smem:[#allocation3 + $0x69]]  ;;  %v5329_v37 = vmul.f32 %v4859_v12, %v918_v10  ;;  %v5363_v17 = vmul.f32 %v4862_v13, %v918_v10  ;;  %v996_v12 = vstv %s5237_s3  ;;  %v5383_v10 = vmul.f32 %v4905_v14, %v978_v45  ;;  %9959 = vst [vmem:[#allocation124_spill] sm:$0xff] %v5424_v21 }
  0xdd   : > { %s5288_s2 = sld [smem:[#allocation3 + $0x6a]]  ;;  %s5290_s0 = sld [smem:[#allocation3 + $0x6b]]  ;;  %v5401_v9 = vmul.f32 %v4905_v14, %v996_v12  ;;  %v5432_v27 = vmul.f32 %v4908_v15, %v996_v12 }
  0xde   : > { %s5309_s28 = sld [smem:[#allocation3 + $0x78]]  ;;  %s5311_s16 = sld [smem:[#allocation3 + $0x79]]  ;;  %9938 = vst [vmem:[#allocation107_spill] sm:$0xff] %v5329_v37  ;;  %v984_v16 = vstv %s5227_s30  ;;  %v5360_v37 = vmul.f32 %v4862_v13, %v912_v25  ;;  %9948 = vst [vmem:[#allocation113_spill] sm:$0xff] %v5363_v17  ;;  %v5398_v25 = vmul.f32 %v4905_v14, %v990_v11 }
  0xdf   : > { %1112 = vrot.lane.b32.xlu1 %v5204_v42, %s9850_s25  ;;  %1110 = vrot.lane.b32.xlu0 %v5207_v63, %s9850_s25  ;;  %9921 = sst [smem:[#allocation94_spill]] %s5265_s5  ;;  %s5317_s18 = sld [smem:[#allocation3 + $0x7a]]  ;;  %9951 = vst [vmem:[#allocation116_spill] sm:$0xff] %v5383_v10  ;;  %v5386_v13 = vmul.f32 %v4905_v14, %v984_v16  ;;  %9955 = vst [vmem:[#allocation120_spill] sm:$0xff] %v5401_v9  ;;  %v5418_v14 = vmul.f32 %v4908_v15, %v978_v45 }
  0xe0   : > { %9922 = sst [smem:[#allocation95_spill]] %s5267_s27  ;;  %s5319_s23 = sld [smem:[#allocation3 + $0x7b]]  ;;  %9947 = vst [vmem:[#allocation112_spill] sm:$0xff] %v5360_v37  ;;  %9954 = vst [vmem:[#allocation119_spill] sm:$0xff] %v5398_v25  ;;  %v5421_v50 = vmul.f32 %v4908_v15, %v984_v16 }
  0xe1   : > { %9924 = sst [smem:[#allocation97_spill]] %s5275_s8  ;;  %s5331_s13 = sld [smem:[#allocation3 + $0x88]]  ;;  %9952 = vst [vmem:[#allocation117_spill] sm:$0xff] %v5386_v13  ;;  %9957 = vst [vmem:[#allocation122_spill] sm:$0xff] %v5418_v14 }
  0xe2   : > { %9925 = sst [smem:[#allocation98_spill]] %s5277_s14  ;;  %s5333_s21 = sld [smem:[#allocation3 + $0x89]]  ;;  %9958 = vst [vmem:[#allocation123_spill] sm:$0xff] %v5421_v50  ;;  %9960 = vst [vmem:[#allocation125_spill] sm:$0xff] %v5432_v27 }
  0xe3   : > { %9930 = sst [smem:[#allocation100_spill]] %s5288_s2  ;;  %1116 = vrot.lane.b32.xlu1 %v5204_v42, %s9841_s26  ;;  %1114 = vrot.lane.b32.xlu0 %v5207_v63, %s9841_s26  ;;  %s5339_s7 = sld [smem:[#allocation3 + $0x8a]] }
  0xe4   : > { %9931 = sst [smem:[#allocation101_spill]] %s5290_s0  ;;  %s5341_s29 = sld [smem:[#allocation3 + $0x8b]]  ;;  %v1050_v13 = vstv %s5309_s28  ;;  %v1056_v10 = vstv %s5311_s16 }
  0xe5   : > { %s9941_s24 = sld [smem:[#allocation84_spill]]  ;;  %s9942_s1 = sld [smem:[#allocation85_spill]]  ;;  %v1062_v55 = vstv %s5317_s18  ;;  %v5443_v11 = vmul.f32 %v4994_v43, %v1050_v13  ;;  %v5446_v21 = vmul.f32 %v4994_v43, %v1056_v10  ;;  %v5477_v16 = vmul.f32 %v4997_v44, %v1056_v10 }
  0xe6   : > { %s5355_s10 = sld [smem:[#allocation3 + $0xc]]  ;;  %s5357_s19 = sld [smem:[#allocation3 + $0xd]]  ;;  %v1068_v9 = vstv %s5319_s23  ;;  %v5449_v15 = vmul.f32 %v4994_v43, %v1062_v55  ;;  %v5480_v45 = vmul.f32 %v4997_v44, %v1062_v55 }
  0xe7   : > { %1122 = vrot.lane.b32.xlu1 %v5280_v23, %s9850_s25  ;;  %1120 = vrot.lane.b32.xlu0 %v5297_v51, %s9850_s25  ;;  %s5367_s25 = sld [smem:[#allocation3 + $0xe]]  ;;  %s5369_s17 = sld [smem:[#allocation3 + $0x1c]]  ;;  %9961 = vst [vmem:[#allocation126_spill] sm:$0xff] %v5443_v11  ;;  %9962 = vst [vmem:[#allocation127_spill] sm:$0xff] %v5446_v21  ;;  %v5456_v12 = vmul.f32 %v4994_v43, %v1068_v9  ;;  %v5474_v43 = vmul.f32 %v4997_v44, %v1050_v13 }
  0xe8   : > { %s5377_s20 = sld [smem:[#allocation3 + $0x1d]]  ;;  %s5379_s30 = sld [smem:[#allocation3 + $0x1e]]  ;;  %9963 = vst [vmem:[#allocation128_spill] sm:$0xff] %v5449_v15  ;;  %9969 = vst [vmem:[#allocation134_spill] sm:$0xff] %v5477_v16  ;;  %v5488_v25 = vmul.f32 %v4997_v44, %v1068_v9 }
  0xe9   : > { %9939 = sst [smem:[#allocation108_spill]] %s5339_s7  ;;  %s5389_s3 = sld [smem:[#allocation3 + $0xf]]  ;;  %9965 = vst [vmem:[#allocation130_spill] sm:$0xff] %v5456_v12  ;;  %9968 = vst [vmem:[#allocation133_spill] sm:$0xff] %v5474_v43 }
  0xea   : > { %9940 = sst [smem:[#allocation109_spill]] %s5341_s29  ;;  %s5391_s9 = sld [smem:[#allocation3 + $0x1f]]  ;;  %9970 = vst [vmem:[#allocation135_spill] sm:$0xff] %v5480_v45  ;;  %9971 = vst [vmem:[#allocation136_spill] sm:$0xff] %v5488_v25 }
  0xeb   : > { %1126 = vrot.lane.b32.xlu1 %v5280_v23, %s9841_s26  ;;  %1124 = vrot.lane.b32.xlu0 %v5297_v51, %s9841_s26  ;;  %s5405_s22 = sld [smem:[#allocation3 + $0x2c]]  ;;  %s5407_s12 = sld [smem:[#allocation3 + $0x2d]] }
  0xec   : > { %9945 = sst [smem:[#allocation84_spill]] %s5355_s10  ;;  %s5413_s26 = sld [smem:[#allocation3 + $0x2e]] }
  0xed   : > { %9946 = sst [smem:[#allocation85_spill]] %s5357_s19  ;;  %s5415_s11 = sld [smem:[#allocation3 + $0x2f]]  ;;  %v1153_v15 = vstv %s5369_s17 }
  0xee   : > { %9949 = sst [smem:[#allocation114_spill]] %s5367_s25  ;;  %s5427_s27 = sld [smem:[#allocation3 + $0x3c]]  ;;  %v1159_v21 = vstv %s5377_s20  ;;  %v1165_v11 = vstv %s5379_s30  ;;  %v5499_v10 = vmul.f32 %v5074_v19, %v1153_v15 }
  0xef   : > { %9953 = sst [smem:[#allocation118_spill]] %s5389_s3  ;;  %s5429_s28 = sld [smem:[#allocation3 + $0x4c]]  ;;  %v5502_v45 = vmul.f32 %v5074_v19, %v1159_v21  ;;  %v5505_v44 = vmul.f32 %v5074_v19, %v1165_v11  ;;  %v5533_v55 = vmul.f32 %v5103_v32, %v1159_v21  ;;  %v5536_v13 = vmul.f32 %v5103_v32, %v1165_v11 }
  0xf0   : > { %s5437_s16 = sld [smem:[#allocation3 + $0x4d]]  ;;  %s5439_s18 = sld [smem:[#allocation3 + $0x4e]]  ;;  %v1171_v14 = vstv %s5391_s9  ;;  %9972 = vst [vmem:[#allocation137_spill] sm:$0xff] %v5499_v10 }
  0xf1   : > { %s5451_s23 = sld [smem:[#allocation3 + $0x3d]]  ;;  %s5453_s2 = sld [smem:[#allocation3 + $0x4f]]  ;;  %9973 = vst [vmem:[#allocation138_spill] sm:$0xff] %v5502_v45  ;;  %9974 = vst [vmem:[#allocation139_spill] sm:$0xff] %v5505_v44  ;;  %v5512_v9 = vmul.f32 %v5074_v19, %v1171_v14  ;;  %v5530_v19 = vmul.f32 %v5103_v32, %v1153_v15  ;;  %v5544_v12 = vmul.f32 %v5103_v32, %v1171_v14  ;;  %v354_v15 = vlaneseq }
  0xf2   : > { %s5461_s0 = sld [smem:[#allocation3 + $0x3e]]  ;;  %s5463_s14 = sld [smem:[#allocation3 + $0x3f]]  ;;  %9977 = vst [vmem:[#allocation142_spill] sm:$0xff] %v5533_v55  ;;  %9978 = vst [vmem:[#allocation143_spill] sm:$0xff] %v5536_v13  ;;  %v4541_v55 = vmov 0.0  }
  0xf3   : > { %9956 = sst [smem:[#allocation121_spill]] %s5415_s11  ;;  %s5469_s8 = sld [smem:[#allocation3 + $0x5c]]  ;;  %9975 = vst [vmem:[#allocation140_spill] sm:$0xff] %v5512_v9  ;;  %9976 = vst [vmem:[#allocation141_spill] sm:$0xff] %v5530_v19  ;;  %v5609_v16 = vand.u32 127, %v354_v15 }
  0xf4   : > { %s5471_s5 = sld [smem:[#allocation3 + $0x5d]]  ;;  %s5483_s29 = sld [smem:[#allocation3 + $0x5e]]  ;;  %9981 = vst [vmem:[#allocation146_spill] sm:$0xff] %v5544_v12  ;;  %1344 = vst [vmem:[#allocation2] sm:$0x1] %v4541_v55 }
  0xf5   : > { %s5485_s17 = sld [smem:[#allocation3 + $0x5f]]  ;;  %s5493_s20 = sld [smem:[#allocation3 + $0x7c]]  ;;  %v1225_v44 = vstv %s5429_s28  ;;  %9999 = vst [vmem:[#allocation164_spill] sm:$0xff] %v5609_v16  ;;  %1345 = vst [vmem:[#allocation2 + $0x11] sm:$0x1] %v4541_v55 }
  0xf6   : > { %s5495_s30 = sld [smem:[#allocation3 + $0x7d]]  ;;  %s5507_s9 = sld [smem:[#allocation3 + $0x6c]]  ;;  %v1231_v45 = vstv %s5437_s16  ;;  %v1237_v10 = vstv %s5439_s18  ;;  %v5555_v11 = vmul.f32 %v5204_v42, %v1225_v44  ;;  %1347 = vst [vmem:[#allocation2 + $0x18] sm:$0x1] %v4541_v55  ;;  %1348 = vst [vmem:[#allocation2 + $0x29] sm:$0x1] %v4541_v55 }
  0xf7   : > { %9964 = sst [smem:[#allocation129_spill]] %s5451_s23  ;;  %s5509_s25 = sld [smem:[#allocation3 + $0x7e]]  ;;  %v1243_v43 = vstv %s5453_s2  ;;  %v5558_v13 = vmul.f32 %v5204_v42, %v1231_v45  ;;  %v5561_v32 = vmul.f32 %v5204_v42, %v1237_v10  ;;  %v5587_v19 = vmul.f32 %v5207_v63, %v1237_v10  ;;  %1350 = vst [vmem:[#allocation2 + $0x30] sm:$0x1] %v4541_v55  ;;  %1351 = vst [vmem:[#allocation2 + $0x41] sm:$0x1] %v4541_v55 }
  0xf8   : > { %9966 = sst [smem:[#allocation131_spill]] %s5461_s0  ;;  %s5517_s3 = sld [smem:[#allocation3 + $0x6d]]  ;;  %9984 = vst [vmem:[#allocation149_spill] sm:$0xff] %v5555_v11  ;;  %v5568_v14 = vmul.f32 %v5204_v42, %v1243_v43  ;;  %v5591_v11 = vmul.f32 %v5207_v63, %v1243_v43  ;;  %1353 = vst [vmem:[#allocation2 + $0x48] sm:$0x1] %v4541_v55 }
  0xf9   : > { %9967 = sst [smem:[#allocation132_spill]] %s5463_s14  ;;  %s5519_s19 = sld [smem:[#allocation3 + $0x7f]]  ;;  %9985 = vst [vmem:[#allocation150_spill] sm:$0xff] %v5558_v13  ;;  %9986 = vst [vmem:[#allocation151_spill] sm:$0xff] %v5561_v32  ;;  %v5579_v32 = vmul.f32 %v5207_v63, %v1225_v44 }
  0xfa   : > { %s5525_s10 = sld [smem:[#allocation3 + $0x6e]]  ;;  %s5527_s7 = sld [smem:[#allocation3 + $0x6f]]  ;;  %9989 = vst [vmem:[#allocation154_spill] sm:$0xff] %v5568_v14  ;;  %v5584_v14 = vmul.f32 %v5207_v63, %v1231_v45  ;;  %9994 = vst [vmem:[#allocation159_spill] sm:$0xff] %v5587_v19 }
  0xfb   : > { %s5539_s11 = sld [smem:[#allocation3 + $0x8c]]  ;;  %s5541_s28 = sld [smem:[#allocation3 + $0x8d]]  ;;  %9992 = vst [vmem:[#allocation157_spill] sm:$0xff] %v5579_v32  ;;  %v1297_v13 = vstv %s5493_s20  ;;  %9995 = vst [vmem:[#allocation160_spill] sm:$0xff] %v5591_v11 }
  0xfc   : > { %s5549_s16 = sld [smem:[#allocation3 + $0x8e]]  ;;  %s5551_s18 = sld [smem:[#allocation3 + $0x8f]]  ;;  %v1303_v42 = vstv %s5495_s30  ;;  %9993 = vst [vmem:[#allocation158_spill] sm:$0xff] %v5584_v14  ;;  %v5599_v25 = vmul.f32 %v5280_v23, %v1297_v13  ;;  %1354 = vst [vmem:[#allocation2 + $0x59] sm:$0x1] %v4541_v55  ;;  %v5617_v44 = vmul.f32 %v5297_v51, %v1297_v13 }
  0xfd   : > { %s5563_s2 = sld [smem:[#allocation6]]  ;;  %s5565_s0 = sld [smem:[#allocation6 + $0x1]]  ;;  %v1309_v21 = vstv %s5509_s25  ;;  %v5602_v45 = vmul.f32 %v5280_v23, %v1303_v42  ;;  %v5620_v43 = vmul.f32 %v5297_v51, %v1303_v42 }
  0xfe   : > { %s5573_s14 = sld [smem:[#allocation6 + $0x2]]  ;;  %s5575_s23 = sld [smem:[#allocation6 + $0x3]]  ;;  %9996 = vst [vmem:[#allocation161_spill] sm:$0xff] %v5599_v25  ;;  %v5605_v10 = vmul.f32 %v5280_v23, %v1309_v21  ;;  %10009 = vst [vmem:[#allocation166_spill] sm:$0xff] %v5617_v44  ;;  %v5623_v14 = vmul.f32 %v5297_v51, %v1309_v21 }
  0xff   : > { %v1315_v32 = vstv %s5519_s19  ;;  %9997 = vst [vmem:[#allocation162_spill] sm:$0xff] %v5602_v45  ;;  %s10001_s25 = sld [smem:[#allocation34_spill]]  ;;  %s10002_s19 = sld [smem:[#allocation35_spill]]  ;;  %10010 = vst [vmem:[#allocation167_spill] sm:$0xff] %v5620_v43 }
 0x100   : > { %9998 = vst [vmem:[#allocation163_spill] sm:$0xff] %v5605_v10  ;;  %v5612_v63 = vmul.f32 %v5280_v23, %v1315_v32  ;;  %s10003_s20 = sld [smem:[#allocation36_spill]]  ;;  %s10004_s30 = sld [smem:[#allocation37_spill]]  ;;  %10011 = vst [vmem:[#allocation168_spill] sm:$0xff] %v5623_v14  ;;  %v5626_v19 = vmul.f32 %v5297_v51, %v1315_v32 }
 0x101   : > { %9979 = sst [smem:[#allocation144_spill]] %s5539_s11  ;;  %v364_v23 = vpop.permute.xlu1 %363  ;;  %v360_v15 = vpop.permute.xlu0 %359  ;;  %s10008_s11 = sld [smem:[#allocation33_spill]] }
 0x102   : > { %9980 = sst [smem:[#allocation145_spill]] %s5541_s28  ;;  %10000 = vst [vmem:[#allocation165_spill] sm:$0xff] %v5612_v63  ;;  %s10005_s28 = sld [smem:[#allocation30_spill]]  ;;  %10012 = vst [vmem:[#allocation169_spill] sm:$0xff] %v5626_v19 }
 0x103   : > { %9982 = sst [smem:[#allocation147_spill]] %s5549_s16  ;;  %s10006_s16 = sld [smem:[#allocation31_spill]] }
 0x104   : > { %9983 = sst [smem:[#allocation148_spill]] %s5551_s18  ;;  %s10007_s18 = sld [smem:[#allocation32_spill]] }
 0x105   : > { %9987 = sst [smem:[#allocation152_spill]] %s5563_s2  ;;  %v10013_v10 = vstv %s10001_s25  ;;  %v10014_v25 = vstv %s10002_s19  ;;  %s10031_s2 = sld [smem:[#allocation41_spill]] }
 0x106   : > { %9988 = sst [smem:[#allocation153_spill]] %s5565_s0  ;;  %v389_v45 = vmul.f32 %v10013_v10, %v360_v15  ;;  %v395_v13 = vmul.f32 %v10014_v25, %v360_v15  ;;  %v10015_v44 = vstv %s10003_s20  ;;  %v10016_v43 = vstv %s10004_s30  ;;  %s10029_s0 = sld [smem:[#allocation40_spill]] }
 0x107   : > { %9990 = sst [smem:[#allocation155_spill]] %s5573_s14  ;;  %v401_v42 = vmul.f32 %v10015_v44, %v360_v15  ;;  %v407_v21 = vmul.f32 %v10016_v43, %v360_v15  ;;  %v10020_v12 = vstv %s10008_s11  ;;  %v366_v43 = vpop.permute.xlu1 %365  ;;  %v362_v15 = vpop.permute.xlu0 %361  ;;  %s10027_s14 = sld [smem:[#allocation39_spill]] }
 0x108   : > { %9991 = sst [smem:[#allocation156_spill]] %s5575_s23  ;;  %v10017_v14 = vstv %s10005_s28  ;;  %v455_v10 = vmul.f32 %v10020_v12, %v364_v23  ;;  %v415_v19 = vadd.f32 %v4943_v28, %v389_v45  ;;  %v421_v25 = vadd.f32 %v4946_v29, %v395_v13  ;;  %s10041_s11 = sld [smem:[#allocation42_spill]] }
 0x109   : > { %v437_v51 = vmul.f32 %v10017_v14, %v364_v23  ;;  %v10018_v32 = vstv %s10006_s16  ;;  %v427_v44 = vadd.f32 %v4949_v30, %v401_v42  ;;  %v433_v16 = vadd.f32 %v4956_v31, %v407_v21  ;;  %s10025_s23 = sld [smem:[#allocation38_spill]]  ;;  %s10042_s28 = sld [smem:[#allocation43_spill]] }
 0x10a   : > { %v443_v55 = vmul.f32 %v10018_v32, %v364_v23  ;;  %v10019_v9 = vstv %s10007_s18  ;;  %v10021_v11 = vmov %v10017_v14  ;;  %v10022_v27 = vmov %v10018_v32  ;;  %s10043_s16 = sld [smem:[#allocation44_spill]]  ;;  %s10044_s18 = sld [smem:[#allocation45_spill]] }
 0x10b   : > { %v449_v63 = vmul.f32 %v10019_v9, %v364_v23  ;;  %v438_v14 = vmul.f32 %v10021_v11, %v366_v43  ;;  %v444_v50 = vmul.f32 %v10022_v27, %v366_v43  ;;  %v10023_v32 = vmov %v10019_v9 }
 0x10c   : > { %v450_v17 = vmul.f32 %v10023_v32, %v366_v43  ;;  %v10024_v37 = vmov %v10020_v12  ;;  %v10026_v12 = vstv %s10001_s25  ;;  %v10028_v45 = vstv %s10002_s19  ;;  %s10061_s25 = sld [smem:[#allocation51_spill]]  ;;  %s10063_s19 = sld [smem:[#allocation52_spill]] }
 0x10d   : > { %v456_v9 = vmul.f32 %v10024_v37, %v366_v43  ;;  %v390_v28 = vmul.f32 %v10026_v12, %v362_v15  ;;  %v396_v29 = vmul.f32 %v10028_v45, %v362_v15  ;;  %v10030_v30 = vstv %s10003_s20  ;;  %v372_v45 = vpop.permute.xlu1 %371  ;;  %s10065_s20 = sld [smem:[#allocation53_spill]] }
 0x10e   : > { %v402_v31 = vmul.f32 %v10030_v30, %v362_v15  ;;  %v10032_v23 = vstv %s10004_s30  ;;  %v439_v42 = vadd.f32 %v437_v51, %v415_v19  ;;  %v445_v11 = vadd.f32 %v443_v55, %v421_v25  ;;  %v370_v30 = vpop.permute.xlu0 %369  ;;  %s10067_s30 = sld [smem:[#allocation54_spill]] }
 0x10f   : > { %v408_v13 = vmul.f32 %v10032_v23, %v362_v15  ;;  %v451_v21 = vadd.f32 %v449_v63, %v427_v44  ;;  %v457_v27 = vadd.f32 %v455_v10, %v433_v16  ;;  %v416_v32 = vadd.f32 %v4966_v35, %v390_v28 }
 0x110   : > { %v422_v37 = vadd.f32 %v4969_v36, %v396_v29  ;;  %v428_v43 = vadd.f32 %v4982_v39, %v402_v31  ;;  %v10033_v26 = vstv %s10025_s23  ;;  %v10034_v19 = vstv %s10027_s14  ;;  %s10050_s14 = sld [smem:[#allocation47_spill]]  ;;  %s10051_s23 = sld [smem:[#allocation48_spill]] }
 0x111   : > { %v434_v12 = vadd.f32 %v4985_v40, %v408_v13  ;;  %v462_v15 = vmul.f32 %v10033_v26, %v372_v45  ;;  %v468_v55 = vmul.f32 %v10034_v19, %v372_v45  ;;  %v10035_v63 = vstv %s10029_s0  ;;  %s10049_s0 = sld [smem:[#allocation46_spill]] }
 0x112   : > { %v474_v51 = vmul.f32 %v10035_v63, %v372_v45  ;;  %v10036_v16 = vstv %s10031_s2  ;;  %v440_v25 = vadd.f32 %v438_v14, %v416_v32  ;;  %v446_v35 = vadd.f32 %v444_v50, %v422_v37  ;;  %v376_v14 = vpop.permute.xlu1 %375  ;;  %v374_v50 = vpop.permute.xlu0 %373  ;;  %s10052_s2 = sld [smem:[#allocation49_spill]] }
 0x113   : > { %v480_v10 = vmul.f32 %v10036_v16, %v372_v45  ;;  %v452_v44 = vadd.f32 %v450_v17, %v428_v43  ;;  %v458_v28 = vadd.f32 %v456_v9, %v434_v12  ;;  %v10037_v36 = vmov %v10033_v26 }
 0x114   : > { %v461_v29 = vmul.f32 %v10037_v36, %v370_v30  ;;  %v10038_v23 = vmov %v10034_v19  ;;  %v10039_v31 = vmov %v10035_v63  ;;  %v10040_v13 = vmov %v10036_v16 }
 0x115   : > { %v467_v39 = vmul.f32 %v10038_v23, %v370_v30  ;;  %v473_v40 = vmul.f32 %v10039_v31, %v370_v30  ;;  %v479_v22 = vmul.f32 %v10040_v13, %v370_v30  ;;  %v464_v26 = vadd.f32 %v462_v15, %v440_v25 }
 0x116   : > { %v470_v19 = vadd.f32 %v468_v55, %v446_v35  ;;  %v476_v63 = vadd.f32 %v474_v51, %v452_v44  ;;  %v482_v45 = vadd.f32 %v480_v10, %v458_v28  ;;  %v463_v17 = vadd.f32 %v461_v29, %v439_v42 }
 0x117   : > { %v469_v9 = vadd.f32 %v467_v39, %v445_v11  ;;  %v475_v32 = vadd.f32 %v473_v40, %v451_v21  ;;  %v481_v37 = vadd.f32 %v479_v22, %v457_v27  ;;  %v488_v43 = vadd.f32 %v5001_v46, %v464_v26  ;;  %v382_v21 = vpop.permute.xlu1 %381  ;;  %v380_v27 = vpop.permute.xlu0 %379 }
 0x118   : > { %v494_v12 = vadd.f32 %v5004_v47, %v470_v19  ;;  %v500_v16 = vadd.f32 %v5007_v48, %v476_v63  ;;  %v506_v30 = vadd.f32 %v5014_v49, %v482_v45  ;;  %v10045_v15 = vstv %s10041_s11  ;;  %s10073_s11 = sld [smem:[#allocation55_spill]] }
 0x119   : > { %v510_v55 = vmul.f32 %v10045_v15, %v376_v14  ;;  %v10046_v51 = vstv %s10042_s28  ;;  %v10047_v25 = vstv %s10043_s16  ;;  %v10048_v11 = vstv %s10044_s18  ;;  %s10074_s28 = sld [smem:[#allocation56_spill]]  ;;  %s10075_s16 = sld [smem:[#allocation57_spill]] }
 0x11a   : > { %v516_v10 = vmul.f32 %v10046_v51, %v376_v14  ;;  %v522_v42 = vmul.f32 %v10047_v25, %v376_v14  ;;  %v528_v22 = vmul.f32 %v10048_v11, %v376_v14  ;;  %v487_v46 = vadd.f32 %v5025_v54, %v463_v17  ;;  %s10076_s18 = sld [smem:[#allocation58_spill]] }
 0x11b   : > { %v493_v47 = vadd.f32 %v5038_v57, %v469_v9  ;;  %v499_v48 = vadd.f32 %v5041_v58, %v475_v32  ;;  %v505_v49 = vadd.f32 %v5044_v59, %v481_v37  ;;  %v512_v35 = vadd.f32 %v510_v55, %v488_v43 }
 0x11c   : > { %v518_v44 = vadd.f32 %v516_v10, %v494_v12  ;;  %v524_v28 = vadd.f32 %v522_v42, %v500_v16  ;;  %v530_v36 = vadd.f32 %v528_v22, %v506_v30  ;;  %v10053_v29 = vmov %v10045_v15  ;;  %v386_v12 = vpop.permute.xlu1 %385  ;;  %v384_v16 = vpop.permute.xlu0 %383 }
 0x11d   : > { %v509_v23 = vmul.f32 %v10053_v29, %v374_v50  ;;  %v10054_v39 = vmov %v10046_v51  ;;  %v10055_v40 = vmov %v10047_v25  ;;  %v10056_v13 = vmov %v10048_v11 }
 0x11e   : > { %v515_v31 = vmul.f32 %v10054_v39, %v374_v50  ;;  %v521_v54 = vmul.f32 %v10055_v40, %v374_v50  ;;  %v527_v57 = vmul.f32 %v10056_v13, %v374_v50  ;;  %v10057_v26 = vstv %s10049_s0  ;;  %s10085_s0 = sld [smem:[#allocation59_spill]] }
 0x11f   : > { %v534_v58 = vmul.f32 %v10057_v26, %v382_v21  ;;  %v10058_v19 = vstv %s10050_s14  ;;  %v10059_v63 = vstv %s10051_s23  ;;  %v10060_v14 = vstv %s10052_s2  ;;  %s10087_s14 = sld [smem:[#allocation60_spill]]  ;;  %s10089_s23 = sld [smem:[#allocation61_spill]] }
 0x120   : > { %v540_v59 = vmul.f32 %v10058_v19, %v382_v21  ;;  %v546_v45 = vmul.f32 %v10059_v63, %v382_v21  ;;  %v552_v17 = vmul.f32 %v10060_v14, %v382_v21  ;;  %v511_v9 = vadd.f32 %v509_v23, %v487_v46  ;;  %v609_v23 = vpop.permute.xlu1 %608  ;;  %v607_v39 = vpop.permute.xlu0 %606  ;;  %s10091_s2 = sld [smem:[#allocation62_spill]] }
 0x121   : > { %v517_v32 = vadd.f32 %v515_v31, %v493_v47  ;;  %v523_v37 = vadd.f32 %v521_v54, %v499_v48  ;;  %v529_v43 = vadd.f32 %v527_v57, %v505_v49  ;;  %v536_v30 = vadd.f32 %v534_v58, %v512_v35 }
 0x122   : > { %v542_v15 = vadd.f32 %v540_v59, %v518_v44  ;;  %v548_v50 = vadd.f32 %v546_v45, %v524_v28  ;;  %v554_v55 = vadd.f32 %v552_v17, %v530_v36  ;;  %v10062_v51 = vmov %v10057_v26 }
 0x123   : > { %v533_v10 = vmul.f32 %v10062_v51, %v380_v27  ;;  %v10064_v25 = vmov %v10058_v19  ;;  %v10066_v11 = vmov %v10059_v63  ;;  %v10068_v46 = vmov %v10060_v14 }
 0x124   : > { %v539_v42 = vmul.f32 %v10064_v25, %v380_v27  ;;  %v545_v22 = vmul.f32 %v10066_v11, %v380_v27  ;;  %v551_v47 = vmul.f32 %v10068_v46, %v380_v27  ;;  %v560_v48 = vadd.f32 %v5061_v2, %v536_v30  ;;  %v611_v30 = vpop.permute.xlu0 %610 }
 0x125   : > { %v566_v49 = vadd.f32 %v5064_v3, %v542_v15  ;;  %v572_v21 = vadd.f32 %v5077_v20, %v548_v50  ;;  %v578_v35 = vadd.f32 %v5091_v34, %v554_v55  ;;  %v535_v44 = vadd.f32 %v533_v10, %v511_v9 }
 0x126   : > { %v541_v28 = vadd.f32 %v539_v42, %v517_v32  ;;  %v547_v36 = vadd.f32 %v545_v22, %v523_v37  ;;  %v553_v29 = vadd.f32 %v551_v47, %v529_v43  ;;  %v10069_v31 = vstv %s10061_s25  ;;  %s10097_s25 = sld [smem:[#allocation63_spill]] }
 0x127   : > { %v582_v27 = vmul.f32 %v10069_v31, %v386_v12  ;;  %v10070_v40 = vstv %s10063_s19  ;;  %v10071_v54 = vstv %s10065_s20  ;;  %v10072_v13 = vstv %s10067_s30  ;;  %s10098_s19 = sld [smem:[#allocation64_spill]]  ;;  %s10099_s20 = sld [smem:[#allocation65_spill]] }
 0x128   : > { %v588_v2 = vmul.f32 %v10070_v40, %v386_v12  ;;  %v594_v3 = vmul.f32 %v10071_v54, %v386_v12  ;;  %v600_v20 = vmul.f32 %v10072_v13, %v386_v12  ;;  %v559_v34 = vadd.f32 %v5067_v18, %v535_v44  ;;  %s10100_s30 = sld [smem:[#allocation66_spill]] }
 0x129   : > { %v565_v57 = vadd.f32 %v5094_v38, %v541_v28  ;;  %v571_v26 = vadd.f32 %v5107_v1, %v547_v36  ;;  %v577_v58 = vadd.f32 %v5116_v56, %v553_v29  ;;  %v584_v19 = vadd.f32 %v582_v27, %v560_v48  ;;  %v613_v38 = vpop.permute.xlu1 %612 }
 0x12a   : > { %v590_v59 = vadd.f32 %v588_v2, %v566_v49  ;;  %v596_v63 = vadd.f32 %v594_v3, %v572_v21  ;;  %v602_v45 = vadd.f32 %v600_v20, %v578_v35  ;;  %v10077_v14 = vmov %v10069_v31 }
 0x12b   : > { %v581_v17 = vmul.f32 %v10077_v14, %v384_v16  ;;  %v10078_v9 = vmov %v10070_v40  ;;  %v10079_v37 = vmov %v10071_v54  ;;  %v10080_v12 = vmov %v10072_v13  ;;  %v617_v40 = vpop.permute.xlu0 %616 }
 0x12c   : > { %v587_v32 = vmul.f32 %v10078_v9, %v384_v16  ;;  %v593_v43 = vmul.f32 %v10079_v37, %v384_v16  ;;  %v599_v18 = vmul.f32 %v10080_v12, %v384_v16  ;;  %v10081_v1 = vstv %s10073_s11  ;;  %s10109_s11 = sld [smem:[#allocation68_spill]] }
 0x12d   : > { %v637_v56 = vmul.f32 %v10081_v1, %v609_v23  ;;  %v10082_v15 = vstv %s10074_s28  ;;  %v10083_v55 = vstv %s10075_s16  ;;  %v10084_v10 = vstv %s10076_s18  ;;  %v619_v27 = vpop.permute.xlu1 %618  ;;  %s10111_s28 = sld [smem:[#allocation69_spill]]  ;;  %s10113_s16 = sld [smem:[#allocation50_spill]] }
 0x12e   : > { %v643_v50 = vmul.f32 %v10082_v15, %v609_v23  ;;  %v649_v51 = vmul.f32 %v10083_v55, %v609_v23  ;;  %v655_v25 = vmul.f32 %v10084_v10, %v609_v23  ;;  %v583_v42 = vadd.f32 %v581_v17, %v559_v34  ;;  %s10115_s18 = sld [smem:[#allocation70_spill]] }
 0x12f   : > { %v589_v11 = vadd.f32 %v587_v32, %v565_v57  ;;  %v595_v22 = vadd.f32 %v593_v43, %v571_v26  ;;  %v601_v46 = vadd.f32 %v599_v18, %v577_v58  ;;  %v639_v47 = vadd.f32 %v637_v56, %v584_v19  ;;  %v621_v32 = vpop.permute.xlu0 %620 }
 0x130   : > { %v645_v48 = vadd.f32 %v643_v50, %v590_v59  ;;  %v651_v16 = vadd.f32 %v649_v51, %v596_v63  ;;  %v657_v49 = vadd.f32 %v655_v25, %v602_v45  ;;  %v10086_v21 = vmov %v10081_v1 }
 0x131   : > { %v636_v35 = vmul.f32 %v10086_v21, %v607_v39  ;;  %v10088_v44 = vmov %v10082_v15  ;;  %v10090_v36 = vmov %v10083_v55  ;;  %v10092_v31 = vmov %v10084_v10  ;;  %v623_v9 = vpop.permute.xlu1 %622 }
 0x132   : > { %v642_v28 = vmul.f32 %v10088_v44, %v607_v39  ;;  %v648_v29 = vmul.f32 %v10090_v36, %v607_v39  ;;  %v654_v23 = vmul.f32 %v10092_v31, %v607_v39  ;;  %v663_v2 = vadd.f32 %v5127_v24, %v639_v47 }
 0x133   : > { %v669_v54 = vadd.f32 %v5130_v52, %v645_v48  ;;  %v675_v3 = vadd.f32 %v5144_v0, %v651_v16  ;;  %v681_v13 = vadd.f32 %v5147_v60, %v657_v49  ;;  %v638_v20 = vadd.f32 %v636_v35, %v583_v42  ;;  %v627_v21 = vpop.permute.xlu0 %626 }
 0x134   : > { %v644_v34 = vadd.f32 %v642_v28, %v589_v11  ;;  %v650_v57 = vadd.f32 %v648_v29, %v595_v22  ;;  %v656_v26 = vadd.f32 %v654_v23, %v601_v46  ;;  %v10093_v58 = vstv %s10085_s0  ;;  %s10120_s0 = sld [smem:[#allocation71_spill]] }
 0x135   : > { %v685_v19 = vmul.f32 %v10093_v58, %v613_v38  ;;  %v10094_v59 = vstv %s10087_s14  ;;  %v10095_v63 = vstv %s10089_s23  ;;  %v10096_v45 = vstv %s10091_s2  ;;  %v629_v49 = vpop.permute.xlu1 %628  ;;  %s10122_s14 = sld [smem:[#allocation72_spill]]  ;;  %s10123_s23 = sld [smem:[#allocation73_spill]] }
 0x136   : > { %v691_v39 = vmul.f32 %v10094_v59, %v613_v38  ;;  %v697_v24 = vmul.f32 %v10095_v63, %v613_v38  ;;  %v703_v52 = vmul.f32 %v10096_v45, %v613_v38  ;;  %v662_v60 = vadd.f32 %v5133_v5, %v638_v20  ;;  %s10124_s2 = sld [smem:[#allocation74_spill]] }
 0x137   : > { %v668_v0 = vadd.f32 %v5157_v62, %v644_v34  ;;  %v674_v14 = vadd.f32 %v5167_v53, %v650_v57  ;;  %v680_v17 = vadd.f32 %v5176_v33, %v656_v26  ;;  %v687_v37 = vadd.f32 %v685_v19, %v663_v2 }
 0x138   : > { %v693_v43 = vadd.f32 %v691_v39, %v669_v54  ;;  %v699_v12 = vadd.f32 %v697_v24, %v675_v3  ;;  %v705_v18 = vadd.f32 %v703_v52, %v681_v13  ;;  %v10101_v1 = vmov %v10093_v58 }
 0x139   : > { %v684_v56 = vmul.f32 %v10101_v1, %v611_v30  ;;  %v10102_v38 = vmov %v10094_v59  ;;  %v10103_v50 = vmov %v10095_v63  ;;  %v10104_v55 = vmov %v10096_v45  ;;  %v633_v39 = vpop.permute.xlu1 %632  ;;  %v631_v63 = vpop.permute.xlu0 %630 }
 0x13a   : > { %v690_v15 = vmul.f32 %v10102_v38, %v611_v30  ;;  %v696_v5 = vmul.f32 %v10103_v50, %v611_v30  ;;  %v702_v62 = vmul.f32 %v10104_v55, %v611_v30  ;;  %v10105_v51 = vstv %s10097_s25  ;;  %s10135_s25 = sld [smem:[#allocation75_spill]] }
 0x13b   : > { %v709_v53 = vmul.f32 %v10105_v51, %v619_v27  ;;  %v10106_v10 = vstv %s10098_s19  ;;  %v10107_v25 = vstv %s10099_s20  ;;  %v10108_v11 = vstv %s10100_s30  ;;  %s10137_s19 = sld [smem:[#allocation76_spill]]  ;;  %s10139_s20 = sld [smem:[#allocation77_spill]] }
 0x13c   : > { %v715_v33 = vmul.f32 %v10106_v10, %v619_v27  ;;  %v721_v42 = vmul.f32 %v10107_v25, %v619_v27  ;;  %v727_v22 = vmul.f32 %v10108_v11, %v619_v27  ;;  %v686_v46 = vadd.f32 %v684_v56, %v662_v60  ;;  %s10150_s30 = sld [smem:[#allocation78_spill]] }
 0x13d   : > { %v692_v47 = vadd.f32 %v690_v15, %v668_v0  ;;  %v698_v48 = vadd.f32 %v696_v5, %v674_v14  ;;  %v704_v16 = vadd.f32 %v702_v62, %v680_v17  ;;  %v711_v35 = vadd.f32 %v709_v53, %v687_v37  ;;  %v10125_v14 = vld [vmem:[#allocation88_spill] sm:$0xff]  ;;  %v10126_v37 = vld [vmem:[#allocation89_spill] sm:$0xff] }
 0x13e   : > { %v717_v44 = vadd.f32 %v715_v33, %v693_v43  ;;  %v723_v30 = vadd.f32 %v721_v42, %v699_v12  ;;  %v729_v28 = vadd.f32 %v727_v22, %v705_v18  ;;  %v10110_v36 = vmov %v10105_v51  ;;  %v856_v51 = vpop.permute.xlu1 %855 }
 0x13f   : > { %v708_v29 = vmul.f32 %v10110_v36, %v617_v40  ;;  %v10112_v31 = vmov %v10106_v10  ;;  %v10114_v2 = vmov %v10107_v25  ;;  %v10116_v54 = vmov %v10108_v11 }
 0x140   : > { %v714_v23 = vmul.f32 %v10112_v31, %v617_v40  ;;  %v720_v27 = vmul.f32 %v10114_v2, %v617_v40  ;;  %v726_v3 = vmul.f32 %v10116_v54, %v617_v40  ;;  %v735_v13 = vadd.f32 %v5191_v7, %v711_v35 }
 0x141   : > { %v741_v20 = vadd.f32 %v5194_v4, %v717_v44  ;;  %v747_v34 = vadd.f32 %v5210_v61, %v723_v30  ;;  %v753_v57 = vadd.f32 %v5213_v6, %v729_v28  ;;  %v710_v26 = vadd.f32 %v708_v29, %v686_v46  ;;  %v854_v46 = vpop.permute.xlu0 %853 }
 0x142   : > { %v716_v58 = vadd.f32 %v714_v23, %v692_v47  ;;  %v722_v19 = vadd.f32 %v720_v27, %v698_v48  ;;  %v728_v59 = vadd.f32 %v726_v3, %v704_v16  ;;  %v10117_v24 = vstv %s10109_s11  ;;  %v860_v3 = vpop.permute.xlu1 %859  ;;  %s10151_s11 = sld [smem:[#allocation79_spill]] }
 0x143   : > { %v757_v40 = vmul.f32 %v10117_v24, %v623_v9  ;;  %v10118_v45 = vstv %s10111_s28  ;;  %v10119_v52 = vstv %s10113_s16  ;;  %v10121_v61 = vstv %s10115_s18  ;;  %s10153_s28 = sld [smem:[#allocation80_spill]]  ;;  %s10155_s16 = sld [smem:[#allocation81_spill]] }
 0x144   : > { %v763_v7 = vmul.f32 %v10118_v45, %v623_v9  ;;  %v769_v4 = vmul.f32 %v10119_v52, %v623_v9  ;;  %v775_v6 = vmul.f32 %v10121_v61, %v623_v9  ;;  %v734_v60 = vadd.f32 %v5197_v41, %v710_v26  ;;  %v10144_v26 = vld [vmem:[#allocation93_spill] sm:$0xff]  ;;  %s10168_s18 = sld [smem:[#allocation82_spill]] }
 0x145   : > { %v740_v0 = vadd.f32 %v5231_v8, %v716_v58  ;;  %v746_v17 = vadd.f32 %v10125_v14, %v722_v19  ;;  %v752_v43 = vadd.f32 %v10126_v37, %v728_v59  ;;  %v759_v12 = vadd.f32 %v757_v40, %v735_v13  ;;  %v10142_v13 = vld [vmem:[#allocation91_spill] sm:$0xff]  ;;  %v10145_v19 = vld [vmem:[#allocation96_spill] sm:$0xff] }
 0x146   : > { %v765_v18 = vadd.f32 %v763_v7, %v741_v20  ;;  %v771_v1 = vadd.f32 %v769_v4, %v747_v34  ;;  %v777_v56 = vadd.f32 %v775_v6, %v753_v57  ;;  %v10127_v38 = vmov %v10117_v24  ;;  %v10143_v34 = vld [vmem:[#allocation92_spill] sm:$0xff]  ;;  %v10152_v37 = vld [vmem:[#allocation99_spill] sm:$0xff] }
 0x147   : > { %v756_v15 = vmul.f32 %v10127_v38, %v621_v32  ;;  %v10128_v50 = vmov %v10118_v45  ;;  %v10129_v55 = vmov %v10119_v52  ;;  %v10130_v62 = vmov %v10121_v61  ;;  %v10157_v38 = vld [vmem:[#allocation104_spill] sm:$0xff] }
 0x148   : > { %v762_v5 = vmul.f32 %v10128_v50, %v621_v32  ;;  %v768_v9 = vmul.f32 %v10129_v55, %v621_v32  ;;  %v774_v41 = vmul.f32 %v10130_v62, %v621_v32  ;;  %v10131_v8 = vstv %s10120_s0  ;;  %s10170_s0 = sld [smem:[#allocation83_spill]] }
 0x149   : > { %v781_v53 = vmul.f32 %v10131_v8, %v629_v49  ;;  %v10132_v10 = vstv %s10122_s14  ;;  %v10133_v25 = vstv %s10123_s23  ;;  %v10134_v11 = vstv %s10124_s2  ;;  %s10182_s14 = sld [smem:[#allocation86_spill]]  ;;  %s10184_s23 = sld [smem:[#allocation87_spill]] }
 0x14a   : > { %v787_v33 = vmul.f32 %v10132_v10, %v629_v49  ;;  %v793_v42 = vmul.f32 %v10133_v25, %v629_v49  ;;  %v799_v22 = vmul.f32 %v10134_v11, %v629_v49  ;;  %v758_v47 = vadd.f32 %v756_v15, %v734_v60  ;;  %s10197_s2 = sld [smem:[#allocation94_spill]] }
 0x14b   : > { %v764_v48 = vadd.f32 %v762_v5, %v740_v0  ;;  %v770_v16 = vadd.f32 %v768_v9, %v746_v17  ;;  %v776_v35 = vadd.f32 %v774_v41, %v752_v43  ;;  %v783_v44 = vadd.f32 %v781_v53, %v759_v12  ;;  %v858_v17 = vpop.permute.xlu0 %857  ;;  %v10154_v12 = vld [vmem:[#allocation102_spill] sm:$0xff] }
 0x14c   : > { %v789_v30 = vadd.f32 %v787_v33, %v765_v18  ;;  %v795_v32 = vadd.f32 %v793_v42, %v771_v1  ;;  %v801_v28 = vadd.f32 %v799_v22, %v777_v56  ;;  %v10136_v36 = vmov %v10131_v8  ;;  %v10156_v1 = vld [vmem:[#allocation103_spill] sm:$0xff]  ;;  %v866_v42 = vpop.permute.xlu1 %865 }
 0x14d   : > { %v780_v29 = vmul.f32 %v10136_v36, %v627_v21  ;;  %v10138_v31 = vmov %v10132_v10  ;;  %v10140_v2 = vmov %v10133_v25  ;;  %v10141_v49 = vmov %v10134_v11 }
 0x14e   : > { %v786_v23 = vmul.f32 %v10138_v31, %v627_v21  ;;  %v792_v27 = vmul.f32 %v10140_v2, %v627_v21  ;;  %v798_v54 = vmul.f32 %v10141_v49, %v627_v21  ;;  %v807_v20 = vadd.f32 %v10142_v13, %v783_v44 }
 0x14f   : > { %v813_v57 = vadd.f32 %v10143_v34, %v789_v30  ;;  %v819_v58 = vadd.f32 %v10144_v26, %v795_v32  ;;  %v825_v59 = vadd.f32 %v10145_v19, %v801_v28  ;;  %v782_v24 = vadd.f32 %v780_v29, %v758_v47 }
 0x150   : > { %v788_v40 = vadd.f32 %v786_v23, %v764_v48  ;;  %v794_v45 = vadd.f32 %v792_v27, %v770_v16  ;;  %v800_v7 = vadd.f32 %v798_v54, %v776_v35  ;;  %v10146_v52 = vstv %s5098_s6  ;;  %s10166_s6 = sld [smem:[#allocation67_spill]]  ;;  %v864_v27 = vpop.permute.xlu0 %863 }
 0x151   : > { %v829_v4 = vmul.f32 %v10146_v52, %v633_v39  ;;  %v10147_v61 = vstv %s10135_s25  ;;  %v10148_v6 = vstv %s10137_s19  ;;  %v10149_v0 = vstv %s10139_s20  ;;  %s10199_s25 = sld [smem:[#allocation95_spill]]  ;;  %s10213_s19 = sld [smem:[#allocation100_spill]] }
 0x152   : > { %v835_v21 = vmul.f32 %v10147_v61, %v633_v39  ;;  %v841_v60 = vmul.f32 %v10148_v6, %v633_v39  ;;  %v847_v14 = vmul.f32 %v10149_v0, %v633_v39  ;;  %v806_v43 = vadd.f32 %v10152_v37, %v782_v24  ;;  %s10215_s20 = sld [smem:[#allocation101_spill]] }
 0x153   : > { %v812_v18 = vadd.f32 %v10154_v12, %v788_v40  ;;  %v818_v56 = vadd.f32 %v10156_v1, %v794_v45  ;;  %v824_v15 = vadd.f32 %v10157_v38, %v800_v7  ;;  %v831_v50 = vadd.f32 %v829_v4, %v807_v20  ;;  %v10175_v40 = vld [vmem:[#allocation107_spill] sm:$0xff]  ;;  %v10176_v7 = vld [vmem:[#allocation110_spill] sm:$0xff] }
 0x154   : > { %v837_v5 = vadd.f32 %v835_v21, %v813_v57  ;;  %v843_v55 = vadd.f32 %v841_v60, %v819_v58  ;;  %v849_v9 = vadd.f32 %v847_v14, %v825_v59  ;;  %v10158_v62 = vmov %v10146_v52  ;;  %v10173_v58 = vld [vmem:[#allocation105_spill] sm:$0xff]  ;;  %v10174_v59 = vld [vmem:[#allocation106_spill] sm:$0xff]  ;;  %v870_v60 = vpop.permute.xlu1 %869 }
 0x155   : > { %v828_v41 = vmul.f32 %v10158_v62, %v631_v63  ;;  %v10159_v8 = vmov %v10147_v61  ;;  %v10160_v53 = vmov %v10148_v6  ;;  %v10161_v33 = vmov %v10149_v0 }
 0x156   : > { %v834_v39 = vmul.f32 %v10159_v8, %v631_v63  ;;  %v840_v10 = vmul.f32 %v10160_v53, %v631_v63  ;;  %v846_v25 = vmul.f32 %v10161_v33, %v631_v63  ;;  %v10162_v11 = vstv %s10150_s30  ;;  %s10229_s30 = sld [smem:[#allocation109_spill]] }
 0x157   : > { %v884_v22 = vmul.f32 %v10162_v11, %v856_v51  ;;  %v10163_v47 = vstv %s10151_s11  ;;  %v10164_v16 = vstv %s10153_s28  ;;  %v10165_v44 = vstv %s10155_s16  ;;  %s10240_s11 = sld [smem:[#allocation84_spill]]  ;;  %s10241_s28 = sld [smem:[#allocation85_spill]] }
 0x158   : > { %v890_v48 = vmul.f32 %v10163_v47, %v856_v51  ;;  %v896_v35 = vmul.f32 %v10164_v16, %v856_v51  ;;  %v902_v30 = vmul.f32 %v10165_v44, %v856_v51  ;;  %v830_v32 = vadd.f32 %v828_v41, %v806_v43  ;;  %s10243_s16 = sld [smem:[#allocation114_spill]] }
 0x159   : > { %v836_v28 = vadd.f32 %v834_v39, %v812_v18  ;;  %v842_v36 = vadd.f32 %v840_v10, %v818_v56  ;;  %v848_v29 = vadd.f32 %v846_v25, %v824_v15  ;;  %v886_v31 = vadd.f32 %v884_v22, %v831_v50  ;;  %v10181_v56 = vld [vmem:[#allocation111_spill] sm:$0xff]  ;;  %v10183_v15 = vld [vmem:[#allocation112_spill] sm:$0xff]  ;;  %v868_v10 = vpop.permute.xlu0 %867 }
 0x15a   : > { %v892_v23 = vadd.f32 %v890_v48, %v837_v5  ;;  %v898_v2 = vadd.f32 %v896_v35, %v843_v55  ;;  %v904_v63 = vadd.f32 %v902_v30, %v849_v9  ;;  %v10167_v49 = vmov %v10162_v11  ;;  %v10185_v5 = vld [vmem:[#allocation113_spill] sm:$0xff]  ;;  %v10186_v9 = vld [vmem:[#allocation115_spill] sm:$0xff] }
 0x15b   : > { %v883_v54 = vmul.f32 %v10167_v49, %v854_v46  ;;  %v10169_v13 = vmov %v10163_v47  ;;  %v10171_v34 = vmov %v10164_v16  ;;  %v10172_v51 = vmov %v10165_v44 }
 0x15c   : > { %v889_v20 = vmul.f32 %v10169_v13, %v854_v46  ;;  %v895_v57 = vmul.f32 %v10171_v34, %v854_v46  ;;  %v901_v26 = vmul.f32 %v10172_v51, %v854_v46  ;;  %v910_v19 = vadd.f32 %v10173_v58, %v886_v31 }
 0x15d   : > { %v916_v24 = vadd.f32 %v10174_v59, %v892_v23  ;;  %v922_v45 = vadd.f32 %v10175_v40, %v898_v2  ;;  %v928_v52 = vadd.f32 %v10176_v7, %v904_v63  ;;  %v885_v4 = vadd.f32 %v883_v54, %v830_v32  ;;  %v876_v54 = vpop.permute.xlu1 %875  ;;  %v10202_v40 = vld [vmem:[#allocation116_spill] sm:$0xff]  ;;  %v10203_v7 = vld [vmem:[#allocation117_spill] sm:$0xff] }
 0x15e   : > { %v891_v61 = vadd.f32 %v889_v20, %v836_v28  ;;  %v897_v21 = vadd.f32 %v895_v57, %v842_v36  ;;  %v903_v6 = vadd.f32 %v901_v26, %v848_v29  ;;  %v10177_v0 = vstv %s5171_s15  ;;  %s10195_s15 = sld [smem:[#allocation90_spill]] }
 0x15f   : > { %v932_v14 = vmul.f32 %v10177_v0, %v860_v3  ;;  %v10178_v37 = vstv %s10166_s6  ;;  %v10179_v43 = vstv %s10168_s18  ;;  %v10180_v18 = vstv %s10170_s0  ;;  %s10245_s6 = sld [smem:[#allocation118_spill]]  ;;  %s10271_s18 = sld [smem:[#allocation131_spill]] }
 0x160   : > { %v938_v46 = vmul.f32 %v10178_v37, %v860_v3  ;;  %v944_v12 = vmul.f32 %v10179_v43, %v860_v3  ;;  %v950_v1 = vmul.f32 %v10180_v18, %v860_v3  ;;  %v909_v38 = vadd.f32 %v10181_v56, %v885_v4  ;;  %v10204_v4 = vld [vmem:[#allocation119_spill] sm:$0xff]  ;;  %s10273_s0 = sld [smem:[#allocation132_spill]] }
 0x161   : > { %v915_v50 = vadd.f32 %v10183_v15, %v891_v61  ;;  %v921_v55 = vadd.f32 %v10185_v5, %v897_v21  ;;  %v927_v62 = vadd.f32 %v10186_v9, %v903_v6  ;;  %v934_v41 = vadd.f32 %v932_v14, %v910_v19  ;;  %v10205_v21 = vld [vmem:[#allocation120_spill] sm:$0xff]  ;;  %v10212_v5 = vld [vmem:[#allocation122_spill] sm:$0xff]  ;;  %v10214_v9 = vld [vmem:[#allocation123_spill] sm:$0xff] }
 0x162   : > { %v940_v8 = vadd.f32 %v938_v46, %v916_v24  ;;  %v946_v39 = vadd.f32 %v944_v12, %v922_v45  ;;  %v952_v53 = vadd.f32 %v950_v1, %v928_v52  ;;  %v10187_v33 = vmov %v10177_v0  ;;  %v874_v0 = vpop.permute.xlu0 %873 }
 0x163   : > { %v931_v25 = vmul.f32 %v10187_v33, %v858_v17  ;;  %v10188_v11 = vmov %v10178_v37  ;;  %v10189_v3 = vmov %v10179_v43  ;;  %v10190_v48 = vmov %v10180_v18  ;;  %v880_v33 = vpop.permute.xlu1 %879 }
 0x164   : > { %v937_v22 = vmul.f32 %v10188_v11, %v858_v17  ;;  %v943_v47 = vmul.f32 %v10189_v3, %v858_v17  ;;  %v949_v16 = vmul.f32 %v10190_v48, %v858_v17  ;;  %v10191_v35 = vstv %s9941_s24  ;;  %s10211_s24 = sld [smem:[#allocation98_spill]] }
 0x165   : > { %v956_v44 = vmul.f32 %v10191_v35, %v866_v42  ;;  %v10192_v30 = vstv %s9942_s1  ;;  %v10193_v28 = vstv %s10182_s14  ;;  %v10194_v29 = vstv %s10184_s23  ;;  %s10209_s1 = sld [smem:[#allocation97_spill]]  ;;  %s6185_s14 = sld [smem:[#allocation8 + $0x62]] }
 0x166   : > { %v962_v32 = vmul.f32 %v10192_v30, %v866_v42  ;;  %v968_v36 = vmul.f32 %v10193_v28, %v866_v42  ;;  %v974_v31 = vmul.f32 %v10194_v29, %v866_v42  ;;  %v933_v23 = vadd.f32 %v931_v25, %v909_v38  ;;  %s6187_s23 = sld [smem:[#allocation8 + $0x63]] }
 0x167   : > { %v939_v2 = vadd.f32 %v937_v22, %v915_v50  ;;  %v945_v63 = vadd.f32 %v943_v47, %v921_v55  ;;  %v951_v49 = vadd.f32 %v949_v16, %v927_v62  ;;  %v958_v13 = vadd.f32 %v956_v44, %v934_v41  ;;  %v10216_v41 = vld [vmem:[#allocation124_spill] sm:$0xff] }
 0x168   : > { %v964_v20 = vadd.f32 %v962_v32, %v940_v8  ;;  %v970_v34 = vadd.f32 %v968_v36, %v946_v39  ;;  %v976_v17 = vadd.f32 %v974_v31, %v952_v53  ;;  %v10196_v57 = vmov %v10191_v35  ;;  %v10217_v39 = vld [vmem:[#allocation125_spill] sm:$0xff] }
 0x169   : > { %v955_v51 = vmul.f32 %v10196_v57, %v864_v27  ;;  %v10198_v26 = vmov %v10192_v30  ;;  %v10200_v19 = vmov %v10193_v28  ;;  %v10201_v42 = vmov %v10194_v29 }
 0x16a   : > { %v961_v58 = vmul.f32 %v10198_v26, %v864_v27  ;;  %v967_v59 = vmul.f32 %v10200_v19, %v864_v27  ;;  %v973_v24 = vmul.f32 %v10201_v42, %v864_v27  ;;  %v982_v45 = vadd.f32 %v10202_v40, %v958_v13  ;;  %v878_v13 = vpop.permute.xlu0 %877 }
 0x16b   : > { %v988_v52 = vadd.f32 %v10203_v7, %v964_v20  ;;  %v994_v61 = vadd.f32 %v10204_v4, %v970_v34  ;;  %v1000_v6 = vadd.f32 %v10205_v21, %v976_v17  ;;  %v957_v14 = vadd.f32 %v955_v51, %v933_v23  ;;  %v10232_v4 = vld [vmem:[#allocation126_spill] sm:$0xff]  ;;  %v10233_v21 = vld [vmem:[#allocation127_spill] sm:$0xff] }
 0x16c   : > { %v963_v37 = vadd.f32 %v961_v58, %v939_v2  ;;  %v969_v46 = vadd.f32 %v967_v59, %v945_v63  ;;  %v975_v43 = vadd.f32 %v973_v24, %v951_v49  ;;  %v10206_v12 = vstv %s10195_s15  ;;  %s6189_s15 = sld [smem:[#allocation8 + $0x64]] }
 0x16d   : > { %v1004_v18 = vmul.f32 %v10206_v12, %v870_v60  ;;  %v10207_v1 = vstv %s5253_s4  ;;  %v10208_v56 = vstv %s10197_s2  ;;  %v10210_v15 = vstv %s10199_s25  ;;  %s10227_s4 = sld [smem:[#allocation108_spill]]  ;;  %s6191_s2 = sld [smem:[#allocation8 + $0x65]] }
 0x16e   : > { %v1010_v27 = vmul.f32 %v10207_v1, %v870_v60  ;;  %v1016_v38 = vmul.f32 %v10208_v56, %v870_v60  ;;  %v1022_v50 = vmul.f32 %v10210_v15, %v870_v60  ;;  %v981_v55 = vadd.f32 %v10212_v5, %v957_v14  ;;  %v10234_v14 = vld [vmem:[#allocation128_spill] sm:$0xff]  ;;  %s6197_s25 = sld [smem:[#allocation8 + $0x18]] }
 0x16f   : > { %v987_v62 = vadd.f32 %v10214_v9, %v963_v37  ;;  %v993_v8 = vadd.f32 %v10216_v41, %v969_v46  ;;  %v999_v53 = vadd.f32 %v10217_v39, %v975_v43  ;;  %v1006_v25 = vadd.f32 %v1004_v18, %v982_v45  ;;  %v10235_v46 = vld [vmem:[#allocation130_spill] sm:$0xff]  ;;  %v10242_v41 = vld [vmem:[#allocation133_spill] sm:$0xff]  ;;  %v10244_v39 = vld [vmem:[#allocation134_spill] sm:$0xff] }
 0x170   : > { %v1012_v11 = vadd.f32 %v1010_v27, %v988_v52  ;;  %v1018_v22 = vadd.f32 %v1016_v38, %v994_v61  ;;  %v1024_v3 = vadd.f32 %v1022_v50, %v1000_v6  ;;  %v10218_v47 = vmov %v10206_v12  ;;  %v1103_v52 = vpop.permute.xlu1 %1102 }
 0x171   : > { %v1003_v48 = vmul.f32 %v10218_v47, %v868_v10  ;;  %v10219_v16 = vmov %v10207_v1  ;;  %v10220_v60 = vmov %v10208_v56  ;;  %v10221_v30 = vmov %v10210_v15 }
 0x172   : > { %v1009_v35 = vmul.f32 %v10219_v16, %v868_v10  ;;  %v1015_v44 = vmul.f32 %v10220_v60, %v868_v10  ;;  %v1021_v32 = vmul.f32 %v10221_v30, %v868_v10  ;;  %v10222_v28 = vstv %s10209_s1  ;;  %s6199_s1 = sld [smem:[#allocation8 + $0x19]] }
 0x173   : > { %v1028_v36 = vmul.f32 %v10222_v28, %v876_v54  ;;  %v10223_v29 = vstv %s10211_s24  ;;  %v10224_v23 = vstv %s10213_s19  ;;  %v10225_v63 = vstv %s10215_s20  ;;  %s6201_s24 = sld [smem:[#allocation8 + $0x1a]]  ;;  %s6203_s19 = sld [smem:[#allocation8 + $0x1b]] }
 0x174   : > { %v1034_v31 = vmul.f32 %v10223_v29, %v876_v54  ;;  %v1040_v2 = vmul.f32 %v10224_v23, %v876_v54  ;;  %v1046_v49 = vmul.f32 %v10225_v63, %v876_v54  ;;  %v1005_v20 = vadd.f32 %v1003_v48, %v981_v55  ;;  %s6205_s20 = sld [smem:[#allocation8 + $0x1c]] }
 0x175   : > { %v1011_v34 = vadd.f32 %v1009_v35, %v987_v62  ;;  %v1017_v17 = vadd.f32 %v1015_v44, %v993_v8  ;;  %v1023_v57 = vadd.f32 %v1021_v32, %v999_v53  ;;  %v1030_v51 = vadd.f32 %v1028_v36, %v1006_v25  ;;  %v1101_v62 = vpop.permute.xlu0 %1100  ;;  %v10246_v25 = vld [vmem:[#allocation135_spill] sm:$0xff] }
 0x176   : > { %v1036_v26 = vadd.f32 %v1034_v31, %v1012_v11  ;;  %v1042_v58 = vadd.f32 %v1040_v2, %v1018_v22  ;;  %v1048_v10 = vadd.f32 %v1046_v49, %v1024_v3  ;;  %v10226_v19 = vmov %v10222_v28  ;;  %v10247_v22 = vld [vmem:[#allocation136_spill] sm:$0xff]  ;;  %v1107_v31 = vpop.permute.xlu1 %1106 }
 0x177   : > { %v1027_v59 = vmul.f32 %v10226_v19, %v874_v0  ;;  %v10228_v42 = vmov %v10223_v29  ;;  %v10230_v40 = vmov %v10224_v23  ;;  %v10231_v54 = vmov %v10225_v63 }
 0x178   : > { %v1033_v24 = vmul.f32 %v10228_v42, %v874_v0  ;;  %v1039_v45 = vmul.f32 %v10230_v40, %v874_v0  ;;  %v1045_v7 = vmul.f32 %v10231_v54, %v874_v0  ;;  %v1054_v61 = vadd.f32 %v10232_v4, %v1030_v51 }
 0x179   : > { %v1060_v6 = vadd.f32 %v10233_v21, %v1036_v26  ;;  %v1066_v37 = vadd.f32 %v10234_v14, %v1042_v58  ;;  %v1072_v43 = vadd.f32 %v10235_v46, %v1048_v10  ;;  %v1029_v12 = vadd.f32 %v1027_v59, %v1005_v20 }
 0x17a   : > { %v1035_v18 = vadd.f32 %v1033_v24, %v1011_v34  ;;  %v1041_v1 = vadd.f32 %v1039_v45, %v1017_v17  ;;  %v1047_v27 = vadd.f32 %v1045_v7, %v1023_v57  ;;  %v10236_v56 = vstv %s5331_s13  ;;  %v1105_v24 = vpop.permute.xlu0 %1104  ;;  %s10258_s13 = sld [smem:[#allocation121_spill]] }
 0x17b   : > { %v1076_v38 = vmul.f32 %v10236_v56, %v880_v33  ;;  %v10237_v15 = vstv %s5333_s21  ;;  %v10238_v50 = vstv %s10227_s4  ;;  %v10239_v55 = vstv %s10229_s30  ;;  %s10269_s21 = sld [smem:[#allocation129_spill]]  ;;  %s6207_s4 = sld [smem:[#allocation8 + $0x1d]] }
 0x17c   : > { %v1082_v0 = vmul.f32 %v10237_v15, %v880_v33  ;;  %v1088_v5 = vmul.f32 %v10238_v50, %v880_v33  ;;  %v1094_v9 = vmul.f32 %v10239_v55, %v880_v33  ;;  %v1053_v8 = vadd.f32 %v10242_v41, %v1029_v12  ;;  %s6209_s30 = sld [smem:[#allocation8 + $0x1e]] }
 0x17d   : > { %v1059_v53 = vadd.f32 %v10244_v39, %v1035_v18  ;;  %v1065_v11 = vadd.f32 %v10246_v25, %v1041_v1  ;;  %v1071_v3 = vadd.f32 %v10247_v22, %v1047_v27  ;;  %v1078_v47 = vadd.f32 %v1076_v38, %v1054_v61  ;;  %v10264_v18 = vld [vmem:[#allocation140_spill] sm:$0xff] }
 0x17e   : > { %v1084_v48 = vadd.f32 %v1082_v0, %v1060_v6  ;;  %v1090_v16 = vadd.f32 %v1088_v5, %v1066_v37  ;;  %v1096_v35 = vadd.f32 %v1094_v9, %v1072_v43  ;;  %v10248_v60 = vmov %v10236_v56  ;;  %v10261_v6 = vld [vmem:[#allocation137_spill] sm:$0xff]  ;;  %v10262_v37 = vld [vmem:[#allocation138_spill] sm:$0xff]  ;;  %v10263_v43 = vld [vmem:[#allocation139_spill] sm:$0xff]  ;;  %v1113_v0 = vpop.permute.xlu1 %1112 }
 0x17f   : > { %v1075_v44 = vmul.f32 %v10248_v60, %v878_v13  ;;  %v10249_v30 = vmov %v10237_v15  ;;  %v10250_v32 = vmov %v10238_v50  ;;  %v10251_v36 = vmov %v10239_v55 }
 0x180   : > { %v1081_v33 = vmul.f32 %v10249_v30, %v878_v13  ;;  %v1087_v28 = vmul.f32 %v10250_v32, %v878_v13  ;;  %v1093_v29 = vmul.f32 %v10251_v36, %v878_v13  ;;  %v10252_v23 = vstv %s10240_s11  ;;  %s6211_s11 = sld [smem:[#allocation8 + $0x1f]] }
 0x181   : > { %v1131_v2 = vmul.f32 %v10252_v23, %v1103_v52  ;;  %v10253_v63 = vstv %s10241_s28  ;;  %v10254_v20 = vstv %s10243_s16  ;;  %v10255_v17 = vstv %s10245_s6  ;;  %s6217_s28 = sld [smem:[#allocation8 + $0x20]]  ;;  %s6219_s16 = sld [smem:[#allocation8 + $0x21]] }
 0x182   : > { %v1137_v49 = vmul.f32 %v10253_v63, %v1103_v52  ;;  %v1143_v34 = vmul.f32 %v10254_v20, %v1103_v52  ;;  %v1149_v57 = vmul.f32 %v10255_v17, %v1103_v52  ;;  %v1077_v51 = vadd.f32 %v1075_v44, %v1053_v8  ;;  %s6221_s6 = sld [smem:[#allocation8 + $0x22]] }
 0x183   : > { %v1083_v26 = vadd.f32 %v1081_v33, %v1059_v53  ;;  %v1089_v58 = vadd.f32 %v1087_v28, %v1065_v11  ;;  %v1095_v10 = vadd.f32 %v1093_v29, %v1071_v3  ;;  %v1133_v19 = vadd.f32 %v1131_v2, %v1078_v47  ;;  %v10270_v53 = vld [vmem:[#allocation141_spill] sm:$0xff]  ;;  %v10272_v11 = vld [vmem:[#allocation142_spill] sm:$0xff]  ;;  %v10274_v3 = vld [vmem:[#allocation143_spill] sm:$0xff]  ;;  %v1111_v33 = vpop.permute.xlu0 %1110 }
 0x184   : > { %v1139_v59 = vadd.f32 %v1137_v49, %v1084_v48  ;;  %v1145_v42 = vadd.f32 %v1143_v34, %v1090_v16  ;;  %v1151_v13 = vadd.f32 %v1149_v57, %v1096_v35  ;;  %v10256_v40 = vmov %v10252_v23  ;;  %v10275_v48 = vld [vmem:[#allocation146_spill] sm:$0xff] }
 0x185   : > { %v1130_v45 = vmul.f32 %v10256_v40, %v1101_v62  ;;  %v10257_v54 = vmov %v10253_v63  ;;  %v10259_v4 = vmov %v10254_v20  ;;  %v10260_v52 = vmov %v10255_v17 }
 0x186   : > { %v1136_v7 = vmul.f32 %v10257_v54, %v1101_v62  ;;  %v1142_v61 = vmul.f32 %v10259_v4, %v1101_v62  ;;  %v1148_v21 = vmul.f32 %v10260_v52, %v1101_v62  ;;  %v1157_v14 = vadd.f32 %v10261_v6, %v1133_v19 }
 0x187   : > { %v1163_v46 = vadd.f32 %v10262_v37, %v1139_v59  ;;  %v1169_v12 = vadd.f32 %v10263_v43, %v1145_v42  ;;  %v1175_v1 = vadd.f32 %v10264_v18, %v1151_v13  ;;  %v1132_v27 = vadd.f32 %v1130_v45, %v1077_v51  ;;  %v1117_v13 = vpop.permute.xlu1 %1116  ;;  %10347 = sst [smem:[#allocation34_spill]] %s6217_s28 }
 0x188   : > { %v1138_v56 = vadd.f32 %v1136_v7, %v1083_v26  ;;  %v1144_v38 = vadd.f32 %v1142_v61, %v1089_v58  ;;  %v1150_v15 = vadd.f32 %v1148_v21, %v1095_v10  ;;  %v10265_v50 = vstv %s5405_s22  ;;  %s10326_s22 = sld [smem:[#allocation153_spill]]  ;;  %10348 = sst [smem:[#allocation35_spill]] %s6219_s16 }
 0x189   : > { %v1179_v5 = vmul.f32 %v10265_v50, %v1107_v31  ;;  %v10266_v55 = vstv %s5407_s12  ;;  %v10267_v62 = vstv %s5413_s26  ;;  %v10268_v8 = vstv %s10258_s13  ;;  %s10308_s26 = sld [smem:[#allocation144_spill]]  ;;  %s10314_s12 = sld [smem:[#allocation148_spill]] }
 0x18a   : > { %v1185_v9 = vmul.f32 %v10266_v55, %v1107_v31  ;;  %v1191_v41 = vmul.f32 %v10267_v62, %v1107_v31  ;;  %v1197_v39 = vmul.f32 %v10268_v8, %v1107_v31  ;;  %v1156_v25 = vadd.f32 %v10270_v53, %v1132_v27  ;;  %10349 = sst [smem:[#allocation36_spill]] %s6221_s6  ;;  %s6223_s13 = sld [smem:[#allocation8 + $0x23]] }
 0x18b   : > { %v1162_v22 = vadd.f32 %v10272_v11, %v1138_v56  ;;  %v1168_v47 = vadd.f32 %v10274_v3, %v1144_v38  ;;  %v1174_v16 = vadd.f32 %v10275_v48, %v1150_v15  ;;  %v1181_v35 = vadd.f32 %v1179_v5, %v1157_v14  ;;  %v10291_v56 = vld [vmem:[#allocation154_spill] sm:$0xff]  ;;  %v1115_v15 = vpop.permute.xlu0 %1114  ;;  %s6294_s6 = sld [smem:[#allocation8 + $0x35]]  ;;  %s6302_s16 = sld [smem:[#allocation8 + $0x48]] }
 0x18c   : > { %v1187_v60 = vadd.f32 %v1185_v9, %v1163_v46  ;;  %v1193_v44 = vadd.f32 %v1191_v41, %v1169_v12  ;;  %v1199_v30 = vadd.f32 %v1197_v39, %v1175_v1  ;;  %v10276_v32 = vmov %v10265_v50  ;;  %v10288_v46 = vld [vmem:[#allocation149_spill] sm:$0xff]  ;;  %v10289_v12 = vld [vmem:[#allocation150_spill] sm:$0xff]  ;;  %v10290_v1 = vld [vmem:[#allocation151_spill] sm:$0xff]  ;;  %s6304_s28 = sld [smem:[#allocation8 + $0x26]] }
 0x18d   : > { %v1178_v28 = vmul.f32 %v10276_v32, %v1105_v24  ;;  %v10277_v36 = vmov %v10266_v55  ;;  %v10278_v31 = vmov %v10267_v62  ;;  %v10279_v2 = vmov %v10268_v8 }
 0x18e   : > { %v1184_v29 = vmul.f32 %v10277_v36, %v1105_v24  ;;  %v1190_v23 = vmul.f32 %v10278_v31, %v1105_v24  ;;  %v1196_v63 = vmul.f32 %v10279_v2, %v1105_v24  ;;  %v10280_v49 = vstv %s5427_s27  ;;  %s10329_s27 = sld [smem:[#allocation156_spill]] }
 0x18f   : > { %v1203_v20 = vmul.f32 %v10280_v49, %v1113_v0  ;;  %v10281_v34 = vstv %s10269_s21  ;;  %v10282_v57 = vstv %s10271_s18  ;;  %v10283_v26 = vstv %s10273_s0  ;;  %s6225_s21 = sld [smem:[#allocation8 + $0xa8]]  ;;  %s6227_s18 = sld [smem:[#allocation8 + $0xa9]] }
 0x190   : > { %v1209_v17 = vmul.f32 %v10281_v34, %v1113_v0  ;;  %v1215_v51 = vmul.f32 %v10282_v57, %v1113_v0  ;;  %v1221_v58 = vmul.f32 %v10283_v26, %v1113_v0  ;;  %v1180_v10 = vadd.f32 %v1178_v28, %v1156_v25  ;;  %10350 = sst [smem:[#allocation37_spill]] %s6223_s13  ;;  %s6233_s0 = sld [smem:[#allocation8 + $0xaa]] }
 0x191   : > { %v1186_v19 = vadd.f32 %v1184_v29, %v1162_v22  ;;  %v1192_v59 = vadd.f32 %v1190_v23, %v1168_v47  ;;  %v1198_v42 = vadd.f32 %v1196_v63, %v1174_v16  ;;  %v1205_v40 = vadd.f32 %v1203_v20, %v1181_v35  ;;  %v10296_v22 = vld [vmem:[#allocation157_spill] sm:$0xff]  ;;  %v10297_v47 = vld [vmem:[#allocation158_spill] sm:$0xff]  ;;  %v10298_v16 = vld [vmem:[#allocation159_spill] sm:$0xff]  ;;  %s6291_s13 = sld [smem:[#allocation8 + $0x34]]  ;;  %10375 = sst [smem:[#allocation59_spill]] %s6294_s6 }
 0x192   : > { %v1211_v45 = vadd.f32 %v1209_v17, %v1187_v60  ;;  %v1217_v54 = vadd.f32 %v1215_v51, %v1193_v44  ;;  %v1223_v24 = vadd.f32 %v1221_v58, %v1199_v30  ;;  %v10284_v7 = vmov %v10280_v49  ;;  %v10299_v60 = vld [vmem:[#allocation160_spill] sm:$0xff]  ;;  %v1123_v30 = vpop.permute.xlu1 %1122  ;;  %10377 = sst [smem:[#allocation61_spill]] %s6302_s16  ;;  %s6420_s16 = sld [smem:[#allocation8 + $0x7a]] }
 0x193   : > { %v1202_v4 = vmul.f32 %v10284_v7, %v1111_v33  ;;  %v10285_v61 = vmov %v10281_v34  ;;  %v10286_v21 = vmov %v10282_v57  ;;  %v10287_v14 = vmov %v10283_v26  ;;  %10378 = sst [smem:[#allocation62_spill]] %s6304_s28  ;;  %s6322_s28 = sld [smem:[#allocation8 + $0x28]] }
 0x194   : > { %v1208_v52 = vmul.f32 %v10285_v61, %v1111_v33  ;;  %v1214_v6 = vmul.f32 %v10286_v21, %v1111_v33  ;;  %v1220_v37 = vmul.f32 %v10287_v14, %v1111_v33  ;;  %v1229_v43 = vadd.f32 %v10288_v46, %v1205_v40  ;;  %s6387_s6 = sld [smem:[#allocation8 + $0x79]] }
 0x195   : > { %v1235_v18 = vadd.f32 %v10289_v12, %v1211_v45  ;;  %v1241_v27 = vadd.f32 %v10290_v1, %v1217_v54  ;;  %v1247_v38 = vadd.f32 %v10291_v56, %v1223_v24  ;;  %v1204_v0 = vadd.f32 %v1202_v4, %v1180_v10  ;;  %10351 = sst [smem:[#allocation30_spill]] %s6225_s21  ;;  %s6279_s21 = sld [smem:[#allocation8 + $0x24]] }
 0x196   : > { %v1210_v50 = vadd.f32 %v1208_v52, %v1186_v19  ;;  %v1216_v5 = vadd.f32 %v1214_v6, %v1192_v59  ;;  %v1222_v55 = vadd.f32 %v1220_v37, %v1198_v42  ;;  %v10292_v9 = vstv %s5469_s8  ;;  %v1121_v42 = vpop.permute.xlu0 %1120  ;;  %s10312_s8 = sld [smem:[#allocation147_spill]]  ;;  %v1127_v1 = vpop.permute.xlu1 %1126  ;;  %10352 = sst [smem:[#allocation31_spill]] %s6227_s18 }
 0x197   : > { %v1251_v62 = vmul.f32 %v10292_v9, %v1117_v13  ;;  %v10293_v41 = vstv %s5471_s5  ;;  %v10294_v39 = vstv %s5483_s29  ;;  %v10295_v25 = vstv %s5485_s17  ;;  %s10310_s29 = sld [smem:[#allocation145_spill]]  ;;  %s10327_s5 = sld [smem:[#allocation155_spill]] }
 0x198   : > { %v1257_v8 = vmul.f32 %v10293_v41, %v1117_v13  ;;  %v1263_v53 = vmul.f32 %v10294_v39, %v1117_v13  ;;  %v1269_v11 = vmul.f32 %v10295_v25, %v1117_v13  ;;  %v1228_v3 = vadd.f32 %v10296_v22, %v1204_v0  ;;  %v10319_v0 = vld [vmem:[#allocation163_spill] sm:$0xff]  ;;  %s6181_s17 = sld [smem:[#allocation8 + $0x60]]  ;;  %10353 = sst [smem:[#allocation32_spill]] %s6233_s0 }
 0x199   : > { %v1234_v48 = vadd.f32 %v10297_v47, %v1210_v50  ;;  %v1240_v35 = vadd.f32 %v10298_v16, %v1216_v5  ;;  %v1246_v44 = vadd.f32 %v10299_v60, %v1222_v55  ;;  %v1253_v33 = vadd.f32 %v1251_v62, %v1229_v43  ;;  %v10320_v5 = vld [vmem:[#allocation165_spill] sm:$0xff]  ;;  %s6275_s0 = sld [smem:[#allocation8 + $0x5]]  ;;  %s6277_s18 = sld [smem:[#allocation8 + $0x30]] }
 0x19a   : > { %v1259_v32 = vadd.f32 %v1257_v8, %v1235_v18  ;;  %v1265_v28 = vadd.f32 %v1263_v53, %v1241_v27  ;;  %v1271_v36 = vadd.f32 %v1269_v11, %v1247_v38  ;;  %v10300_v29 = vmov %v10292_v9  ;;  %v10316_v18 = vld [vmem:[#allocation164_spill] sm:$0xff]  ;;  %v10317_v27 = vld [vmem:[#allocation161_spill] sm:$0xff]  ;;  %v10318_v38 = vld [vmem:[#allocation162_spill] sm:$0xff]  ;;  %v1125_v16 = vpop.permute.xlu0 %1124  ;;  %10374 = sst [smem:[#allocation58_spill]] %s6291_s13  ;;  %s6384_s13 = sld [smem:[#allocation8 + $0xb2]] }
 0x19b   : > { %v1250_v31 = vmul.f32 %v10300_v29, %v1115_v15  ;;  %v10301_v23 = vmov %v10293_v41  ;;  %v10302_v63 = vmov %v10294_v39  ;;  %v10303_v20 = vmov %v10295_v25  ;;  %10370 = sst [smem:[#allocation54_spill]] %s6279_s21  ;;  %s6296_s21 = sld [smem:[#allocation8 + $0x25]] }
 0x19c   : > { %v1256_v2 = vmul.f32 %v10301_v23, %v1115_v15  ;;  %v1262_v49 = vmul.f32 %v10302_v63, %v1115_v15  ;;  %v1268_v34 = vmul.f32 %v10303_v20, %v1115_v15  ;;  %v10304_v17 = vstv %s5507_s9  ;;  %s6183_s9 = sld [smem:[#allocation8 + $0x61]]  ;;  %10385 = sst [smem:[#allocation50_spill]] %s6387_s6 }
 0x19d   : > { %v1275_v57 = vmul.f32 %v10304_v17, %v1123_v30  ;;  %v10305_v51 = vstv %s5517_s3  ;;  %v10306_v58 = vstv %s5525_s10  ;;  %v10307_v19 = vstv %s5527_s7  ;;  %s10324_s10 = sld [smem:[#allocation152_spill]]  ;;  %s10345_s7 = smov 1  }
 0x19e   : > { %v1281_v26 = vmul.f32 %v10305_v51, %v1123_v30  ;;  %v1287_v10 = vmul.f32 %v10306_v58, %v1123_v30  ;;  %v1293_v59 = vmul.f32 %v10307_v19, %v1123_v30  ;;  %v1252_v13 = vadd.f32 %v1250_v31, %v1228_v3  ;;  %s10346_s3 = smov 127   ;;  %10386 = sst [smem:[#allocation70_spill]] %s6420_s16 }
 0x19f   : > { %v1258_v40 = vadd.f32 %v1256_v2, %v1234_v48  ;;  %v1264_v45 = vadd.f32 %v1262_v49, %v1240_v35  ;;  %v1270_v54 = vadd.f32 %v1268_v34, %v1246_v44  ;;  %v1277_v24 = vadd.f32 %v1275_v57, %v1253_v33  ;;  %v10328_v35 = vld [vmem:[#allocation166_spill] sm:$0xff]  ;;  %v10330_v44 = vld [vmem:[#allocation167_spill] sm:$0xff]  ;;  %v10331_v33 = vld [vmem:[#allocation168_spill] sm:$0xff]  ;;  %10368 = sst [smem:[#allocation52_spill]] %s6275_s0  ;;  %s10388_s0 = sld [smem:[#allocation34_spill]] }
 0x1a0   : > { %v1283_v7 = vadd.f32 %v1281_v26, %v1259_v32  ;;  %v1289_v4 = vadd.f32 %v1287_v10, %v1265_v28  ;;  %v1295_v61 = vadd.f32 %v1293_v59, %v1271_v36  ;;  %v10309_v52 = vmov %v10304_v17  ;;  %v10332_v28 = vld [vmem:[#allocation169_spill] sm:$0xff]  ;;  %10369 = sst [smem:[#allocation53_spill]] %s6277_s18  ;;  %s6369_s18 = sld [smem:[#allocation8 + $0x78]] }
 0x1a1   : > { %v1274_v21 = vmul.f32 %v10309_v52, %v1121_v42  ;;  %v10311_v6 = vmov %v10305_v51  ;;  %v10313_v37 = vmov %v10306_v58  ;;  %v10315_v43 = vmov %v10307_v19  ;;  %10376 = sst [smem:[#allocation60_spill]] %s6296_s21  ;;  %s6330_s21 = sld [smem:[#allocation8 + $0xae]] }
 0x1a2   : > { %v1280_v14 = vmul.f32 %v10311_v6, %v1121_v42  ;;  %v1286_v46 = vmul.f32 %v10313_v37, %v1121_v42  ;;  %v1292_v12 = vmul.f32 %v10315_v43, %v1121_v42  ;;  %vm356_vm0 = vcmp.ge.s32.totalorder %v10316_v18, 16  ;;  %s6571_s16 = sld [smem:[#allocation8 + $0x93]] }
 0x1a3   : > { %v1301_v56 = vadd.f32 %v10317_v27, %v1277_v24  ;;  %v1307_v15 = vadd.f32 %v10318_v38, %v1283_v7  ;;  %v1313_v50 = vadd.f32 %v10319_v0, %v1289_v4  ;;  %v1319_v55 = vadd.f32 %v10320_v5, %v1295_v61 }
 0x1a4   : > { %v1276_v9 = vadd.f32 %v1274_v21, %v1252_v13  ;;  %v1282_v62 = vadd.f32 %v1280_v14, %v1258_v40  ;;  %v1288_v41 = vadd.f32 %v1286_v46, %v1264_v45  ;;  %v1294_v8 = vadd.f32 %v1292_v12, %v1270_v54 }
 0x1a5   : > { %v10321_v39 = vstv %s10308_s26  ;;  %v10322_v25 = vstv %s10310_s29  ;;  %v10323_v22 = vstv %s10312_s8  ;;  %v10325_v47 = vstv %s10314_s12  ;;  %s6235_s26 = sld [smem:[#allocation8 + $0xab]]  ;;  %s6241_s29 = sld [smem:[#allocation8 + $0xac]] }
 0x1a6   : > { %v1323_v53 = vmul.f32 %v10321_v39, %v1127_v1  ;;  %v1329_v11 = vmul.f32 %v10322_v25, %v1127_v1  ;;  %v1335_v3 = vmul.f32 %v10323_v22, %v1127_v1  ;;  %v1341_v48 = vmul.f32 %v10325_v47, %v1127_v1  ;;  %s6243_s8 = sld [smem:[#allocation8 + $0xad]]  ;;  %s6245_s12 = sld [smem:[#allocation8 + $0x66]] }
 0x1a7   : > { %v1300_v60 = vadd.f32 %v10328_v35, %v1276_v9  ;;  %v1306_v30 = vadd.f32 %v10330_v44, %v1282_v62  ;;  %v1312_v32 = vadd.f32 %v10331_v33, %v1288_v41  ;;  %v1318_v36 = vadd.f32 %v10332_v28, %v1294_v8  ;;  %10384 = sst [smem:[#allocation69_spill]] %s6369_s18  ;;  %s6540_s18 = sld [smem:[#allocation8 + $0x2e]] }
 0x1a8   : > { %v1325_v29 = vadd.f32 %v1323_v53, %v1301_v56  ;;  %v1331_v31 = vadd.f32 %v1329_v11, %v1307_v15  ;;  %v1337_v23 = vadd.f32 %v1335_v3, %v1313_v50  ;;  %v1343_v2 = vadd.f32 %v1341_v48, %v1319_v55  ;;  %10416 = sst [smem:[#allocation97_spill]] %s6571_s16  ;;  %s6726_s16 = sld [smem:[#allocation8 + $0x74]] }
 0x1a9   : > { %v10333_v63 = vmov %v10321_v39  ;;  %v10334_v20 = vmov %v10322_v25  ;;  %v10335_v17 = vmov %v10323_v22  ;;  %v10336_v51 = vmov %v10325_v47 }
 0x1aa   : > { %v1322_v49 = vmul.f32 %v10333_v63, %v1125_v16  ;;  %v1328_v34 = vmul.f32 %v10334_v20, %v1125_v16  ;;  %v1334_v57 = vmul.f32 %v10335_v17, %v1125_v16  ;;  %v1340_v26 = vmul.f32 %v10336_v51, %v1125_v16 }
 0x1ab   : > { %v10337_v58 = vstv %s10324_s10  ;;  %v10338_v19 = vstv %s10326_s22  ;;  %v10339_v42 = vstv %s10327_s5  ;;  %v10340_v40 = vstv %s10329_s27  ;;  %10354 = sst [smem:[#allocation33_spill]] %s6235_s26  ;;  %s6247_s10 = sld [smem:[#allocation8 + $0x67]] }
 0x1ac   : > { %v1358_v10 = vadd.f32 %v10337_v58, %v1325_v29  ;;  %v1368_v59 = vadd.f32 %v10338_v19, %v1331_v31  ;;  %v1378_v13 = vadd.f32 %v10339_v42, %v1337_v23  ;;  %v1388_v45 = vadd.f32 %v10340_v40, %v1343_v2  ;;  %10355 = sst [smem:[#allocation38_spill]] %s6241_s29  ;;  %s6249_s22 = sld [smem:[#allocation8]] }
 0x1ad   : > { %v1324_v54 = vadd.f32 %v1322_v49, %v1300_v60  ;;  %v1330_v24 = vadd.f32 %v1328_v34, %v1306_v30  ;;  %v1336_v7 = vadd.f32 %v1334_v57, %v1312_v32  ;;  %v1342_v4 = vadd.f32 %v1340_v26, %v1318_v36  ;;  %10356 = sst [smem:[#allocation39_spill]] %s6243_s8  ;;  %s6251_s5 = sld [smem:[#allocation8 + $0x68]] }
 0x1ae   : > { %v1360_v61 = vmax.f32 %v1358_v10, 0.0  ;;  %v1370_v52 = vmax.f32 %v1368_v59, 0.0  ;;  %v1380_v21 = vmax.f32 %v1378_v13, 0.0  ;;  %v1390_v6 = vmax.f32 %v1388_v45, 0.0  ;;  %10357 = sst [smem:[#allocation40_spill]] %s6245_s12  ;;  %s6257_s27 = sld [smem:[#allocation8 + $0x1]] }
 0x1af   : > { %v10341_v14 = vmov %v10337_v58  ;;  %v10342_v46 = vmov %v10338_v19  ;;  %v10343_v12 = vmov %v10339_v42  ;;  %v10344_v27 = vmov %v10340_v40  ;;  %s6259_s26 = sld [smem:[#allocation8 + $0x2]]  ;;  %s6267_s12 = sld [smem:[#allocation8 + $0x69]] }
 0x1b0   : > { %v1357_v37 = vadd.f32 %v10341_v14, %v1324_v54  ;;  %v1367_v43 = vadd.f32 %v10342_v46, %v1330_v24  ;;  %v1377_v1 = vadd.f32 %v10343_v12, %v1336_v7  ;;  %v1387_v56 = vadd.f32 %v10344_v27, %v1342_v4  ;;  %s6271_s8 = sld [smem:[#allocation8 + $0x6b]]  ;;  %s6273_s29 = sld [smem:[#allocation8 + $0x4]] }
 0x1b1   : > { %v6131_v38 = vsel %vm356_vm0, 0.0, %v1360_v61  ;;  %v6135_v15 = vsel %vm356_vm0, 0.0, %v1370_v52  ;;  %v6139_v0 = vsel %vm356_vm0, 0.0, %v1380_v21  ;;  %v6143_v50 = vsel %vm356_vm0, 0.0, %v1390_v6  ;;  %10358 = sst [smem:[#allocation41_spill]] %s6247_s10  ;;  %s6265_s10 = sld [smem:[#allocation8 + $0x3]] }
 0x1b2   : > { %1364 = vst [vmem:[#allocation2 + $0x9] sm:$0xff] %v6131_v38  ;;  %1374 = vst [vmem:[#allocation2 + $0x21] sm:$0xff] %v6135_v15  ;;  %v1359_v5 = vmax.f32 %v1357_v37, 0.0  ;;  %v1369_v55 = vmax.f32 %v1367_v43, 0.0  ;;  %v1379_v9 = vmax.f32 %v1377_v1, 0.0  ;;  %v1389_v62 = vmax.f32 %v1387_v56, 0.0 }
 0x1b3   : > { %1384 = vst [vmem:[#allocation2 + $0x39] sm:$0xff] %v6139_v0  ;;  %1394 = vst [vmem:[#allocation2 + $0x51] sm:$0xff] %v6143_v50  ;;  %10359 = sst [smem:[#allocation42_spill]] %s6249_s22  ;;  %v1432_v16 = vstv %s6197_s25  ;;  %v1516_v60 = vstv %s6199_s1  ;;  %v1600_v30 = vstv %s6201_s24  ;;  %v1684_v32 = vstv %s6203_s19  ;;  %s6317_s22 = sld [smem:[#allocation8 + $0x4a]] }
 0x1b4   : > { %v6151_v41 = vsel %vm356_vm0, 0.0, %v1359_v5  ;;  %v6155_v8 = vsel %vm356_vm0, 0.0, %v1369_v55  ;;  %v6159_v39 = vsel %vm356_vm0, 0.0, %v1379_v9  ;;  %v6163_v53 = vsel %vm356_vm0, 0.0, %v1389_v62  ;;  %10360 = sst [smem:[#allocation43_spill]] %s6251_s5  ;;  %s6269_s5 = sld [smem:[#allocation8 + $0x6a]] }
 0x1b5   : > { %1363 = vst [vmem:[#allocation2 + $0x1] sm:$0xff] %v6151_v41  ;;  %1373 = vst [vmem:[#allocation2 + $0x19] sm:$0xff] %v6155_v8  ;;  %10361 = sst [smem:[#allocation44_spill]] %s6257_s27  ;;  %s6312_s27 = sld [smem:[#allocation8 + $0x49]]  ;;  %v1450_v28 = vstv %s6181_s17  ;;  %v1534_v36 = vstv %s6183_s9  ;;  %v1618_v29 = vstv %s6185_s14  ;;  %v1768_v23 = vstv %s6205_s20 }
 0x1b6   : > { %1383 = vst [vmem:[#allocation2 + $0x31] sm:$0xff] %v6159_v39  ;;  %1393 = vst [vmem:[#allocation2 + $0x49] sm:$0xff] %v6163_v53  ;;  %10362 = sst [smem:[#allocation45_spill]] %s6259_s26  ;;  %s6314_s26 = sld [smem:[#allocation8 + $0x27]]  ;;  %v1702_v63 = vstv %s6187_s23  ;;  %v1852_v49 = vstv %s6207_s4  ;;  %v1786_v34 = vstv %s6189_s15  ;;  %v1870_v17 = vstv %s6191_s2 }
 0x1b7   : > { %10363 = sst [smem:[#allocation46_spill]] %s6265_s10  ;;  %s6328_s10 = sld [smem:[#allocation8 + $0x29]]  ;;  %v6346_v51 = vmul.f32 %v1450_v28, %v6131_v38  ;;  %v6349_v26 = vmul.f32 %v1534_v36, %v6131_v38  ;;  %v6352_v58 = vmul.f32 %v1618_v29, %v6131_v38  ;;  %v6366_v42 = vmul.f32 %v1702_v63, %v6131_v38 }
 0x1b8   : > { %10364 = sst [smem:[#allocation47_spill]] %s6267_s12  ;;  %s6338_s17 = sld [smem:[#allocation8 + $0xaf]]  ;;  %v6374_v40 = vmul.f32 %v1786_v34, %v6131_v38  ;;  %v6379_v45 = vmul.f32 %v1870_v17, %v6131_v38  ;;  %v6382_v54 = vmul.f32 %v1450_v28, %v6151_v41  ;;  %v6390_v7 = vmul.f32 %v1534_v36, %v6151_v41 }
 0x1b9   : > { %v6229_v18 = vld [vmem:[#allocation2 + $0xa] sm:$0xff]  ;;  %10366 = sst [smem:[#allocation49_spill]] %s6271_s8  ;;  %s6287_s8 = sld [smem:[#allocation8 + $0x32]]  ;;  %v6393_v4 = vmul.f32 %v1618_v29, %v6151_v41  ;;  %v6396_v61 = vmul.f32 %v1702_v63, %v6151_v41  ;;  %v6464_v5 = vld [vmem:[#allocation2 + $0x22] sm:$0xff]  ;;  %v1966_v62 = vstv %s6209_s30  ;;  %v6501_v63 = vmul.f32 %v1786_v34, %v6151_v41 }
 0x1ba   : > { %10365 = sst [smem:[#allocation48_spill]] %s6269_s5  ;;  %s6285_s5 = sld [smem:[#allocation8 + $0x31]] }
 0x1bb   : > { %10367 = sst [smem:[#allocation51_spill]] %s6273_s29  ;;  %s6289_s12 = sld [smem:[#allocation8 + $0x33]] }
 0x1bc   : > { %v6169_v25 = vld [vmem:[#allocation2 + $0x8] sm:$0xff]  ;;  %v6171_v11 = vld [vmem:[#allocation2] sm:$0xff]  ;;  %v6255_v47 = vld [vmem:[#allocation2 + $0x18] sm:$0xff]  ;;  %10379 = sst [smem:[#allocation63_spill]] %s6312_s27  ;;  %s6354_s9 = sld [smem:[#allocation8 + $0xb0]] }
 0x1bd   : > { %1399 = vrot.lane.b32.xlu1 %v6169_v25, %s10345_s7  ;;  %1397 = vrot.lane.b32.xlu0 %v6171_v11, %s10345_s7  ;;  %v6231_v22 = vld [vmem:[#allocation2 + $0x2] sm:$0xff]  ;;  %10380 = sst [smem:[#allocation64_spill]] %s6317_s22  ;;  %s6334_s19 = sld [smem:[#allocation8 + $0x4b]]  ;;  %v6407_v52 = vmul.f32 %v1432_v16, %v6169_v25  ;;  %v6412_v21 = vmul.f32 %v1516_v60, %v6169_v25  ;;  %v6417_v6 = vmul.f32 %v1600_v30, %v6169_v25  ;;  %v6466_v55 = vld [vmem:[#allocation2 + $0x1a] sm:$0xff]  ;;  %v6526_v36 = vld [vmem:[#allocation2 + $0x30] sm:$0xff] }
 0x1be   : > { %v6253_v3 = vld [vmem:[#allocation2 + $0x20] sm:$0xff]  ;;  %s6356_s14 = sld [smem:[#allocation8 + $0xb1]]  ;;  %s6361_s23 = sld [smem:[#allocation8 + $0x4c]]  ;;  %v6425_v37 = vmul.f32 %v1684_v32, %v6169_v25  ;;  %v6430_v46 = vmul.f32 %v1768_v23, %v6169_v25  ;;  %v6435_v43 = vmul.f32 %v1852_v49, %v6169_v25  ;;  %v6445_v1 = vmul.f32 %v1432_v16, %v6171_v11  ;;  %v6524_v34 = vld [vmem:[#allocation2 + $0x38] sm:$0xff] }
 0x1bf   : > { %10372 = sst [smem:[#allocation56_spill]] %s6287_s8  ;;  %s6438_s27 = sld [smem:[#allocation8 + $0x6d]]  ;;  %v6450_v27 = vmul.f32 %v1516_v60, %v6171_v11  ;;  %v6455_v56 = vmul.f32 %v1600_v30, %v6171_v11  ;;  %v2134_v16 = vstv %s10388_s0  ;;  %v6483_v60 = vmul.f32 %v1768_v23, %v6171_v11 }
 0x1c0   : > { %10371 = sst [smem:[#allocation55_spill]] %s6285_s5  ;;  %s6363_s5 = sld [smem:[#allocation8 + $0x4d]]  ;;  %v6488_v30 = vmul.f32 %v1852_v49, %v6171_v11  ;;  %v6512_v23 = vmul.f32 %v1870_v17, %v6151_v41  ;;  %v6515_v49 = vmul.f32 %v1966_v62, %v6253_v3  ;;  %v6551_v24 = vmul.f32 %v1966_v62, %v6255_v47 }
 0x1c1   : > { %1403 = vrot.lane.b32.xlu1 %v6169_v25, %s10346_s3  ;;  %1401 = vrot.lane.b32.xlu0 %v6171_v11, %s10346_s3  ;;  %10373 = sst [smem:[#allocation57_spill]] %s6289_s12  ;;  %s6398_s12 = sld [smem:[#allocation8 + $0xb3]]  ;;  %v2050_v25 = vstv %s6211_s11 }
 0x1c2   : > { %s6422_s8 = sld [smem:[#allocation8 + $0x6c]]  ;;  %s6440_s29 = sld [smem:[#allocation8 + $0x6e]]  ;;  %v6518_v29 = vmul.f32 %v2050_v25, %v6253_v3  ;;  %v6554_v13 = vmul.f32 %v2050_v25, %v6255_v47 }
 0x1c3   : > { %10381 = sst [smem:[#allocation65_spill]] %s6334_s19  ;;  %s10391_s22 = sld [smem:[#allocation35_spill]] }
 0x1c4   : > { %10382 = sst [smem:[#allocation66_spill]] %s6361_s23  ;;  %s6462_s25 = sld [smem:[#allocation8 + $0x6f]] }
 0x1c5   : > { %1409 = vrot.lane.b32.xlu1 %v6131_v38, %s10345_s7  ;;  %1407 = vrot.lane.b32.xlu0 %v6151_v41, %s10345_s7  ;;  %10389 = sst [smem:[#allocation72_spill]] %s6438_s27  ;;  %s6460_s27 = sld [smem:[#allocation8 + $0x7b]] }
 0x1c6   : > { %10383 = sst [smem:[#allocation68_spill]] %s6363_s5  ;;  %s6469_s1 = sld [smem:[#allocation8 + $0x7c]] }
 0x1c7   : > { %s10396_s24 = sld [smem:[#allocation37_spill]]  ;;  %s6490_s30 = sld [smem:[#allocation8 + $0x7d]] }
 0x1c8   : > { %10387 = sst [smem:[#allocation71_spill]] %s6422_s8  ;;  %s6474_s8 = sld [smem:[#allocation8 + $0x70]] }
 0x1c9   : > { %1413 = vrot.lane.b32.xlu1 %v6131_v38, %s10346_s3  ;;  %1411 = vrot.lane.b32.xlu0 %v6151_v41, %s10346_s3  ;;  %10390 = sst [smem:[#allocation73_spill]] %s6440_s29  ;;  %v6458_v38 = vmul.f32 %v1684_v32, %v6171_v11  ;;  %s10393_s29 = sld [smem:[#allocation36_spill]]  ;;  %v2218_v32 = vstv %s10391_s22  ;;  %v6532_v41 = vmul.f32 %v2134_v16, %v6253_v3  ;;  %v6565_v11 = vmul.f32 %v2134_v16, %v6255_v47 }
 0x1ca   : > { %10394 = sst [smem:[#allocation75_spill]] %s6462_s25  ;;  %s6494_s11 = sld [smem:[#allocation8 + $0x71]]  ;;  %v6535_v17 = vmul.f32 %v2218_v32, %v6253_v3  ;;  %v6582_v2 = vmul.f32 %v2218_v32, %v6255_v47 }
 0x1cb   : > { %10392 = sst [smem:[#allocation74_spill]] %s6460_s27  ;;  %s6504_s20 = sld [smem:[#allocation8 + $0x2a]] }
 0x1cc   : > { %10395 = sst [smem:[#allocation76_spill]] %s6469_s1  ;;  %s6506_s0 = sld [smem:[#allocation8 + $0x2b]] }
 0x1cd   : > { %1419 = vrot.lane.b32.xlu1 %v6229_v18, %s10345_s7  ;;  %1417 = vrot.lane.b32.xlu0 %v6231_v22, %s10345_s7  ;;  %10398 = sst [smem:[#allocation78_spill]] %s6490_s30  ;;  %v2386_v9 = vstv %s10396_s24  ;;  %s6520_s15 = sld [smem:[#allocation8 + $0x2c]] }
 0x1ce   : > { %10397 = sst [smem:[#allocation77_spill]] %s6474_s8  ;;  %s6522_s4 = sld [smem:[#allocation8 + $0x2d]]  ;;  %v6548_v14 = vmul.f32 %v2386_v9, %v6253_v3  ;;  %v6588_v31 = vmul.f32 %v2386_v9, %v6255_v47 }
 0x1cf   : > { %v2302_v28 = vstv %s10393_s29  ;;  %s6529_s29 = sld [smem:[#allocation8 + $0x90]]  ;;  %s10405_s2 = sld [smem:[#allocation30_spill]] }
 0x1d0   : > { %10399 = sst [smem:[#allocation79_spill]] %s6494_s11  ;;  %s10407_s24 = sld [smem:[#allocation32_spill]]  ;;  %v6538_v12 = vmul.f32 %v2302_v28, %v6253_v3  ;;  %v6585_v16 = vmul.f32 %v2302_v28, %v6255_v47 }
 0x1d1   : > { %1933 = vrot.lane.b32.xlu1 %v6253_v3, %s10345_s7  ;;  %1931 = vrot.lane.b32.xlu0 %v6255_v47, %s10345_s7  ;;  %10400 = sst [smem:[#allocation80_spill]] %s6504_s20  ;;  %s10406_s22 = sld [smem:[#allocation31_spill]] }
 0x1d2   : > { %10401 = sst [smem:[#allocation81_spill]] %s6506_s0  ;;  %s10410_s5 = sld [smem:[#allocation38_spill]] }
 0x1d3   : > { %10402 = sst [smem:[#allocation67_spill]] %s6520_s15  ;;  %s10409_s6 = sld [smem:[#allocation33_spill]] }
 0x1d4   : > { %10403 = sst [smem:[#allocation82_spill]] %s6522_s4  ;;  %s10411_s23 = sld [smem:[#allocation39_spill]] }
 0x1d5   : > { %1937 = vrot.lane.b32.xlu1 %v6253_v3, %s10346_s3  ;;  %1935 = vrot.lane.b32.xlu0 %v6255_v47, %s10346_s3  ;;  %10404 = sst [smem:[#allocation83_spill]] %s6529_s29  ;;  %s6560_s4 = sld [smem:[#allocation8 + $0x91]]  ;;  %v1468_v3 = vstv %s10405_s2 }
 0x1d6   : > { %10408 = sst [smem:[#allocation86_spill]] %s6540_s18  ;;  %s6556_s19 = sld [smem:[#allocation8 + $0x2f]]  ;;  %v1636_v62 = vstv %s10407_s24  ;;  %v6598_v32 = vmul.f32 %v1468_v3, %v6229_v18  ;;  %v6622_v33 = vmul.f32 %v1468_v3, %v6231_v22 }
 0x1d7   : > { %s6558_s18 = sld [smem:[#allocation8 + $0xb4]]  ;;  %s6562_s15 = sld [smem:[#allocation8 + $0x92]]  ;;  %v1552_v59 = vstv %s10406_s22  ;;  %v6604_v47 = vmul.f32 %v1636_v62, %v6229_v18  ;;  %v6632_v35 = vmul.f32 %v1636_v62, %v6231_v22 }
 0x1d8   : > { %s6573_s0 = sld [smem:[#allocation8 + $0x94]]  ;;  %v1804_v10 = vstv %s10410_s5  ;;  %s6590_s2 = sld [smem:[#allocation8 + $0xb5]]  ;;  %v6601_v28 = vmul.f32 %v1552_v59, %v6229_v18  ;;  %10432 = vst [vmem:[#allocation96_spill] sm:$0xff] %v6622_v33  ;;  %v6629_v44 = vmul.f32 %v1552_v59, %v6231_v22 }
 0x1d9   : > { %1423 = vrot.lane.b32.xlu1 %v6229_v18, %s10346_s3  ;;  %1421 = vrot.lane.b32.xlu0 %v6231_v22, %s10346_s3  ;;  %v1720_v25 = vstv %s10409_s6  ;;  %s10420_s6 = sld [smem:[#allocation40_spill]]  ;;  %s10421_s5 = sld [smem:[#allocation41_spill]]  ;;  %10423 = vst [vmem:[#allocation89_spill] sm:$0xff] %v6604_v47  ;;  %v6616_v20 = vmul.f32 %v1804_v10, %v6229_v18  ;;  %10436 = vst [vmem:[#allocation102_spill] sm:$0xff] %v6632_v35 }
 0x1da   : > { %v1888_v57 = vstv %s10411_s23  ;;  %10422 = vst [vmem:[#allocation88_spill] sm:$0xff] %v6601_v28  ;;  %s6606_s23 = sld [smem:[#allocation8 + $0xb6]]  ;;  %s6608_s22 = sld [smem:[#allocation8 + $0xb7]]  ;;  %v6613_v9 = vmul.f32 %v1720_v25, %v6229_v18  ;;  %10435 = vst [vmem:[#allocation99_spill] sm:$0xff] %v6629_v44  ;;  %v6644_v3 = vmul.f32 %v1720_v25, %v6231_v22 }
 0x1db   : > { %10414 = sst [smem:[#allocation94_spill]] %s6560_s4  ;;  %s6610_s24 = sld [smem:[#allocation8 + $0x6]]  ;;  %10430 = vst [vmem:[#allocation92_spill] sm:$0xff] %v6616_v20  ;;  %v6619_v19 = vmul.f32 %v1888_v57, %v6229_v18  ;;  %v6657_v18 = vmul.f32 %v1804_v10, %v6231_v22  ;;  %v6660_v25 = vmul.f32 %v1888_v57, %v6231_v22 }
 0x1dc   : > { %10412 = sst [smem:[#allocation87_spill]] %s6556_s19  ;;  %s10427_s1 = sld [smem:[#allocation43_spill]]  ;;  %10428 = vst [vmem:[#allocation91_spill] sm:$0xff] %v6613_v9  ;;  %10442 = vst [vmem:[#allocation103_spill] sm:$0xff] %v6644_v3 }
 0x1dd   : > { %1943 = vrot.lane.b32.xlu1 %v6135_v15, %s10345_s7  ;;  %1941 = vrot.lane.b32.xlu0 %v6155_v8, %s10345_s7  ;;  %10413 = sst [smem:[#allocation90_spill]] %s6558_s18  ;;  %s6579_s18 = sld [smem:[#allocation8 + $0x95]]  ;;  %10431 = vst [vmem:[#allocation93_spill] sm:$0xff] %v6619_v19  ;;  %10445 = vst [vmem:[#allocation104_spill] sm:$0xff] %v6657_v18 }
 0x1de   : > { %10415 = sst [smem:[#allocation95_spill]] %s6562_s15  ;;  %s10429_s30 = sld [smem:[#allocation47_spill]]  ;;  %10446 = vst [vmem:[#allocation105_spill] sm:$0xff] %v6660_v25 }
 0x1df   : > { %10417 = sst [smem:[#allocation98_spill]] %s6573_s0  ;;  %v1984_v48 = vstv %s10420_s6  ;;  %v2068_v20 = vstv %s10421_s5  ;;  %s6636_s19 = sld [smem:[#allocation8 + $0xb9]] }
 0x1e0   : > { %10419 = sst [smem:[#allocation101_spill]] %s6590_s2  ;;  %s6624_s27 = sld [smem:[#allocation8 + $0xb8]]  ;;  %v6671_v19 = vmul.f32 %v1984_v48, %v6135_v15  ;;  %v6674_v9 = vmul.f32 %v2068_v20, %v6135_v15  ;;  %v6700_v44 = vmul.f32 %v1984_v48, %v6155_v8  ;;  %v6707_v33 = vmul.f32 %v2068_v20, %v6155_v8 }
 0x1e1   : > { %1947 = vrot.lane.b32.xlu1 %v6135_v15, %s10346_s3  ;;  %1945 = vrot.lane.b32.xlu0 %v6155_v8, %s10346_s3  ;;  %10424 = sst [smem:[#allocation108_spill]] %s6606_s23  ;;  %s6626_s23 = sld [smem:[#allocation8 + $0x7]] }
 0x1e2   : > { %10425 = sst [smem:[#allocation109_spill]] %s6608_s22  ;;  %s10438_s2 = sld [smem:[#allocation49_spill]]  ;;  %v2152_v59 = vstv %s10427_s1  ;;  %10449 = vst [vmem:[#allocation106_spill] sm:$0xff] %v6671_v19  ;;  %10450 = vst [vmem:[#allocation107_spill] sm:$0xff] %v6674_v9 }
 0x1e3   : > { %10418 = sst [smem:[#allocation100_spill]] %s6579_s18  ;;  %s10437_s22 = sld [smem:[#allocation48_spill]]  ;;  %v6683_v22 = vmul.f32 %v2152_v59, %v6135_v15  ;;  %10462 = vst [vmem:[#allocation115_spill] sm:$0xff] %v6700_v44  ;;  %10463 = vst [vmem:[#allocation116_spill] sm:$0xff] %v6707_v33  ;;  %v2752_v44 = vstv %s6314_s26 }
 0x1e4   : > { %10426 = sst [smem:[#allocation84_spill]] %s6610_s24  ;;  %v2236_v62 = vstv %s10429_s30  ;;  %s6652_s6 = sld [smem:[#allocation8 + $0xa]] }
 0x1e5   : > { %1953 = vrot.lane.b32.xlu1 %v6464_v5, %s10345_s7  ;;  %1951 = vrot.lane.b32.xlu0 %v6466_v55, %s10345_s7  ;;  %10439 = sst [smem:[#allocation118_spill]] %s6636_s19  ;;  %s6639_s20 = sld [smem:[#allocation8 + $0x8]]  ;;  %10454 = vst [vmem:[#allocation110_spill] sm:$0xff] %v6683_v22  ;;  %v6686_v57 = vmul.f32 %v2236_v62, %v6135_v15 }
 0x1e6   : > { %10433 = sst [smem:[#allocation85_spill]] %s6624_s27  ;;  %s6654_s5 = sld [smem:[#allocation8 + $0xb]] }
 0x1e7   : > { %10434 = sst [smem:[#allocation114_spill]] %s6626_s23  ;;  %s6641_s27 = sld [smem:[#allocation8 + $0x9]]  ;;  %10455 = vst [vmem:[#allocation111_spill] sm:$0xff] %v6686_v57  ;;  %v6710_v57 = vmul.f32 %v2152_v59, %v6155_v8  ;;  %v6767_v59 = vmul.f32 %v2752_v44, %v6524_v34 }
 0x1e8   : > { %v2404_v35 = vstv %s10438_s2  ;;  %s6666_s1 = sld [smem:[#allocation8 + $0x36]]  ;;  %s6668_s30 = sld [smem:[#allocation8 + $0x37]] }
 0x1e9   : > { %2467 = vrot.lane.b32.xlu1 %v6524_v34, %s10345_s7  ;;  %2465 = vrot.lane.b32.xlu0 %v6526_v36, %s10345_s7  ;;  %v2320_v3 = vstv %s10437_s22  ;;  %s10451_s29 = sld [smem:[#allocation54_spill]]  ;;  %s6678_s19 = sld [smem:[#allocation8 + $0x38]]  ;;  %v6697_v10 = vmul.f32 %v2404_v35, %v6135_v15  ;;  %10464 = vst [vmem:[#allocation117_spill] sm:$0xff] %v6710_v57  ;;  %10481 = vst [vmem:[#allocation126_spill] sm:$0xff] %v6767_v59 }
 0x1ea   : > { %10443 = sst [smem:[#allocation131_spill]] %s6652_s6  ;;  %s10456_s2 = sld [smem:[#allocation60_spill]]  ;;  %v6694_v18 = vmul.f32 %v2320_v3, %v6135_v15  ;;  %v6713_v15 = vmul.f32 %v2236_v62, %v6155_v8  ;;  %v6736_v62 = vmul.f32 %v2404_v35, %v6155_v8 }
 0x1eb   : > { %10440 = sst [smem:[#allocation121_spill]] %s6639_s20  ;;  %s6680_s11 = sld [smem:[#allocation8 + $0x39]]  ;;  %10461 = vst [vmem:[#allocation113_spill] sm:$0xff] %v6697_v10  ;;  %v6722_v10 = vmul.f32 %v2320_v3, %v6155_v8  ;;  %v2836_v3 = vstv %s6322_s28 }
 0x1ec   : > { %10444 = sst [smem:[#allocation132_spill]] %s6654_s5  ;;  %s6691_s4 = sld [smem:[#allocation8 + $0x3b]]  ;;  %10460 = vst [vmem:[#allocation112_spill] sm:$0xff] %v6694_v18  ;;  %10465 = vst [vmem:[#allocation119_spill] sm:$0xff] %v6713_v15  ;;  %v2920_v18 = vstv %s6328_s10 }
 0x1ed   : > { %1957 = vrot.lane.b32.xlu1 %v6464_v5, %s10346_s3  ;;  %1955 = vrot.lane.b32.xlu0 %v6466_v55, %s10346_s3  ;;  %10441 = sst [smem:[#allocation129_spill]] %s6641_s27  ;;  %s6689_s22 = sld [smem:[#allocation8 + $0x3a]]  ;;  %10468 = vst [vmem:[#allocation120_spill] sm:$0xff] %v6722_v10  ;;  %10473 = vst [vmem:[#allocation122_spill] sm:$0xff] %v6736_v62  ;;  %v6787_v59 = vmul.f32 %v2920_v18, %v6524_v34  ;;  %v6848_v62 = vld [vmem:[#allocation2 + $0x50] sm:$0xff] }
 0x1ee   : > { %10447 = sst [smem:[#allocation144_spill]] %s6666_s1  ;;  %s10458_s15 = sld [smem:[#allocation62_spill]] }
 0x1ef   : > { %10448 = sst [smem:[#allocation145_spill]] %s6668_s30  ;;  %v2500_v48 = vstv %s10451_s29  ;;  %s6716_s18 = sld [smem:[#allocation8 + $0x72]]  ;;  %10489 = vst [vmem:[#allocation133_spill] sm:$0xff] %v6787_v59  ;;  %v2422_v59 = vstv %s6398_s12 }
 0x1f0   : > { %10452 = sst [smem:[#allocation147_spill]] %s6678_s19  ;;  %s6718_s0 = sld [smem:[#allocation8 + $0x73]]  ;;  %v2584_v20 = vstv %s10456_s2  ;;  %v6747_v57 = vmul.f32 %v2500_v48, %v6524_v34  ;;  %v6773_v35 = vmul.f32 %v2500_v48, %v6526_v36  ;;  %v2002_v48 = vstv %s6330_s21 }
 0x1f1   : > { %2471 = vrot.lane.b32.xlu1 %v6524_v34, %s10346_s3  ;;  %2469 = vrot.lane.b32.xlu0 %v6526_v36, %s10346_s3  ;;  %10453 = sst [smem:[#allocation148_spill]] %s6680_s11  ;;  %s6728_s8 = sld [smem:[#allocation8 + $0x75]]  ;;  %v6761_v15 = vmul.f32 %v2584_v20, %v6524_v34  ;;  %v6776_v8 = vmul.f32 %v2584_v20, %v6526_v36  ;;  %v6794_v20 = vld [vmem:[#allocation2 + $0x3a] sm:$0xff]  ;;  %v6831_v22 = vmul.f32 %v2002_v48, %v6464_v5 }
 0x1f2   : > { %10459 = sst [smem:[#allocation153_spill]] %s6691_s4  ;;  %s6733_s25 = sld [smem:[#allocation8 + $0xc1]]  ;;  %10476 = vst [vmem:[#allocation123_spill] sm:$0xff] %v6747_v57  ;;  %v6770_v57 = vmul.f32 %v2836_v3, %v6524_v34  ;;  %10483 = vst [vmem:[#allocation128_spill] sm:$0xff] %v6773_v35  ;;  %v2086_v35 = vstv %s6338_s17 }
 0x1f3   : > { %10457 = sst [smem:[#allocation152_spill]] %s6689_s22  ;;  %s6731_s29 = sld [smem:[#allocation8 + $0xc0]]  ;;  %10479 = vst [vmem:[#allocation124_spill] sm:$0xff] %v6761_v15  ;;  %10484 = vst [vmem:[#allocation130_spill] sm:$0xff] %v6776_v8  ;;  %v6796_v8 = vld [vmem:[#allocation2 + $0x32] sm:$0xff]  ;;  %v6834_v9 = vmul.f32 %v2086_v35, %v6464_v5  ;;  %v6850_v15 = vld [vmem:[#allocation2 + $0x48] sm:$0xff] }
 0x1f4   : > { %v2668_v33 = vstv %s10458_s15  ;;  %10469 = sst [smem:[#allocation34_spill]] %s6726_s16  ;;  %s6742_s2 = sld [smem:[#allocation8 + $0xc2]]  ;;  %10482 = vst [vmem:[#allocation127_spill] sm:$0xff] %v6770_v57  ;;  %10501 = vst [vmem:[#allocation138_spill] sm:$0xff] %v6831_v22 }
 0x1f5   : > { %2477 = vrot.lane.b32.xlu1 %v6139_v0, %s10345_s7  ;;  %2475 = vrot.lane.b32.xlu0 %v6159_v39, %s10345_s7  ;;  %10466 = sst [smem:[#allocation155_spill]] %s6716_s18  ;;  %s6744_s15 = sld [smem:[#allocation8 + $0xc3]]  ;;  %v6764_v10 = vmul.f32 %v2668_v33, %v6524_v34  ;;  %v6790_v57 = vmul.f32 %v2668_v33, %v6526_v36  ;;  %v6804_v34 = vmul.f32 %v2752_v44, %v6526_v36  ;;  %v2170_v33 = vstv %s6354_s9 }
 0x1f6   : > { %10467 = sst [smem:[#allocation156_spill]] %s6718_s0  ;;  %s6756_s28 = sld [smem:[#allocation8 + $0xc4]]  ;;  %v6820_v44 = vmul.f32 %v2920_v18, %v6526_v36  ;;  %10502 = vst [vmem:[#allocation139_spill] sm:$0xff] %v6834_v9 }
 0x1f7   : > { %10470 = sst [smem:[#allocation35_spill]] %s6728_s8  ;;  %s6758_s26 = sld [smem:[#allocation8 + $0xc5]]  ;;  %10480 = vst [vmem:[#allocation125_spill] sm:$0xff] %v6764_v10  ;;  %10490 = vst [vmem:[#allocation134_spill] sm:$0xff] %v6790_v57  ;;  %v2254_v57 = vstv %s6356_s14  ;;  %v6817_v10 = vmul.f32 %v2836_v3, %v6526_v36  ;;  %v6843_v36 = vmul.f32 %v2170_v33, %v6464_v5  ;;  %v6860_v3 = vmul.f32 %v2422_v59, %v6464_v5 }
 0x1f8   : > { %10472 = sst [smem:[#allocation37_spill]] %s6733_s25  ;;  %s6778_s10 = sld [smem:[#allocation8 + $0x76]]  ;;  %10493 = vst [vmem:[#allocation135_spill] sm:$0xff] %v6804_v34  ;;  %10497 = vst [vmem:[#allocation137_spill] sm:$0xff] %v6820_v44  ;;  %v2338_v34 = vstv %s6384_s13  ;;  %v6846_v18 = vmul.f32 %v2254_v57, %v6464_v5  ;;  %v6863_v44 = vmul.f32 %v2002_v48, %v6466_v55  ;;  %v6879_v48 = vmul.f32 %v2170_v33, %v6466_v55 }
 0x1f9   : > { %10471 = sst [smem:[#allocation36_spill]] %s6731_s29  ;;  %2481 = vrot.lane.b32.xlu1 %v6139_v0, %s10346_s3  ;;  %2479 = vrot.lane.b32.xlu0 %v6159_v39, %s10346_s3  ;;  %s6780_s5 = sld [smem:[#allocation8 + $0x77]]  ;;  %10496 = vst [vmem:[#allocation136_spill] sm:$0xff] %v6817_v10  ;;  %10505 = vst [vmem:[#allocation140_spill] sm:$0xff] %v6843_v36  ;;  %v6857_v10 = vmul.f32 %v2338_v34, %v6464_v5  ;;  %v6876_v5 = vmul.f32 %v2086_v35, %v6466_v55 }
 0x1fa   : > { %10474 = sst [smem:[#allocation30_spill]] %s6742_s2  ;;  %s6782_s6 = sld [smem:[#allocation9]]  ;;  %10506 = vst [vmem:[#allocation141_spill] sm:$0xff] %v6846_v18  ;;  %10511 = vst [vmem:[#allocation143_spill] sm:$0xff] %v6860_v3  ;;  %v6890_v36 = vmul.f32 %v2338_v34, %v6466_v55 }
 0x1fb   : > { %10475 = sst [smem:[#allocation31_spill]] %s6744_s15  ;;  %s6784_s27 = sld [smem:[#allocation9 + $0x1]]  ;;  %10509 = vst [vmem:[#allocation142_spill] sm:$0xff] %v6857_v10  ;;  %10513 = vst [vmem:[#allocation146_spill] sm:$0xff] %v6863_v44  ;;  %v6882_v44 = vmul.f32 %v2254_v57, %v6466_v55  ;;  %v6901_v57 = vmul.f32 %v2422_v59, %v6466_v55 }
 0x1fc   : > { %10477 = sst [smem:[#allocation32_spill]] %s6756_s28  ;;  %s6799_s20 = sld [smem:[#allocation11]]  ;;  %10516 = vst [vmem:[#allocation149_spill] sm:$0xff] %v6876_v5  ;;  %10517 = vst [vmem:[#allocation150_spill] sm:$0xff] %v6879_v48 }
 0x1fd   : > { %10478 = sst [smem:[#allocation33_spill]] %s6758_s26  ;;  %s6801_s23 = sld [smem:[#allocation11 + $0x1]]  ;;  %2487 = vrot.lane.b32.xlu1 %v6794_v20, %s10345_s7  ;;  %2485 = vrot.lane.b32.xlu0 %v6796_v8, %s10345_s7  ;;  %10518 = vst [vmem:[#allocation151_spill] sm:$0xff] %v6882_v44  ;;  %10523 = vst [vmem:[#allocation154_spill] sm:$0xff] %v6890_v36 }
 0x1fe   : > { %10485 = sst [smem:[#allocation38_spill]] %s6778_s10  ;;  %s6814_s17 = sld [smem:[#allocation11 + $0x3]]  ;;  %10527 = vst [vmem:[#allocation157_spill] sm:$0xff] %v6901_v57 }
 0x1ff   : > { %10486 = sst [smem:[#allocation39_spill]] %s6780_s5  ;;  %s6812_s21 = sld [smem:[#allocation11 + $0x2]] }
 0x200   : > { %10487 = sst [smem:[#allocation40_spill]] %s6782_s6  ;;  %s6828_s14 = sld [smem:[#allocation11 + $0x5]] }
 0x201   : > { %10488 = sst [smem:[#allocation41_spill]] %s6784_s27  ;;  %s6826_s9 = sld [smem:[#allocation11 + $0x4]]  ;;  %3001 = vrot.lane.b32.xlu1 %v6848_v62, %s10345_s7  ;;  %2999 = vrot.lane.b32.xlu0 %v6850_v15, %s10345_s7 }
 0x202   : > { %10491 = sst [smem:[#allocation43_spill]] %s6799_s20  ;;  %s10500_s1 = sld [smem:[#allocation71_spill]] }
 0x203   : > { %10492 = sst [smem:[#allocation47_spill]] %s6801_s23  ;;  %s6838_s24 = sld [smem:[#allocation11 + $0x6]] }
 0x204   : > { %10495 = sst [smem:[#allocation49_spill]] %s6814_s17  ;;  %s6840_s13 = sld [smem:[#allocation11 + $0x7]] }
 0x205   : > { %10494 = sst [smem:[#allocation48_spill]] %s6812_s21  ;;  %s6852_s12 = sld [smem:[#allocation9 + $0x2]]  ;;  %2491 = vrot.lane.b32.xlu1 %v6794_v20, %s10346_s3  ;;  %2489 = vrot.lane.b32.xlu0 %v6796_v8, %s10346_s3 }
 0x206   : > { %10499 = sst [smem:[#allocation60_spill]] %s6828_s14  ;;  %s10510_s22 = sld [smem:[#allocation72_spill]] }
 0x207   : > { %10498 = sst [smem:[#allocation54_spill]] %s6826_s9  ;;  %s6854_s11 = sld [smem:[#allocation11 + $0x8]] }
 0x208   : > { %s10512_s19 = sld [smem:[#allocation73_spill]]  ;;  %v2518_v18 = vstv %s10500_s1  ;;  %s6871_s30 = sld [smem:[#allocation11 + $0x9]] }
 0x209   : > { %10503 = sst [smem:[#allocation62_spill]] %s6838_s24  ;;  %s10519_s1 = sld [smem:[#allocation75_spill]]  ;;  %v6904_v3 = vmul.f32 %v2518_v18, %v6139_v0  ;;  %v6937_v44 = vmul.f32 %v2518_v18, %v6159_v39  ;;  %3005 = vrot.lane.b32.xlu1 %v6848_v62, %s10346_s3  ;;  %3003 = vrot.lane.b32.xlu0 %v6850_v15, %s10346_s3 }
 0x20a   : > { %10504 = sst [smem:[#allocation71_spill]] %s6840_s13  ;;  %s6873_s5 = sld [smem:[#allocation11 + $0xa]] }
 0x20b   : > { %10507 = sst [smem:[#allocation170_spill]] %s6852_s12  ;;  %s10521_s4 = sld [smem:[#allocation77_spill]]  ;;  %10528 = vst [vmem:[#allocation158_spill] sm:$0xff] %v6904_v3  ;;  %10537 = vst [vmem:[#allocation164_spill] sm:$0xff] %v6937_v44 }
 0x20c   : > { %s6885_s10 = sld [smem:[#allocation11 + $0xb]]  ;;  %v2602_v10 = vstv %s10510_s22  ;;  %s6896_s16 = sld [smem:[#allocation11 + $0xc]] }
 0x20d   : > { %10508 = sst [smem:[#allocation171_spill]] %s6854_s11  ;;  %s6887_s8 = sld [smem:[#allocation9 + $0x3]]  ;;  %v6924_v59 = vmul.f32 %v2602_v10, %v6139_v0  ;;  %v6940_v55 = vmul.f32 %v2602_v10, %v6159_v39  ;;  %3011 = vrot.lane.b32.xlu1 %v6143_v50, %s10345_s7  ;;  %3009 = vrot.lane.b32.xlu0 %v6163_v53, %s10345_s7 }
 0x20e   : > { %10514 = sst [smem:[#allocation72_spill]] %s6871_s30  ;;  %v2686_v35 = vstv %s10512_s19  ;;  %s6898_s0 = sld [smem:[#allocation11 + $0xd]] }
 0x20f   : > { %s10526_s29 = sld [smem:[#allocation79_spill]]  ;;  %s6907_s18 = sld [smem:[#allocation11 + $0xe]]  ;;  %v2770_v33 = vstv %s10519_s1  ;;  %10533 = vst [vmem:[#allocation159_spill] sm:$0xff] %v6924_v59  ;;  %v6927_v5 = vmul.f32 %v2686_v35, %v6139_v0  ;;  %10538 = vst [vmem:[#allocation161_spill] sm:$0xff] %v6940_v55  ;;  %v6964_v48 = vmul.f32 %v2686_v35, %v6159_v39 }
 0x210   : > { %10515 = sst [smem:[#allocation73_spill]] %s6873_s5  ;;  %s6909_s19 = sld [smem:[#allocation11 + $0xf]]  ;;  %v6949_v57 = vmul.f32 %v2770_v33, %v6139_v0 }
 0x211   : > { %v2854_v36 = vstv %s10521_s4  ;;  %s6918_s22 = sld [smem:[#allocation9 + $0x4]]  ;;  %s6920_s2 = sld [smem:[#allocation11 + $0x10]]  ;;  %10534 = vst [vmem:[#allocation160_spill] sm:$0xff] %v6927_v5  ;;  %10548 = vst [vmem:[#allocation166_spill] sm:$0xff] %v6964_v48  ;;  %3015 = vrot.lane.b32.xlu1 %v6143_v50, %s10346_s3  ;;  %3013 = vrot.lane.b32.xlu0 %v6163_v53, %s10346_s3 }
 0x212   : > { %10520 = sst [smem:[#allocation75_spill]] %s6885_s10  ;;  %s6932_s4 = sld [smem:[#allocation11 + $0x11]]  ;;  %10541 = vst [vmem:[#allocation162_spill] sm:$0xff] %v6949_v57  ;;  %v6952_v3 = vmul.f32 %v2854_v36, %v6139_v0  ;;  %v6980_v35 = vmul.f32 %v2854_v36, %v6159_v39 }
 0x213   : > { %10522 = sst [smem:[#allocation77_spill]] %s6887_s8  ;;  %s6934_s1 = sld [smem:[#allocation11 + $0x12]] }
 0x214   : > { %10524 = sst [smem:[#allocation172_spill]] %s6896_s16  ;;  %s6944_s26 = sld [smem:[#allocation11 + $0x13]]  ;;  %10542 = vst [vmem:[#allocation163_spill] sm:$0xff] %v6952_v3  ;;  %10554 = vst [vmem:[#allocation168_spill] sm:$0xff] %v6980_v35 }
 0x215   : > { %10525 = sst [smem:[#allocation173_spill]] %s6898_s0  ;;  %v2938_v34 = vstv %s10526_s29  ;;  %s6946_s28 = sld [smem:[#allocation9 + $0x5]] }
 0x216   : > { %10529 = sst [smem:[#allocation79_spill]] %s6907_s18  ;;  %s10543_s29 = sld [smem:[#allocation80_spill]]  ;;  %v6961_v10 = vmul.f32 %v2938_v34, %v6139_v0  ;;  %v6977_v0 = vmul.f32 %v2770_v33, %v6159_v39  ;;  %v6984_v48 = vmul.f32 %v2938_v34, %v6159_v39 }
 0x217   : > { %10530 = sst [smem:[#allocation174_spill]] %s6909_s19  ;;  %s10544_s27 = sld [smem:[#allocation81_spill]] }
 0x218   : > { %10531 = sst [smem:[#allocation175_spill]] %s6918_s22  ;;  %s6956_s6 = sld [smem:[#allocation11 + $0x14]]  ;;  %10547 = vst [vmem:[#allocation165_spill] sm:$0xff] %v6961_v10  ;;  %10553 = vst [vmem:[#allocation167_spill] sm:$0xff] %v6977_v0 }
 0x219   : > { %10532 = sst [smem:[#allocation176_spill]] %s6920_s2  ;;  %s6958_s15 = sld [smem:[#allocation11 + $0x15]]  ;;  %10556 = vst [vmem:[#allocation169_spill] sm:$0xff] %v6984_v48 }
 0x21a   : > { %10535 = sst [smem:[#allocation177_spill]] %s6932_s4  ;;  %s10549_s21 = sld [smem:[#allocation67_spill]] }
 0x21b   : > { %10536 = sst [smem:[#allocation178_spill]] %s6934_s1  ;;  %s10550_s17 = sld [smem:[#allocation82_spill]] }
 0x21c   : > { %10539 = sst [smem:[#allocation179_spill]] %s6944_s26  ;;  %s6972_s23 = sld [smem:[#allocation11 + $0x16]]  ;;  %v3034_v44 = vstv %s10543_s29 }
 0x21d   : > { %10540 = sst [smem:[#allocation180_spill]] %s6946_s28  ;;  %s6974_s20 = sld [smem:[#allocation11 + $0x17]]  ;;  %v3118_v18 = vstv %s10544_s27  ;;  %v7018_v34 = vmul.f32 %v3034_v44, %v6848_v62  ;;  %v7056_v57 = vmul.f32 %v3034_v44, %v6850_v15 }
 0x21e   : > { %10545 = sst [smem:[#allocation80_spill]] %s6956_s6  ;;  %s10555_s25 = sld [smem:[#allocation86_spill]]  ;;  %v7021_v36 = vmul.f32 %v3118_v18, %v6848_v62 }
 0x21f   : > { %10546 = sst [smem:[#allocation81_spill]] %s6958_s15  ;;  %s6988_s14 = sld [smem:[#allocation8 + $0xba]]  ;;  %10560 = vst [vmem:[#allocation181_spill] sm:$0xff] %v7018_v34  ;;  %10574 = vst [vmem:[#allocation192_spill] sm:$0xff] %v7056_v57 }
 0x220   : > { %s6990_s9 = sld [smem:[#allocation8 + $0xbb]]  ;;  %v3202_v33 = vstv %s10549_s21  ;;  %s6998_s15 = sld [smem:[#allocation8 + $0xbd]]  ;;  %10561 = vst [vmem:[#allocation182_spill] sm:$0xff] %v7021_v36 }
 0x221   : > { %v3286_v0 = vstv %s10550_s17  ;;  %s7004_s27 = sld [smem:[#allocation8 + $0xbe]]  ;;  %s7006_s29 = sld [smem:[#allocation8 + $0xbf]]  ;;  %v7031_v55 = vmul.f32 %v3202_v33, %v6848_v62  ;;  %v7072_v44 = vmul.f32 %v3202_v33, %v6850_v15 }
 0x222   : > { %10551 = sst [smem:[#allocation67_spill]] %s6972_s23  ;;  %s6996_s23 = sld [smem:[#allocation8 + $0xbc]]  ;;  %v7034_v35 = vmul.f32 %v3286_v0, %v6848_v62  ;;  %v7080_v53 = vmul.f32 %v3286_v0, %v6850_v15 }
 0x223   : > { %10552 = sst [smem:[#allocation82_spill]] %s6974_s20  ;;  %s10557_s20 = sld [smem:[#allocation87_spill]]  ;;  %10564 = vst [vmem:[#allocation185_spill] sm:$0xff] %v7031_v55  ;;  %10580 = vst [vmem:[#allocation194_spill] sm:$0xff] %v7072_v44  ;;  %v7094_v44 = vld [vmem:[#allocation2 + $0x52] sm:$0xff] }
 0x224   : > { %v3370_v59 = vstv %s10555_s25  ;;  %s7013_s21 = sld [smem:[#allocation8 + $0x4e]]  ;;  %s7015_s17 = sld [smem:[#allocation8 + $0x4f]]  ;;  %10565 = vst [vmem:[#allocation186_spill] sm:$0xff] %v7034_v35  ;;  %10584 = vst [vmem:[#allocation196_spill] sm:$0xff] %v7080_v53  ;;  %3021 = vrot.lane.b32.xlu1 %v7094_v44, %s10345_s7 }
 0x225   : > { %s7026_s25 = sld [smem:[#allocation8 + $0x50]]  ;;  %s7028_s5 = sld [smem:[#allocation8 + $0x51]]  ;;  %v7044_v48 = vmul.f32 %v3370_v59, %v6848_v62 }
 0x226   : > { %s7039_s10 = sld [smem:[#allocation8 + $0x52]]  ;;  %s7048_s16 = sld [smem:[#allocation8 + $0x7e]] }
 0x227   : > { %10568 = vst [vmem:[#allocation189_spill] sm:$0xff] %v7044_v48  ;;  %s10570_s30 = sld [smem:[#allocation90_spill]]  ;;  %s7050_s11 = sld [smem:[#allocation8 + $0x7f]]  ;;  %v4361_v48 = vld [vmem:[#allocation2 + $0x51] sm:$0xff] }
 0x228   : > { %s10572_s13 = sld [smem:[#allocation101_spill]]  ;;  %s10575_s2 = sld [smem:[#allocation108_spill]]  ;;  %3025 = vrot.lane.b32.xlu1 %v7094_v44, %s10346_s3 }
 0x229   : > { %v3454_v39 = vstv %s10557_s20  ;;  %s7041_s20 = sld [smem:[#allocation8 + $0x53]]  ;;  %s10576_s19 = sld [smem:[#allocation109_spill]] }
 0x22a   : > { %10558 = sst [smem:[#allocation86_spill]] %s7013_s21  ;;  %v7053_v34 = vmul.f32 %v3454_v39, %v6848_v62  ;;  %s7064_s18 = sld [smem:[#allocation8 + $0x80]]  ;;  %v7069_v62 = vmul.f32 %v3118_v18, %v6850_v15  ;;  %v7090_v18 = vmul.f32 %v3370_v59, %v6850_v15  ;;  %v7105_v10 = vmul.f32 %v3454_v39, %v6850_v15 }
 0x22b   : > { %10559 = sst [smem:[#allocation87_spill]] %s7015_s17  ;;  %s7066_s0 = sld [smem:[#allocation8 + $0x81]] }
 0x22c   : > { %10562 = sst [smem:[#allocation183_spill]] %s7026_s25  ;;  %10573 = vst [vmem:[#allocation191_spill] sm:$0xff] %v7053_v34  ;;  %10579 = vst [vmem:[#allocation193_spill] sm:$0xff] %v7069_v62  ;;  %s7075_s22 = sld [smem:[#allocation8 + $0x82]]  ;;  %v7096_v62 = vld [vmem:[#allocation2 + $0x4a] sm:$0xff] }
 0x22d   : > { %10563 = sst [smem:[#allocation184_spill]] %s7028_s5  ;;  %s7077_s8 = sld [smem:[#allocation8 + $0x83]]  ;;  %v2536_v3 = vstv %s10570_s30  ;;  %10589 = vst [vmem:[#allocation198_spill] sm:$0xff] %v7090_v18  ;;  %10593 = vst [vmem:[#allocation200_spill] sm:$0xff] %v7105_v10  ;;  %3019 = vrot.lane.b32.xlu0 %v7096_v62, %s10345_s7 }
 0x22e   : > { %10566 = sst [smem:[#allocation187_spill]] %s7039_s10  ;;  %s10585_s1 = sld [smem:[#allocation85_spill]]  ;;  %v2620_v36 = vstv %s10572_s13  ;;  %v2704_v33 = vstv %s10575_s2  ;;  %v7118_v53 = vmul.f32 %v2536_v3, %v6794_v20  ;;  %v7135_v10 = vmul.f32 %v2536_v3, %v6796_v8 }
 0x22f   : > { %10567 = sst [smem:[#allocation188_spill]] %s7041_s20  ;;  %s7085_s12 = sld [smem:[#allocation8 + $0x96]]  ;;  %v2788_v50 = vstv %s10576_s19  ;;  %v7121_v15 = vmul.f32 %v2620_v36, %v6794_v20  ;;  %v7129_v59 = vmul.f32 %v2704_v33, %v6794_v20 }
 0x230   : > { %10569 = sst [smem:[#allocation190_spill]] %s7048_s16  ;;  %s10590_s26 = sld [smem:[#allocation118_spill]]  ;;  %10599 = vst [vmem:[#allocation201_spill] sm:$0xff] %v7118_v53  ;;  %v7132_v0 = vmul.f32 %v2788_v50, %v6794_v20  ;;  %10608 = vst [vmem:[#allocation205_spill] sm:$0xff] %v7135_v10 }
 0x231   : > { %10571 = sst [smem:[#allocation90_spill]] %s7050_s11  ;;  %s7100_s30 = sld [smem:[#allocation8 + $0x98]]  ;;  %10600 = vst [vmem:[#allocation202_spill] sm:$0xff] %v7121_v15  ;;  %10606 = vst [vmem:[#allocation203_spill] sm:$0xff] %v7129_v59  ;;  %v7138_v15 = vmul.f32 %v2620_v36, %v6796_v8  ;;  %3023 = vrot.lane.b32.xlu0 %v7096_v62, %s10346_s3 }
 0x232   : > { %10577 = sst [smem:[#allocation101_spill]] %s7064_s18  ;;  %s7102_s13 = sld [smem:[#allocation8 + $0x99]]  ;;  %10607 = vst [vmem:[#allocation204_spill] sm:$0xff] %v7132_v0  ;;  %v7170_v0 = vmul.f32 %v2704_v33, %v6796_v8 }
 0x233   : > { %10578 = sst [smem:[#allocation108_spill]] %s7066_s0  ;;  %s7087_s0 = sld [smem:[#allocation8 + $0x97]]  ;;  %10610 = vst [vmem:[#allocation206_spill] sm:$0xff] %v7138_v15 }
 0x234   : > { %10582 = sst [smem:[#allocation109_spill]] %s7075_s22  ;;  %v2872_v57 = vstv %s10585_s1  ;;  %s10594_s2 = sld [smem:[#allocation155_spill]]  ;;  %10619 = vst [vmem:[#allocation213_spill] sm:$0xff] %v7170_v0 }
 0x235   : > { %10583 = sst [smem:[#allocation195_spill]] %s7077_s8  ;;  %s10595_s19 = sld [smem:[#allocation156_spill]]  ;;  %v7145_v18 = vmul.f32 %v2872_v57, %v6794_v20 }
 0x236   : > { %10587 = sst [smem:[#allocation85_spill]] %s7085_s12  ;;  %s7113_s28 = sld [smem:[#allocation8 + $0x9a]]  ;;  %v2956_v39 = vstv %s10590_s26 }
 0x237   : > { %10591 = sst [smem:[#allocation118_spill]] %s7100_s30  ;;  %s7115_s6 = sld [smem:[#allocation8 + $0x9b]]  ;;  %10613 = vst [vmem:[#allocation207_spill] sm:$0xff] %v7145_v18  ;;  %v7155_v3 = vmul.f32 %v2956_v39, %v6794_v20  ;;  %v7173_v20 = vmul.f32 %v2788_v50, %v6796_v8  ;;  %v7183_v18 = vmul.f32 %v2956_v39, %v6796_v8  ;;  %v3154_v39 = vstv %s6990_s9 }
 0x238   : > { %10592 = sst [smem:[#allocation199_spill]] %s7102_s13  ;;  %s10597_s24 = sld [smem:[#allocation34_spill]] }
 0x239   : > { %10588 = sst [smem:[#allocation197_spill]] %s7087_s0  ;;  %s10601_s1 = sld [smem:[#allocation35_spill]]  ;;  %10616 = vst [vmem:[#allocation210_spill] sm:$0xff] %v7155_v3  ;;  %10620 = vst [vmem:[#allocation214_spill] sm:$0xff] %v7173_v20  ;;  %v7176_v3 = vmul.f32 %v2872_v57, %v6796_v8  ;;  %v3070_v8 = vstv %s6988_s14 }
 0x23a   : > { %s7124_s13 = sld [smem:[#allocation8 + $0xc]]  ;;  %s10603_s30 = sld [smem:[#allocation38_spill]]  ;;  %v3052_v53 = vstv %s10594_s2  ;;  %10624 = vst [vmem:[#allocation218_spill] sm:$0xff] %v7183_v18  ;;  %v4362_v18 = vld [vmem:[#allocation2 + $0x49] sm:$0xff] }
 0x23b   : > { %s7126_s7 = sld [smem:[#allocation8 + $0xd]]  ;;  %s10605_s4 = sld [smem:[#allocation39_spill]]  ;;  %v3136_v34 = vstv %s10595_s19  ;;  %10621 = vst [vmem:[#allocation215_spill] sm:$0xff] %v7176_v3  ;;  %v7185_v33 = vmul.f32 %v4361_v48, %v3052_v53 }
 0x23c   : > { %10596 = sst [smem:[#allocation155_spill]] %s7113_s28  ;;  %s7140_s26 = sld [smem:[#allocation8 + $0xe]]  ;;  %v7187_v0 = vmul.f32 %v4361_v48, %v3136_v34 }
 0x23d   : > { %10598 = sst [smem:[#allocation156_spill]] %s7115_s6  ;;  %s7152_s28 = sld [smem:[#allocation8 + $0x11]]  ;;  %10625 = vst [vmem:[#allocation219_spill] sm:$0xff] %v7185_v33  ;;  %v3322_v33 = vstv %s6998_s15 }
 0x23e   : > { %v3220_v59 = vstv %s10597_s24  ;;  %s7165_s2 = sld [smem:[#allocation8 + $0xc6]]  ;;  %s7167_s24 = sld [smem:[#allocation8 + $0xc7]]  ;;  %10626 = vst [vmem:[#allocation220_spill] sm:$0xff] %v7187_v0  ;;  %v3238_v0 = vstv %s6996_s23 }
 0x23f   : > { %v3304_v10 = vstv %s10601_s1  ;;  %s7180_s3 = sld [smem:[#allocation8 + $0xc9]]  ;;  %v7189_v50 = vmul.f32 %v4361_v48, %v3220_v59  ;;  %s7193_s19 = sld [smem:[#allocation8 + $0xcb]] }
 0x240   : > { %10602 = sst [smem:[#allocation34_spill]] %s7124_s13  ;;  %s7142_s13 = sld [smem:[#allocation8 + $0xf]]  ;;  %v3388_v36 = vstv %s10603_s30  ;;  %v7195_v57 = vmul.f32 %v4361_v48, %v3304_v10  ;;  %v7225_v35 = vmul.f32 %v4362_v18, %v3304_v10  ;;  %v7242_v10 = vmul.f32 %v3238_v0, %v7094_v44 }
 0x241   : > { %10604 = sst [smem:[#allocation35_spill]] %s7126_s7  ;;  %s7150_s7 = sld [smem:[#allocation8 + $0x10]]  ;;  %v3472_v15 = vstv %s10605_s4  ;;  %10627 = vst [vmem:[#allocation221_spill] sm:$0xff] %v7189_v50  ;;  %v7197_v3 = vmul.f32 %v4361_v48, %v3388_v36  ;;  %v3406_v50 = vstv %s7004_s27  ;;  %v7227_v55 = vmul.f32 %v4362_v18, %v3388_v36 }
 0x242   : > { %10611 = sst [smem:[#allocation38_spill]] %s7140_s26  ;;  %s7178_s4 = sld [smem:[#allocation8 + $0xc8]]  ;;  %10630 = vst [vmem:[#allocation224_spill] sm:$0xff] %v7195_v57  ;;  %v7199_v20 = vmul.f32 %v4361_v48, %v3472_v15  ;;  %v7214_v57 = vmul.f32 %v4362_v18, %v3052_v53  ;;  %v7218_v48 = vmul.f32 %v4362_v18, %v3220_v59  ;;  %10642 = vst [vmem:[#allocation236_spill] sm:$0xff] %v7225_v35 }
 0x243   : > { %10615 = sst [smem:[#allocation209_spill]] %s7152_s28  ;;  %s7191_s30 = sld [smem:[#allocation8 + $0xca]]  ;;  %10631 = vst [vmem:[#allocation225_spill] sm:$0xff] %v7197_v3  ;;  %v7216_v3 = vmul.f32 %v4362_v18, %v3136_v34  ;;  %10643 = vst [vmem:[#allocation237_spill] sm:$0xff] %v7227_v55  ;;  %v7229_v53 = vmul.f32 %v4362_v18, %v3472_v15  ;;  %v7232_v34 = vmul.f32 %v3070_v8, %v7094_v44 }
 0x244   : > { %10617 = sst [smem:[#allocation211_spill]] %s7165_s2  ;;  %10632 = vst [vmem:[#allocation226_spill] sm:$0xff] %v7199_v20  ;;  %s7202_s1 = sld [smem:[#allocation9 + $0x6]]  ;;  %10637 = vst [vmem:[#allocation231_spill] sm:$0xff] %v7214_v57  ;;  %v3490_v20 = vstv %s7006_s29  ;;  %v7239_v59 = vmul.f32 %v3154_v39, %v7094_v44  ;;  %v7245_v36 = vmul.f32 %v3322_v33, %v7094_v44  ;;  %v7248_v18 = vmul.f32 %v3406_v50, %v7094_v44 }
 0x245   : > { %10618 = sst [smem:[#allocation212_spill]] %s7167_s24  ;;  %s7204_s6 = sld [smem:[#allocation9 + $0x7]]  ;;  %10638 = vst [vmem:[#allocation232_spill] sm:$0xff] %v7216_v3  ;;  %10639 = vst [vmem:[#allocation233_spill] sm:$0xff] %v7218_v48  ;;  %v7268_v55 = vmul.f32 %v3070_v8, %v7096_v62  ;;  %v7278_v35 = vmul.f32 %v3238_v0, %v7096_v62  ;;  %v7284_v8 = vmul.f32 %v3406_v50, %v7096_v62 }
 0x246   : > { %10612 = sst [smem:[#allocation39_spill]] %s7142_s13  ;;  %s7221_s14 = sld [smem:[#allocation11 + $0x1a]]  ;;  %10644 = vst [vmem:[#allocation238_spill] sm:$0xff] %v7229_v53  ;;  %10645 = vst [vmem:[#allocation239_spill] sm:$0xff] %v7232_v34  ;;  %v7281_v34 = vmul.f32 %v3322_v33, %v7096_v62  ;;  %v7294_v0 = vmul.f32 %v3490_v20, %v7096_v62 }
 0x247   : > { %10614 = sst [smem:[#allocation208_spill]] %s7150_s7  ;;  %s7223_s23 = sld [smem:[#allocation11 + $0x1b]]  ;;  %10648 = vst [vmem:[#allocation242_spill] sm:$0xff] %v7239_v59  ;;  %10649 = vst [vmem:[#allocation243_spill] sm:$0xff] %v7242_v10  ;;  %v7258_v59 = vmul.f32 %v3490_v20, %v7094_v44  ;;  %v7275_v44 = vmul.f32 %v3154_v39, %v7096_v62 }
 0x248   : > { %10622 = sst [smem:[#allocation216_spill]] %s7178_s4  ;;  %s7234_s15 = sld [smem:[#allocation11 + $0x1c]]  ;;  %10650 = vst [vmem:[#allocation244_spill] sm:$0xff] %v7245_v36  ;;  %10651 = vst [vmem:[#allocation245_spill] sm:$0xff] %v7248_v18 }
 0x249   : > { %10623 = sst [smem:[#allocation217_spill]] %s7180_s3  ;;  %s7210_s3 = sld [smem:[#allocation11 + $0x18]]  ;;  %10654 = vst [vmem:[#allocation248_spill] sm:$0xff] %v7258_v59  ;;  %10658 = vst [vmem:[#allocation251_spill] sm:$0xff] %v7268_v55 }
 0x24a   : > { %10628 = sst [smem:[#allocation222_spill]] %s7191_s30  ;;  %s7212_s30 = sld [smem:[#allocation11 + $0x19]]  ;;  %10661 = vst [vmem:[#allocation254_spill] sm:$0xff] %v7275_v44  ;;  %10662 = vst [vmem:[#allocation255_spill] sm:$0xff] %v7278_v35  ;;  %v1398_v35 = vpop.permute.xlu0 %1397 }
 0x24b   : > { %10629 = sst [smem:[#allocation223_spill]] %s7193_s19  ;;  %s7253_s27 = sld [smem:[#allocation11 + $0x1e]]  ;;  %10664 = vst [vmem:[#allocation256_spill] sm:$0xff] %v7281_v34  ;;  %10666 = vst [vmem:[#allocation257_spill] sm:$0xff] %v7284_v8  ;;  %v1400_v34 = vpop.permute.xlu1 %1399 }
 0x24c   : > { %10633 = sst [smem:[#allocation227_spill]] %s7202_s1  ;;  %s7236_s9 = sld [smem:[#allocation11 + $0x1d]]  ;;  %10673 = vst [vmem:[#allocation260_spill] sm:$0xff] %v7294_v0 }
 0x24d   : > { %10634 = sst [smem:[#allocation228_spill]] %s7204_s6  ;;  %s7265_s21 = sld [smem:[#allocation11 + $0x20]] }
 0x24e   : > { %10640 = sst [smem:[#allocation234_spill]] %s7221_s14  ;;  %s7255_s29 = sld [smem:[#allocation11 + $0x1f]] }
 0x24f   : > { %10635 = sst [smem:[#allocation229_spill]] %s7210_s3  ;;  %s7270_s25 = sld [smem:[#allocation11 + $0x21]] }
 0x250   : > { %10636 = sst [smem:[#allocation230_spill]] %s7212_s30  ;;  %s7272_s17 = sld [smem:[#allocation11 + $0x22]] }
 0x251   : > { %10641 = sst [smem:[#allocation235_spill]] %s7223_s23  ;;  %s7300_s16 = sld [smem:[#allocation11 + $0x24]] }
 0x252   : > { %10646 = sst [smem:[#allocation240_spill]] %s7234_s15  ;;  %s7263_s15 = sld [smem:[#allocation9 + $0x8]] }
 0x253   : > { %10647 = sst [smem:[#allocation241_spill]] %s7236_s9  ;;  %s7308_s11 = sld [smem:[#allocation11 + $0x26]] }
 0x254   : > { %10652 = sst [smem:[#allocation246_spill]] %s7253_s27  ;;  %s7302_s18 = sld [smem:[#allocation11 + $0x25]] }
 0x255   : > { %10653 = sst [smem:[#allocation247_spill]] %s7255_s29  ;;  %s7316_s12 = sld [smem:[#allocation9 + $0xa]] }
 0x256   : > { %10657 = sst [smem:[#allocation250_spill]] %s7265_s21  ;;  %s7310_s22 = sld [smem:[#allocation11 + $0x27]] }
 0x257   : > { %10659 = sst [smem:[#allocation252_spill]] %s7270_s25  ;;  %s7289_s25 = sld [smem:[#allocation11 + $0x23]] }
 0x258   : > { %10656 = sst [smem:[#allocation249_spill]] %s7263_s15  ;;  %s7291_s15 = sld [smem:[#allocation9 + $0x9]] }
 0x259   : > { %10660 = sst [smem:[#allocation253_spill]] %s7272_s17  ;;  %s7318_s20 = sld [smem:[#allocation11 + $0x28]] }
 0x25a   : > { %10674 = sst [smem:[#allocation261_spill]] %s7300_s16  ;;  %s7324_s5 = sld [smem:[#allocation11 + $0x29]] }
 0x25b   : > { %10675 = sst [smem:[#allocation262_spill]] %s7302_s18  ;;  %s7326_s29 = sld [smem:[#allocation11 + $0x2a]] }
 0x25c   : > { %10676 = sst [smem:[#allocation263_spill]] %s7308_s11  ;;  %s7332_s7 = sld [smem:[#allocation11 + $0x2b]] }
 0x25d   : > { %10669 = sst [smem:[#allocation258_spill]] %s7289_s25  ;;  %s7334_s0 = sld [smem:[#allocation9 + $0xb]] }
 0x25e   : > { %10671 = sst [smem:[#allocation259_spill]] %s7291_s15  ;;  %s7340_s4 = sld [smem:[#allocation11 + $0x2c]] }
 0x25f   : > { %10678 = sst [smem:[#allocation264_spill]] %s7310_s22  ;;  %s10694_s3 = sld [smem:[#allocation42_spill]] }
 0x260   : > { %10680 = sst [smem:[#allocation265_spill]] %s7316_s12  ;;  %s10695_s30 = sld [smem:[#allocation44_spill]] }
 0x261   : > { %10681 = sst [smem:[#allocation266_spill]] %s7318_s20  ;;  %s10696_s14 = sld [smem:[#allocation45_spill]] }
 0x262   : > { %10682 = sst [smem:[#allocation267_spill]] %s7324_s5  ;;  %s10697_s23 = sld [smem:[#allocation46_spill]] }
 0x263   : > { %10684 = sst [smem:[#allocation268_spill]] %s7326_s29  ;;  %s10698_s21 = sld [smem:[#allocation51_spill]] }
 0x264   : > { %10689 = sst [smem:[#allocation269_spill]] %s7332_s7  ;;  %s10699_s27 = sld [smem:[#allocation52_spill]] }
 0x265   : > { %10691 = sst [smem:[#allocation270_spill]] %s7334_s0  ;;  %v10700_v62 = vstv %s10694_s3  ;;  %s10709_s7 = sld [smem:[#allocation55_spill]] }
 0x266   : > { %10693 = sst [smem:[#allocation271_spill]] %s7340_s4  ;;  %v1428_v59 = vmul.f32 %v10700_v62, %v1400_v34  ;;  %v10701_v50 = vstv %s10695_s30  ;;  %v10706_v0 = vmov %v10700_v62  ;;  %s10708_s4 = sld [smem:[#allocation53_spill]] }
 0x267   : > { %v1512_v18 = vmul.f32 %v10701_v50, %v1400_v34  ;;  %v10702_v8 = vstv %s10696_s14  ;;  %v1427_v44 = vmul.f32 %v10706_v0, %v1398_v35  ;;  %v10707_v20 = vmov %v10701_v50  ;;  %s10710_s29 = sld [smem:[#allocation56_spill]]  ;;  %s10711_s5 = sld [smem:[#allocation57_spill]] }
 0x268   : > { %v1596_v39 = vmul.f32 %v10702_v8, %v1400_v34  ;;  %v10703_v36 = vstv %s10697_s23  ;;  %v1511_v55 = vmul.f32 %v10707_v20, %v1398_v35  ;;  %v1436_v50 = vadd.f32 %v6407_v52, %v1428_v59  ;;  %v1404_v20 = vpop.permute.xlu1 %1403  ;;  %s10715_s3 = sld [smem:[#allocation58_spill]]  ;;  %s10717_s30 = sld [smem:[#allocation59_spill]] }
 0x269   : > { %v1680_v33 = vmul.f32 %v10703_v36, %v1400_v34  ;;  %v10704_v15 = vstv %s10698_s21  ;;  %v1520_v8 = vadd.f32 %v6412_v21, %v1512_v18  ;;  %v10712_v3 = vstv %s10696_s14  ;;  %s10727_s14 = sld [smem:[#allocation63_spill]]  ;;  %s10733_s20 = sld [smem:[#allocation66_spill]] }
 0x26a   : > { %v1764_v10 = vmul.f32 %v10704_v15, %v1400_v34  ;;  %v10705_v53 = vstv %s10699_s27  ;;  %v1604_v36 = vadd.f32 %v6417_v6, %v1596_v39  ;;  %v1519_v0 = vadd.f32 %v6450_v27, %v1511_v55  ;;  %s10735_s22 = sld [smem:[#allocation68_spill]]  ;;  %s10842_s11 = sld [smem:[#allocation47_spill]] }
 0x26b   : > { %v1848_v48 = vmul.f32 %v10705_v53, %v1400_v34  ;;  %v1688_v62 = vadd.f32 %v6425_v37, %v1680_v33  ;;  %v1435_v34 = vadd.f32 %v6445_v1, %v1427_v44  ;;  %v1595_v57 = vmul.f32 %v10712_v3, %v1398_v35  ;;  %v1402_v37 = vpop.permute.xlu0 %1401  ;;  %s10844_s18 = sld [smem:[#allocation48_spill]]  ;;  %s10846_s16 = sld [smem:[#allocation49_spill]] }
 0x26c   : > { %v1772_v15 = vadd.f32 %v6430_v46, %v1764_v10  ;;  %v10713_v52 = vstv %s10697_s23  ;;  %v10714_v5 = vstv %s10698_s21  ;;  %v10716_v18 = vstv %s10699_s27  ;;  %s10726_s21 = sld [smem:[#allocation61_spill]]  ;;  %s10729_s23 = sld [smem:[#allocation64_spill]] }
 0x26d   : > { %v1856_v53 = vadd.f32 %v6435_v43, %v1848_v48  ;;  %v1679_v59 = vmul.f32 %v10713_v52, %v1398_v35  ;;  %v1763_v21 = vmul.f32 %v10714_v5, %v1398_v35  ;;  %v1847_v6 = vmul.f32 %v10716_v18, %v1398_v35  ;;  %s10731_s27 = sld [smem:[#allocation65_spill]]  ;;  %s10847_s25 = sld [smem:[#allocation54_spill]] }
 0x26e   : > { %v10718_v46 = vstv %s10708_s4  ;;  %v10719_v48 = vstv %s10709_s7  ;;  %v10720_v10 = vstv %s10710_s29  ;;  %v10721_v55 = vstv %s10711_s5  ;;  %s10848_s2 = sld [smem:[#allocation60_spill]]  ;;  %s10850_s28 = sld [smem:[#allocation62_spill]] }
 0x26f   : > { %v1440_v43 = vmul.f32 %v10718_v46, %v1404_v20  ;;  %v1524_v1 = vmul.f32 %v10719_v48, %v1404_v20  ;;  %v1608_v27 = vmul.f32 %v10720_v10, %v1404_v20  ;;  %v1692_v3 = vmul.f32 %v10721_v55, %v1404_v20  ;;  %s10851_s13 = sld [smem:[#allocation71_spill]]  ;;  %s10854_s17 = sld [smem:[#allocation180_spill]] }
 0x270   : > { %v1603_v44 = vadd.f32 %v6455_v56, %v1595_v57  ;;  %v1687_v5 = vadd.f32 %v6458_v38, %v1679_v59  ;;  %v1771_v35 = vadd.f32 %v6483_v60, %v1763_v21  ;;  %v1855_v33 = vadd.f32 %v6488_v30, %v1847_v6  ;;  %v1410_v57 = vpop.permute.xlu1 %1409  ;;  %v1408_v6 = vpop.permute.xlu0 %1407  ;;  %s10860_s26 = sld [smem:[#allocation171_spill]]  ;;  %s10866_s12 = sld [smem:[#allocation75_spill]] }
 0x271   : > { %v1442_v39 = vadd.f32 %v1440_v43, %v1436_v50  ;;  %v1526_v52 = vadd.f32 %v1524_v1, %v1520_v8  ;;  %v1610_v18 = vadd.f32 %v1608_v27, %v1604_v36  ;;  %v1694_v46 = vadd.f32 %v1692_v3, %v1688_v62  ;;  %s10862_s0 = sld [smem:[#allocation72_spill]]  ;;  %s10868_s15 = sld [smem:[#allocation172_spill]] }
 0x272   : > { %v10722_v48 = vstv %s10715_s3  ;;  %v10723_v10 = vstv %s10717_s30  ;;  %v10724_v19 = vstv %s10708_s4  ;;  %v10725_v25 = vstv %s10709_s7  ;;  %s10745_s7 = sld [smem:[#allocation50_spill]]  ;;  %s10747_s4 = sld [smem:[#allocation70_spill]] }
 0x273   : > { %v1776_v9 = vmul.f32 %v10722_v48, %v1404_v20  ;;  %v1860_v22 = vmul.f32 %v10723_v10, %v1404_v20  ;;  %v1439_v55 = vmul.f32 %v10724_v19, %v1402_v37  ;;  %v1523_v56 = vmul.f32 %v10725_v25, %v1402_v37  ;;  %s10752_s3 = sld [smem:[#allocation76_spill]]  ;;  %s10754_s30 = sld [smem:[#allocation78_spill]] }
 0x274   : > { %v10728_v38 = vstv %s10710_s29  ;;  %v10730_v59 = vstv %s10711_s5  ;;  %v10732_v50 = vmov %v10722_v48  ;;  %v10734_v36 = vmov %v10723_v10  ;;  %s10744_s5 = sld [smem:[#allocation69_spill]]  ;;  %s10750_s29 = sld [smem:[#allocation74_spill]] }
 0x275   : > { %v1607_v60 = vmul.f32 %v10728_v38, %v1402_v37  ;;  %v1691_v30 = vmul.f32 %v10730_v59, %v1402_v37  ;;  %v1775_v8 = vmul.f32 %v10732_v50, %v1402_v37  ;;  %v1859_v62 = vmul.f32 %v10734_v36, %v1402_v37  ;;  %s10870_s10 = sld [smem:[#allocation173_spill]]  ;;  %s10872_s6 = sld [smem:[#allocation79_spill]] }
 0x276   : > { %v1778_v20 = vadd.f32 %v1776_v9, %v1772_v15  ;;  %v1862_v19 = vadd.f32 %v1860_v22, %v1856_v53  ;;  %v1441_v21 = vadd.f32 %v1439_v55, %v1435_v34  ;;  %v1525_v25 = vadd.f32 %v1523_v56, %v1519_v0  ;;  %s10873_s1 = sld [smem:[#allocation174_spill]]  ;;  %s10875_s19 = sld [smem:[#allocation176_spill]] }
 0x277   : > { %v1609_v43 = vadd.f32 %v1607_v60, %v1603_v44  ;;  %v1693_v1 = vadd.f32 %v1691_v30, %v1687_v5  ;;  %v1777_v27 = vadd.f32 %v1775_v8, %v1771_v35  ;;  %v1861_v3 = vadd.f32 %v1859_v62, %v1855_v33  ;;  %s10876_s8 = sld [smem:[#allocation177_spill]]  ;;  %s10877_s9 = sld [smem:[#allocation178_spill]] }
 0x278   : > { %v10736_v48 = vstv %s10726_s21  ;;  %v10737_v38 = vstv %s10727_s14  ;;  %v10738_v47 = vstv %s10729_s23  ;;  %v10739_v28 = vstv %s10731_s27  ;;  %s10764_s21 = sld [smem:[#allocation95_spill]]  ;;  %s10765_s14 = sld [smem:[#allocation97_spill]] }
 0x279   : > { %v1446_v10 = vmul.f32 %v10736_v48, %v1410_v57  ;;  %v1530_v59 = vmul.f32 %v10737_v38, %v1410_v57  ;;  %v1614_v50 = vmul.f32 %v10738_v47, %v1410_v57  ;;  %v1698_v37 = vmul.f32 %v10739_v28, %v1410_v57  ;;  %v1414_v47 = vpop.permute.xlu1 %1413  ;;  %s10879_s24 = sld [smem:[#allocation179_spill]] }
 0x27a   : > { %v10740_v9 = vstv %s10733_s20  ;;  %v10741_v15 = vstv %s10735_s22  ;;  %v10742_v34 = vmov %v10736_v48  ;;  %v10743_v44 = vmov %v10737_v38  ;;  %s10760_s22 = sld [smem:[#allocation83_spill]]  ;;  %s10761_s20 = sld [smem:[#allocation94_spill]] }
 0x27b   : > { %v1782_v22 = vmul.f32 %v10740_v9, %v1410_v57  ;;  %v1866_v53 = vmul.f32 %v10741_v15, %v1410_v57  ;;  %v1445_v0 = vmul.f32 %v10742_v34, %v1408_v6  ;;  %v1529_v5 = vmul.f32 %v10743_v44, %v1408_v6 }
 0x27c   : > { %v1448_v35 = vadd.f32 %v1446_v10, %v1442_v39  ;;  %v1532_v33 = vadd.f32 %v1530_v59, %v1526_v52  ;;  %v1616_v55 = vadd.f32 %v1614_v50, %v1610_v18  ;;  %v1700_v56 = vadd.f32 %v1698_v37, %v1694_v46 }
 0x27d   : > { %v1784_v60 = vadd.f32 %v1782_v22, %v1778_v20  ;;  %v1868_v30 = vadd.f32 %v1866_v53, %v1862_v19  ;;  %v1447_v28 = vadd.f32 %v1445_v0, %v1441_v21  ;;  %v1531_v8 = vadd.f32 %v1529_v5, %v1525_v25 }
 0x27e   : > { %v10746_v36 = vstv %s10729_s23  ;;  %v10748_v48 = vstv %s10731_s27  ;;  %v10749_v38 = vmov %v10740_v9  ;;  %v1865_v34 = vmul.f32 %v10741_v15, %v1408_v6  ;;  %s10766_s23 = sld [smem:[#allocation98_spill]]  ;;  %s10768_s27 = sld [smem:[#allocation100_spill]] }
 0x27f   : > { %v1613_v62 = vmul.f32 %v10746_v36, %v1408_v6  ;;  %v1697_v57 = vmul.f32 %v10748_v48, %v1408_v6  ;;  %v1781_v9 = vmul.f32 %v10749_v38, %v1408_v6  ;;  %v1454_v39 = vadd.f32 %v6346_v51, %v1448_v35  ;;  %v1412_v51 = vpop.permute.xlu0 %1411 }
 0x280   : > { %v10751_v52 = vstv %s10744_s5  ;;  %v1538_v46 = vadd.f32 %v6349_v26, %v1532_v33  ;;  %v10753_v20 = vstv %s10745_s7  ;;  %v1867_v59 = vadd.f32 %v1865_v34, %v1861_v3  ;;  %s10776_s5 = sld [smem:[#allocation84_spill]]  ;;  %s10778_s7 = sld [smem:[#allocation114_spill]] }
 0x281   : > { %v1458_v18 = vmul.f32 %v10751_v52, %v1414_v47  ;;  %v1542_v19 = vmul.f32 %v10753_v20, %v1414_v47  ;;  %v1615_v21 = vadd.f32 %v1613_v62, %v1609_v43  ;;  %v1699_v25 = vadd.f32 %v1697_v57, %v1693_v1 }
 0x282   : > { %v1783_v10 = vadd.f32 %v1781_v9, %v1777_v27  ;;  %v1622_v22 = vadd.f32 %v6352_v58, %v1616_v55  ;;  %v10755_v6 = vstv %s10747_s4  ;;  %v1706_v0 = vadd.f32 %v6366_v42, %v1700_v56  ;;  %s10781_s4 = sld [smem:[#allocation121_spill]] }
 0x283   : > { %v1460_v50 = vadd.f32 %v1458_v18, %v1454_v39  ;;  %v1544_v37 = vadd.f32 %v1542_v19, %v1538_v46  ;;  %v1626_v53 = vmul.f32 %v10755_v6, %v1414_v47  ;;  %v10756_v44 = vstv %s10750_s29  ;;  %s10784_s29 = sld [smem:[#allocation129_spill]] }
 0x284   : > { %v1710_v26 = vmul.f32 %v10756_v44, %v1414_v47  ;;  %v1790_v5 = vadd.f32 %v6374_v40, %v1784_v60  ;;  %v10757_v43 = vstv %s10752_s3  ;;  %v1874_v3 = vadd.f32 %v6379_v45, %v1868_v30  ;;  %v1420_v40 = vpop.permute.xlu1 %1419  ;;  %s10785_s3 = sld [smem:[#allocation131_spill]] }
 0x285   : > { %v1794_v1 = vmul.f32 %v10757_v43, %v1414_v47  ;;  %v1628_v27 = vadd.f32 %v1626_v53, %v1622_v22  ;;  %v10758_v35 = vstv %s10754_s30  ;;  %v1453_v58 = vadd.f32 %v6382_v54, %v1447_v28  ;;  %s10787_s30 = sld [smem:[#allocation132_spill]] }
 0x286   : > { %v1878_v33 = vmul.f32 %v10758_v35, %v1414_v47  ;;  %v1712_v55 = vadd.f32 %v1710_v26, %v1706_v0  ;;  %v10759_v62 = vmov %v10751_v52  ;;  %v1537_v56 = vadd.f32 %v6390_v7, %v1531_v8 }
 0x287   : > { %v1796_v36 = vadd.f32 %v1794_v1, %v1790_v5  ;;  %v1457_v42 = vmul.f32 %v10759_v62, %v1412_v51  ;;  %v10762_v48 = vmov %v10753_v20  ;;  %v1621_v45 = vadd.f32 %v6393_v4, %v1615_v21 }
 0x288   : > { %v1880_v60 = vadd.f32 %v1878_v33, %v1874_v3  ;;  %v1541_v57 = vmul.f32 %v10762_v48, %v1412_v51  ;;  %v10763_v30 = vmov %v10755_v6  ;;  %v1705_v28 = vadd.f32 %v6396_v61, %v1699_v25  ;;  %v1418_v61 = vpop.permute.xlu0 %1417 }
 0x289   : > { %v1625_v47 = vmul.f32 %v10763_v30, %v1412_v51  ;;  %v1459_v54 = vadd.f32 %v1457_v42, %v1453_v58  ;;  %v10767_v38 = vmov %v10756_v44  ;;  %v1789_v7 = vadd.f32 %v6501_v63, %v1783_v10 }
 0x28a   : > { %v1709_v9 = vmul.f32 %v10767_v38, %v1412_v51  ;;  %v1543_v8 = vadd.f32 %v1541_v57, %v1537_v56  ;;  %v10769_v34 = vmov %v10757_v43  ;;  %v1873_v52 = vadd.f32 %v6512_v23, %v1867_v59  ;;  %v1934_v43 = vpop.permute.xlu1 %1933 }
 0x28b   : > { %v1627_v15 = vadd.f32 %v1625_v47, %v1621_v45  ;;  %v1793_v39 = vmul.f32 %v10769_v34, %v1412_v51  ;;  %v10770_v18 = vmov %v10758_v35  ;;  %v10771_v20 = vstv %s10760_s22  ;;  %s10795_s22 = sld [smem:[#allocation144_spill]] }
 0x28c   : > { %v1711_v4 = vadd.f32 %v1709_v9, %v1705_v28  ;;  %v1877_v46 = vmul.f32 %v10770_v18, %v1412_v51  ;;  %v1464_v19 = vmul.f32 %v10771_v20, %v1420_v40  ;;  %v10772_v21 = vstv %s10761_s20  ;;  %s10797_s20 = sld [smem:[#allocation145_spill]] }
 0x28d   : > { %v1548_v22 = vmul.f32 %v10772_v21, %v1420_v40  ;;  %v1795_v25 = vadd.f32 %v1793_v39, %v1789_v7  ;;  %v10773_v63 = vstv %s10764_s21  ;;  %v10774_v6 = vstv %s10765_s14  ;;  %s10800_s21 = sld [smem:[#allocation147_spill]]  ;;  %s10801_s14 = sld [smem:[#allocation148_spill]] }
 0x28e   : > { %v1632_v10 = vmul.f32 %v10773_v63, %v1420_v40  ;;  %v1716_v53 = vmul.f32 %v10774_v6, %v1420_v40  ;;  %v10775_v0 = vstv %s10766_s23  ;;  %v1879_v59 = vadd.f32 %v1877_v46, %v1873_v52  ;;  %s10802_s23 = sld [smem:[#allocation152_spill]] }
 0x28f   : > { %v1800_v23 = vmul.f32 %v10775_v0, %v1420_v40  ;;  %v7496_v51 = vadd.f32 %v1464_v19, %v1460_v50  ;;  %v7498_v44 = vadd.f32 %v1548_v22, %v1544_v37  ;;  %v10777_v26 = vstv %s10768_s27  ;;  %s10804_s27 = sld [smem:[#allocation153_spill]] }
 0x290   : > { %v1884_v5 = vmul.f32 %v10777_v26, %v1420_v40  ;;  %v7502_v1 = vadd.f32 %v1632_v10, %v1628_v27  ;;  %v7504_v3 = vadd.f32 %v1716_v53, %v1712_v55  ;;  %v10779_v33 = vmov %v10771_v20 }
 0x291   : > { %v7506_v35 = vadd.f32 %v1800_v23, %v1796_v36  ;;  %v1463_v58 = vmul.f32 %v10779_v33, %v1418_v61  ;;  %v10780_v42 = vmov %v10772_v21  ;;  %v10782_v56 = vmov %v10773_v63 }
 0x292   : > { %v7510_v62 = vadd.f32 %v1884_v5, %v1880_v60  ;;  %v1547_v50 = vmul.f32 %v10780_v42, %v1418_v61  ;;  %v1631_v37 = vmul.f32 %v10782_v56, %v1418_v61  ;;  %v10783_v48 = vmov %v10774_v6 }
 0x293   : > { %v1715_v40 = vmul.f32 %v10783_v48, %v1418_v61  ;;  %v7518_v57 = vadd.f32 %v1463_v58, %v1459_v54  ;;  %v10786_v27 = vmov %v10775_v0  ;;  %v10788_v36 = vmov %v10777_v26  ;;  %v1932_v54 = vpop.permute.xlu0 %1931 }
 0x294   : > { %v1799_v55 = vmul.f32 %v10786_v27, %v1418_v61  ;;  %v1883_v45 = vmul.f32 %v10788_v36, %v1418_v61  ;;  %v10789_v30 = vstv %s10776_s5  ;;  %v7526_v47 = vadd.f32 %v1547_v50, %v1543_v8  ;;  %s10813_s5 = sld [smem:[#allocation36_spill]] }
 0x295   : > { %v1962_v60 = vmul.f32 %v10789_v30, %v1934_v43  ;;  %v7528_v28 = vadd.f32 %v1631_v37, %v1627_v15  ;;  %v7530_v38 = vadd.f32 %v1715_v40, %v1711_v4  ;;  %v10790_v9 = vstv %s10778_s7  ;;  %s10815_s7 = sld [smem:[#allocation37_spill]] }
 0x296   : > { %v2046_v7 = vmul.f32 %v10790_v9, %v1934_v43  ;;  %v7534_v34 = vadd.f32 %v1799_v55, %v1795_v25  ;;  %v7536_v39 = vadd.f32 %v1883_v45, %v1879_v59  ;;  %v10791_v18 = vstv %s10781_s4  ;;  %s10819_s4 = sld [smem:[#allocation30_spill]] }
 0x297   : > { %v1970_v52 = vadd.f32 %v6515_v49, %v1962_v60  ;;  %v2130_v46 = vmul.f32 %v10791_v18, %v1934_v43  ;;  %v10792_v20 = vstv %s10784_s29  ;;  %v10793_v19 = vstv %s10785_s3  ;;  %v1936_v40 = vpop.permute.xlu0 %1935  ;;  %s10822_s29 = sld [smem:[#allocation31_spill]]  ;;  %s10823_s3 = sld [smem:[#allocation32_spill]] }
 0x298   : > { %v2054_v8 = vadd.f32 %v6518_v29, %v2046_v7  ;;  %v2214_v15 = vmul.f32 %v10792_v20, %v1934_v43  ;;  %v2298_v4 = vmul.f32 %v10793_v19, %v1934_v43  ;;  %v10794_v21 = vstv %s10787_s30  ;;  %v1938_v29 = vpop.permute.xlu1 %1937  ;;  %s10824_s30 = sld [smem:[#allocation40_spill]] }
 0x299   : > { %v2382_v22 = vmul.f32 %v10794_v21, %v1934_v43  ;;  %v2138_v61 = vadd.f32 %v6532_v41, %v2130_v46  ;;  %v10796_v25 = vmov %v10789_v30  ;;  %v10798_v10 = vmov %v10790_v9 }
 0x29a   : > { %v1961_v63 = vmul.f32 %v10796_v25, %v1932_v54  ;;  %v2045_v49 = vmul.f32 %v10798_v10, %v1932_v54  ;;  %v10799_v6 = vmov %v10791_v18  ;;  %v2222_v0 = vadd.f32 %v6535_v17, %v2214_v15 }
 0x29b   : > { %v2129_v53 = vmul.f32 %v10799_v6, %v1932_v54  ;;  %v2306_v23 = vadd.f32 %v6538_v12, %v2298_v4  ;;  %v2390_v59 = vadd.f32 %v6548_v14, %v2382_v22  ;;  %v10803_v26 = vmov %v10792_v20 }
 0x29c   : > { %v2213_v5 = vmul.f32 %v10803_v26, %v1932_v54  ;;  %v1969_v41 = vadd.f32 %v6551_v24, %v1961_v63  ;;  %v2053_v43 = vadd.f32 %v6554_v13, %v2045_v49  ;;  %v10805_v58 = vmov %v10793_v19  ;;  %v1424_v15 = vpop.permute.xlu1 %1423 }
 0x29d   : > { %v2137_v33 = vadd.f32 %v6565_v11, %v2129_v53  ;;  %v2297_v42 = vmul.f32 %v10805_v58, %v1932_v54  ;;  %v10806_v56 = vmov %v10794_v21  ;;  %v10807_v37 = vstv %s10795_s22  ;;  %s10826_s22 = sld [smem:[#allocation33_spill]] }
 0x29e   : > { %v2221_v50 = vadd.f32 %v6582_v2, %v2213_v5  ;;  %v2381_v17 = vmul.f32 %v10806_v56, %v1932_v54  ;;  %v1974_v12 = vmul.f32 %v10807_v37, %v1938_v29  ;;  %v10808_v48 = vstv %s10797_s20  ;;  %s10828_s20 = sld [smem:[#allocation41_spill]] }
 0x29f   : > { %v2058_v14 = vmul.f32 %v10808_v48, %v1938_v29  ;;  %v2305_v24 = vadd.f32 %v6585_v16, %v2297_v42  ;;  %v10809_v27 = vstv %s10800_s21  ;;  %v10810_v11 = vstv %s10801_s14  ;;  %s10833_s21 = sld [smem:[#allocation170_spill]]  ;;  %s10837_s14 = sld [smem:[#allocation77_spill]] }
 0x2a0   : > { %v2142_v13 = vmul.f32 %v10809_v27, %v1938_v29  ;;  %v2226_v55 = vmul.f32 %v10810_v11, %v1938_v29  ;;  %v10811_v36 = vstv %s10802_s23  ;;  %v2389_v45 = vadd.f32 %v6588_v31, %v2381_v17  ;;  %v10832_v17 = vld [vmem:[#allocation91_spill] sm:$0xff]  ;;  %s10838_s23 = sld [smem:[#allocation175_spill]] }
 0x2a1   : > { %v2310_v2 = vmul.f32 %v10811_v36, %v1938_v29  ;;  %v7580_v30 = vadd.f32 %v1974_v12, %v1970_v52  ;;  %v7582_v60 = vadd.f32 %v2058_v14, %v2054_v8  ;;  %v10812_v9 = vstv %s10804_s27  ;;  %s10840_s27 = sld [smem:[#allocation43_spill]] }
 0x2a2   : > { %v2394_v7 = vmul.f32 %v10812_v9, %v1938_v29  ;;  %v7586_v54 = vadd.f32 %v2142_v13, %v2138_v61  ;;  %v7588_v16 = vadd.f32 %v2226_v55, %v2222_v0  ;;  %v10814_v46 = vmov %v10807_v37  ;;  %v7638_v13 = vpop.permute.xlu0 %1421 }
 0x2a3   : > { %v7590_v18 = vadd.f32 %v2310_v2, %v2306_v23  ;;  %v1973_v20 = vmul.f32 %v10814_v46, %v1936_v40  ;;  %v10816_v31 = vmov %v10808_v48  ;;  %v10817_v4 = vmov %v10809_v27 }
 0x2a4   : > { %v7594_v19 = vadd.f32 %v2394_v7, %v2390_v59  ;;  %v2057_v52 = vmul.f32 %v10816_v31, %v1936_v40  ;;  %v2141_v8 = vmul.f32 %v10817_v4, %v1936_v40  ;;  %v10818_v21 = vmov %v10810_v11 }
 0x2a5   : > { %v2225_v22 = vmul.f32 %v10818_v21, %v1936_v40  ;;  %v7602_v61 = vadd.f32 %v1973_v20, %v1969_v41  ;;  %v10820_v25 = vmov %v10811_v36  ;;  %v10821_v10 = vmov %v10812_v9  ;;  %v10827_v41 = vld [vmem:[#allocation88_spill] sm:$0xff]  ;;  %v10849_v20 = vld [vmem:[#allocation96_spill] sm:$0xff] }
 0x2a6   : > { %v2309_v63 = vmul.f32 %v10820_v25, %v1936_v40  ;;  %v2393_v49 = vmul.f32 %v10821_v10, %v1936_v40  ;;  %v1472_v6 = vadd.f32 %v6598_v32, %v7496_v51  ;;  %v7610_v53 = vadd.f32 %v2057_v52, %v2053_v43  ;;  %v10835_v40 = vld [vmem:[#allocation92_spill] sm:$0xff]  ;;  %v10841_v36 = vld [vmem:[#allocation93_spill] sm:$0xff] }
 0x2a7   : > { %v7612_v29 = vadd.f32 %v2141_v8, %v2137_v33  ;;  %v7614_v0 = vadd.f32 %v2225_v22, %v2221_v50  ;;  %v10825_v23 = vstv %s10813_s5  ;;  %v1556_v58 = vadd.f32 %v10827_v41, %v7498_v44  ;;  %v10830_v33 = vld [vmem:[#allocation89_spill] sm:$0xff]  ;;  %s10864_s5 = sld [smem:[#allocation73_spill]] }
 0x2a8   : > { %v1476_v59 = vmul.f32 %v10825_v23, %v1424_v15  ;;  %v7618_v26 = vadd.f32 %v2309_v63, %v2305_v24  ;;  %v7620_v5 = vadd.f32 %v2393_v49, %v2389_v45  ;;  %v10829_v32 = vstv %s10815_s7 }
 0x2a9   : > { %v1560_v51 = vmul.f32 %v10829_v32, %v1424_v15  ;;  %v1640_v42 = vadd.f32 %v10830_v33, %v7502_v1  ;;  %v10831_v56 = vstv %s10819_s4  ;;  %v1724_v37 = vadd.f32 %v10832_v17, %v7504_v3 }
 0x2aa   : > { %v1478_v43 = vadd.f32 %v1476_v59, %v1472_v6  ;;  %v1644_v50 = vmul.f32 %v10831_v56, %v1424_v15  ;;  %v10834_v48 = vstv %s10822_s29  ;;  %v1808_v24 = vadd.f32 %v10835_v40, %v7506_v35  ;;  %v10857_v6 = vld [vmem:[#allocation99_spill] sm:$0xff] }
 0x2ab   : > { %v1562_v12 = vadd.f32 %v1560_v51, %v1556_v58  ;;  %v1728_v14 = vmul.f32 %v10834_v48, %v1424_v15  ;;  %v10836_v44 = vstv %s10823_s3  ;;  %v10839_v1 = vstv %s10824_s30 }
 0x2ac   : > { %v1812_v27 = vmul.f32 %v10836_v44, %v1424_v15  ;;  %v1482_v11 = vadd.f32 %v10839_v1, %v1478_v43  ;;  %v1646_v55 = vadd.f32 %v1644_v50, %v1640_v42  ;;  %v1892_v3 = vadd.f32 %v10841_v36, %v7510_v62 }
 0x2ad   : > { %v10843_v2 = vstv %s10826_s22  ;;  %v10845_v9 = vstv %s10828_s20  ;;  %v1730_v7 = vadd.f32 %v1728_v14, %v1724_v37  ;;  %v1471_v31 = vadd.f32 %v10849_v20, %v7518_v57 }
 0x2ae   : > { %v1896_v45 = vmul.f32 %v10843_v2, %v1424_v15  ;;  %v1566_v35 = vadd.f32 %v10845_v9, %v1562_v12  ;;  %v1814_v46 = vadd.f32 %v1812_v27, %v1808_v24  ;;  %v1484_v52 = vmax.f32 %v1482_v11, 0.0 }
 0x2af   : > { %v10852_v4 = vstv %s10833_s21  ;;  %v10853_v62 = vmov %v10825_v23  ;;  %v10855_v25 = vstv %s10837_s14  ;;  %v10856_v10 = vstv %s10838_s23 }
 0x2b0   : > { %v1650_v8 = vadd.f32 %v10852_v4, %v1646_v55  ;;  %v1898_v21 = vadd.f32 %v1896_v45, %v1892_v3  ;;  %v1475_v22 = vmul.f32 %v10853_v62, %v7638_v13  ;;  %v1568_v15 = vmax.f32 %v1566_v35, 0.0 }
 0x2b1   : > { %v1734_v63 = vadd.f32 %v10855_v25, %v1730_v7  ;;  %v1818_v49 = vadd.f32 %v10856_v10, %v1814_v46  ;;  %v1555_v23 = vadd.f32 %v10857_v6, %v7526_v47  ;;  %v10858_v59 = vstv %s10840_s27 }
 0x2b2   : > { %v1488_v41 = vmul.f32 %v10858_v59, %v1484_v52  ;;  %v10859_v57 = vstv %s10842_s11  ;;  %v10861_v32 = vstv %s10844_s18  ;;  %v10863_v43 = vstv %s10846_s16 }
 0x2b3   : > { %v1494_v58 = vmul.f32 %v10859_v57, %v1484_v52  ;;  %v1500_v51 = vmul.f32 %v10861_v32, %v1484_v52  ;;  %v1506_v33 = vmul.f32 %v10863_v43, %v1484_v52  ;;  %v10865_v42 = vstv %s10847_s25 }
 0x2b4   : > { %v1572_v56 = vmul.f32 %v10865_v42, %v1568_v15  ;;  %v10867_v50 = vstv %s10848_s2  ;;  %v10869_v37 = vstv %s10850_s28  ;;  %v10871_v12 = vstv %s10851_s13 }
 0x2b5   : > { %v1578_v17 = vmul.f32 %v10867_v50, %v1568_v15  ;;  %v1584_v47 = vmul.f32 %v10869_v37, %v1568_v15  ;;  %v1590_v48 = vmul.f32 %v10871_v12, %v1568_v15  ;;  %v1652_v14 = vmax.f32 %v1650_v8, 0.0 }
 0x2b6   : > { %v1736_v40 = vmax.f32 %v1734_v63, 0.0  ;;  %v1820_v24 = vmax.f32 %v1818_v49, 0.0  ;;  %v10874_v44 = vstv %s10854_s17  ;;  %v1574_v1 = vadd.f32 %v1572_v56, %v1488_v41 }
 0x2b7   : > { %v1902_v27 = vadd.f32 %v10874_v44, %v1898_v21  ;;  %v1580_v11 = vadd.f32 %v1578_v17, %v1494_v58  ;;  %v1586_v55 = vadd.f32 %v1584_v47, %v1500_v51  ;;  %v1592_v36 = vadd.f32 %v1590_v48, %v1506_v33 }
 0x2b8   : > { %v10878_v3 = vstv %s10860_s26  ;;  %v10880_v45 = vstv %s10862_s0  ;;  %v10881_v35 = vstv %s10864_s5  ;;  %v10882_v46 = vstv %s10866_s12  ;;  %s10889_s5 = sld [smem:[#allocation80_spill]]  ;;  %s10891_s12 = sld [smem:[#allocation81_spill]] }
 0x2b9   : > { %v1656_v2 = vmul.f32 %v10878_v3, %v1652_v14  ;;  %v1662_v9 = vmul.f32 %v10880_v45, %v1652_v14  ;;  %v1668_v7 = vmul.f32 %v10881_v35, %v1652_v14  ;;  %v1674_v20 = vmul.f32 %v10882_v46, %v1652_v14 }
 0x2ba   : > { %v10883_v52 = vstv %s10868_s15  ;;  %v10884_v8 = vstv %s10870_s10  ;;  %v10885_v62 = vstv %s10872_s6  ;;  %v10886_v25 = vstv %s10873_s1  ;;  %s10893_s10 = sld [smem:[#allocation67_spill]]  ;;  %s10894_s6 = sld [smem:[#allocation82_spill]] }
 0x2bb   : > { %v1740_v4 = vmul.f32 %v10883_v52, %v1736_v40  ;;  %v1746_v21 = vmul.f32 %v10884_v8, %v1736_v40  ;;  %v1752_v15 = vmul.f32 %v10885_v62, %v1736_v40  ;;  %v1758_v63 = vmul.f32 %v10886_v25, %v1736_v40  ;;  %v10896_v40 = vld [vmem:[#allocation102_spill] sm:$0xff]  ;;  %v10903_v52 = vld [vmem:[#allocation103_spill] sm:$0xff] }
 0x2bc   : > { %v1658_v10 = vadd.f32 %v1656_v2, %v1574_v1  ;;  %v1664_v49 = vadd.f32 %v1662_v9, %v1580_v11  ;;  %v1670_v6 = vadd.f32 %v1668_v7, %v1586_v55  ;;  %v1676_v59 = vadd.f32 %v1674_v20, %v1592_v36 }
 0x2bd   : > { %v10887_v41 = vstv %s10875_s19  ;;  %v10888_v58 = vstv %s10876_s8  ;;  %v10890_v51 = vstv %s10877_s9  ;;  %v10892_v33 = vstv %s10879_s24 }
 0x2be   : > { %v1824_v57 = vmul.f32 %v10887_v41, %v1820_v24  ;;  %v1830_v32 = vmul.f32 %v10888_v58, %v1820_v24  ;;  %v1836_v43 = vmul.f32 %v10890_v51, %v1820_v24  ;;  %v1842_v42 = vmul.f32 %v10892_v33, %v1820_v24  ;;  %v10911_v58 = vld [vmem:[#allocation105_spill] sm:$0xff]  ;;  %v7746_v33 = vpop.permute.xlu1 %1943 }
 0x2bf   : > { %v1742_v56 = vadd.f32 %v1740_v4, %v1658_v10  ;;  %v1748_v50 = vadd.f32 %v1746_v21, %v1664_v49  ;;  %v1754_v17 = vadd.f32 %v1752_v15, %v1670_v6  ;;  %v1760_v37 = vadd.f32 %v1758_v63, %v1676_v59 }
 0x2c0   : > { %v1904_v47 = vmax.f32 %v1902_v27, 0.0  ;;  %v1477_v12 = vadd.f32 %v1475_v22, %v1471_v31  ;;  %v10895_v48 = vstv %s10815_s7  ;;  %v1639_v44 = vadd.f32 %v10896_v40, %v7528_v28  ;;  %s10906_s7 = sld [smem:[#allocation86_spill]] }
 0x2c1   : > { %v1559_v14 = vmul.f32 %v10895_v48, %v7638_v13  ;;  %v1826_v1 = vadd.f32 %v1824_v57, %v1742_v56  ;;  %v1832_v11 = vadd.f32 %v1830_v32, %v1748_v50  ;;  %v1838_v55 = vadd.f32 %v1836_v43, %v1754_v17 }
 0x2c2   : > { %v1844_v24 = vadd.f32 %v1842_v42, %v1760_v37  ;;  %v10897_v36 = vstv %s10889_s5  ;;  %v10898_v2 = vstv %s10891_s12  ;;  %v10899_v9 = vstv %s10893_s10 }
 0x2c3   : > { %v1908_v3 = vmul.f32 %v10897_v36, %v1904_v47  ;;  %v1914_v45 = vmul.f32 %v10898_v2, %v1904_v47  ;;  %v1920_v27 = vmul.f32 %v10899_v9, %v1904_v47  ;;  %v10900_v31 = vstv %s10894_s6 }
 0x2c4   : > { %v1926_v22 = vmul.f32 %v10900_v31, %v1904_v47  ;;  %v10901_v35 = vstv %s10824_s30  ;;  %v1561_v46 = vadd.f32 %v1559_v14, %v1555_v23  ;;  %v10902_v28 = vstv %s10819_s4  ;;  %s10908_s4 = sld [smem:[#allocation87_spill]]  ;;  %s10910_s30 = sld [smem:[#allocation183_spill]] }
 0x2c5   : > { %v1481_v7 = vadd.f32 %v10901_v35, %v1477_v12  ;;  %v1643_v20 = vmul.f32 %v10902_v28, %v7638_v13  ;;  %v1723_v4 = vadd.f32 %v10903_v52, %v7530_v38  ;;  %v7723_v8 = vadd.f32 %v1908_v3, %v1826_v1  ;;  %v10907_v38 = vld [vmem:[#allocation104_spill] sm:$0xff] }
 0x2c6   : > { %v7725_v21 = vadd.f32 %v1914_v45, %v1832_v11  ;;  %v7727_v62 = vadd.f32 %v1920_v27, %v1838_v55  ;;  %v7729_v15 = vadd.f32 %v1926_v22, %v1844_v24  ;;  %v10904_v25 = vstv %s10828_s20  ;;  %s11007_s20 = sld [smem:[#allocation38_spill]] }
 0x2c7   : > { %v1483_v23 = vmax.f32 %v1481_v7, 0.0  ;;  %v1565_v63 = vadd.f32 %v10904_v25, %v1561_v46  ;;  %v1645_v10 = vadd.f32 %v1643_v20, %v1639_v44  ;;  %v10905_v49 = vstv %s10822_s29  ;;  %s10995_s29 = sld [smem:[#allocation156_spill]] }
 0x2c8   : > { %v1727_v6 = vmul.f32 %v10905_v49, %v7638_v13  ;;  %v1807_v59 = vadd.f32 %v10907_v38, %v7534_v34  ;;  %v10909_v41 = vstv %s10823_s3  ;;  %v1891_v32 = vadd.f32 %v10911_v58, %v7536_v39  ;;  %s11002_s3 = sld [smem:[#allocation34_spill]] }
 0x2c9   : > { %v1811_v57 = vmul.f32 %v10909_v41, %v7638_v13  ;;  %v10912_v51 = vstv %s10826_s22  ;;  %v10913_v42 = vstv %s10840_s27  ;;  %v10914_v50 = vstv %s10842_s11  ;;  %s10930_s11 = sld [smem:[#allocation173_spill]]  ;;  %s11004_s22 = sld [smem:[#allocation35_spill]] }
 0x2ca   : > { %v1895_v43 = vmul.f32 %v10912_v51, %v7638_v13  ;;  %v1487_v56 = vmul.f32 %v10913_v42, %v1483_v23  ;;  %v1493_v34 = vmul.f32 %v10914_v50, %v1483_v23  ;;  %v10915_v17 = vstv %s10844_s18  ;;  %s10923_s18 = sld [smem:[#allocation75_spill]]  ;;  %s7921_s27 = sld [smem:[#allocation11 + $0x2e]] }
 0x2cb   : > { %v1499_v37 = vmul.f32 %v10915_v17, %v1483_v23  ;;  %v10916_v47 = vstv %s10846_s16  ;;  %v1567_v39 = vmax.f32 %v1565_v63, 0.0  ;;  %v10917_v48 = vstv %s10833_s21  ;;  %s10921_s16 = sld [smem:[#allocation73_spill]]  ;;  %s11008_s21 = sld [smem:[#allocation39_spill]] }
 0x2cc   : > { %v1505_v12 = vmul.f32 %v10916_v47, %v1483_v23  ;;  %v1649_v14 = vadd.f32 %v10917_v48, %v1645_v10  ;;  %v1729_v40 = vadd.f32 %v1727_v6, %v1723_v4  ;;  %v1813_v13 = vadd.f32 %v1811_v57, %v1807_v59 }
 0x2cd   : > { %v1897_v44 = vadd.f32 %v1895_v43, %v1891_v32  ;;  %v10918_v1 = vstv %s10906_s7  ;;  %v10919_v55 = vstv %s10908_s4  ;;  %v10920_v36 = vstv %s10910_s30 }
 0x2ce   : > { %v1980_v11 = vmul.f32 %v10918_v1, %v7746_v33  ;;  %v2064_v24 = vmul.f32 %v10919_v55, %v7746_v33  ;;  %v2148_v3 = vmul.f32 %v10920_v36, %v7746_v33  ;;  %v10922_v2 = vstv %s10847_s25  ;;  %s10931_s25 = sld [smem:[#allocation79_spill]] }
 0x2cf   : > { %v1571_v45 = vmul.f32 %v10922_v2, %v1567_v39  ;;  %v10924_v9 = vstv %s10848_s2  ;;  %v10925_v31 = vstv %s10850_s28  ;;  %v10926_v35 = vstv %s10851_s13  ;;  %s10945_s28 = sld [smem:[#allocation187_spill]]  ;;  %s10964_s13 = sld [smem:[#allocation108_spill]] }
 0x2d0   : > { %v1577_v27 = vmul.f32 %v10924_v9, %v1567_v39  ;;  %v1583_v22 = vmul.f32 %v10925_v31, %v1567_v39  ;;  %v1589_v7 = vmul.f32 %v10926_v35, %v1567_v39  ;;  %v1651_v46 = vmax.f32 %v1649_v14, 0.0  ;;  %s10966_s2 = sld [smem:[#allocation195_spill]] }
 0x2d1   : > { %v10927_v28 = vstv %s10837_s14  ;;  %v10928_v52 = vstv %s10838_s23  ;;  %v10929_v23 = vstv %s10854_s17  ;;  %v1573_v63 = vadd.f32 %v1571_v45, %v1487_v56  ;;  %s10962_s17 = sld [smem:[#allocation101_spill]]  ;;  %s11009_s14 = sld [smem:[#allocation208_spill]] }
 0x2d2   : > { %v1733_v20 = vadd.f32 %v10927_v28, %v1729_v40  ;;  %v1817_v4 = vadd.f32 %v10928_v52, %v1813_v13  ;;  %v1901_v25 = vadd.f32 %v10929_v23, %v1897_v44  ;;  %v1579_v10 = vadd.f32 %v1577_v27, %v1493_v34  ;;  %s11010_s23 = sld [smem:[#allocation209_spill]] }
 0x2d3   : > { %v1585_v49 = vadd.f32 %v1583_v22, %v1499_v37  ;;  %v1591_v6 = vadd.f32 %v1589_v7, %v1505_v12  ;;  %v10932_v38 = vstv %s10860_s26  ;;  %v10933_v41 = vstv %s10862_s0  ;;  %s10944_s0 = sld [smem:[#allocation184_spill]]  ;;  %s10965_s26 = sld [smem:[#allocation109_spill]] }
 0x2d4   : > { %v1655_v59 = vmul.f32 %v10932_v38, %v1651_v46  ;;  %v1661_v57 = vmul.f32 %v10933_v41, %v1651_v46  ;;  %v10934_v58 = vstv %s10921_s16  ;;  %v10935_v51 = vstv %s10923_s18  ;;  %v1942_v41 = vpop.permute.xlu0 %1941  ;;  %s11038_s16 = sld [smem:[#allocation217_spill]]  ;;  %s11040_s18 = sld [smem:[#allocation222_spill]] }
 0x2d5   : > { %v1667_v32 = vmul.f32 %v10934_v58, %v1651_v46  ;;  %v1673_v43 = vmul.f32 %v10935_v51, %v1651_v46  ;;  %v1735_v42 = vmax.f32 %v1733_v20, 0.0  ;;  %v1819_v56 = vmax.f32 %v1817_v4, 0.0 }
 0x2d6   : > { %v1903_v50 = vmax.f32 %v1901_v25, 0.0  ;;  %v1982_v34 = vadd.f32 %v1980_v11, %v7580_v30  ;;  %v1657_v17 = vadd.f32 %v1655_v59, %v1573_v63  ;;  %v1663_v37 = vadd.f32 %v1661_v57, %v1579_v10 }
 0x2d7   : > { %v1669_v47 = vadd.f32 %v1667_v32, %v1585_v49  ;;  %v1675_v12 = vadd.f32 %v1673_v43, %v1591_v6  ;;  %v10936_v39 = vstv %s10868_s15  ;;  %v10937_v14 = vstv %s10930_s11  ;;  %s10991_s15 = sld [smem:[#allocation199_spill]] }
 0x2d8   : > { %v1739_v48 = vmul.f32 %v10936_v39, %v1735_v42  ;;  %v1745_v40 = vmul.f32 %v10937_v14, %v1735_v42  ;;  %v10938_v13 = vstv %s10931_s25  ;;  %v10939_v1 = vstv %s10873_s1  ;;  %s10989_s1 = sld [smem:[#allocation118_spill]]  ;;  %s11042_s11 = sld [smem:[#allocation223_spill]] }
 0x2d9   : > { %v1751_v44 = vmul.f32 %v10938_v13, %v1735_v42  ;;  %v1757_v55 = vmul.f32 %v10939_v1, %v1735_v42  ;;  %v10940_v36 = vstv %s10875_s19  ;;  %v10941_v45 = vstv %s10876_s8  ;;  %s10950_s8 = sld [smem:[#allocation188_spill]]  ;;  %s10981_s19 = sld [smem:[#allocation197_spill]] }
 0x2da   : > { %v1823_v2 = vmul.f32 %v10940_v36, %v1819_v56  ;;  %v1829_v30 = vmul.f32 %v10941_v45, %v1819_v56  ;;  %v10942_v11 = vstv %s10877_s9  ;;  %v10943_v27 = vstv %s10879_s24  ;;  %s10980_s24 = sld [smem:[#allocation85_spill]]  ;;  %s11051_s25 = sld [smem:[#allocation227_spill]] }
 0x2db   : > { %v1835_v9 = vmul.f32 %v10942_v11, %v1819_v56  ;;  %v1841_v31 = vmul.f32 %v10943_v27, %v1819_v56  ;;  %v1741_v22 = vadd.f32 %v1739_v48, %v1657_v17  ;;  %v1747_v35 = vadd.f32 %v1745_v40, %v1663_v37  ;;  %s10993_s9 = sld [smem:[#allocation155_spill]] }
 0x2dc   : > { %v1753_v7 = vadd.f32 %v1751_v44, %v1669_v47  ;;  %v1759_v46 = vadd.f32 %v1757_v55, %v1675_v12  ;;  %v10946_v28 = vstv %s10889_s5  ;;  %v10947_v52 = vstv %s10891_s12  ;;  %s10960_s12 = sld [smem:[#allocation90_spill]]  ;;  %s7923_s5 = sld [smem:[#allocation11 + $0x2f]] }
 0x2dd   : > { %v1907_v20 = vmul.f32 %v10946_v28, %v1903_v50  ;;  %v1913_v4 = vmul.f32 %v10947_v52, %v1903_v50  ;;  %v10948_v23 = vstv %s10893_s10  ;;  %v10949_v63 = vstv %s10894_s6  ;;  %s7822_s6 = sld [smem:[#allocation11 + $0x2d]]  ;;  %s10959_s10 = sld [smem:[#allocation190_spill]]  ;;  %v10970_v28 = vld [vmem:[#allocation112_spill] sm:$0xff]  ;;  %v10971_v52 = vld [vmem:[#allocation113_spill] sm:$0xff] }
 0x2de   : > { %v1919_v25 = vmul.f32 %v10948_v23, %v1903_v50  ;;  %v1925_v10 = vmul.f32 %v10949_v63, %v1903_v50  ;;  %v1825_v49 = vadd.f32 %v1823_v2, %v1741_v22  ;;  %v1831_v6 = vadd.f32 %v1829_v30, %v1747_v35  ;;  %v1948_v30 = vpop.permute.xlu1 %1947  ;;  %v10968_v35 = vld [vmem:[#allocation110_spill] sm:$0xff] }
 0x2df   : > { %v1837_v38 = vadd.f32 %v1835_v9, %v1753_v7  ;;  %v1843_v59 = vadd.f32 %v1841_v31, %v1759_v46  ;;  %v2066_v57 = vadd.f32 %v2064_v24, %v7582_v60  ;;  %v2150_v58 = vadd.f32 %v2148_v3, %v7586_v54  ;;  %v10967_v31 = vld [vmem:[#allocation107_spill] sm:$0xff]  ;;  %v10969_v46 = vld [vmem:[#allocation111_spill] sm:$0xff] }
 0x2e0   : > { %v10951_v32 = vstv %s10944_s0  ;;  %v10952_v43 = vstv %s10945_s28  ;;  %v7824_v56 = vadd.f32 %v1907_v20, %v1825_v49  ;;  %v7826_v50 = vadd.f32 %v1913_v4, %v1831_v6  ;;  %v1946_v6 = vpop.permute.xlu0 %1945  ;;  %s11053_s0 = sld [smem:[#allocation228_spill]]  ;;  %s11055_s28 = sld [smem:[#allocation249_spill]] }
 0x2e1   : > { %v2232_v51 = vmul.f32 %v10951_v32, %v7746_v33  ;;  %v2316_v42 = vmul.f32 %v10952_v43, %v7746_v33  ;;  %v7828_v17 = vadd.f32 %v1919_v25, %v1837_v38  ;;  %v7830_v37 = vadd.f32 %v1925_v10, %v1843_v59 }
 0x2e2   : > { %v10953_v24 = vstv %s10950_s8  ;;  %v10954_v47 = vstv %s10906_s7  ;;  %v10955_v39 = vstv %s10908_s4  ;;  %v10956_v14 = vstv %s10910_s30  ;;  %s11032_s7 = sld [smem:[#allocation211_spill]]  ;;  %s11034_s4 = sld [smem:[#allocation212_spill]] }
 0x2e3   : > { %v2234_v60 = vadd.f32 %v2232_v51, %v7588_v16  ;;  %v2318_v54 = vadd.f32 %v2316_v42, %v7590_v18  ;;  %v2400_v3 = vmul.f32 %v10953_v24, %v7746_v33  ;;  %v1979_v12 = vmul.f32 %v10954_v47, %v1942_v41  ;;  %v10963_v33 = vld [vmem:[#allocation106_spill] sm:$0xff]  ;;  %v10979_v51 = vld [vmem:[#allocation116_spill] sm:$0xff]  ;;  %s11036_s30 = sld [smem:[#allocation216_spill]]  ;;  %s11057_s8 = sld [smem:[#allocation259_spill]] }
 0x2e4   : > { %v2063_v48 = vmul.f32 %v10955_v39, %v1942_v41  ;;  %v2147_v40 = vmul.f32 %v10956_v14, %v1942_v41  ;;  %v10957_v13 = vmov %v10951_v32  ;;  %v10958_v1 = vmov %v10952_v43  ;;  %v10982_v47 = vld [vmem:[#allocation117_spill] sm:$0xff]  ;;  %v10983_v39 = vld [vmem:[#allocation119_spill] sm:$0xff]  ;;  %v10984_v14 = vld [vmem:[#allocation120_spill] sm:$0xff] }
 0x2e5   : > { %v2231_v44 = vmul.f32 %v10957_v13, %v1942_v41  ;;  %v2315_v55 = vmul.f32 %v10958_v1, %v1942_v41  ;;  %v2402_v36 = vadd.f32 %v2400_v3, %v7594_v19  ;;  %v1981_v16 = vadd.f32 %v1979_v12, %v7602_v61  ;;  %v1954_v3 = vpop.permute.xlu1 %1953  ;;  %v10985_v13 = vld [vmem:[#allocation122_spill] sm:$0xff] }
 0x2e6   : > { %v10961_v18 = vmov %v10953_v24  ;;  %v1988_v45 = vadd.f32 %v10963_v33, %v1982_v34  ;;  %v2065_v11 = vadd.f32 %v2063_v48, %v7610_v53  ;;  %v2149_v9 = vadd.f32 %v2147_v40, %v7612_v29 }
 0x2e7   : > { %v2399_v2 = vmul.f32 %v10961_v18, %v1942_v41  ;;  %v2233_v27 = vadd.f32 %v2231_v44, %v7614_v0  ;;  %v2317_v19 = vadd.f32 %v2315_v55, %v7618_v26  ;;  %v2072_v22 = vadd.f32 %v10967_v31, %v2066_v57 }
 0x2e8   : > { %v2156_v7 = vadd.f32 %v10968_v35, %v2150_v58  ;;  %v2240_v34 = vadd.f32 %v10969_v46, %v2234_v60  ;;  %v2324_v20 = vadd.f32 %v10970_v28, %v2318_v54  ;;  %v2408_v53 = vadd.f32 %v10971_v52, %v2402_v36  ;;  %v10978_v58 = vld [vmem:[#allocation115_spill] sm:$0xff]  ;;  %v1952_v28 = vpop.permute.xlu0 %1951 }
 0x2e9   : > { %v2401_v61 = vadd.f32 %v2399_v2, %v7620_v5  ;;  %v10972_v4 = vstv %s10959_s10  ;;  %v10973_v29 = vstv %s10960_s12  ;;  %v10974_v0 = vstv %s10962_s17  ;;  %s11060_s10 = sld [smem:[#allocation265_spill]]  ;;  %s11062_s12 = sld [smem:[#allocation270_spill]] }
 0x2ea   : > { %v1992_v23 = vmul.f32 %v10972_v4, %v1948_v30  ;;  %v2076_v25 = vmul.f32 %v10973_v29, %v1948_v30  ;;  %v2160_v63 = vmul.f32 %v10974_v0, %v1948_v30  ;;  %v10975_v10 = vstv %s10964_s13  ;;  %s11068_s17 = sld [smem:[#allocation229_spill]]  ;;  %s11070_s13 = sld [smem:[#allocation230_spill]] }
 0x2eb   : > { %v2244_v26 = vmul.f32 %v10975_v10, %v1948_v30  ;;  %v10976_v49 = vstv %s10965_s26  ;;  %v2446_v38 = vstv %s7822_s6  ;;  %v10977_v41 = vstv %s10966_s2  ;;  %s11071_s26 = sld [smem:[#allocation234_spill]]  ;;  %s11073_s2 = sld [smem:[#allocation235_spill]] }
 0x2ec   : > { %v2328_v5 = vmul.f32 %v10976_v49, %v1948_v30  ;;  %v1994_v59 = vadd.f32 %v1992_v23, %v1988_v45  ;;  %v2412_v57 = vmul.f32 %v10977_v41, %v1948_v30  ;;  %v1987_v32 = vadd.f32 %v10978_v58, %v1981_v16  ;;  %s8214_s6 = sld [smem:[#allocation8 + $0x58]] }
 0x2ed   : > { %v2071_v43 = vadd.f32 %v10979_v51, %v2065_v11  ;;  %v2078_v42 = vadd.f32 %v2076_v25, %v2072_v22  ;;  %v2162_v60 = vadd.f32 %v2160_v63, %v2156_v7  ;;  %v2246_v54 = vadd.f32 %v2244_v26, %v2240_v34 }
 0x2ee   : > { %v2330_v24 = vadd.f32 %v2328_v5, %v2324_v20  ;;  %v2155_v12 = vadd.f32 %v10982_v47, %v2149_v9  ;;  %v2239_v48 = vadd.f32 %v10983_v39, %v2233_v27  ;;  %v2323_v40 = vadd.f32 %v10984_v14, %v2317_v19 }
 0x2ef   : > { %v2407_v44 = vadd.f32 %v10985_v13, %v2401_v61  ;;  %v10986_v1 = vmov %v10972_v4  ;;  %v10987_v36 = vmov %v10973_v29  ;;  %v10988_v18 = vmov %v10974_v0 }
 0x2f0   : > { %v1991_v55 = vmul.f32 %v10986_v1, %v1946_v6  ;;  %v2075_v16 = vmul.f32 %v10987_v36, %v1946_v6  ;;  %v2159_v2 = vmul.f32 %v10988_v18, %v1946_v6  ;;  %v10990_v33 = vmov %v10975_v10 }
 0x2f1   : > { %v2243_v45 = vmul.f32 %v10990_v33, %v1946_v6  ;;  %v10992_v30 = vmov %v10976_v49  ;;  %v10994_v9 = vmov %v10977_v41  ;;  %v10996_v31 = vstv %s10980_s24  ;;  %s11075_s24 = sld [smem:[#allocation240_spill]] }
 0x2f2   : > { %v2327_v11 = vmul.f32 %v10992_v30, %v1946_v6  ;;  %v2411_v27 = vmul.f32 %v10994_v9, %v1946_v6  ;;  %v1998_v19 = vmul.f32 %v10996_v31, %v1954_v3  ;;  %v10997_v22 = vstv %s10981_s19  ;;  %s11077_s19 = sld [smem:[#allocation241_spill]] }
 0x2f3   : > { %v2082_v61 = vmul.f32 %v10997_v22, %v1954_v3  ;;  %v2414_v35 = vadd.f32 %v2412_v57, %v2408_v53  ;;  %v1993_v7 = vadd.f32 %v1991_v55, %v1987_v32  ;;  %v2077_v46 = vadd.f32 %v2075_v16, %v2071_v43 }
 0x2f4   : > { %v2161_v34 = vadd.f32 %v2159_v2, %v2155_v12  ;;  %v2245_v20 = vadd.f32 %v2243_v45, %v2239_v48  ;;  %v2329_v52 = vadd.f32 %v2327_v11, %v2323_v40  ;;  %v2413_v4 = vadd.f32 %v2411_v27, %v2407_v44  ;;  %v2466_v27 = vpop.permute.xlu0 %2465 }
 0x2f5   : > { %v2000_v23 = vadd.f32 %v1998_v19, %v1994_v59  ;;  %v10998_v29 = vstv %s10989_s1  ;;  %v10999_v0 = vstv %s10991_s15  ;;  %v11000_v10 = vstv %s10993_s9  ;;  %v2468_v59 = vpop.permute.xlu1 %2467  ;;  %s11079_s1 = sld [smem:[#allocation246_spill]]  ;;  %s11080_s15 = sld [smem:[#allocation247_spill]] }
 0x2f6   : > { %v2166_v25 = vmul.f32 %v10998_v29, %v1954_v3  ;;  %v2250_v63 = vmul.f32 %v10999_v0, %v1954_v3  ;;  %v2334_v26 = vmul.f32 %v11000_v10, %v1954_v3  ;;  %v11001_v49 = vstv %s10995_s29  ;;  %s11081_s9 = sld [smem:[#allocation250_spill]]  ;;  %s11083_s29 = sld [smem:[#allocation252_spill]] }
 0x2f7   : > { %v2418_v53 = vmul.f32 %v11001_v49, %v1954_v3  ;;  %v2084_v5 = vadd.f32 %v2082_v61, %v2078_v42  ;;  %v11003_v6 = vmov %v10996_v31  ;;  %v11005_v57 = vmov %v10997_v22  ;;  %v11020_v61 = vld [vmem:[#allocation123_spill] sm:$0xff] }
 0x2f8   : > { %v1997_v41 = vmul.f32 %v11003_v6, %v1952_v28  ;;  %v2081_v58 = vmul.f32 %v11005_v57, %v1952_v28  ;;  %v11006_v32 = vmov %v10998_v29  ;;  %v2168_v43 = vadd.f32 %v2166_v25, %v2162_v60  ;;  %v11023_v29 = vld [vmem:[#allocation126_spill] sm:$0xff] }
 0x2f9   : > { %v2165_v51 = vmul.f32 %v11006_v32, %v1952_v28  ;;  %v2252_v47 = vadd.f32 %v2250_v63, %v2246_v54  ;;  %v2336_v12 = vadd.f32 %v2334_v26, %v2330_v24  ;;  %v11011_v39 = vmov %v10999_v0  ;;  %v11024_v0 = vld [vmem:[#allocation127_spill] sm:$0xff] }
 0x2fa   : > { %v2249_v48 = vmul.f32 %v11011_v39, %v1952_v28  ;;  %v2420_v3 = vadd.f32 %v2418_v53, %v2414_v35  ;;  %v1999_v14 = vadd.f32 %v1997_v41, %v1993_v7  ;;  %v2083_v42 = vadd.f32 %v2081_v58, %v2077_v46  ;;  %v11021_v7 = vld [vmem:[#allocation124_spill] sm:$0xff]  ;;  %v11029_v41 = vld [vmem:[#allocation133_spill] sm:$0xff] }
 0x2fb   : > { %v2167_v40 = vadd.f32 %v2165_v51, %v2161_v34  ;;  %v11012_v13 = vmov %v11000_v10  ;;  %v11013_v1 = vmov %v11001_v49  ;;  %v11014_v36 = vstv %s11002_s3  ;;  %v11022_v34 = vld [vmem:[#allocation125_spill] sm:$0xff]  ;;  %v11031_v51 = vld [vmem:[#allocation138_spill] sm:$0xff]  ;;  %v11033_v39 = vld [vmem:[#allocation139_spill] sm:$0xff]  ;;  %s11085_s3 = sld [smem:[#allocation253_spill]] }
 0x2fc   : > { %v2333_v44 = vmul.f32 %v11012_v13, %v1952_v28  ;;  %v2417_v55 = vmul.f32 %v11013_v1, %v1952_v28  ;;  %v2496_v16 = vmul.f32 %v11014_v36, %v2468_v59  ;;  %v11015_v18 = vstv %s11004_s22  ;;  %v11035_v13 = vld [vmem:[#allocation128_spill] sm:$0xff]  ;;  %v11037_v1 = vld [vmem:[#allocation130_spill] sm:$0xff]  ;;  %s11087_s22 = sld [smem:[#allocation258_spill]] }
 0x2fd   : > { %v2580_v2 = vmul.f32 %v11015_v18, %v2468_v59  ;;  %v11016_v60 = vstv %s11007_s20  ;;  %v11017_v24 = vstv %s11008_s21  ;;  %v11018_v45 = vstv %s11009_s14  ;;  %s11093_s20 = sld [smem:[#allocation261_spill]]  ;;  %s11095_s21 = sld [smem:[#allocation262_spill]] }
 0x2fe   : > { %v2664_v54 = vmul.f32 %v11016_v60, %v2468_v59  ;;  %v2748_v33 = vmul.f32 %v11017_v24, %v2468_v59  ;;  %v2832_v30 = vmul.f32 %v11018_v45, %v2468_v59  ;;  %v11019_v11 = vstv %s11010_s23  ;;  %s11097_s14 = sld [smem:[#allocation263_spill]]  ;;  %s11098_s23 = sld [smem:[#allocation264_spill]] }
 0x2ff   : > { %v2916_v9 = vmul.f32 %v11019_v11, %v2468_v59  ;;  %v2251_v31 = vadd.f32 %v2249_v48, %v2245_v20  ;;  %v2335_v19 = vadd.f32 %v2333_v44, %v2329_v52  ;;  %v2419_v22 = vadd.f32 %v2417_v55, %v2413_v4 }
 0x300   : > { %v7934_v35 = vadd.f32 %v11020_v61, %v2496_v16  ;;  %v7937_v46 = vadd.f32 %v11021_v7, %v2580_v2  ;;  %v7940_v28 = vadd.f32 %v11022_v34, %v2664_v54  ;;  %v7943_v25 = vadd.f32 %v11023_v29, %v2748_v33  ;;  %v11045_v33 = vld [vmem:[#allocation140_spill] sm:$0xff]  ;;  %v11048_v7 = vld [vmem:[#allocation143_spill] sm:$0xff] }
 0x301   : > { %v7946_v63 = vadd.f32 %v11024_v0, %v2832_v30  ;;  %v11025_v10 = vmov %v11014_v36  ;;  %v11026_v52 = vmov %v11015_v18  ;;  %v11027_v26 = vmov %v11016_v60  ;;  %v11039_v36 = vld [vmem:[#allocation134_spill] sm:$0xff]  ;;  %v11043_v60 = vld [vmem:[#allocation135_spill] sm:$0xff]  ;;  %v11046_v30 = vld [vmem:[#allocation141_spill] sm:$0xff] }
 0x302   : > { %v2495_v20 = vmul.f32 %v11025_v10, %v2466_v27  ;;  %v2579_v4 = vmul.f32 %v11026_v52, %v2466_v27  ;;  %v2663_v49 = vmul.f32 %v11027_v26, %v2466_v27  ;;  %v11028_v53 = vmov %v11017_v24 }
 0x303   : > { %v2747_v6 = vmul.f32 %v11028_v53, %v2466_v27  ;;  %v7957_v57 = vadd.f32 %v11029_v41, %v2916_v9  ;;  %v11030_v58 = vmov %v11018_v45  ;;  %v2006_v59 = vadd.f32 %v11031_v51, %v2000_v23  ;;  %v1958_v23 = vpop.permute.xlu1 %1957  ;;  %v11047_v9 = vld [vmem:[#allocation142_spill] sm:$0xff]  ;;  %v11059_v41 = vld [vmem:[#allocation146_spill] sm:$0xff] }
 0x304   : > { %v2831_v32 = vmul.f32 %v11030_v58, %v2466_v27  ;;  %v2090_v48 = vadd.f32 %v11033_v39, %v2084_v5  ;;  %v7964_v44 = vadd.f32 %v11035_v13, %v2495_v20  ;;  %v7967_v55 = vadd.f32 %v11037_v1, %v2579_v4  ;;  %v11044_v5 = vld [vmem:[#allocation136_spill] sm:$0xff]  ;;  %v11061_v58 = vld [vmem:[#allocation149_spill] sm:$0xff] }
 0x305   : > { %v7970_v16 = vadd.f32 %v11039_v36, %v2663_v49  ;;  %v11041_v18 = vmov %v11019_v11  ;;  %v7977_v54 = vadd.f32 %v11043_v60, %v2747_v6  ;;  %v2174_v45 = vadd.f32 %v11045_v33, %v2168_v43  ;;  %v11063_v60 = vld [vmem:[#allocation150_spill] sm:$0xff]  ;;  %v11064_v33 = vld [vmem:[#allocation151_spill] sm:$0xff] }
 0x306   : > { %v7974_v2 = vmul.f32 %v11041_v18, %v2466_v27  ;;  %v7980_v24 = vadd.f32 %v11044_v5, %v2831_v32  ;;  %v2258_v11 = vadd.f32 %v11046_v30, %v2252_v47  ;;  %v2342_v61 = vadd.f32 %v11047_v9, %v2336_v12 }
 0x307   : > { %v2426_v34 = vadd.f32 %v11048_v7, %v2420_v3  ;;  %v2452_v29 = vstv %s7921_s27  ;;  %v2458_v0 = vstv %s7923_s5  ;;  %v11049_v10 = vstv %s11032_s7  ;;  %s8216_s27 = sld [smem:[#allocation8 + $0x59]]  ;;  %s8247_s5 = sld [smem:[#allocation8 + $0x84]] }
 0x308   : > { %v2010_v27 = vmul.f32 %v11049_v10, %v1958_v23  ;;  %v11050_v20 = vstv %s11034_s4  ;;  %v11052_v4 = vstv %s11036_s30  ;;  %v11054_v49 = vstv %s11038_s16  ;;  %v11076_v10 = vld [vmem:[#allocation154_spill] sm:$0xff] }
 0x309   : > { %v2094_v52 = vmul.f32 %v11050_v20, %v1958_v23  ;;  %v2178_v26 = vmul.f32 %v11052_v4, %v1958_v23  ;;  %v2262_v53 = vmul.f32 %v11054_v49, %v1958_v23  ;;  %v11056_v43 = vstv %s11040_s18  ;;  %v11078_v20 = vld [vmem:[#allocation157_spill] sm:$0xff] }
 0x30a   : > { %v2346_v47 = vmul.f32 %v11056_v43, %v1958_v23  ;;  %v11058_v6 = vstv %s11042_s11  ;;  %v8001_v3 = vadd.f32 %v11059_v41, %v1999_v14  ;;  %v8004_v32 = vadd.f32 %v11061_v58, %v2083_v42 }
 0x30b   : > { %v2430_v12 = vmul.f32 %v11058_v6, %v1958_v23  ;;  %v2012_v51 = vadd.f32 %v2010_v27, %v2006_v59  ;;  %v2096_v39 = vadd.f32 %v2094_v52, %v2090_v48  ;;  %v2180_v13 = vadd.f32 %v2178_v26, %v2174_v45 }
 0x30c   : > { %v2264_v1 = vadd.f32 %v2262_v53, %v2258_v11  ;;  %v2348_v36 = vadd.f32 %v2346_v47, %v2342_v61  ;;  %v8007_v5 = vadd.f32 %v11063_v60, %v2167_v40  ;;  %v8010_v30 = vadd.f32 %v11064_v33, %v2251_v31  ;;  %v8020_v11 = vpop.permute.xlu0 %1955 }
 0x30d   : > { %v2432_v18 = vadd.f32 %v2430_v12, %v2426_v34  ;;  %v11065_v23 = vstv %s11051_s25  ;;  %v11066_v9 = vstv %s11053_s0  ;;  %v11067_v42 = vstv %s11055_s28 }
 0x30e   : > { %v2016_v14 = vadd.f32 %v11065_v23, %v2012_v51  ;;  %v2100_v7 = vadd.f32 %v11066_v9, %v2096_v39  ;;  %v2184_v59 = vadd.f32 %v11067_v42, %v2180_v13  ;;  %v11069_v48 = vstv %s11057_s8 }
 0x30f   : > { %v2268_v45 = vadd.f32 %v11069_v48, %v2264_v1  ;;  %v11072_v40 = vstv %s11060_s10  ;;  %v11074_v31 = vstv %s11062_s12  ;;  %v8027_v27 = vadd.f32 %v11076_v10, %v2335_v19  ;;  %s11105_s12 = sld [smem:[#allocation268_spill]]  ;;  %s11106_s10 = sld [smem:[#allocation269_spill]] }
 0x310   : > { %v2352_v61 = vadd.f32 %v11072_v40, %v2348_v36  ;;  %v2436_v34 = vadd.f32 %v11074_v31, %v2432_v18  ;;  %v8030_v52 = vadd.f32 %v11078_v20, %v2419_v22  ;;  %v2018_v4 = vmax.f32 %v2016_v14, 0.0 }
 0x311   : > { %v2102_v26 = vmax.f32 %v2100_v7, 0.0  ;;  %v2186_v49 = vmax.f32 %v2184_v59, 0.0  ;;  %v2270_v53 = vmax.f32 %v2268_v45, 0.0  ;;  %v11082_v6 = vstv %s11032_s7  ;;  %s11103_s7 = sld [smem:[#allocation266_spill]] }
 0x312   : > { %v2354_v43 = vmax.f32 %v2352_v61, 0.0  ;;  %v2438_v47 = vmax.f32 %v2436_v34, 0.0  ;;  %v2009_v12 = vmul.f32 %v11082_v6, %v8020_v11  ;;  %v11084_v41 = vstv %s11034_s4  ;;  %s11104_s4 = sld [smem:[#allocation267_spill]] }
 0x313   : > { %v2093_v19 = vmul.f32 %v11084_v41, %v8020_v11  ;;  %v11086_v58 = vstv %s11068_s17  ;;  %v11088_v51 = vstv %s11070_s13  ;;  %v11089_v13 = vstv %s11071_s26 }
 0x314   : > { %v2022_v22 = vmul.f32 %v11086_v58, %v2018_v4  ;;  %v2028_v39 = vmul.f32 %v11088_v51, %v2018_v4  ;;  %v2034_v1 = vmul.f32 %v11089_v13, %v2018_v4  ;;  %v11090_v36 = vstv %s11073_s2 }
 0x315   : > { %v2040_v18 = vmul.f32 %v11090_v36, %v2018_v4  ;;  %v11091_v60 = vstv %s11075_s24  ;;  %v11092_v23 = vstv %s11077_s19  ;;  %v11094_v9 = vstv %s11079_s1 }
 0x316   : > { %v2106_v33 = vmul.f32 %v11091_v60, %v2102_v26  ;;  %v2112_v14 = vmul.f32 %v11092_v23, %v2102_v26  ;;  %v2118_v7 = vmul.f32 %v11094_v9, %v2102_v26  ;;  %v11096_v42 = vstv %s11080_s15 }
 0x317   : > { %v2124_v59 = vmul.f32 %v11096_v42, %v2102_v26  ;;  %v2024_v48 = vadd.f32 %v2022_v22, %v7723_v8  ;;  %v2030_v45 = vadd.f32 %v2028_v39, %v7725_v21  ;;  %v2036_v40 = vadd.f32 %v2034_v1, %v7727_v62 }
 0x318   : > { %v2042_v61 = vadd.f32 %v2040_v18, %v7729_v15  ;;  %v11099_v31 = vstv %s11081_s9  ;;  %v11100_v10 = vstv %s11083_s29  ;;  %v11101_v4 = vstv %s11085_s3  ;;  %s11111_s3 = sld [smem:[#allocation271_spill]]  ;;  %s8076_s29 = sld [smem:[#allocation8 + $0x3d]] }
 0x319   : > { %v2190_v34 = vmul.f32 %v11099_v31, %v2186_v49  ;;  %v2196_v20 = vmul.f32 %v11100_v10, %v2186_v49  ;;  %v2202_v6 = vmul.f32 %v11101_v4, %v2186_v49  ;;  %v11102_v41 = vstv %s11087_s22  ;;  %s8074_s22 = sld [smem:[#allocation8 + $0x3c]] }
 0x31a   : > { %v2208_v58 = vmul.f32 %v11102_v41, %v2186_v49  ;;  %v2108_v26 = vadd.f32 %v2106_v33, %v2024_v48  ;;  %v2114_v51 = vadd.f32 %v2112_v14, %v2030_v45  ;;  %v2120_v8 = vadd.f32 %v2118_v7, %v2036_v40 }
 0x31b   : > { %v2126_v21 = vadd.f32 %v2124_v59, %v2042_v61  ;;  %v11107_v22 = vstv %s11093_s20  ;;  %v11108_v39 = vstv %s11095_s21  ;;  %v11109_v13 = vstv %s11097_s14  ;;  %s8088_s14 = sld [smem:[#allocation8 + $0x3f]] }
 0x31c   : > { %v2274_v62 = vmul.f32 %v11107_v22, %v2270_v53  ;;  %v2280_v15 = vmul.f32 %v11108_v39, %v2270_v53  ;;  %v2286_v1 = vmul.f32 %v11109_v13, %v2270_v53  ;;  %v11110_v36 = vstv %s11098_s23  ;;  %s8086_s23 = sld [smem:[#allocation8 + $0x3e]] }
 0x31d   : > { %v2292_v18 = vmul.f32 %v11110_v36, %v2270_v53  ;;  %v2192_v60 = vadd.f32 %v2190_v34, %v2108_v26  ;;  %v2198_v23 = vadd.f32 %v2196_v20, %v2114_v51  ;;  %v2204_v49 = vadd.f32 %v2202_v6, %v2120_v8 }
 0x31e   : > { %v2210_v33 = vadd.f32 %v2208_v58, %v2126_v21  ;;  %v11112_v14 = vstv %s11103_s7  ;;  %v11113_v7 = vstv %s11104_s4  ;;  %v11114_v59 = vstv %s11105_s12 }
 0x31f   : > { %v2358_v9 = vmul.f32 %v11112_v14, %v2354_v43  ;;  %v2364_v42 = vmul.f32 %v11113_v7, %v2354_v43  ;;  %v2370_v48 = vmul.f32 %v11114_v59, %v2354_v43  ;;  %v11115_v45 = vstv %s11106_s10 }
 0x320   : > { %v2376_v53 = vmul.f32 %v11115_v45, %v2354_v43  ;;  %v2276_v40 = vadd.f32 %v2274_v62, %v2192_v60  ;;  %v2282_v61 = vadd.f32 %v2280_v15, %v2198_v23  ;;  %v2288_v31 = vadd.f32 %v2286_v1, %v2204_v49 }
 0x321   : > { %v2294_v34 = vadd.f32 %v2292_v18, %v2210_v33  ;;  %v11116_v10 = vstv %s11111_s3  ;;  %v2448_v4 = vmul.f32 %v2446_v38, %v2438_v47  ;;  %v2454_v6 = vmul.f32 %v2452_v29, %v2438_v47 }
 0x322   : > { %v2442_v20 = vmul.f32 %v11116_v10, %v2438_v47  ;;  %v2460_v43 = vmul.f32 %v2458_v0, %v2438_v47  ;;  %v2360_v41 = vadd.f32 %v2358_v9, %v2276_v40  ;;  %v2366_v58 = vadd.f32 %v2364_v42, %v2282_v61 }
 0x323   : > { %v2372_v26 = vadd.f32 %v2370_v48, %v2288_v31  ;;  %v2378_v51 = vadd.f32 %v2376_v53, %v2294_v34  ;;  %v2011_v8 = vadd.f32 %v2009_v12, %v8001_v3  ;;  %v2095_v21 = vadd.f32 %v2093_v19, %v8004_v32 }
 0x324   : > { %v11117_v22 = vstv %s11036_s30  ;;  %v11118_v39 = vstv %s11038_s16  ;;  %v8106_v47 = vadd.f32 %v2442_v20, %v2360_v41  ;;  %v8108_v13 = vadd.f32 %v2448_v4, %v2366_v58  ;;  %s11127_s30 = sld [smem:[#allocation265_spill]]  ;;  %s11129_s16 = sld [smem:[#allocation270_spill]] }
 0x325   : > { %v2177_v62 = vmul.f32 %v11117_v22, %v8020_v11  ;;  %v2261_v15 = vmul.f32 %v11118_v39, %v8020_v11  ;;  %v8110_v1 = vadd.f32 %v2454_v6, %v2372_v26  ;;  %v8112_v36 = vadd.f32 %v2460_v43, %v2378_v51 }
 0x326   : > { %v11119_v3 = vstv %s11051_s25  ;;  %v11120_v12 = vstv %s11053_s0  ;;  %v11121_v23 = vstv %s11040_s18  ;;  %v11122_v33 = vstv %s11042_s11  ;;  %s8144_s18 = sld [smem:[#allocation8 + $0x40]]  ;;  %s8146_s11 = sld [smem:[#allocation8 + $0x41]] }
 0x327   : > { %v2015_v32 = vadd.f32 %v11119_v3, %v2011_v8  ;;  %v2099_v19 = vadd.f32 %v11120_v12, %v2095_v21  ;;  %v2179_v18 = vadd.f32 %v2177_v62, %v8007_v5  ;;  %v2263_v60 = vadd.f32 %v2261_v15, %v8010_v30  ;;  %s11134_s25 = sld [smem:[#allocation252_spill]]  ;;  %s11136_s0 = sld [smem:[#allocation253_spill]] }
 0x328   : > { %v2345_v49 = vmul.f32 %v11121_v23, %v8020_v11  ;;  %v2429_v14 = vmul.f32 %v11122_v33, %v8020_v11  ;;  %v2506_v9 = vstv %s8074_s22  ;;  %v2590_v7 = vstv %s8076_s29  ;;  %s8273_s29 = sld [smem:[#allocation8 + $0x9d]]  ;;  %s8283_s22 = sld [smem:[#allocation8 + $0x9f]] }
 0x329   : > { %v2017_v42 = vmax.f32 %v2015_v32, 0.0  ;;  %v2101_v59 = vmax.f32 %v2099_v19, 0.0  ;;  %v11123_v48 = vstv %s11055_s28  ;;  %v11124_v45 = vstv %s11057_s8  ;;  %s11137_s28 = sld [smem:[#allocation258_spill]]  ;;  %s11138_s8 = sld [smem:[#allocation263_spill]] }
 0x32a   : > { %v2183_v5 = vadd.f32 %v11123_v48, %v2179_v18  ;;  %v2267_v53 = vadd.f32 %v11124_v45, %v2263_v60  ;;  %v2347_v30 = vadd.f32 %v2345_v49, %v8027_v27  ;;  %v2431_v40 = vadd.f32 %v2429_v14, %v8030_v52 }
 0x32b   : > { %v2674_v61 = vstv %s8086_s23  ;;  %v2758_v31 = vstv %s8088_s14  ;;  %v11125_v34 = vstv %s11068_s17  ;;  %v11126_v10 = vstv %s11070_s13  ;;  %s11139_s17 = sld [smem:[#allocation264_spill]]  ;;  %s8198_s13 = sld [smem:[#allocation8 + $0x54]] }
 0x32c   : > { %v2021_v11 = vmul.f32 %v11125_v34, %v2017_v42  ;;  %v2027_v20 = vmul.f32 %v11126_v10, %v2017_v42  ;;  %v11128_v4 = vstv %s11071_s26  ;;  %v11130_v43 = vstv %s11073_s2  ;;  %s8200_s26 = sld [smem:[#allocation8 + $0x55]]  ;;  %s8294_s14 = sld [smem:[#allocation8 + $0x12]] }
 0x32d   : > { %v2033_v6 = vmul.f32 %v11128_v4, %v2017_v42  ;;  %v2039_v41 = vmul.f32 %v11130_v43, %v2017_v42  ;;  %v11131_v58 = vstv %s11075_s24  ;;  %v11132_v26 = vstv %s11077_s19  ;;  %s8249_s2 = sld [smem:[#allocation8 + $0x85]]  ;;  %s8255_s24 = sld [smem:[#allocation8 + $0x86]] }
 0x32e   : > { %v2105_v27 = vmul.f32 %v11131_v58, %v2101_v59  ;;  %v2111_v52 = vmul.f32 %v11132_v26, %v2101_v59  ;;  %v11133_v51 = vstv %s11079_s1  ;;  %v11135_v21 = vstv %s11080_s15  ;;  %s8259_s19 = sld [smem:[#allocation8 + $0x87]]  ;;  %s8261_s1 = sld [smem:[#allocation8 + $0x88]] }
 0x32f   : > { %v2117_v8 = vmul.f32 %v11133_v51, %v2101_v59  ;;  %v2123_v22 = vmul.f32 %v11135_v21, %v2101_v59  ;;  %v2023_v62 = vadd.f32 %v2021_v11, %v7824_v56  ;;  %v2029_v39 = vadd.f32 %v2027_v20, %v7826_v50  ;;  %s8263_s15 = sld [smem:[#allocation8 + $0x89]]  ;;  %s8299_s23 = sld [smem:[#allocation8 + $0x13]] }
 0x330   : > { %v2035_v15 = vadd.f32 %v2033_v6, %v7828_v17  ;;  %v2041_v3 = vadd.f32 %v2039_v41, %v7830_v37  ;;  %v2185_v32 = vmax.f32 %v2183_v5, 0.0  ;;  %v2269_v12 = vmax.f32 %v2267_v53, 0.0 }
 0x331   : > { %v11140_v19 = vstv %s11127_s30  ;;  %v11141_v60 = vstv %s11129_s16  ;;  %v2107_v49 = vadd.f32 %v2105_v27, %v2023_v62  ;;  %v2113_v33 = vadd.f32 %v2111_v52, %v2029_v39  ;;  %s8305_s30 = sld [smem:[#allocation8 + $0x16]]  ;;  %s8309_s16 = sld [smem:[#allocation8 + $0x17]] }
 0x332   : > { %v2351_v18 = vadd.f32 %v11140_v19, %v2347_v30  ;;  %v2435_v23 = vadd.f32 %v11141_v60, %v2431_v40  ;;  %v2119_v14 = vadd.f32 %v2117_v8, %v2035_v15  ;;  %v2125_v56 = vadd.f32 %v2123_v22, %v2041_v3 }
 0x333   : > { %v11142_v42 = vstv %s11081_s9  ;;  %v11143_v59 = vstv %s11134_s25  ;;  %v11144_v48 = vstv %s11136_s0  ;;  %v11145_v37 = vstv %s11137_s28  ;;  %s8271_s9 = sld [smem:[#allocation8 + $0x9c]]  ;;  %s8317_s25 = sld [smem:[#allocation8 + $0xcd]] }
 0x334   : > { %v2189_v50 = vmul.f32 %v11142_v42, %v2185_v32  ;;  %v2195_v17 = vmul.f32 %v11143_v59, %v2185_v32  ;;  %v2201_v45 = vmul.f32 %v11144_v48, %v2185_v32  ;;  %v2207_v34 = vmul.f32 %v11145_v37, %v2185_v32  ;;  %v2470_v37 = vpop.permute.xlu0 %2469  ;;  %s8319_s0 = sld [smem:[#allocation11 + $0x30]]  ;;  %s8321_s28 = sld [smem:[#allocation11 + $0x31]] }
 0x335   : > { %v11146_v5 = vstv %s11093_s20  ;;  %v11147_v11 = vstv %s11095_s21  ;;  %v11148_v40 = vstv %s11138_s8  ;;  %v11149_v20 = vstv %s11139_s17  ;;  %s8285_s20 = sld [smem:[#allocation8 + $0xa0]]  ;;  %s8287_s21 = sld [smem:[#allocation8 + $0xa1]] }
 0x336   : > { %v2273_v53 = vmul.f32 %v11146_v5, %v2269_v12  ;;  %v2279_v30 = vmul.f32 %v11147_v11, %v2269_v12  ;;  %v2285_v10 = vmul.f32 %v11148_v40, %v2269_v12  ;;  %v2291_v4 = vmul.f32 %v11149_v20, %v2269_v12  ;;  %s8325_s8 = sld [smem:[#allocation11 + $0x32]]  ;;  %s8327_s17 = sld [smem:[#allocation11 + $0x33]] }
 0x337   : > { %v2191_v6 = vadd.f32 %v2189_v50, %v2107_v49  ;;  %v2197_v43 = vadd.f32 %v2195_v17, %v2113_v33  ;;  %v2203_v41 = vadd.f32 %v2201_v45, %v2119_v14  ;;  %v2209_v58 = vadd.f32 %v2207_v34, %v2125_v56 }
 0x338   : > { %v2353_v27 = vmax.f32 %v2351_v18, 0.0  ;;  %v2437_v26 = vmax.f32 %v2435_v23, 0.0  ;;  %v2842_v52 = vstv %s8144_s18  ;;  %v2926_v51 = vstv %s8146_s11  ;;  %v2472_v18 = vpop.permute.xlu1 %2471  ;;  %s8311_s18 = sld [smem:[#allocation8 + $0xcc]] }
 0x339   : > { %v2275_v8 = vadd.f32 %v2273_v53, %v2191_v6  ;;  %v2281_v21 = vadd.f32 %v2279_v30, %v2197_v43  ;;  %v2287_v22 = vadd.f32 %v2285_v10, %v2203_v41  ;;  %v2293_v62 = vadd.f32 %v2291_v4, %v2209_v58  ;;  %v11155_v30 = vld [vmem:[#allocation137_spill] sm:$0xff]  ;;  %s8315_s11 = sld [smem:[#allocation9 + $0xc]] }
 0x33a   : > { %v11150_v39 = vstv %s11103_s7  ;;  %v11151_v3 = vstv %s11104_s4  ;;  %v11152_v12 = vstv %s11105_s12  ;;  %v11153_v60 = vstv %s11106_s10  ;;  %s8202_s10 = sld [smem:[#allocation8 + $0x56]]  ;;  %s8204_s12 = sld [smem:[#allocation8 + $0x57]] }
 0x33b   : > { %v2357_v15 = vmul.f32 %v11150_v39, %v2353_v27  ;;  %v2363_v32 = vmul.f32 %v11151_v3, %v2353_v27  ;;  %v2369_v19 = vmul.f32 %v11152_v12, %v2353_v27  ;;  %v2375_v49 = vmul.f32 %v11153_v60, %v2353_v27  ;;  %s8301_s7 = sld [smem:[#allocation8 + $0x14]]  ;;  %s8303_s4 = sld [smem:[#allocation8 + $0x15]] }
 0x33c   : > { %v11154_v33 = vstv %s11111_s3  ;;  %v2447_v14 = vmul.f32 %v2446_v38, %v2437_v26  ;;  %v2453_v56 = vmul.f32 %v2452_v29, %v2437_v26  ;;  %v2459_v42 = vmul.f32 %v2458_v0, %v2437_v26  ;;  %s8281_s3 = sld [smem:[#allocation8 + $0x9e]]  ;;  %11169 = sst [smem:[#allocation44_spill]] %s8319_s0 }
 0x33d   : > { %v2441_v23 = vmul.f32 %v11154_v33, %v2437_v26  ;;  %v2359_v50 = vadd.f32 %v2357_v15, %v2275_v8  ;;  %v2365_v59 = vadd.f32 %v2363_v32, %v2281_v21  ;;  %v2371_v17 = vadd.f32 %v2369_v19, %v2287_v22  ;;  %v2478_v8 = vpop.permute.xlu1 %2477  ;;  %11170 = sst [smem:[#allocation45_spill]] %s8321_s28 }
 0x33e   : > { %v2377_v48 = vadd.f32 %v2375_v49, %v2293_v62  ;;  %v2508_v45 = vmul.f32 %v2506_v9, %v2472_v18  ;;  %v2592_v38 = vmul.f32 %v2590_v7, %v2472_v18  ;;  %v2676_v29 = vmul.f32 %v2674_v61, %v2472_v18  ;;  %11171 = sst [smem:[#allocation46_spill]] %s8325_s8 }
 0x33f   : > { %v2760_v0 = vmul.f32 %v2758_v31, %v2472_v18  ;;  %v8218_v34 = vadd.f32 %v2441_v23, %v2359_v50  ;;  %v8220_v5 = vadd.f32 %v2447_v14, %v2365_v59  ;;  %v8222_v53 = vadd.f32 %v2453_v56, %v2371_v17  ;;  %11168 = sst [smem:[#allocation42_spill]] %s8315_s11 }
 0x340   : > { %v8224_v11 = vadd.f32 %v2459_v42, %v2377_v48  ;;  %v2923_v40 = vadd.f32 %v11155_v30, %v7974_v2  ;;  %v2510_v10 = vadd.f32 %v2508_v45, %v7934_v35  ;;  %v2594_v20 = vadd.f32 %v2592_v38, %v7937_v46  ;;  %v11156_v48 = vld [vmem:[#allocation158_spill] sm:$0xff] }
 0x341   : > { %v2678_v4 = vadd.f32 %v2676_v29, %v7940_v28  ;;  %v2844_v6 = vmul.f32 %v2842_v52, %v2472_v18  ;;  %v2928_v43 = vmul.f32 %v2926_v51, %v2472_v18  ;;  %v2507_v41 = vmul.f32 %v2506_v9, %v2470_v37  ;;  %v2482_v30 = vpop.permute.xlu1 %2481 }
 0x342   : > { %v2591_v58 = vmul.f32 %v2590_v7, %v2470_v37  ;;  %v2762_v27 = vadd.f32 %v2760_v0, %v7943_v25  ;;  %v2675_v26 = vmul.f32 %v2674_v61, %v2470_v37  ;;  %v2759_v2 = vmul.f32 %v2758_v31, %v2470_v37 }
 0x343   : > { %v2843_v35 = vmul.f32 %v2842_v52, %v2470_v37  ;;  %v2846_v46 = vadd.f32 %v2844_v6, %v7946_v63  ;;  %v2930_v28 = vadd.f32 %v2928_v43, %v7957_v57  ;;  %v2509_v9 = vadd.f32 %v2507_v41, %v7964_v44  ;;  %v2476_v44 = vpop.permute.xlu0 %2475  ;;  %v11159_v41 = vld [vmem:[#allocation162_spill] sm:$0xff] }
 0x344   : > { %v2927_v7 = vmul.f32 %v2926_v51, %v2470_v37  ;;  %v2593_v25 = vadd.f32 %v2591_v58, %v7967_v55  ;;  %v2677_v21 = vadd.f32 %v2675_v26, %v7970_v16  ;;  %v2761_v61 = vadd.f32 %v2759_v2, %v7977_v54  ;;  %v11160_v26 = vld [vmem:[#allocation163_spill] sm:$0xff] }
 0x345   : > { %v2845_v31 = vadd.f32 %v2843_v35, %v7980_v24  ;;  %v2512_v63 = vstv %s8198_s13  ;;  %v2596_v57 = vstv %s8200_s26  ;;  %v2680_v52 = vstv %s8202_s10  ;;  %s8337_s13 = sld [smem:[#allocation9 + $0xd]]  ;;  %s8339_s26 = sld [smem:[#allocation11 + $0x34]] }
 0x346   : > { %v2764_v22 = vstv %s8204_s12  ;;  %v2848_v51 = vstv %s8214_s6  ;;  %v2932_v62 = vstv %s8216_s27  ;;  %v2514_v55 = vmul.f32 %v2512_v63, %v2478_v8  ;;  %s8345_s10 = sld [smem:[#allocation11 + $0x35]]  ;;  %s8347_s12 = sld [smem:[#allocation11 + $0x36]] }
 0x347   : > { %v2598_v39 = vmul.f32 %v2596_v57, %v2478_v8  ;;  %v2682_v16 = vmul.f32 %v2680_v52, %v2478_v8  ;;  %v2766_v54 = vmul.f32 %v2764_v22, %v2478_v8  ;;  %v2850_v24 = vmul.f32 %v2848_v51, %v2478_v8  ;;  %s8353_s6 = sld [smem:[#allocation11 + $0x37]]  ;;  %s8355_s27 = sld [smem:[#allocation8 + $0xce]] }
 0x348   : > { %v2934_v15 = vmul.f32 %v2932_v62, %v2478_v8  ;;  %v2929_v3 = vadd.f32 %v2927_v7, %v2923_v40  ;;  %v2516_v32 = vadd.f32 %v2514_v55, %v2510_v10  ;;  %v2513_v12 = vmul.f32 %v2512_v63, %v2476_v44  ;;  %v11157_v10 = vld [vmem:[#allocation159_spill] sm:$0xff] }
 0x349   : > { %v2597_v19 = vmul.f32 %v2596_v57, %v2476_v44  ;;  %v2600_v60 = vadd.f32 %v2598_v39, %v2594_v20  ;;  %v2684_v49 = vadd.f32 %v2682_v16, %v2678_v4  ;;  %v2768_v18 = vadd.f32 %v2766_v54, %v2762_v27  ;;  %v11158_v4 = vld [vmem:[#allocation160_spill] sm:$0xff]  ;;  %v11163_v16 = vld [vmem:[#allocation161_spill] sm:$0xff] }
 0x34a   : > { %v2852_v33 = vadd.f32 %v2850_v24, %v2846_v46  ;;  %v2936_v23 = vadd.f32 %v2934_v15, %v2930_v28  ;;  %v2515_v14 = vadd.f32 %v2513_v12, %v2509_v9  ;;  %v2681_v56 = vmul.f32 %v2680_v52, %v2476_v44  ;;  %v11161_v46 = vld [vmem:[#allocation165_spill] sm:$0xff]  ;;  %v11164_v15 = vld [vmem:[#allocation166_spill] sm:$0xff]  ;;  %v11165_v12 = vld [vmem:[#allocation167_spill] sm:$0xff] }
 0x34b   : > { %v2765_v42 = vmul.f32 %v2764_v22, %v2476_v44  ;;  %v2599_v50 = vadd.f32 %v2597_v19, %v2593_v25  ;;  %v2849_v59 = vmul.f32 %v2848_v51, %v2476_v44  ;;  %v2933_v17 = vmul.f32 %v2932_v62, %v2476_v44  ;;  %v11162_v22 = vld [vmem:[#allocation164_spill] sm:$0xff]  ;;  %v2480_v51 = vpop.permute.xlu0 %2479 }
 0x34c   : > { %v2522_v45 = vadd.f32 %v11156_v48, %v2516_v32  ;;  %v2683_v38 = vadd.f32 %v2681_v56, %v2677_v21  ;;  %v2524_v0 = vstv %s8247_s5  ;;  %v2608_v37 = vstv %s8249_s2  ;;  %s8361_s5 = sld [smem:[#allocation9 + $0xe]]  ;;  %s8363_s2 = sld [smem:[#allocation11 + $0x38]] }
 0x34d   : > { %v2767_v29 = vadd.f32 %v2765_v42, %v2761_v61  ;;  %v2851_v40 = vadd.f32 %v2849_v59, %v2845_v31  ;;  %v2606_v20 = vadd.f32 %v11157_v10, %v2600_v60  ;;  %v2690_v6 = vadd.f32 %v11158_v4, %v2684_v49  ;;  %v11166_v60 = vld [vmem:[#allocation168_spill] sm:$0xff]  ;;  %11172 = sst [smem:[#allocation51_spill]] %s8353_s6 }
 0x34e   : > { %v2692_v43 = vstv %s8255_s24  ;;  %v2774_v58 = vadd.f32 %v11159_v41, %v2768_v18  ;;  %v2776_v27 = vstv %s8259_s19  ;;  %v2858_v2 = vadd.f32 %v11160_v26, %v2852_v33  ;;  %s8371_s24 = sld [smem:[#allocation11 + $0x39]]  ;;  %s8373_s19 = sld [smem:[#allocation11 + $0x3a]] }
 0x34f   : > { %v2860_v35 = vstv %s8261_s1  ;;  %v2942_v28 = vadd.f32 %v11161_v46, %v2936_v23  ;;  %v2944_v9 = vstv %s8263_s15  ;;  %v2526_v7 = vmul.f32 %v2524_v0, %v2482_v30  ;;  %v2486_v10 = vpop.permute.xlu0 %2485  ;;  %s8375_s1 = sld [smem:[#allocation11 + $0x3b]]  ;;  %s8377_s15 = sld [smem:[#allocation8 + $0xcf]] }
 0x350   : > { %v2610_v8 = vmul.f32 %v2608_v37, %v2482_v30  ;;  %v2694_v25 = vmul.f32 %v2692_v43, %v2482_v30  ;;  %v2778_v21 = vmul.f32 %v2776_v27, %v2482_v30  ;;  %v2862_v61 = vmul.f32 %v2860_v35, %v2482_v30 }
 0x351   : > { %v2946_v31 = vmul.f32 %v2944_v9, %v2482_v30  ;;  %v2935_v63 = vadd.f32 %v2933_v17, %v2929_v3  ;;  %v2528_v57 = vadd.f32 %v2526_v7, %v2522_v45  ;;  %v2521_v44 = vadd.f32 %v11162_v22, %v2515_v14  ;;  %v11167_v14 = vld [vmem:[#allocation169_spill] sm:$0xff]  ;;  %v2488_v17 = vpop.permute.xlu1 %2487 }
 0x352   : > { %v2612_v52 = vadd.f32 %v2610_v8, %v2606_v20  ;;  %v2696_v62 = vadd.f32 %v2694_v25, %v2690_v6  ;;  %v2780_v55 = vadd.f32 %v2778_v21, %v2774_v58  ;;  %v2864_v39 = vadd.f32 %v2862_v61, %v2858_v2 }
 0x353   : > { %v2605_v54 = vadd.f32 %v11163_v16, %v2599_v50  ;;  %v2948_v24 = vadd.f32 %v2946_v31, %v2942_v28  ;;  %v2689_v32 = vadd.f32 %v11164_v15, %v2683_v38  ;;  %v2773_v19 = vadd.f32 %v11165_v12, %v2767_v29 }
 0x354   : > { %v2857_v49 = vadd.f32 %v11166_v60, %v2851_v40  ;;  %v2525_v3 = vmul.f32 %v2524_v0, %v2480_v51  ;;  %v2609_v18 = vmul.f32 %v2608_v37, %v2480_v51  ;;  %v2693_v33 = vmul.f32 %v2692_v43, %v2480_v51  ;;  %11173 = sst [smem:[#allocation52_spill]] %s8373_s19 }
 0x355   : > { %v2777_v23 = vmul.f32 %v2776_v27, %v2480_v51  ;;  %v2941_v56 = vadd.f32 %v11167_v14, %v2935_v63  ;;  %v2861_v42 = vmul.f32 %v2860_v35, %v2480_v51  ;;  %v2530_v59 = vstv %s8271_s9  ;;  %11174 = sst [smem:[#allocation53_spill]] %s8375_s1  ;;  %s8379_s9 = sld [smem:[#allocation9 + $0xf]] }
 0x356   : > { %v2614_v50 = vstv %s8273_s29  ;;  %v2527_v48 = vadd.f32 %v2525_v3, %v2521_v44  ;;  %v2611_v45 = vadd.f32 %v2609_v18, %v2605_v54  ;;  %v2695_v38 = vadd.f32 %v2693_v33, %v2689_v32  ;;  %v3000_v54 = vpop.permute.xlu0 %2999  ;;  %11175 = sst [smem:[#allocation55_spill]] %s8377_s15  ;;  %s8381_s29 = sld [smem:[#allocation11 + $0x3c]] }
 0x357   : > { %v2945_v29 = vmul.f32 %v2944_v9, %v2480_v51  ;;  %v2779_v0 = vadd.f32 %v2777_v23, %v2773_v19  ;;  %v2863_v37 = vadd.f32 %v2861_v42, %v2857_v49  ;;  %v2698_v30 = vstv %s8281_s3  ;;  %v3002_v51 = vpop.permute.xlu1 %3001  ;;  %v11176_v42 = vld [vmem:[#allocation181_spill] sm:$0xff]  ;;  %s8394_s3 = sld [smem:[#allocation11 + $0x3d]] }
 0x358   : > { %v2782_v40 = vstv %s8283_s22  ;;  %v2866_v20 = vstv %s8285_s20  ;;  %v2950_v4 = vstv %s8287_s21  ;;  %v2532_v6 = vmul.f32 %v2530_v59, %v2488_v17  ;;  %s8396_s22 = sld [smem:[#allocation11 + $0x3e]]  ;;  %s8410_s20 = sld [smem:[#allocation11 + $0x3f]] }
 0x359   : > { %v2616_v43 = vmul.f32 %v2614_v50, %v2488_v17  ;;  %v2700_v41 = vmul.f32 %v2698_v30, %v2488_v17  ;;  %v2784_v58 = vmul.f32 %v2782_v40, %v2488_v17  ;;  %v2868_v27 = vmul.f32 %v2866_v20, %v2488_v17  ;;  %s8412_s21 = sld [smem:[#allocation8 + $0xd0]] }
 0x35a   : > { %v2952_v26 = vmul.f32 %v2950_v4, %v2488_v17  ;;  %v2947_v2 = vadd.f32 %v2945_v29, %v2941_v56  ;;  %v8323_v35 = vadd.f32 %v2532_v6, %v2528_v57  ;;  %v2531_v46 = vmul.f32 %v2530_v59, %v2486_v10 }
 0x35b   : > { %v2615_v28 = vmul.f32 %v2614_v50, %v2486_v10  ;;  %v8329_v9 = vadd.f32 %v2616_v43, %v2612_v52  ;;  %v8331_v7 = vadd.f32 %v2700_v41, %v2696_v62  ;;  %v8333_v8 = vadd.f32 %v2784_v58, %v2780_v55  ;;  %v11177_v50 = vld [vmem:[#allocation182_spill] sm:$0xff]  ;;  %v11188_v58 = vld [vmem:[#allocation193_spill] sm:$0xff] }
 0x35c   : > { %v8335_v25 = vadd.f32 %v2868_v27, %v2864_v39  ;;  %v8341_v21 = vadd.f32 %v2952_v26, %v2948_v24  ;;  %v8343_v61 = vadd.f32 %v2531_v46, %v2527_v48  ;;  %v2699_v31 = vmul.f32 %v2698_v30, %v2486_v10  ;;  %v11178_v48 = vld [vmem:[#allocation185_spill] sm:$0xff]  ;;  %v11183_v30 = vld [vmem:[#allocation191_spill] sm:$0xff]  ;;  %v11189_v26 = vld [vmem:[#allocation201_spill] sm:$0xff] }
 0x35d   : > { %v2783_v63 = vmul.f32 %v2782_v40, %v2486_v10  ;;  %v8349_v57 = vadd.f32 %v2615_v28, %v2611_v45  ;;  %v2867_v52 = vmul.f32 %v2866_v20, %v2486_v10  ;;  %v3028_v22 = vstv %s8294_s14  ;;  %11179 = sst [smem:[#allocation56_spill]] %s8394_s3  ;;  %s8414_s14 = sld [smem:[#allocation9 + $0x10]] }
 0x35e   : > { %v3112_v44 = vstv %s8299_s23  ;;  %v8357_v62 = vadd.f32 %v2699_v31, %v2695_v38  ;;  %v2951_v55 = vmul.f32 %v2950_v4, %v2486_v10  ;;  %v3196_v39 = vstv %s8301_s7  ;;  %11180 = sst [smem:[#allocation57_spill]] %s8396_s22  ;;  %v11181_v38 = vld [vmem:[#allocation186_spill] sm:$0xff]  ;;  %v11184_v10 = vld [vmem:[#allocation192_spill] sm:$0xff]  ;;  %s8416_s23 = sld [smem:[#allocation11 + $0x40]]  ;;  %v11191_v31 = vld [vmem:[#allocation194_spill] sm:$0xff] }
 0x35f   : > { %v3280_v16 = vstv %s8303_s4  ;;  %v8365_v24 = vadd.f32 %v2783_v63, %v2779_v0  ;;  %v8367_v15 = vadd.f32 %v2867_v52, %v2863_v37  ;;  %v3364_v32 = vstv %s8305_s30  ;;  %v11182_v0 = vld [vmem:[#allocation189_spill] sm:$0xff]  ;;  %11185 = sst [smem:[#allocation58_spill]] %s8410_s20  ;;  %s8425_s7 = sld [smem:[#allocation11 + $0x41]]  ;;  %v11192_v52 = vld [vmem:[#allocation196_spill] sm:$0xff] }
 0x360   : > { %v3448_v12 = vstv %s8309_s16  ;;  %v3030_v19 = vmul.f32 %v3028_v22, %v3002_v51  ;;  %v3114_v60 = vmul.f32 %v3112_v44, %v3002_v51  ;;  %v3198_v49 = vmul.f32 %v3196_v39, %v3002_v51  ;;  %11186 = sst [smem:[#allocation59_spill]] %s8412_s21  ;;  %s8427_s4 = sld [smem:[#allocation11 + $0x42]] }
 0x361   : > { %v3282_v3 = vmul.f32 %v3280_v16, %v3002_v51  ;;  %v3366_v18 = vmul.f32 %v3364_v32, %v3002_v51  ;;  %v3450_v33 = vmul.f32 %v3448_v12, %v3002_v51  ;;  %v3029_v23 = vmul.f32 %v3028_v22, %v3000_v54  ;;  %s8439_s30 = sld [smem:[#allocation11 + $0x43]]  ;;  %s8441_s16 = sld [smem:[#allocation8 + $0xd1]] }
 0x362   : > { %v3113_v14 = vmul.f32 %v3112_v44, %v3000_v54  ;;  %v8383_v56 = vadd.f32 %v2951_v55, %v2947_v2  ;;  %v8386_v59 = vadd.f32 %v11176_v42, %v3030_v19  ;;  %v8389_v17 = vadd.f32 %v11177_v50, %v3114_v60  ;;  %v11193_v44 = vld [vmem:[#allocation198_spill] sm:$0xff]  ;;  %v11196_v55 = vld [vmem:[#allocation200_spill] sm:$0xff]  ;;  %s11248_s20 = sld [smem:[#allocation58_spill]] }
 0x363   : > { %v8392_v45 = vadd.f32 %v11178_v48, %v3198_v49  ;;  %v8399_v29 = vadd.f32 %v11181_v38, %v3282_v3  ;;  %v8402_v37 = vadd.f32 %v11182_v0, %v3366_v18  ;;  %v8405_v40 = vadd.f32 %v11183_v30, %v3450_v33 }
 0x364   : > { %v8408_v20 = vadd.f32 %v11184_v10, %v3029_v23  ;;  %v3197_v4 = vmul.f32 %v3196_v39, %v3000_v54  ;;  %v3281_v6 = vmul.f32 %v3280_v16, %v3000_v54  ;;  %v3365_v43 = vmul.f32 %v3364_v32, %v3000_v54  ;;  %11187 = sst [smem:[#allocation61_spill]] %s8416_s23  ;;  %v11197_v32 = vld [vmem:[#allocation202_spill] sm:$0xff]  ;;  %v11199_v23 = vld [vmem:[#allocation203_spill] sm:$0xff]  ;;  %v11200_v10 = vld [vmem:[#allocation204_spill] sm:$0xff] }
 0x365   : > { %v3449_v41 = vmul.f32 %v3448_v12, %v3000_v54  ;;  %v8419_v27 = vadd.f32 %v11188_v58, %v3113_v14  ;;  %v2540_v2 = vadd.f32 %v11189_v26, %v8323_v35  ;;  %v9718_v46 = vstv %s8311_s18  ;;  %11190 = sst [smem:[#allocation63_spill]] %s8425_s7 }
 0x366   : > { %v2548_v28 = vstv %s8315_s11  ;;  %v8430_v63 = vadd.f32 %v11191_v31, %v3197_v4  ;;  %v8433_v22 = vadd.f32 %v11192_v52, %v3281_v6  ;;  %v8436_v51 = vadd.f32 %v11193_v44, %v3365_v43  ;;  %s8450_s11 = sld [smem:[#allocation9 + $0x11]]  ;;  %v11201_v31 = vld [vmem:[#allocation207_spill] sm:$0xff] }
 0x367   : > { %v2554_v35 = vstv %s8319_s0  ;;  %11194 = sst [smem:[#allocation64_spill]] %s8439_s30  ;;  %v8444_v39 = vadd.f32 %v11196_v55, %v3449_v41  ;;  %v2560_v16 = vstv %s8321_s28  ;;  %v2566_v54 = vstv %s8325_s8  ;;  %s8458_s28 = sld [smem:[#allocation11 + $0x45]]  ;;  %v2492_v55 = vpop.permute.xlu1 %2491  ;;  %v11202_v41 = vld [vmem:[#allocation210_spill] sm:$0xff] }
 0x368   : > { %11195 = sst [smem:[#allocation65_spill]] %s8441_s16  ;;  %v2624_v12 = vadd.f32 %v11197_v32, %v8329_v9  ;;  %s8452_s0 = sld [smem:[#allocation11 + $0x44]]  ;;  %v2572_v19 = vstv %s8327_s17  ;;  %v9717_v60 = vstv %s8317_s25  ;;  %v2632_v49 = vstv %s8337_s13 }
 0x369   : > { %v2638_v3 = vstv %s8339_s26  ;;  %s8460_s8 = sld [smem:[#allocation11 + $0x46]]  ;;  %v9727_v9 = vstv %s8345_s10  ;;  %v9726_v18 = vstv %s8347_s12  ;;  %v2708_v14 = vadd.f32 %v11199_v23, %v8331_v7  ;;  %s11240_s13 = sld [smem:[#allocation51_spill]] }
 0x36a   : > { %v9719_v42 = vstv %s8355_s27  ;;  %v2716_v50 = vstv %s8361_s5  ;;  %v2792_v4 = vadd.f32 %v11200_v10, %v8333_v8  ;;  %v9720_v6 = vstv %s8377_s15  ;;  %s11214_s15 = sld [smem:[#allocation58_spill]]  ;;  %s11242_s5 = sld [smem:[#allocation53_spill]] }
 0x36b   : > { %v2800_v43 = vstv %s8379_s9  ;;  %v2876_v52 = vadd.f32 %v11201_v31, %v8335_v25  ;;  %v9721_v44 = vstv %s8412_s21  ;;  %v2884_v8 = vstv %s8414_s14  ;;  %v11204_v25 = vld [vmem:[#allocation205_spill] sm:$0xff]  ;;  %s11247_s9 = sld [smem:[#allocation57_spill]]  ;;  %s11251_s17 = sld [smem:[#allocation61_spill]] }
 0x36c   : > { %11198 = sst [smem:[#allocation66_spill]] %s8450_s11  ;;  %v2960_v7 = vadd.f32 %v11202_v41, %v8341_v21  ;;  %v2962_v30 = vstv %s8441_s16  ;;  %v2968_v26 = vstv %s8450_s11  ;;  %v2544_v31 = vmul.f32 %v9718_v46, %v2492_v55  ;;  %s8552_s11 = sld [smem:[#allocation11 + $0x47]] }
 0x36d   : > { %v2628_v48 = vmul.f32 %v9717_v60, %v2492_v55  ;;  %v2712_v33 = vmul.f32 %v9719_v42, %v2492_v55  ;;  %v2796_v10 = vmul.f32 %v9720_v6, %v2492_v55  ;;  %v2880_v21 = vmul.f32 %v9721_v44, %v2492_v55  ;;  %v11205_v60 = vld [vmem:[#allocation206_spill] sm:$0xff]  ;;  %s11253_s26 = sld [smem:[#allocation63_spill]]  ;;  %s8735_s21 = sld [smem:[#allocation8 + $0x5e]] }
 0x36e   : > { %v2964_v41 = vmul.f32 %v2962_v30, %v2492_v55  ;;  %v2546_v38 = vadd.f32 %v2544_v31, %v2540_v2  ;;  %v8510_v58 = vadd.f32 %v11204_v25, %v8343_v61  ;;  %v8514_v46 = vadd.f32 %v11205_v60, %v8349_v57  ;;  %v11207_v2 = vld [vmem:[#allocation213_spill] sm:$0xff]  ;;  %v11209_v61 = vld [vmem:[#allocation214_spill] sm:$0xff]  ;;  %s8813_s14 = sld [smem:[#allocation8 + $0xa4]]  ;;  %s8831_s16 = sld [smem:[#allocation8 + $0xd3]] }
 0x36f   : > { %v2630_v0 = vadd.f32 %v2628_v48, %v2624_v12  ;;  %v2714_v42 = vadd.f32 %v2712_v33, %v2708_v14  ;;  %v2798_v23 = vadd.f32 %v2796_v10, %v2792_v4  ;;  %v2882_v6 = vadd.f32 %v2880_v21, %v2876_v52 }
 0x370   : > { %v2966_v32 = vadd.f32 %v2964_v41, %v2960_v7  ;;  %v2550_v44 = vadd.f32 %v2548_v28, %v2546_v38  ;;  %v8522_v12 = vadd.f32 %v11207_v2, %v8357_v62  ;;  %v8526_v48 = vadd.f32 %v11209_v61, %v8365_v24  ;;  %v11212_v24 = vld [vmem:[#allocation218_spill] sm:$0xff] }
 0x371   : > { %v2634_v55 = vadd.f32 %v2632_v49, %v2630_v0  ;;  %v2718_v57 = vadd.f32 %v2716_v50, %v2714_v42  ;;  %v2802_v60 = vadd.f32 %v2800_v43, %v2798_v23  ;;  %v2886_v33 = vadd.f32 %v2884_v8, %v2882_v6  ;;  %v11211_v0 = vld [vmem:[#allocation215_spill] sm:$0xff] }
 0x372   : > { %v2970_v14 = vadd.f32 %v2968_v26, %v2966_v32  ;;  %v2552_v38 = vmax.f32 %v2550_v44, 0.0  ;;  %v8538_v4 = vadd.f32 %v11211_v0, %v8367_v15  ;;  %v8542_v7 = vadd.f32 %v11212_v24, %v8383_v56 }
 0x373   : > { %v2636_v62 = vmax.f32 %v2634_v55, 0.0  ;;  %v2720_v42 = vmax.f32 %v2718_v57, 0.0  ;;  %v2804_v52 = vmax.f32 %v2802_v60, 0.0  ;;  %v2888_v23 = vmax.f32 %v2886_v33, 0.0 }
 0x374   : > { %v2972_v6 = vmax.f32 %v2970_v14, 0.0  ;;  %v2556_v32 = vmul.f32 %v2554_v35, %v2552_v38  ;;  %v2562_v44 = vmul.f32 %v2560_v16, %v2552_v38  ;;  %v2568_v10 = vmul.f32 %v2566_v54, %v2552_v38 }
 0x375   : > { %v2574_v15 = vmul.f32 %v2572_v19, %v2552_v38  ;;  %v2640_v56 = vmul.f32 %v2638_v3, %v2636_v62  ;;  %v2646_v25 = vmul.f32 %v9727_v9, %v2636_v62  ;;  %v2652_v31 = vmul.f32 %v9726_v18, %v2636_v62 }
 0x376   : > { %v11213_v21 = vstv %s8353_s6  ;;  %v2558_v55 = vadd.f32 %v2556_v32, %v8106_v47  ;;  %v2564_v2 = vadd.f32 %v2562_v44, %v8108_v13  ;;  %v2570_v61 = vadd.f32 %v2568_v10, %v8110_v1  ;;  %s8574_s6 = sld [smem:[#allocation8 + $0x42]] }
 0x377   : > { %v2658_v41 = vmul.f32 %v11213_v21, %v2636_v62  ;;  %v2576_v57 = vadd.f32 %v2574_v15, %v8112_v36  ;;  %v11215_v60 = vstv %s8363_s2  ;;  %v11216_v14 = vstv %s8371_s24 }
 0x378   : > { %v2724_v33 = vmul.f32 %v11215_v60, %v2720_v42  ;;  %v2730_v38 = vmul.f32 %v11216_v14, %v2720_v42  ;;  %v11217_v0 = vstv %s8373_s19  ;;  %v11218_v18 = vstv %s8375_s1  ;;  %s8584_s1 = sld [smem:[#allocation8 + $0x43]]  ;;  %s8586_s19 = sld [smem:[#allocation8 + $0x44]] }
 0x379   : > { %v2736_v24 = vmul.f32 %v11217_v0, %v2720_v42  ;;  %v2742_v9 = vmul.f32 %v11218_v18, %v2720_v42  ;;  %v2642_v62 = vadd.f32 %v2640_v56, %v2558_v55  ;;  %v2648_v21 = vadd.f32 %v2646_v25, %v2564_v2 }
 0x37a   : > { %v2654_v47 = vadd.f32 %v2652_v31, %v2570_v61  ;;  %v2660_v13 = vadd.f32 %v2658_v41, %v2576_v57  ;;  %v11219_v1 = vstv %s8381_s29  ;;  %v11220_v32 = vstv %s8394_s3  ;;  %s8598_s3 = sld [smem:[#allocation8 + $0x46]] }
 0x37b   : > { %v2808_v36 = vmul.f32 %v11219_v1, %v2804_v52  ;;  %v2814_v44 = vmul.f32 %v11220_v32, %v2804_v52  ;;  %v11221_v10 = vstv %s8396_s22  ;;  %v11222_v60 = vstv %s11214_s15  ;;  %s11227_s15 = sld [smem:[#allocation55_spill]]  ;;  %s8596_s22 = sld [smem:[#allocation8 + $0x45]] }
 0x37c   : > { %v2820_v15 = vmul.f32 %v11221_v10, %v2804_v52  ;;  %v2826_v14 = vmul.f32 %v11222_v60, %v2804_v52  ;;  %v2726_v0 = vadd.f32 %v2724_v33, %v2642_v62  ;;  %v2732_v18 = vadd.f32 %v2730_v38, %v2648_v21  ;;  %v2490_v62 = vpop.permute.xlu0 %2489 }
 0x37d   : > { %v2738_v42 = vadd.f32 %v2736_v24, %v2654_v47  ;;  %v2744_v56 = vadd.f32 %v2742_v9, %v2660_v13  ;;  %v11223_v25 = vstv %s8416_s23  ;;  %v11224_v41 = vstv %s8425_s7  ;;  %s11228_s23 = sld [smem:[#allocation59_spill]]  ;;  %s8821_s7 = sld [smem:[#allocation8 + $0xa6]] }
 0x37e   : > { %v2892_v31 = vmul.f32 %v11223_v25, %v2888_v23  ;;  %v2898_v55 = vmul.f32 %v11224_v41, %v2888_v23  ;;  %v11225_v2 = vstv %s8427_s4  ;;  %v11226_v57 = vstv %s8439_s30  ;;  %s8613_s30 = sld [smem:[#allocation8 + $0x47]] }
 0x37f   : > { %v2904_v61 = vmul.f32 %v11225_v2, %v2888_v23  ;;  %v2910_v52 = vmul.f32 %v11226_v57, %v2888_v23  ;;  %v2810_v33 = vadd.f32 %v2808_v36, %v2726_v0  ;;  %v2816_v38 = vadd.f32 %v2814_v44, %v2732_v18 }
 0x380   : > { %v2822_v24 = vadd.f32 %v2820_v15, %v2738_v42  ;;  %v2828_v9 = vadd.f32 %v2826_v14, %v2744_v56  ;;  %v2992_v21 = vstv %s8552_s11  ;;  %v11230_v47 = vstv %s8452_s0  ;;  %s8784_s11 = sld [smem:[#allocation8 + $0x8a]] }
 0x381   : > { %v8603_v23 = vmul.f32 %v11230_v47, %v2972_v6  ;;  %v11231_v13 = vstv %s8458_s28  ;;  %v11232_v36 = vstv %s8460_s8  ;;  %v8615_v44 = vadd.f32 %v2892_v31, %v2810_v33 }
 0x382   : > { %v8607_v1 = vmul.f32 %v11231_v13, %v2972_v6  ;;  %v8611_v32 = vmul.f32 %v11232_v36, %v2972_v6  ;;  %v8617_v10 = vadd.f32 %v2898_v55, %v2816_v38  ;;  %v8619_v15 = vadd.f32 %v2904_v61, %v2822_v24 }
 0x383   : > { %v8621_v60 = vadd.f32 %v2910_v52, %v2828_v9  ;;  %v11233_v14 = vstv %s8311_s18  ;;  %v11234_v18 = vstv %s8317_s25  ;;  %v11235_v56 = vstv %s8355_s27  ;;  %s11241_s27 = sld [smem:[#allocation52_spill]]  ;;  %s8833_s18 = sld [smem:[#allocation8 + $0xd4]] }
 0x384   : > { %v2543_v0 = vmul.f32 %v11233_v14, %v2490_v62  ;;  %v2627_v42 = vmul.f32 %v11234_v18, %v2490_v62  ;;  %v2711_v25 = vmul.f32 %v11235_v56, %v2490_v62  ;;  %v11236_v41 = vstv %s11227_s15  ;;  %s11245_s15 = sld [smem:[#allocation56_spill]]  ;;  %s8835_s25 = sld [smem:[#allocation8 + $0xd5]] }
 0x385   : > { %v2795_v31 = vmul.f32 %v11236_v41, %v2490_v62  ;;  %v8633_v55 = vmul.f32 %v2992_v21, %v2972_v6  ;;  %v11237_v2 = vstv %s11228_s23  ;;  %v2963_v57 = vmul.f32 %v2962_v30, %v2490_v62  ;;  %s8815_s23 = sld [smem:[#allocation8 + $0xa5]] }
 0x386   : > { %v2879_v61 = vmul.f32 %v11237_v2, %v2490_v62  ;;  %v3040_v52 = vstv %s8574_s6  ;;  %v2545_v33 = vadd.f32 %v2543_v0, %v8510_v58  ;;  %v2629_v38 = vadd.f32 %v2627_v42, %v8514_v46  ;;  %s8798_s6 = sld [smem:[#allocation8 + $0x8d]] }
 0x387   : > { %v2713_v24 = vadd.f32 %v2711_v25, %v8522_v12  ;;  %v2797_v9 = vadd.f32 %v2795_v31, %v8526_v48  ;;  %v2965_v47 = vadd.f32 %v2963_v57, %v8542_v7  ;;  %v3124_v13 = vstv %s8584_s1  ;;  %v8656_v12 = vpop.permute.xlu1 %3005  ;;  %s8802_s1 = sld [smem:[#allocation8 + $0x8f]] }
 0x388   : > { %v2881_v6 = vadd.f32 %v2879_v61, %v8538_v4  ;;  %v3208_v36 = vstv %s8586_s19  ;;  %v2549_v30 = vadd.f32 %v2548_v28, %v2545_v33  ;;  %v2633_v62 = vadd.f32 %v2632_v49, %v2629_v38  ;;  %s8800_s19 = sld [smem:[#allocation8 + $0x8e]] }
 0x389   : > { %v2717_v58 = vadd.f32 %v2716_v50, %v2713_v24  ;;  %v2801_v46 = vadd.f32 %v2800_v43, %v2797_v9  ;;  %v2969_v4 = vadd.f32 %v2968_v26, %v2965_v47  ;;  %v3292_v28 = vstv %s8596_s22  ;;  %s8810_s22 = sld [smem:[#allocation8 + $0xa3]] }
 0x38a   : > { %v2885_v48 = vadd.f32 %v2884_v8, %v2881_v6  ;;  %v3376_v7 = vstv %s8598_s3  ;;  %v2551_v49 = vmax.f32 %v2549_v30, 0.0  ;;  %v2635_v14 = vmax.f32 %v2633_v62, 0.0  ;;  %s8808_s3 = sld [smem:[#allocation8 + $0xa2]] }
 0x38b   : > { %v2719_v50 = vmax.f32 %v2717_v58, 0.0  ;;  %v3460_v0 = vstv %s8613_s30  ;;  %v2803_v18 = vmax.f32 %v2801_v46, 0.0  ;;  %v2971_v42 = vmax.f32 %v2969_v4, 0.0  ;;  %s8829_s30 = sld [smem:[#allocation8 + $0xd2]] }
 0x38c   : > { %v2887_v43 = vmax.f32 %v2885_v48, 0.0  ;;  %v3042_v8 = vmul.f32 %v3040_v52, %v8656_v12  ;;  %v2555_v26 = vmul.f32 %v2554_v35, %v2551_v49  ;;  %v2561_v56 = vmul.f32 %v2560_v16, %v2551_v49 }
 0x38d   : > { %v2567_v25 = vmul.f32 %v2566_v54, %v2551_v49  ;;  %v2573_v41 = vmul.f32 %v2572_v19, %v2551_v49  ;;  %v2639_v31 = vmul.f32 %v2638_v3, %v2635_v14  ;;  %v11243_v2 = vstv %s8345_s10  ;;  %s11255_s10 = sld [smem:[#allocation64_spill]] }
 0x38e   : > { %v2645_v61 = vmul.f32 %v11243_v2, %v2635_v14  ;;  %v11244_v57 = vstv %s8347_s12  ;;  %v11246_v38 = vstv %s11240_s13  ;;  %v2557_v35 = vadd.f32 %v2555_v26, %v8218_v34  ;;  %s8712_s12 = sld [smem:[#allocation8 + $0x5a]] }
 0x38f   : > { %v2651_v33 = vmul.f32 %v11244_v57, %v2635_v14  ;;  %v2657_v24 = vmul.f32 %v11246_v38, %v2635_v14  ;;  %v2563_v16 = vadd.f32 %v2561_v56, %v8220_v5  ;;  %v2569_v54 = vadd.f32 %v2567_v25, %v8222_v53  ;;  %s8838_s13 = sld [smem:[#allocation9 + $0x12]] }
 0x390   : > { %v2575_v19 = vadd.f32 %v2573_v41, %v8224_v11  ;;  %v11249_v9 = vstv %s8363_s2  ;;  %v11250_v6 = vstv %s8371_s24  ;;  %v11252_v30 = vstv %s11241_s27  ;;  %s8714_s2 = sld [smem:[#allocation8 + $0x5b]]  ;;  %s8716_s24 = sld [smem:[#allocation8 + $0x5c]] }
 0x391   : > { %v2723_v3 = vmul.f32 %v11249_v9, %v2719_v50  ;;  %v2729_v47 = vmul.f32 %v11250_v6, %v2719_v50  ;;  %v2735_v62 = vmul.f32 %v11252_v30, %v2719_v50  ;;  %v11254_v58 = vstv %s11242_s5  ;;  %11273 = sst [smem:[#allocation68_spill]] %s8829_s30  ;;  %s8843_s5 = sld [smem:[#allocation11 + $0x49]] }
 0x392   : > { %v2741_v46 = vmul.f32 %v11254_v58, %v2719_v50  ;;  %v2641_v48 = vadd.f32 %v2639_v31, %v2557_v35  ;;  %v2647_v34 = vadd.f32 %v2645_v61, %v2563_v16  ;;  %v2653_v4 = vadd.f32 %v2651_v33, %v2569_v54  ;;  %s8840_s27 = sld [smem:[#allocation11 + $0x48]] }
 0x393   : > { %v2659_v5 = vadd.f32 %v2657_v24, %v2575_v19  ;;  %v11256_v49 = vstv %s8381_s29  ;;  %v11257_v14 = vstv %s11245_s15  ;;  %v11258_v26 = vstv %s11247_s9  ;;  %s8718_s29 = sld [smem:[#allocation8 + $0x5d]]  ;;  %s8845_s15 = sld [smem:[#allocation11 + $0x4a]] }
 0x394   : > { %v2807_v53 = vmul.f32 %v11256_v49, %v2803_v18  ;;  %v2813_v11 = vmul.f32 %v11257_v14, %v2803_v18  ;;  %v2819_v56 = vmul.f32 %v11258_v26, %v2803_v18  ;;  %v11259_v25 = vstv %s11248_s20  ;;  %s8849_s9 = sld [smem:[#allocation11 + $0x4b]] }
 0x395   : > { %v2825_v41 = vmul.f32 %v11259_v25, %v2803_v18  ;;  %v2725_v2 = vadd.f32 %v2723_v3, %v2641_v48  ;;  %v2731_v57 = vadd.f32 %v2729_v47, %v2647_v34  ;;  %v2737_v38 = vadd.f32 %v2735_v62, %v2653_v4  ;;  %v3004_v34 = vpop.permute.xlu0 %3003  ;;  %11275 = sst [smem:[#allocation69_spill]] %s8838_s13  ;;  %s8851_s20 = sld [smem:[#allocation9 + $0x13]] }
 0x396   : > { %v2743_v50 = vadd.f32 %v2741_v46, %v2659_v5  ;;  %v11260_v9 = vstv %s11251_s17  ;;  %v11261_v61 = vstv %s11253_s26  ;;  %v11262_v24 = vstv %s8427_s4  ;;  %s8823_s4 = sld [smem:[#allocation8 + $0xa7]]  ;;  %s8854_s17 = sld [smem:[#allocation11 + $0x4c]] }
 0x397   : > { %v2891_v31 = vmul.f32 %v11260_v9, %v2887_v43  ;;  %v2897_v33 = vmul.f32 %v11261_v61, %v2887_v43  ;;  %v2903_v35 = vmul.f32 %v11262_v24, %v2887_v43  ;;  %v11263_v16 = vstv %s11255_s10  ;;  %v3012_v9 = vpop.permute.xlu1 %3011  ;;  %11278 = sst [smem:[#allocation70_spill]] %s8843_s5  ;;  %s8856_s26 = sld [smem:[#allocation11 + $0x4d]] }
 0x398   : > { %v2909_v54 = vmul.f32 %v11263_v16, %v2887_v43  ;;  %v2809_v18 = vadd.f32 %v2807_v53, %v2725_v2  ;;  %v2815_v19 = vadd.f32 %v2813_v11, %v2731_v57  ;;  %v2821_v3 = vadd.f32 %v2819_v56, %v2737_v38  ;;  %11276 = sst [smem:[#allocation50_spill]] %s8840_s27 }
 0x399   : > { %v2827_v6 = vadd.f32 %v2825_v41, %v2743_v50  ;;  %v11264_v47 = vstv %s8452_s0  ;;  %v11265_v43 = vstv %s8458_s28  ;;  %v11266_v58 = vstv %s8460_s8  ;;  %s8737_s0 = sld [smem:[#allocation8 + $0x5f]]  ;;  %s8790_s28 = sld [smem:[#allocation8 + $0x8b]] }
 0x39a   : > { %v8722_v30 = vmul.f32 %v11264_v47, %v2971_v42  ;;  %v8726_v62 = vmul.f32 %v11265_v43, %v2971_v42  ;;  %v8730_v46 = vmul.f32 %v11266_v58, %v2971_v42  ;;  %v3126_v48 = vmul.f32 %v3124_v13, %v8656_v12  ;;  %s8796_s8 = sld [smem:[#allocation8 + $0x8c]]  ;;  %11279 = sst [smem:[#allocation74_spill]] %s8845_s15 }
 0x39b   : > { %v8739_v4 = vadd.f32 %v2891_v31, %v2809_v18  ;;  %v8741_v5 = vadd.f32 %v2897_v33, %v2815_v19  ;;  %v8743_v49 = vadd.f32 %v2903_v35, %v2821_v3  ;;  %v8745_v53 = vadd.f32 %v2909_v54, %v2827_v6  ;;  %11282 = sst [smem:[#allocation76_spill]] %s8849_s9  ;;  %s8859_s10 = sld [smem:[#allocation11 + $0x4e]] }
 0x39c   : > { %v8749_v14 = vmul.f32 %v2992_v21, %v2971_v42  ;;  %v3044_v11 = vadd.f32 %v3042_v8, %v8386_v59  ;;  %v3210_v26 = vmul.f32 %v3208_v36, %v8656_v12  ;;  %v3294_v56 = vmul.f32 %v3292_v28, %v8656_v12  ;;  %11284 = sst [smem:[#allocation78_spill]] %s8854_s17 }
 0x39d   : > { %v3378_v25 = vmul.f32 %v3376_v7, %v8656_v12  ;;  %v3462_v41 = vmul.f32 %v3460_v0, %v8656_v12  ;;  %v3041_v2 = vmul.f32 %v3040_v52, %v3004_v34  ;;  %v3125_v21 = vmul.f32 %v3124_v13, %v3004_v34 }
 0x39e   : > { %v3128_v59 = vadd.f32 %v3126_v48, %v8389_v17  ;;  %v3212_v42 = vadd.f32 %v3210_v26, %v8392_v45  ;;  %v3209_v8 = vmul.f32 %v3208_v36, %v3004_v34  ;;  %v3293_v57 = vmul.f32 %v3292_v28, %v3004_v34 }
 0x39f   : > { %v3296_v38 = vadd.f32 %v3294_v56, %v8399_v29  ;;  %v3380_v12 = vadd.f32 %v3378_v25, %v8402_v37  ;;  %v3464_v52 = vadd.f32 %v3462_v41, %v8405_v40  ;;  %v3043_v13 = vadd.f32 %v3041_v2, %v8408_v20  ;;  %v3010_v40 = vpop.permute.xlu0 %3009  ;;  %v11267_v41 = vld [vmem:[#allocation219_spill] sm:$0xff] }
 0x3a0   : > { %v3127_v17 = vadd.f32 %v3125_v21, %v8419_v27  ;;  %v3211_v50 = vadd.f32 %v3209_v8, %v8430_v63  ;;  %v3377_v45 = vmul.f32 %v3376_v7, %v3004_v34  ;;  %v3461_v36 = vmul.f32 %v3460_v0, %v3004_v34  ;;  %v11268_v8 = vld [vmem:[#allocation220_spill] sm:$0xff] }
 0x3a1   : > { %v3046_v29 = vstv %s8712_s12  ;;  %v3130_v28 = vstv %s8714_s2  ;;  %v3214_v37 = vstv %s8716_s24  ;;  %v3298_v31 = vstv %s8718_s29  ;;  %11286 = sst [smem:[#allocation83_spill]] %s8859_s10  ;;  %s8865_s2 = sld [smem:[#allocation9 + $0x14]] }
 0x3a2   : > { %v3295_v20 = vadd.f32 %v3293_v57, %v8433_v22  ;;  %v3379_v27 = vadd.f32 %v3377_v45, %v8436_v51  ;;  %v3382_v61 = vstv %s8735_s21  ;;  %v3466_v63 = vstv %s8737_s0  ;;  %s8861_s12 = sld [smem:[#allocation11 + $0x4f]]  ;;  %s8867_s24 = sld [smem:[#allocation11 + $0x50]] }
 0x3a3   : > { %v3048_v7 = vmul.f32 %v3046_v29, %v3012_v9  ;;  %v3132_v0 = vmul.f32 %v3130_v28, %v3012_v9  ;;  %v3216_v33 = vmul.f32 %v3214_v37, %v3012_v9  ;;  %v3300_v24 = vmul.f32 %v3298_v31, %v3012_v9  ;;  %s8869_s29 = sld [smem:[#allocation11 + $0x51]]  ;;  %s8871_s21 = sld [smem:[#allocation11 + $0x52]] }
 0x3a4   : > { %v3384_v35 = vmul.f32 %v3382_v61, %v3012_v9  ;;  %v3468_v16 = vmul.f32 %v3466_v63, %v3012_v9  ;;  %v3047_v54 = vmul.f32 %v3046_v29, %v3010_v40  ;;  %v3131_v22 = vmul.f32 %v3130_v28, %v3010_v40  ;;  %v11272_v28 = vld [vmem:[#allocation226_spill] sm:$0xff]  ;;  %s8877_s0 = sld [smem:[#allocation11 + $0x53]] }
 0x3a5   : > { %v3463_v51 = vadd.f32 %v3461_v36, %v8444_v39  ;;  %v3050_v18 = vadd.f32 %v3048_v7, %v3044_v11  ;;  %v3134_v19 = vadd.f32 %v3132_v0, %v3128_v59  ;;  %v3218_v3 = vadd.f32 %v3216_v33, %v3212_v42  ;;  %v11274_v33 = vld [vmem:[#allocation231_spill] sm:$0xff] }
 0x3a6   : > { %v3302_v6 = vadd.f32 %v3300_v24, %v3296_v38  ;;  %v3386_v47 = vadd.f32 %v3384_v35, %v3380_v12  ;;  %v3470_v43 = vadd.f32 %v3468_v16, %v3464_v52  ;;  %v3049_v58 = vadd.f32 %v3047_v54, %v3043_v13  ;;  %v3016_v38 = vpop.permute.xlu1 %3015  ;;  %v11269_v12 = vld [vmem:[#allocation221_spill] sm:$0xff]  ;;  %v3014_v35 = vpop.permute.xlu0 %3013 }
 0x3a7   : > { %v3133_v48 = vadd.f32 %v3131_v22, %v3127_v17  ;;  %v3215_v34 = vmul.f32 %v3214_v37, %v3010_v40  ;;  %v3299_v26 = vmul.f32 %v3298_v31, %v3010_v40  ;;  %v3383_v56 = vmul.f32 %v3382_v61, %v3010_v40  ;;  %v11270_v17 = vld [vmem:[#allocation224_spill] sm:$0xff] }
 0x3a8   : > { %v3467_v25 = vmul.f32 %v3466_v63, %v3010_v40  ;;  %v3056_v2 = vadd.f32 %v11267_v41, %v3050_v18  ;;  %v3058_v21 = vstv %s8784_s11  ;;  %v3140_v39 = vadd.f32 %v11268_v8, %v3134_v19  ;;  %v11277_v18 = vld [vmem:[#allocation232_spill] sm:$0xff]  ;;  %11287 = sst [smem:[#allocation94_spill]] %s8861_s12 }
 0x3a9   : > { %v3217_v11 = vadd.f32 %v3215_v34, %v3211_v50  ;;  %v3301_v59 = vadd.f32 %v3299_v26, %v3295_v20  ;;  %v3385_v42 = vadd.f32 %v3383_v56, %v3379_v27  ;;  %v3142_v57 = vstv %s8790_s28  ;;  %v11271_v50 = vld [vmem:[#allocation225_spill] sm:$0xff]  ;;  %v11283_v26 = vld [vmem:[#allocation237_spill] sm:$0xff]  ;;  %v11285_v41 = vld [vmem:[#allocation238_spill] sm:$0xff]  ;;  %s8879_s11 = sld [smem:[#allocation9 + $0x15]]  ;;  %s8881_s28 = sld [smem:[#allocation11 + $0x54]] }
 0x3aa   : > { %v3224_v52 = vadd.f32 %v11269_v12, %v3218_v3  ;;  %v3226_v13 = vstv %s8796_s8  ;;  %v3308_v45 = vadd.f32 %v11270_v17, %v3302_v6  ;;  %v3310_v36 = vstv %s8798_s6  ;;  %v11280_v6 = vld [vmem:[#allocation233_spill] sm:$0xff]  ;;  %s8883_s8 = sld [smem:[#allocation11 + $0x55]]  ;;  %s8885_s6 = sld [smem:[#allocation11 + $0x56]] }
 0x3ab   : > { %v3392_v9 = vadd.f32 %v11271_v50, %v3386_v47  ;;  %v3394_v29 = vstv %s8800_s19  ;;  %v3476_v37 = vadd.f32 %v11272_v28, %v3470_v43  ;;  %v3478_v31 = vstv %s8802_s1  ;;  %v11281_v43 = vld [vmem:[#allocation236_spill] sm:$0xff]  ;;  %s8887_s19 = sld [smem:[#allocation11 + $0x57]]  ;;  %s8889_s1 = sld [smem:[#allocation8 + $0xd6]] }
 0x3ac   : > { %v3060_v40 = vmul.f32 %v3058_v21, %v3016_v38  ;;  %v3144_v20 = vmul.f32 %v3142_v57, %v3016_v38  ;;  %v3228_v27 = vmul.f32 %v3226_v13, %v3016_v38  ;;  %v3312_v61 = vmul.f32 %v3310_v36, %v3016_v38 }
 0x3ad   : > { %v3469_v63 = vadd.f32 %v3467_v25, %v3463_v51  ;;  %v3396_v7 = vmul.f32 %v3394_v29, %v3016_v38  ;;  %v3480_v0 = vmul.f32 %v3478_v31, %v3016_v38  ;;  %v3055_v24 = vadd.f32 %v11274_v33, %v3049_v58  ;;  %v3022_v38 = vpop.permute.xlu1 %3021 }
 0x3ae   : > { %v3062_v16 = vadd.f32 %v3060_v40, %v3056_v2  ;;  %v3146_v54 = vadd.f32 %v3144_v20, %v3140_v39  ;;  %v3230_v22 = vadd.f32 %v3228_v27, %v3224_v52  ;;  %v3139_v19 = vadd.f32 %v11277_v18, %v3133_v48 }
 0x3af   : > { %v3314_v3 = vadd.f32 %v3312_v61, %v3308_v45  ;;  %v3398_v51 = vadd.f32 %v3396_v7, %v3392_v9  ;;  %v3223_v47 = vadd.f32 %v11280_v6, %v3217_v11  ;;  %v3307_v58 = vadd.f32 %v11281_v43, %v3301_v59  ;;  %v3020_v45 = vpop.permute.xlu0 %3019  ;;  %11288 = sst [smem:[#allocation95_spill]] %s8881_s28  ;;  %s11390_s28 = sld [smem:[#allocation27_spill]] }
 0x3b0   : > { %v3482_v34 = vadd.f32 %v3480_v0, %v3476_v37  ;;  %v3391_v56 = vadd.f32 %v11283_v26, %v3385_v42  ;;  %v3059_v48 = vmul.f32 %v3058_v21, %v3014_v35  ;;  %v3143_v25 = vmul.f32 %v3142_v57, %v3014_v35 }
 0x3b1   : > { %v3475_v2 = vadd.f32 %v11285_v41, %v3469_v63  ;;  %v3227_v8 = vmul.f32 %v3226_v13, %v3014_v35  ;;  %v3311_v39 = vmul.f32 %v3310_v36, %v3014_v35  ;;  %v3395_v11 = vmul.f32 %v3394_v29, %v3014_v35  ;;  %11289 = sst [smem:[#allocation97_spill]] %s8887_s19 }
 0x3b2   : > { %v3061_v59 = vadd.f32 %v3059_v48, %v3055_v24  ;;  %v3479_v42 = vmul.f32 %v3478_v31, %v3014_v35  ;;  %v3064_v21 = vstv %s8808_s3  ;;  %v3148_v57 = vstv %s8810_s22  ;;  %11290 = sst [smem:[#allocation98_spill]] %s8889_s1  ;;  %s8891_s3 = sld [smem:[#allocation9 + $0x16]] }
 0x3b3   : > { %v3145_v12 = vadd.f32 %v3143_v25, %v3139_v19  ;;  %v3229_v52 = vadd.f32 %v3227_v8, %v3223_v47  ;;  %v3313_v13 = vadd.f32 %v3311_v39, %v3307_v58  ;;  %v3397_v17 = vadd.f32 %v3395_v11, %v3391_v56  ;;  %s8895_s22 = sld [smem:[#allocation11 + $0x58]]  ;;  %v11300_v39 = vld [vmem:[#allocation242_spill] sm:$0xff] }
 0x3b4   : > { %v3232_v36 = vstv %s8813_s14  ;;  %v3316_v50 = vstv %s8815_s23  ;;  %v3400_v9 = vstv %s8821_s7  ;;  %v3484_v29 = vstv %s8823_s4  ;;  %s8897_s14 = sld [smem:[#allocation11 + $0x59]]  ;;  %s8899_s23 = sld [smem:[#allocation11 + $0x5a]] }
 0x3b5   : > { %v3066_v28 = vmul.f32 %v3064_v21, %v3022_v38  ;;  %v3150_v37 = vmul.f32 %v3148_v57, %v3022_v38  ;;  %v3234_v31 = vmul.f32 %v3232_v36, %v3022_v38  ;;  %v3318_v40 = vmul.f32 %v3316_v50, %v3022_v38  ;;  %s8901_s7 = sld [smem:[#allocation11 + $0x5b]]  ;;  %s8910_s4 = sld [smem:[#allocation8 + $0xd7]] }
 0x3b6   : > { %v3402_v20 = vmul.f32 %v3400_v9, %v3022_v38  ;;  %v3486_v27 = vmul.f32 %v3484_v29, %v3022_v38  ;;  %v3065_v61 = vmul.f32 %v3064_v21, %v3020_v45  ;;  %v3149_v63 = vmul.f32 %v3148_v57, %v3020_v45  ;;  %p11393_p3 = scmp.ne.s32.totalorder %s11390_s28, 0 }
 0x3b7   : > { %v3481_v7 = vadd.f32 %v3479_v42, %v3475_v2  ;;  %v3068_v0 = vadd.f32 %v3066_v28, %v3062_v16  ;;  %v3152_v33 = vadd.f32 %v3150_v37, %v3146_v54  ;;  %v3236_v24 = vadd.f32 %v3234_v31, %v3230_v22  ;;  %v11310_v37 = vld [vmem:[#allocation244_spill] sm:$0xff] }
 0x3b8   : > { %11291 = sst [smem:[#allocation100_spill]] %s8891_s3  ;;  %v3320_v35 = vadd.f32 %v3318_v40, %v3314_v3  ;;  %v3404_v18 = vadd.f32 %v3402_v20, %v3398_v51  ;;  %v3488_v19 = vadd.f32 %v3486_v27, %v3482_v34  ;;  %v8893_v6 = vadd.f32 %v3065_v61, %v3061_v59  ;;  %v11295_v51 = vld [vmem:[#allocation239_spill] sm:$0xff] }
 0x3b9   : > { %v3233_v47 = vmul.f32 %v3232_v36, %v3020_v45  ;;  %v3317_v16 = vmul.f32 %v3316_v50, %v3020_v45  ;;  %v3401_v54 = vmul.f32 %v3400_v9, %v3020_v45  ;;  %v3485_v22 = vmul.f32 %v3484_v29, %v3020_v45 }
 0x3ba   : > { %11292 = sst [smem:[#allocation84_spill]] %s8897_s14  ;;  %v8903_v3 = vadd.f32 %v3149_v63, %v3145_v12  ;;  %v8906_v43 = vadd.f32 %v11295_v51, %v3068_v0  ;;  %v3076_v58 = vstv %s8829_s30  ;;  %v3082_v34 = vstv %s8838_s13  ;;  %s8912_s14 = sld [smem:[#allocation9 + $0x17]]  ;;  %v11312_v0 = vld [vmem:[#allocation245_spill] sm:$0xff]  ;;  %v3026_v63 = vpop.permute.xlu1 %3025 }
 0x3bb   : > { %11293 = sst [smem:[#allocation114_spill]] %s8899_s23  ;;  %v8914_v26 = vadd.f32 %v3233_v47, %v3229_v52  ;;  %v8916_v56 = vadd.f32 %v3317_v16, %v3313_v13  ;;  %v8918_v48 = vadd.f32 %v3401_v54, %v3397_v17  ;;  %v3088_v25 = vstv %s8840_s27  ;;  %s8930_s30 = sld [smem:[#allocation11 + $0x5e]]  ;;  %v11305_v13 = vld [vmem:[#allocation243_spill] sm:$0xff] }
 0x3bc   : > { %11294 = sst [smem:[#allocation121_spill]] %s8901_s7  ;;  %s8921_s7 = sld [smem:[#allocation11 + $0x5c]]  ;;  %v8925_v41 = vadd.f32 %v3485_v22, %v3481_v7  ;;  %v3094_v2 = vstv %s8843_s5  ;;  %v3100_v8 = vstv %s8845_s15  ;;  %v3158_v11 = vadd.f32 %v11300_v39, %v3152_v33  ;;  %v11313_v22 = vld [vmem:[#allocation248_spill] sm:$0xff] }
 0x3bd   : > { %11296 = sst [smem:[#allocation129_spill]] %s8910_s4  ;;  %s8923_s13 = sld [smem:[#allocation11 + $0x5d]]  ;;  %v3106_v59 = vstv %s8849_s9  ;;  %v9765_v42 = vstv %s8831_s16  ;;  %v3166_v21 = vstv %s8851_s20  ;;  %v3172_v57 = vstv %s8854_s17 }
 0x3be   : > { %s8938_s27 = sld [smem:[#allocation12]]  ;;  %s8940_s15 = sld [smem:[#allocation12 + $0x1]]  ;;  %v3178_v38 = vstv %s8856_s26  ;;  %v3184_v12 = vstv %s8859_s10  ;;  %v3190_v52 = vstv %s8861_s12  ;;  %v3242_v17 = vadd.f32 %v11305_v13, %v3236_v24 }
 0x3bf   : > { %s8946_s9 = sld [smem:[#allocation12 + $0x2]]  ;;  %s8948_s5 = sld [smem:[#allocation12 + $0x3]]  ;;  %v9762_v45 = vstv %s8833_s18  ;;  %v3250_v36 = vstv %s8865_s2  ;;  %v9781_v50 = vstv %s8867_s24  ;;  %v9780_v9 = vstv %s8869_s29 }
 0x3c0   : > { %11297 = sst [smem:[#allocation131_spill]] %s8912_s14  ;;  %s8932_s14 = sld [smem:[#allocation11 + $0x5f]]  ;;  %v9779_v29 = vstv %s8871_s21  ;;  %v9782_v28 = vstv %s8877_s0  ;;  %v3326_v31 = vadd.f32 %v11310_v37, %v3320_v35  ;;  %v9761_v40 = vstv %s8835_s25 }
 0x3c1   : > { %11301 = sst [smem:[#allocation145_spill]] %s8930_s30  ;;  %s11308_s17 = sld [smem:[#allocation84_spill]]  ;;  %v3334_v20 = vstv %s8879_s11  ;;  %v3410_v33 = vadd.f32 %v11312_v0, %v3404_v18  ;;  %v9763_v24 = vstv %s8889_s1  ;;  %v9777_v47 = vstv %s8891_s3 }
 0x3c2   : > { %11298 = sst [smem:[#allocation132_spill]] %s8921_s7  ;;  %s11309_s10 = sld [smem:[#allocation121_spill]]  ;;  %v3494_v51 = vadd.f32 %v11313_v22, %v3488_v19  ;;  %v9778_v13 = vstv %s8910_s4  ;;  %v2978_v19 = vadd.f32 %v8603_v23, %v8615_v44  ;;  %v2984_v22 = vadd.f32 %v8607_v1, %v8617_v10  ;;  %v11316_v10 = vld [vmem:[#allocation251_spill] sm:$0xff] }
 0x3c3   : > { %11299 = sst [smem:[#allocation144_spill]] %s8923_s13  ;;  %s11311_s12 = sld [smem:[#allocation131_spill]]  ;;  %v2990_v7 = vadd.f32 %v8611_v32, %v8619_v15  ;;  %v2996_v18 = vadd.f32 %v8633_v55, %v8621_v60  ;;  %v3078_v0 = vmul.f32 %v3076_v58, %v3026_v63  ;;  %v3162_v27 = vmul.f32 %v9765_v42, %v3026_v63  ;;  %v11317_v60 = vld [vmem:[#allocation254_spill] sm:$0xff] }
 0x3c4   : > { %11303 = sst [smem:[#allocation148_spill]] %s8938_s27  ;;  %v3246_v54 = vmul.f32 %v9762_v45, %v3026_v63  ;;  %v3330_v23 = vmul.f32 %v9761_v40, %v3026_v63  ;;  %v3414_v1 = vmul.f32 %v9763_v24, %v3026_v63  ;;  %v3498_v32 = vmul.f32 %v9778_v13, %v3026_v63  ;;  %s11337_s3 = sld [smem:[#allocation132_spill]] }
 0x3c5   : > { %11304 = sst [smem:[#allocation152_spill]] %s8940_s15  ;;  %v3080_v44 = vadd.f32 %v3078_v0, %v8906_v43  ;;  %v9004_v15 = vadd.f32 %v11316_v10, %v8893_v6  ;;  %v9008_v55 = vadd.f32 %v11317_v60, %v8903_v3  ;;  %v3164_v16 = vadd.f32 %v3162_v27, %v3158_v11  ;;  %v11319_v43 = vld [vmem:[#allocation255_spill] sm:$0xff]  ;;  %v11321_v6 = vld [vmem:[#allocation256_spill] sm:$0xff]  ;;  %s11365_s15 = sld [smem:[#allocation100_spill]] }
 0x3c6   : > { %11302 = sst [smem:[#allocation147_spill]] %s8932_s14  ;;  %v3526_v61 = vstv %s8932_s14  ;;  %v3248_v35 = vadd.f32 %v3246_v54, %v3242_v17  ;;  %v3332_v40 = vadd.f32 %v3330_v23, %v3326_v31  ;;  %v3416_v45 = vadd.f32 %v3414_v1, %v3410_v33  ;;  %v11327_v33 = vld [vmem:[#allocation257_spill] sm:$0xff]  ;;  %v11328_v54 = vld [vmem:[#allocation260_spill] sm:$0xff]  ;;  %s11362_s27 = sld [smem:[#allocation97_spill]] }
 0x3c7   : > { %11306 = sst [smem:[#allocation153_spill]] %s8946_s9  ;;  %v3084_v24 = vadd.f32 %v3082_v34, %v3080_v44  ;;  %v3500_v42 = vadd.f32 %v3498_v32, %v3494_v51  ;;  %v9014_v63 = vadd.f32 %v11319_v43, %v8914_v26  ;;  %v9018_v0 = vadd.f32 %v11321_v6, %v8916_v56  ;;  %s11366_s20 = sld [smem:[#allocation131_spill]] }
 0x3c8   : > { %11307 = sst [smem:[#allocation36_spill]] %s8948_s5  ;;  %v3442_v39 = vstv %s11309_s10  ;;  %v3168_v3 = vadd.f32 %v3166_v21, %v3164_v16  ;;  %v3252_v11 = vadd.f32 %v3250_v36, %v3248_v35  ;;  %v3336_v17 = vadd.f32 %v3334_v20, %v3332_v40  ;;  %s11339_s10 = sld [smem:[#allocation29_spill]] }
 0x3c9   : > { %v9776_v37 = vstv %s11311_s12  ;;  %v3420_v31 = vadd.f32 %v9777_v47, %v3416_v45  ;;  %v3086_v26 = vmax.f32 %v3084_v24, 0.0  ;;  %v9032_v56 = vadd.f32 %v11327_v33, %v8918_v48  ;;  %s11329_s12 = sld [smem:[#allocation95_spill]]  ;;  %s11348_s14 = sld [smem:[#allocation36_spill]] }
 0x3ca   : > { %v3504_v27 = vadd.f32 %v9776_v37, %v3500_v42  ;;  %v9036_v16 = vadd.f32 %v11328_v54, %v8925_v41  ;;  %v3170_v51 = vmax.f32 %v3168_v3, 0.0  ;;  %v3254_v35 = vmax.f32 %v3252_v11, 0.0  ;;  %s11356_s5 = sld [smem:[#allocation98_spill]]  ;;  %s11369_s26 = sld [smem:[#allocation114_spill]] }
 0x3cb   : > { %v3338_v40 = vmax.f32 %v3336_v17, 0.0  ;;  %v3422_v23 = vmax.f32 %v3420_v31, 0.0  ;;  %v3090_v45 = vmul.f32 %v3088_v25, %v3086_v26  ;;  %v3096_v42 = vmul.f32 %v3094_v2, %v3086_v26  ;;  %s11357_s9 = sld [smem:[#allocation129_spill]] }
 0x3cc   : > { %v3102_v24 = vmul.f32 %v3100_v8, %v3086_v26  ;;  %v3108_v48 = vmul.f32 %v3106_v59, %v3086_v26  ;;  %v3174_v1 = vmul.f32 %v3172_v57, %v3170_v51  ;;  %v3180_v41 = vmul.f32 %v3178_v38, %v3170_v51 }
 0x3cd   : > { %v3186_v44 = vmul.f32 %v3184_v12, %v3170_v51  ;;  %v3192_v32 = vmul.f32 %v3190_v52, %v3170_v51  ;;  %v3092_v10 = vadd.f32 %v3090_v45, %v2978_v19  ;;  %v3098_v60 = vadd.f32 %v3096_v42, %v2984_v22 }
 0x3ce   : > { %v3104_v43 = vadd.f32 %v3102_v24, %v2990_v7  ;;  %v3110_v6 = vadd.f32 %v3108_v48, %v2996_v18  ;;  %v3258_v3 = vmul.f32 %v9781_v50, %v3254_v35  ;;  %v3264_v11 = vmul.f32 %v9780_v9, %v3254_v35 }
 0x3cf   : > { %v3270_v17 = vmul.f32 %v9779_v29, %v3254_v35  ;;  %v3276_v31 = vmul.f32 %v9782_v28, %v3254_v35  ;;  %v3176_v26 = vadd.f32 %v3174_v1, %v3092_v10  ;;  %v3182_v33 = vadd.f32 %v3180_v41, %v3098_v60 }
 0x3d0   : > { %v3188_v54 = vadd.f32 %v3186_v44, %v3104_v43  ;;  %v3194_v51 = vadd.f32 %v3192_v32, %v3110_v6  ;;  %v11330_v19 = vstv %s11329_s12  ;;  %v11331_v7 = vstv %s8883_s8  ;;  %v9078_v6 = vpop.permute.xlu0 %3023 }
 0x3d1   : > { %v3342_v22 = vmul.f32 %v11330_v19, %v3338_v40  ;;  %v3348_v18 = vmul.f32 %v11331_v7, %v3338_v40  ;;  %v11332_v45 = vstv %s8885_s6  ;;  %v11333_v24 = vstv %s8887_s19  ;;  %s11338_s19 = sld [smem:[#allocation21_spill]]  ;;  %v4236_v19 = vld [vmem:[%s11339_s10 + $0x21] sm:$0xff] }
 0x3d2   : > { %v3354_v42 = vmul.f32 %v11332_v45, %v3338_v40  ;;  %v3360_v48 = vmul.f32 %v11333_v24, %v3338_v40  ;;  %v3260_v37 = vadd.f32 %v3258_v3, %v3176_v26  ;;  %v3266_v47 = vadd.f32 %v3264_v11, %v3182_v33  ;;  %v3536_v33 = vld [vmem:[%s11339_s10 + $0x9] sm:$0xff] }
 0x3d3   : > { %v3272_v13 = vadd.f32 %v3270_v17, %v3188_v54  ;;  %v3278_v29 = vadd.f32 %v3276_v31, %v3194_v51  ;;  %v11334_v9 = vstv %s8895_s22  ;;  %v11335_v35 = vstv %s11308_s17 }
 0x3d4   : > { %v3426_v50 = vmul.f32 %v11334_v9, %v3422_v23  ;;  %v3432_v28 = vmul.f32 %v11335_v35, %v3422_v23  ;;  %v11336_v1 = vstv %s8899_s23  ;;  %v3444_v44 = vmul.f32 %v3442_v39, %v3422_v23 }
 0x3d5   : > { %v3438_v41 = vmul.f32 %v11336_v1, %v3422_v23  ;;  %v3344_v32 = vadd.f32 %v3342_v22, %v3260_v37  ;;  %v3350_v10 = vadd.f32 %v3348_v18, %v3266_v47  ;;  %v3356_v60 = vadd.f32 %v3354_v42, %v3272_v13  ;;  %v4246_v22 = vld [vmem:[%s11339_s10 + $0x51] sm:$0xff] }
 0x3d6   : > { %v3362_v40 = vadd.f32 %v3360_v48, %v3278_v29  ;;  %v3506_v43 = vmax.f32 %v3504_v27, 0.0  ;;  %v9082_v9 = vadd.f32 %v8722_v30, %v8739_v4  ;;  %v9086_v23 = vadd.f32 %v8726_v62, %v8741_v5 }
 0x3d7   : > { %v9090_v47 = vadd.f32 %v8730_v46, %v8743_v49  ;;  %v3428_v29 = vadd.f32 %v3426_v50, %v3344_v32  ;;  %v3434_v13 = vadd.f32 %v3432_v28, %v3350_v10  ;;  %v3440_v37 = vadd.f32 %v3438_v41, %v3356_v60 }
 0x3d8   : > { %v3446_v27 = vadd.f32 %v3444_v44, %v3362_v40  ;;  %v11340_v3 = vstv %s11337_s3  ;;  %v11341_v4 = vstv %s8923_s13  ;;  %v11342_v17 = vstv %s8930_s30  ;;  %s11344_s3 = sld [smem:[#allocation148_spill]]  ;;  %s11346_s13 = sld [smem:[#allocation152_spill]] }
 0x3d9   : > { %v3510_v30 = vmul.f32 %v11340_v3, %v3506_v43  ;;  %v3516_v11 = vmul.f32 %v11341_v4, %v3506_v43  ;;  %v3522_v62 = vmul.f32 %v11342_v17, %v3506_v43  ;;  %v3528_v5 = vmul.f32 %v3526_v61, %v3506_v43  ;;  %s11347_s30 = sld [smem:[#allocation153_spill]] }
 0x3da   : > { %v2995_v46 = vadd.f32 %v8749_v14, %v8745_v53  ;;  %v3077_v49 = vmul.f32 %v3076_v58, %v9078_v6  ;;  %v11343_v50 = vstv %s8831_s16  ;;  %v11345_v31 = vstv %s8833_s18  ;;  %v4241_v58 = vld [vmem:[%s11339_s10 + $0x39] sm:$0xff]  ;;  %s11351_s16 = sand.u32 1, %s11338_s19  }
 0x3db   : > { %v3161_v28 = vmul.f32 %v11343_v50, %v9078_v6  ;;  %v3245_v26 = vmul.f32 %v11345_v31, %v9078_v6  ;;  %v3512_v54 = vadd.f32 %v3510_v30, %v3428_v29  ;;  %v3518_v51 = vadd.f32 %v3516_v11, %v3434_v13  ;;  %s3735_s18 = sshll.u32 %s11351_s16, 6 }
 0x3dc   : > { %v3524_v53 = vadd.f32 %v3522_v62, %v3440_v37  ;;  %v3530_v14 = vadd.f32 %v3528_v5, %v3446_v27  ;;  %v3079_v7 = vadd.f32 %v3077_v49, %v9004_v15  ;;  %v11350_v42 = vstv %s8835_s25  ;;  %s9149_s25 = scalar_lea.vmem [#allocation14], %s3735_s18 }
 0x3dd   : > { %v3163_v18 = vadd.f32 %v3161_v28, %v9008_v55  ;;  %v3247_v45 = vadd.f32 %v3245_v26, %v9014_v63  ;;  %v3329_v24 = vmul.f32 %v11350_v42, %v9078_v6  ;;  %v11355_v10 = vstv %s11348_s14  ;;  %s3597_s11 = sshll.u32 %s9149_s25, 4  ;;  %s9233_s11 = int_to_ptr.vmem [resolvable:$true] %s3597_s11 }
 0x3de   : > { %v11352_v48 = vstv %s11344_s3  ;;  %v11353_v1 = vstv %s11346_s13  ;;  %v3573_v60 = vadd.f32 %v11355_v10, %v3530_v14  ;;  %v3083_v15 = vadd.f32 %v3082_v34, %v3079_v7 }
 0x3df   : > { %v3534_v35 = vadd.f32 %v11352_v48, %v3512_v54  ;;  %v3547_v41 = vadd.f32 %v11353_v1, %v3518_v51  ;;  %v11354_v44 = vstv %s11347_s30  ;;  %v3167_v55 = vadd.f32 %v3166_v21, %v3163_v18 }
 0x3e0   : > { %v3560_v32 = vadd.f32 %v11354_v44, %v3524_v53  ;;  %v3251_v63 = vadd.f32 %v3250_v36, %v3247_v45  ;;  %v3331_v40 = vadd.f32 %v3329_v24, %v9018_v0  ;;  %v3577_v37 = vadd.f32 %v4246_v22, %v3573_v60 }
 0x3e1   : > { %v3538_v43 = vadd.f32 %v3536_v33, %v3534_v35  ;;  %v3551_v29 = vadd.f32 %v4236_v19, %v3547_v41  ;;  %v3085_v27 = vmax.f32 %v3083_v15, 0.0  ;;  %v3169_v3 = vmax.f32 %v3167_v55, 0.0 }
 0x3e2   : > { %v3564_v13 = vadd.f32 %v4241_v58, %v3560_v32  ;;  %v3253_v30 = vmax.f32 %v3251_v63, 0.0  ;;  %v3335_v34 = vadd.f32 %v3334_v20, %v3331_v40  ;;  %v3579_v11 = vmax.f32 %v3577_v37, 0.0 }
 0x3e3   : > { %v3540_v21 = vmax.f32 %v3538_v43, 0.0  ;;  %v3553_v4 = vmax.f32 %v3551_v29, 0.0  ;;  %v3089_v0 = vmul.f32 %v3088_v25, %v3085_v27  ;;  %v3095_v17 = vmul.f32 %v3094_v2, %v3085_v27 }
 0x3e4   : > { %v3566_v36 = vmax.f32 %v3564_v13, 0.0  ;;  %v3101_v62 = vmul.f32 %v3100_v8, %v3085_v27  ;;  %v3107_v5 = vmul.f32 %v3106_v59, %v3085_v27  ;;  %4248 = vst.msk [vmem:[%s9149_s25 + $0x38] sm:$0xff] %vm3541_vm1, %v3579_v11  ;;  %v3173_v25 = vmul.f32 %v3172_v57, %v3169_v3 }
 0x3e5   : > { %3543 = vst.msk [vmem:[%s9149_s25 + $0x8] sm:$0xff] %vm3541_vm1, %v3540_v21  ;;  %4238 = vst.msk [vmem:[%s9149_s25 + $0x18] sm:$0xff] %vm3541_vm1, %v3553_v4  ;;  %v3179_v2 = vmul.f32 %v3178_v38, %v3169_v3  ;;  %v3185_v8 = vmul.f32 %v3184_v12, %v3169_v3  ;;  %v3191_v59 = vmul.f32 %v3190_v52, %v3169_v3  ;;  %v11358_v31 = vstv %s8867_s24  ;;  %s11373_s24 = sld [smem:[#allocation132_spill]] }
 0x3e6   : > { %4243 = vst.msk [vmem:[%s9149_s25 + $0x28] sm:$0xff] %vm3541_vm1, %v3566_v36  ;;  %v3091_v20 = vadd.f32 %v3089_v0, %v9082_v9  ;;  %v3097_v49 = vadd.f32 %v3095_v17, %v9086_v23  ;;  %v3103_v50 = vadd.f32 %v3101_v62, %v9090_v47  ;;  %v3109_v28 = vadd.f32 %v3107_v5, %v2995_v46 }
 0x3e7   : > { %v3257_v26 = vmul.f32 %v11358_v31, %v3253_v30  ;;  %v11359_v33 = vstv %s8869_s29  ;;  %v11360_v38 = vstv %s8871_s21  ;;  %v11361_v12 = vstv %s8877_s0  ;;  %s11374_s29 = sld [smem:[#allocation144_spill]]  ;;  %s11375_s21 = sld [smem:[#allocation145_spill]] }
 0x3e8   : > { %v3263_v57 = vmul.f32 %v11359_v33, %v3253_v30  ;;  %v3269_v54 = vmul.f32 %v11360_v38, %v3253_v30  ;;  %v3275_v51 = vmul.f32 %v11361_v12, %v3253_v30  ;;  %v3175_v52 = vadd.f32 %v3173_v25, %v3091_v20  ;;  %v4240_v33 = vld [vmem:[%s11339_s10 + $0x31] sm:$0xff] }
 0x3e9   : > { %v3181_v53 = vadd.f32 %v3179_v2, %v3097_v49  ;;  %v3187_v9 = vadd.f32 %v3185_v8, %v3103_v50  ;;  %v3193_v14 = vadd.f32 %v3191_v59, %v3109_v28  ;;  %v3337_v23 = vmax.f32 %v3335_v34, 0.0 }
 0x3ea   : > { %v11363_v47 = vstv %s11356_s5  ;;  %v11364_v19 = vstv %s11357_s9  ;;  %v3259_v22 = vadd.f32 %v3257_v26, %v3175_v52  ;;  %v11367_v42 = vstv %s11329_s12  ;;  %v4235_v26 = vld [vmem:[%s11339_s10 + $0x19] sm:$0xff] }
 0x3eb   : > { %v3413_v46 = vmul.f32 %v11363_v47, %v9078_v6  ;;  %v3497_v58 = vmul.f32 %v11364_v19, %v9078_v6  ;;  %v3265_v7 = vadd.f32 %v3263_v57, %v3181_v53  ;;  %v3271_v18 = vadd.f32 %v3269_v54, %v3187_v9  ;;  %v4245_v57 = vld [vmem:[%s11339_s10 + $0x49] sm:$0xff] }
 0x3ec   : > { %v3277_v45 = vadd.f32 %v3275_v51, %v3193_v14  ;;  %v3341_v24 = vmul.f32 %v11367_v42, %v3337_v23  ;;  %v11368_v48 = vstv %s8883_s8  ;;  %v11370_v1 = vstv %s8885_s6 }
 0x3ed   : > { %v3347_v35 = vmul.f32 %v11368_v48, %v3337_v23  ;;  %v3353_v41 = vmul.f32 %v11370_v1, %v3337_v23  ;;  %v11372_v44 = vstv %s11362_s27  ;;  %v3415_v6 = vadd.f32 %v3413_v46, %v9032_v56 }
 0x3ee   : > { %v3359_v32 = vmul.f32 %v11372_v44, %v3337_v23  ;;  %v3499_v10 = vadd.f32 %v3497_v58, %v9036_v16  ;;  %v3343_v60 = vadd.f32 %v3341_v24, %v3259_v22  ;;  %v11377_v40 = vstv %s11365_s15 }
 0x3ef   : > { %v3349_v15 = vadd.f32 %v3347_v35, %v3265_v7  ;;  %v3355_v55 = vadd.f32 %v3353_v41, %v3271_v18  ;;  %v3419_v43 = vadd.f32 %v11377_v40, %v3415_v6  ;;  %v11378_v29 = vstv %s11366_s20 }
 0x3f0   : > { %v3361_v63 = vadd.f32 %v3359_v32, %v3277_v45  ;;  %v3503_v13 = vadd.f32 %v11378_v29, %v3499_v10  ;;  %v11379_v3 = vstv %s8895_s22  ;;  %v11380_v34 = vstv %s11308_s17  ;;  %s11385_s17 = sld [smem:[#allocation24_spill]]  ;;  %s4542_s22 = smov [#allocation14]  }
 0x3f1   : > { %v3421_v37 = vmax.f32 %v3419_v43, 0.0  ;;  %v11381_v56 = vstv %s11369_s26  ;;  %v11382_v36 = vstv %s11373_s24  ;;  %v11383_v0 = vstv %s11374_s29 }
 0x3f2   : > { %v3505_v27 = vmax.f32 %v3503_v13, 0.0  ;;  %v11384_v62 = vstv %s11375_s21  ;;  %v11386_v38 = vstv %s11344_s3  ;;  %v11387_v12 = vstv %s11346_s13  ;;  %s11391_s13 = sld [smem:[#allocation279_spill]]  ;;  %s4453_s3 = scalar_lea.vmem %s9233_s11, 1024 }
 0x3f3   : > { %v3425_v30 = vmul.f32 %v11379_v3, %v3421_v37  ;;  %v3431_v21 = vmul.f32 %v11380_v34, %v3421_v37  ;;  %v3437_v4 = vmul.f32 %v11381_v56, %v3421_v37  ;;  %v3443_v16 = vmul.f32 %v3442_v39, %v3421_v37  ;;  %v3535_v39 = vld [vmem:[%s11339_s10 + $0x1] sm:$0xff]  ;;  %p4454_p2 = scmp.ne.s32.totalorder %s9233_s11, %s4453_s3 }
 0x3f4   : > { %v3509_v11 = vmul.f32 %v11382_v36, %v3505_v27  ;;  %v3515_v17 = vmul.f32 %v11383_v0, %v3505_v27  ;;  %v3521_v5 = vmul.f32 %v11384_v62, %v3505_v27  ;;  %v3527_v25 = vmul.f32 %v3526_v61, %v3505_v27 }
 0x3f5   : > { %v3427_v2 = vadd.f32 %v3425_v30, %v3343_v60  ;;  %v3433_v8 = vadd.f32 %v3431_v21, %v3349_v15  ;;  %v3439_v59 = vadd.f32 %v3437_v4, %v3355_v55  ;;  %v3445_v20 = vadd.f32 %v3443_v16, %v3361_v63  ;;  %p4455_p4 = pnand %p4454_p2, %p11393_p3 }
 0x3f6   : > { %v11388_v51 = vstv %s11347_s30  ;;  %v11389_v53 = vstv %s11348_s14  ;;  %s4254_s12 = sshll.u32 %s11385_s17, 10  ;;  %s11392_s30 = smov %s11351_s16 }
 0x3f7   : > { %v3511_v49 = vadd.f32 %v3509_v11, %v3427_v2  ;;  %v3517_v50 = vadd.f32 %v3515_v17, %v3433_v8  ;;  %v3523_v28 = vadd.f32 %v3521_v5, %v3439_v59  ;;  %v3529_v31 = vadd.f32 %v3527_v25, %v3445_v20  ;;  %s9245_s1 = scalar_lea.sflag [#allocation4], %s11392_s30  ;;  %p4456_p9 = pneg %p4455_p4 }
 0x3f8   : > { %s9231_s6 = scalar_lea.hbm %s11391_s13, %s4254_s12  ;;  %s4457_s14 = sshll.u32 %s4542_s22, 4  ;;  %s4458_s14 = int_to_ptr.vmem [resolvable:$false] %s4457_s14 }
 0x3f9   : > { %v3533_v54 = vadd.f32 %v11386_v38, %v3511_v49  ;;  %v3546_v61 = vadd.f32 %v11387_v12, %v3517_v50  ;;  %v3559_v52 = vadd.f32 %v11388_v51, %v3523_v28  ;;  %v3572_v9 = vadd.f32 %v11389_v53, %v3529_v31  ;;  %s4459_s23 = scalar_lea.vmem %s4458_s14, 2048  ;;  %p4460_p7 = scmp.lt.s32.totalorder %s9233_s11, %s4458_s14 }
 0x3fa   : > { %p4461_p8 = scmp.lt.s32.totalorder %s4459_s23, %s4453_s3 }
 0x3fb   : > { %v3537_v14 = vadd.f32 %v3535_v39, %v3533_v54  ;;  %v3550_v23 = vadd.f32 %v4235_v26, %v3546_v61  ;;  %v3563_v47 = vadd.f32 %v4240_v33, %v3559_v52  ;;  %v3576_v46 = vadd.f32 %v4245_v57, %v3572_v9 }
 0x3fc   : > { %p4462_p5 = por %p4461_p8, %p4460_p7 }
 0x3fd   : > { %v3539_v19 = vmax.f32 %v3537_v14, 0.0  ;;  %v3552_v58 = vmax.f32 %v3550_v23, 0.0  ;;  %v3565_v22 = vmax.f32 %v3563_v47, 0.0  ;;  %v3578_v7 = vmax.f32 %v3576_v46, 0.0 }
 0x3fe   : > { %p4463_p0 = pnand %p4462_p5, %p4456_p9 }
 0x3ff   : > { %3542 = vst.msk [vmem:[%s9149_s25] sm:$0xff] %vm3541_vm1, %v3539_v19  ;;  %4237 = vst.msk [vmem:[%s9149_s25 + $0x10] sm:$0xff] %vm3541_vm1, %v3552_v58 }
 0x400   : > { %4242 = vst.msk [vmem:[%s9149_s25 + $0x20] sm:$0xff] %vm3541_vm1, %v3565_v22  ;;  %4247 = vst.msk [vmem:[%s9149_s25 + $0x30] sm:$0xff] %vm3541_vm1, %v3578_v7 }
 0x401   : > { %4466 = shalt.err (!%p4463_p0)
}
 0x402   : > { %s4467_s19 = scalar_lea.hbm %s9231_s6, 1024  ;;  %s4471_s16 = scalar_lea.hbm %s11391_s13, 2048 }
 0x403   : > { %p4468_p6 = scmp.ne.s32.totalorder %s9231_s6, %s4467_s19  ;;  %p4472_p11 = scmp.lt.u32.totalorder %s9231_s6, %s11391_s13 }
 0x404   : > { %p4473_p13 = scmp.lt.u32.totalorder %s4471_s16, %s4467_s19  ;;  %p4475_p2 = scmp.lt.u32.totalorder %s4467_s19, %s9231_s6 }
 0x405   : > { %p4469_p10 = pnand %p4468_p6, %p11393_p3 }
 0x406   : > { %p4474_p1 = por %p4473_p13, %p4472_p11 }
 0x407   : > { %p4470_p12 = pneg %p4469_p10 }
 0x408   : > { %p4476_p4 = por %p4475_p2, %p4474_p1 }
 0x40a   : > { %p4477_p9 = pnand %p4476_p4, %p4470_p12 }
 0x40c   : > { %4480 = shalt.err (!%p4477_p9)
}
 0x40d   : > { %s4543_s5 = smov 128   ;;  %s4544_s9 = smov 8  }
 0x40e   : > { %4280 = dma.vmem_to_hbm [thread:$0]  (%p11393_p3), %s9233_s11, 1024, %s9231_s6, %s9245_s1, %s4543_s5, %s4543_s5, %s4544_s9  }
 0x40f PF: > { %s11394_s27 = sld [smem:[#allocation23_spill]]  ;;  %s11395_s15 = sld [smem:[#allocation20_spill]] }
 0x410   : > { %s11396_s20 = sld [smem:[#allocation28_spill]] }
 0x415   : > { %p4317_p7 = scmp.ge.s32.totalorder %s11394_s27, 2  ;;  %s3612_s26 = sand.u32 1, %s11395_s15  }
 0x416   : > { %p11397_p8 = scmp.ne.s32.totalorder %s11396_s20, 0  ;;  %s3613_s2 = scalar_lea.sflag [#allocation4], %s3612_s26 }
 0x418   : > { %p4302_p5 = pnand %p4317_p7, %p11397_p8 }
 0x41a   : > { %4514 = dma.done.wait (!%p4302_p5), %s3613_s2, 1024  }
 0x41b   : > { %4516 = vsyncadd (!%p4302_p5), %s3613_s2, 4294966272  ;;  %s11398_s27 = sld [smem:[#allocation25_spill]]  ;;  %s11399_s24 = sld [smem:[#allocation21_spill]] }
 0x41c   : > { %s11400_s25 = sld [smem:[#allocation22_spill]]  ;;  %s11401_s26 = sld [smem:[#allocation26_spill]] }
 0x421   : > { %p21_p0 = scmp.ge.s32.totalorder %s11398_s27, 4  }
 0x423   :  { %23 = sbr.rel (!%p21_p0) target bundleno = 16 (0x10), region = 117 }
 0x42a   :  { %3618 = vsyncpa [#allocation4], 1 }
 0x42b   :  { %3620 = vsyncpa [#allocation4 + $0x1], 1 }
 0x42c   :  { %3621 = vsyncpa [#allocation5], 1 }
 0x42d   :  { %3623 = vsyncpa [#allocation5 + $0x1], 1 }
 0x42e   :  { %3624 = vsyncpa [#allocation7], 1 }
 0x42f   :  { %3625 = vsyncpa [#allocation10], 1 }
 0x430   :  { %3626 = vsyncpa [#allocation13], 1 }

</bundles_post_ra>
